<compile_context>
chip_gen: v7x
topology: tpu7x:2x2x1
jax: 0.10.0
libtpu: 0.0.40
codegen_flags: <defaults>
</compile_context>

<pallas_src>
import functools

import jax
import jax.numpy as jnp
from jax.experimental import pallas as pl
from jax.experimental.pallas import tpu as pltpu


def _round_up(n, m):
    return (n + m - 1) // m * m


def _vmem_capacity_bytes():
    try:
        cap = int(getattr(pltpu.get_tpu_info(), "vmem_capacity_bytes", 0))
        if cap > 0:
            return cap
    except Exception:
        pass
    return 64 << 20  # conservative fallback: v7x per-TensorCore VMEM


def _wire_kernel(x_ref, w_ref, b_ref, o_ref, *, out_p):
    """Fused WIRE forward on one (bm, in_size) row tile.

    y = x @ [omega_0*Wf | scale_0*Ws] + [omega_0*bf | scale_0*bs]   (f32 acc)
    o = cos(y[:, :out_p]) * exp(-(y[:, out_p:])^2)
    """
    x = x_ref[...].astype(w_ref.dtype)                    # cast (if any) in-kernel
    y = jnp.dot(x, w_ref[...],
                preferred_element_type=jnp.float32) + b_ref[...]   # (bm, 2*out_p) f32
    omega = y[:, :out_p]            # omega_0 already folded into Wf / bf
    s = y[:, out_p:]                # scale_0 already folded into Ws / bs
    g = jnp.cos(omega) * jnp.exp(-(s * s))
    n = o_ref.shape[-1]             # static: out_size (masked store) or out_p
    o_ref[...] = (g if n == out_p else g[:, :n]).astype(o_ref.dtype)


def make_wire(w_freqs, b_freqs, w_scale, b_scale, *,
              omega_0=10.0, scale_0=10.0,
              compute_dtype=jnp.float32, out_dtype=None,
              block_m=4096, lane_dense_output=False):
    """Build a WIRE forward closure with weights prepared once per layer.

    w_*: (out_size, in_size) PyTorch nn.Linear layout; b_*: (out_size,).
    Returns forward(x) mapping (..., in_size) -> (..., out_size).
    """
    out_size, in_size = w_freqs.shape
    out_p = _round_up(out_size, 128)   # pad halves so the split is lane-aligned

    # ---- one-time weight prep: fold scalars, transpose, pad, concat --------
    wf = jnp.asarray(w_freqs, jnp.float32).T * jnp.float32(omega_0)   # (in, out)
    ws = jnp.asarray(w_scale, jnp.float32).T * jnp.float32(scale_0)   # (in, out)
    bf = (jnp.asarray(b_freqs, jnp.float32) * jnp.float32(omega_0)).reshape(1, out_size)
    bs = (jnp.asarray(b_scale, jnp.float32) * jnp.float32(scale_0)).reshape(1, out_size)

    def pad_cols(a):
        pad = out_p - a.shape[-1]
        return a if pad == 0 else jnp.pad(a, ((0, 0), (0, pad)))

    w = jnp.concatenate([pad_cols(wf), pad_cols(ws)], axis=1).astype(compute_dtype)
    b = jnp.concatenate([pad_cols(bf), pad_cols(bs)], axis=1)          # bias stays f32
    w = jax.block_until_ready(w)   # materialize the prep once, outside any jit
    b = jax.block_until_ready(b)

    kernel = functools.partial(_wire_kernel, out_p=out_p)

    def _call(x2):
        B = x2.shape[0]
        o_dtype = jnp.dtype(x2.dtype if out_dtype is None else out_dtype)
        out_cols = out_p if lane_dense_output else out_size

        # ---- VMEM-budget-driven batch tile (generation aware) --------------
        cap = _vmem_capacity_bytes()
        budget = int(cap * 0.8)                        # headroom for Mosaic scratch
        w_bytes = 2 * w.size * w.dtype.itemsize        # conservative: 2 buffers
        b_bytes = 2 * b.size * b.dtype.itemsize
        row_bytes = (2 * in_size * x2.dtype.itemsize   # x tile, double buffered
                     + 2 * out_cols * o_dtype.itemsize)  # out tile, double buffered
        avail = budget - w_bytes - b_bytes - (2 << 20)
        bm_budget = max(8, avail // row_bytes)
        bm = min(block_m, bm_budget,
                 max(8, _round_up(pl.cdiv(B, 2), 8)))  # grid >= 2 for v7x's 2 TCs
        bm = max(8, bm // 8 * 8)
        grid = (pl.cdiv(B, bm),)                       # ragged last block masked

        vmem_limit = int(min(max(w_bytes + b_bytes + bm * row_bytes + (4 << 20),
                                 32 << 20), budget))

        def build(single_buffer_const):
            const_kw = {"pipeline_mode": pl.Buffered(1)} if single_buffer_const else {}
            return pl.pallas_call(
                kernel,
                out_shape=jax.ShapeDtypeStruct((B, out_cols), o_dtype),
                grid_spec=pltpu.PrefetchScalarGridSpec(
                    num_scalar_prefetch=0,
                    grid=grid,
                    in_specs=[
                        pl.BlockSpec((bm, in_size), lambda i: (i, 0)),          # x tile
                        pl.BlockSpec((in_size, 2 * out_p), lambda i: (0, 0),
                                     **const_kw),                               # fused W
                        pl.BlockSpec((1, 2 * out_p), lambda i: (0, 0),
                                     **const_kw),                               # fused bias
                    ],
                    out_specs=pl.BlockSpec((bm, out_cols), lambda i: (i, 0)),
                ),
                compiler_params=pltpu.CompilerParams(
                    dimension_semantics=("parallel",),
                    vmem_limit_bytes=vmem_limit),
            )

        try:
            out = build(True)(x2, w, b)
        except Exception:
            # pipeline_mode=pl.Buffered(1) unsupported by this Pallas build;
            # fall back to default double-buffered constant-index weight specs.
            out = build(False)(x2, w, b)

        return out[:, :out_size] if out_cols != out_size else out

    def forward(x):
        assert x.shape[-1] == in_size, (x.shape, in_size)
        lead = x.shape[:-1]
        out = _call(x.reshape(-1, in_size))
        return out.reshape(*lead, out_size)

    # TODO(synk): dropout (Layer.dropout, default 0.0) is not applied; add
    # pltpu.prng_seed / pltpu.prng_random_bits masking if a nonzero rate is needed.
    return forward


# ---------------------------------------------------------------------------
# Plain-JAX references
# ---------------------------------------------------------------------------
def wire_reference(x, w_freqs, b_freqs, w_scale, b_scale,
                   *, omega_0=10.0, scale_0=10.0):
    """Exact f32 reference mirroring the PyTorch forward."""
    freqs = x @ w_freqs.T + b_freqs
    scl = (x @ w_scale.T + b_scale) * scale_0
    return jnp.cos(omega_0 * freqs) * jnp.exp(-(scl * scl))


def wire_reference_bf16(x, w_freqs, b_freqs, w_scale, b_scale,
                        *, omega_0=10.0, scale_0=10.0):
    """Reference emulating the bf16-input / f32-accumulation matmul path."""
    wf = (jnp.asarray(w_freqs, jnp.float32).T * omega_0).astype(jnp.bfloat16)
    ws = (jnp.asarray(w_scale, jnp.float32).T * scale_0).astype(jnp.bfloat16)
    xb = x.astype(jnp.bfloat16)
    freqs = jnp.dot(xb, wf, preferred_element_type=jnp.float32) + b_freqs * omega_0
    scl = jnp.dot(xb, ws, preferred_element_type=jnp.float32) + b_scale * scale_0
    return jnp.cos(freqs) * jnp.exp(-(scl * scl))


if __name__ == "__main__":
    # WIRE is a pointwise layer over a batch of coordinate/feature vectors.
    # batch=300 exercises the ragged last row block (bm=152 -> 2-step grid);
    # out_size=32 exercises the narrow (masked) lane store path.
    batch, in_size, out_size = 300, 8, 32
    omega_0, scale_0 = 10.0, 10.0

    key = jax.random.PRNGKey(0)
    kx, kwf, kbf, kws, kbs = jax.random.split(key, 5)

    x = jax.random.normal(kx, (batch, in_size), dtype=jnp.float32)

    # nn.Linear-shaped params: weight (out, in), bias (out,)
    bound = 1.0 / (in_size ** 0.5)
    w_freqs = jax.random.uniform(kwf, (out_size, in_size), jnp.float32, -bound, bound)
    b_freqs = jax.random.uniform(kbf, (out_size,), jnp.float32, -bound, bound)
    w_scale = jax.random.uniform(kws, (out_size, in_size), jnp.float32, -bound, bound)
    b_scale = jax.random.uniform(kbs, (out_size,), jnp.float32, -bound, bound)

    # --- default path: f32 compute, f32 out, unpadded stores, ragged grid ----
    wire_f32 = make_wire(w_freqs, b_freqs, w_scale, b_scale,
                         omega_0=omega_0, scale_0=scale_0)
    out_f32 = jax.block_until_ready(wire_f32(x))
    ref = wire_reference(x, w_freqs, b_freqs, w_scale, b_scale,
                         omega_0=omega_0, scale_0=scale_0)
    assert out_f32.shape == (batch, out_size)
    assert jnp.allclose(out_f32, ref, atol=1e-4, rtol=1e-4), "f32 path mismatch"

    # --- throughput path: bf16 MXU inputs + bf16 output stream ---------------
    wire_bf16 = make_wire(w_freqs, b_freqs, w_scale, b_scale,
                          omega_0=omega_0, scale_0=scale_0,
                          compute_dtype=jnp.bfloat16, out_dtype=jnp.bfloat16)
    out_bf16 = jax.block_until_ready(wire_bf16(x))
    ref_bf16 = wire_reference_bf16(x, w_freqs, b_freqs, w_scale, b_scale,
                                   omega_0=omega_0, scale_0=scale_0)
    assert out_bf16.shape == (batch, out_size)
    assert out_bf16.dtype == jnp.bfloat16
    assert jnp.allclose(out_bf16.astype(jnp.float32), ref_bf16,
                        atol=1.5e-2, rtol=1.5e-2), "bf16 path mismatch"

    # --- lane-dense padded-store variant (preferred layout on v5e) -----------
    wire_dense = make_wire(w_freqs, b_freqs, w_scale, b_scale,
                           omega_0=omega_0, scale_0=scale_0,
                           lane_dense_output=True)
    out_dense = jax.block_until_ready(wire_dense(x))
    assert out_dense.shape == (batch, out_size)
    assert jnp.allclose(out_dense, ref, atol=1e-4, rtol=1e-4), "lane-dense path mismatch"

    print("KERNEL_OK")
</pallas_src>

<mosaic_0001>
module attributes {stable_mosaic.version = 11 : i64} {
  func.func @_wire_kernel(%arg0: i32, %arg1: memref<152x8xf32, #tpu.memory_space<vmem>>, %arg2: memref<8x256xf32, #tpu.memory_space<vmem>>, %arg3: memref<1x256xf32, #tpu.memory_space<vmem>>, %arg4: memref<152x32xf32, #tpu.memory_space<vmem>>) attributes {dimension_semantics = [#tpu.dimension_semantics<parallel>], iteration_bounds = array<i64: 2>, scalar_prefetch = 0 : i64, scratch_operands = 0 : i64, tpu.core_type = #tpu.core_type<tc>, window_params = [{transform_indices = @transform_0, window_bounds = array<i64: 152, 8>}, {pipeline_mode = #tpu.pipeline_mode<synchronous>, transform_indices = @transform_1, window_bounds = array<i64: 8, 256>}, {pipeline_mode = #tpu.pipeline_mode<synchronous>, transform_indices = @transform_2, window_bounds = array<i64: 1, 256>}, {transform_indices = @transform_3, window_bounds = array<i64: 152, 32>}]} {
    %c0 = arith.constant 0 : index
    %c0_0 = arith.constant 0 : index
    %0 = vector.load %arg1[%c0, %c0_0] : memref<152x8xf32, #tpu.memory_space<vmem>>, vector<152x8xf32>
    %c0_1 = arith.constant 0 : index
    %c0_2 = arith.constant 0 : index
    %1 = vector.load %arg2[%c0_1, %c0_2] : memref<8x256xf32, #tpu.memory_space<vmem>>, vector<8x256xf32>
    %cst = arith.constant dense<0.000000e+00> : vector<152x256xf32>
    %2 = tpu.matmul %0, %1, %cst {dimension_numbers = #tpu.dot_dimension_numbers<[1], [0], [0], [1], [0, 0, 1, 1], [], []>} : vector<152x8xf32>, vector<8x256xf32>, vector<152x256xf32> -> vector<152x256xf32>
    %c0_3 = arith.constant 0 : index
    %c0_4 = arith.constant 0 : index
    %3 = vector.load %arg3[%c0_3, %c0_4] : memref<1x256xf32, #tpu.memory_space<vmem>>, vector<1x256xf32>
    %4 = vector.broadcast %3 : vector<1x256xf32> to vector<152x256xf32>
    %5 = arith.addf %2, %4 : vector<152x256xf32>
    %6 = vector.extract_strided_slice %5 {offsets = [0, 0], sizes = [152, 128], strides = [1, 1]} : vector<152x256xf32> to vector<152x128xf32>
    %7 = vector.extract_strided_slice %5 {offsets = [0, 128], sizes = [152, 128], strides = [1, 1]} : vector<152x256xf32> to vector<152x128xf32>
    %8 = math.cos %6 : vector<152x128xf32>
    %9 = arith.mulf %7, %7 : vector<152x128xf32>
    %cst_5 = arith.constant 0.000000e+00 : f32
    %10 = vector.broadcast %cst_5 : f32 to vector<152x128xf32>
    %11 = arith.subf %10, %9 : vector<152x128xf32>
    %12 = math.exp %11 : vector<152x128xf32>
    %13 = arith.mulf %8, %12 : vector<152x128xf32>
    %14 = vector.extract_strided_slice %13 {offsets = [0, 0], sizes = [152, 32], strides = [1, 1]} : vector<152x128xf32> to vector<152x32xf32>
    %c0_6 = arith.constant 0 : index
    %c0_7 = arith.constant 0 : index
    %15 = vector.load %arg4[%c0_6, %c0_7] : memref<152x32xf32, #tpu.memory_space<vmem>>, vector<152x32xf32>
    tpu.vector_store %arg4[%c0_6, %c0_7], %14 {strides = array<i32>} : memref<152x32xf32, #tpu.memory_space<vmem>>, vector<152x32xf32>,
    return
  }
  func.func @transform_0(%arg0: i32) -> (i32, i32) {
    %c0_i32 = arith.constant 0 : i32
    %c0_i32_0 = arith.constant 0 : i32
    return %arg0, %c0_i32 : i32, i32
  }
  func.func @transform_1(%arg0: i32) -> (i32, i32) {
    %c0_i32 = arith.constant 0 : i32
    %c0_i32_0 = arith.constant 0 : i32
    %c0_i32_1 = arith.constant 0 : i32
    return %c0_i32, %c0_i32_0 : i32, i32
  }
  func.func @transform_2(%arg0: i32) -> (i32, i32) {
    %c0_i32 = arith.constant 0 : i32
    %c0_i32_0 = arith.constant 0 : i32
    %c0_i32_1 = arith.constant 0 : i32
    return %c0_i32, %c0_i32_0 : i32, i32
  }
  func.func @transform_3(%arg0: i32) -> (i32, i32) {
    %c0_i32 = arith.constant 0 : i32
    %c0_i32_0 = arith.constant 0 : i32
    return %arg0, %c0_i32 : i32, i32
  }
}

module attributes {stable_mosaic.version = 11 : i64} {
  func.func @_wire_kernel(%arg0: i32, %arg1: memref<152x8xf32, #tpu.memory_space<vmem>>, %arg2: memref<8x256xf32, #tpu.memory_space<vmem>>, %arg3: memref<1x256xf32, #tpu.memory_space<vmem>>, %arg4: memref<152x32xf32, #tpu.memory_space<vmem>>) attributes {dimension_semantics = [#tpu.dimension_semantics<parallel>], iteration_bounds = array<i64: 2>, scalar_prefetch = 0 : i64, scratch_operands = 0 : i64, tpu.core_type = #tpu.core_type<tc>, window_params = [{transform_indices = @transform_0, window_bounds = array<i64: 152, 8>}, {pipeline_mode = #tpu.pipeline_mode<synchronous>, transform_indices = @transform_1, window_bounds = array<i64: 8, 256>}, {pipeline_mode = #tpu.pipeline_mode<synchronous>, transform_indices = @transform_2, window_bounds = array<i64: 1, 256>}, {transform_indices = @transform_3, window_bounds = array<i64: 152, 32>}]} {
    %c0 = arith.constant 0 : index
    %c0_0 = arith.constant 0 : index
    %0 = vector.load %arg1[%c0, %c0_0] : memref<152x8xf32, #tpu.memory_space<vmem>>, vector<152x8xf32>
    %c0_1 = arith.constant 0 : index
    %c0_2 = arith.constant 0 : index
    %1 = vector.load %arg2[%c0_1, %c0_2] : memref<8x256xf32, #tpu.memory_space<vmem>>, vector<8x256xf32>
    %cst = arith.constant dense<0.000000e+00> : vector<152x256xf32>
    %2 = tpu.matmul %0, %1, %cst {dimension_numbers = #tpu.dot_dimension_numbers<[1], [0], [0], [1], [0, 0, 1, 1], [], []>} : vector<152x8xf32>, vector<8x256xf32>, vector<152x256xf32> -> vector<152x256xf32>
    %c0_3 = arith.constant 0 : index
    %c0_4 = arith.constant 0 : index
    %3 = vector.load %arg3[%c0_3, %c0_4] : memref<1x256xf32, #tpu.memory_space<vmem>>, vector<1x256xf32>
    %4 = vector.broadcast %3 : vector<1x256xf32> to vector<152x256xf32>
    %5 = arith.addf %2, %4 : vector<152x256xf32>
    %6 = vector.extract_strided_slice %5 {offsets = [0, 0], sizes = [152, 128], strides = [1, 1]} : vector<152x256xf32> to vector<152x128xf32>
    %7 = vector.extract_strided_slice %5 {offsets = [0, 128], sizes = [152, 128], strides = [1, 1]} : vector<152x256xf32> to vector<152x128xf32>
    %8 = math.cos %6 : vector<152x128xf32>
    %9 = arith.mulf %7, %7 : vector<152x128xf32>
    %cst_5 = arith.constant 0.000000e+00 : f32
    %10 = vector.broadcast %cst_5 : f32 to vector<152x128xf32>
    %11 = arith.subf %10, %9 : vector<152x128xf32>
    %12 = math.exp %11 : vector<152x128xf32>
    %13 = arith.mulf %8, %12 : vector<152x128xf32>
    %14 = vector.extract_strided_slice %13 {offsets = [0, 0], sizes = [152, 32], strides = [1, 1]} : vector<152x128xf32> to vector<152x32xf32>
    %c0_6 = arith.constant 0 : index
    %c0_7 = arith.constant 0 : index
    %15 = vector.load %arg4[%c0_6, %c0_7] : memref<152x32xf32, #tpu.memory_space<vmem>>, vector<152x32xf32>
    tpu.vector_store %arg4[%c0_6, %c0_7], %14 {strides = array<i32>} : memref<152x32xf32, #tpu.memory_space<vmem>>, vector<152x32xf32>,
    return
  }
  func.func @transform_0(%arg0: i32) -> (i32, i32) {
    %c0_i32 = arith.constant 0 : i32
    %c0_i32_0 = arith.constant 0 : i32
    return %arg0, %c0_i32 : i32, i32
  }
  func.func @transform_1(%arg0: i32) -> (i32, i32) {
    %c0_i32 = arith.constant 0 : i32
    %c0_i32_0 = arith.constant 0 : i32
    %c0_i32_1 = arith.constant 0 : i32
    return %c0_i32, %c0_i32_0 : i32, i32
  }
  func.func @transform_2(%arg0: i32) -> (i32, i32) {
    %c0_i32 = arith.constant 0 : i32
    %c0_i32_0 = arith.constant 0 : i32
    %c0_i32_1 = arith.constant 0 : i32
    return %c0_i32, %c0_i32_0 : i32, i32
  }
  func.func @transform_3(%arg0: i32) -> (i32, i32) {
    %c0_i32 = arith.constant 0 : i32
    %c0_i32_0 = arith.constant 0 : i32
    return %arg0, %c0_i32 : i32, i32
  }
}

</mosaic_0001>

<bundles_post_ra>
// kernel: tpu_custom_call.1
= control target key start
LH: loop header
LB: loop body
LE: loop exit
PB: predicated region body
PF: predicated region fallthrough
CT: control target
= control target key end

     0   :  { %s2918_s12 = smov 0   ;;  %s4779_s0 = inlined_call_operand.vmem [shape: f32[300,8], index: 0, kind: input, shape index: {}]   ;;  %s4780_s1 = inlined_call_operand.vmem [shape: f32[8,256], index: 1, kind: input, shape index: {}]   ;;  %s4781_s2 = inlined_call_operand.vmem [shape: f32[1,256], index: 2, kind: input, shape index: {}]   ;;  %s4782_s3 = inlined_call_operand.vmem [shape: f32[300,32], index: 3, kind: output, shape index: {}]  }
   0x1 LB: > { %s2572_s13 = sadd.s32 4294967295, %s2889_s12   ;;  %p2576_p0 = scmp.ge.s32.totalorder %s2889_s12, 1  ;;  %s2889_s12 = sphi %s2918_s12, %s13_s12  }
   0x2   : > { %p138_p1 = scmp.lt.s32.totalorder %s2889_s12, 3 }
   0x4   : > { %p139_p2 = pnand %p2576_p0, %p138_p1 }
   0x5   : > { %v194_v0 = vld [vmem:[%s4780_s1 + $0x8] sm:$0xff] (!%p139_p2)  ;;  %v193_v1 = vld [vmem:[%s4780_s1] sm:$0xff] (!%p139_p2)  ;;  %s162_s18 = smul.u32 (!%p139_p2), 19, %s2572_s13  ;;  %v2891_v2 = vmov (!%p139_p2), 0.0   ;;  %vm207_vm0 = vcmask (!%p139_p2), 64512   ;;  %v197_v22 = vlaneseq (!%p139_p2) }
   0x6   : > { %142 = sbr.rel (%p139_p2) target bundleno = 764 (0x2fc), region = 32  ;;  %265 = vmatprep.subr.mxu0 (!%p139_p2), %v194_v0  ;;  %2676 = vmatprep.subr.mxu1 (!%p139_p2), %v194_v0  ;;  %v195_v25 = vld [vmem:[%s4781_s2] sm:$0x3] (!%p139_p2) }
   0x7   : > { %266 = vmatpush1.msra.mxu0 (!%p139_p2), %v193_v1  ;;  %2677 = vmatpush1.msra.mxu1 (!%p139_p2), %v193_v1  ;;  %p163_p3 = scmp.lt.s32.totalorder (!%p139_p2), %s162_s18, 37  ;;  %v198_v23 = vshrl.u32 (!%p139_p2), %v197_v22, 7 }
   0x8   : > { %329 = vmatprep.mubr.f32.mxu0 (!%p139_p2), %v2891_v2  ;;  %389 = vmatprep.mubr.f32.mxu1 (!%p139_p2), %v2891_v2 }
   0x9   : > { %v199_v24 = vsub.s32 (!%p139_p2), 0, %v198_v23  ;;  %v203_v29 = vsub.s32 (!%p139_p2), 1, %v198_v23 }
   0xb   : > { %v2983_v26 = vrot.slane (!%p139_p2), %v195_v25, %v199_v24  ;;  %v2995_v38 = vrot.slane (!%p139_p2), %v195_v25, %v203_v29 }
   0xd   : > { %s4820_s18 = smov (!%p163_p3, %s162_s18), 37 }
   0xe   : > { %s2577_s19 = sshll.u32 %s4820_s18, 3 }
   0xf   : > { %s2940_s22 = scalar_lea.vmem %s4779_s0, %s2577_s19  ;;  %s3269_s27 = scalar_lea.vmem %s4782_s3, %s2577_s19 }
  0x10   : > { %v174_v3 = vld [vmem:[%s2940_s22] sm:$0xff]  ;;  %v184_v4 = vld [vmem:[%s2940_s22 + $0x50] sm:$0xff]  ;;  %v175_v5 = vld [vmem:[%s2940_s22 + $0x8] sm:$0xff] }
  0x11   : > { %2579 = vmatmul.mubr.msk.f32.vlgmr.msra.gmra.mrb[0].mxu0 %vm207_vm0, %v174_v3  ;;  %2589 = vmatmul.mubr.msk.f32.vlgmr.msra.gmra.mrb[0].mxu1 %vm207_vm0, %v184_v4  ;;  %v185_v6 = vld [vmem:[%s2940_s22 + $0x58] sm:$0xff]  ;;  %v176_v7 = vld [vmem:[%s2940_s22 + $0x10] sm:$0xff]  ;;  %v186_v8 = vld [vmem:[%s2940_s22 + $0x60] sm:$0xff] }
  0x12   : > { %335 = vmatprep.mubr.f32.mxu0 %v2891_v2  ;;  %395 = vmatprep.mubr.f32.mxu1 %v2891_v2  ;;  %v177_v9 = vld [vmem:[%s2940_s22 + $0x18] sm:$0xff]  ;;  %v187_v10 = vld [vmem:[%s2940_s22 + $0x68] sm:$0xff]  ;;  %v178_v11 = vld [vmem:[%s2940_s22 + $0x20] sm:$0xff] }
  0x13   : > { %v188_v12 = vld [vmem:[%s2940_s22 + $0x70] sm:$0xff]  ;;  %v179_v13 = vld [vmem:[%s2940_s22 + $0x28] sm:$0xff]  ;;  %v189_v14 = vld [vmem:[%s2940_s22 + $0x78] sm:$0xff] }
  0x14   : > { %v180_v15 = vld [vmem:[%s2940_s22 + $0x30] sm:$0xff]  ;;  %v190_v16 = vld [vmem:[%s2940_s22 + $0x80] sm:$0xff]  ;;  %v181_v17 = vld [vmem:[%s2940_s22 + $0x38] sm:$0xff] }
  0x15   : > { %2580 = vmatmul.mubr.msk.f32.gmra.mrb[2].mxu0 %vm207_vm0, %v175_v5  ;;  %2590 = vmatmul.mubr.msk.f32.gmra.mrb[2].mxu1 %vm207_vm0, %v185_v6  ;;  %v191_v18 = vld [vmem:[%s2940_s22 + $0x88] sm:$0xff]  ;;  %v182_v19 = vld [vmem:[%s2940_s22 + $0x40] sm:$0xff]  ;;  %v192_v20 = vld [vmem:[%s2940_s22 + $0x90] sm:$0xff] }
  0x16   : > { %341 = vmatprep.mubr.f32.mxu0 %v2891_v2  ;;  %401 = vmatprep.mubr.f32.mxu1 %v2891_v2  ;;  %v183_v21 = vld [vmem:[%s2940_s22 + $0x48] sm:$0xff] }
  0x19   : > { %2581 = vmatmul.mubr.msk.f32.gmra.mrb[4].mxu0 %vm207_vm0, %v176_v7  ;;  %2591 = vmatmul.mubr.msk.f32.gmra.mrb[4].mxu1 %vm207_vm0, %v186_v8 }
  0x1a   : > { %347 = vmatprep.mubr.f32.mxu0 %v2891_v2  ;;  %407 = vmatprep.mubr.f32.mxu1 %v2891_v2 }
  0x1d   : > { %2582 = vmatmul.mubr.msk.f32.gmra.mrb[6].mxu0 %vm207_vm0, %v177_v9  ;;  %2592 = vmatmul.mubr.msk.f32.gmra.mrb[6].mxu1 %vm207_vm0, %v187_v10  ;;  %v2892_v9 = vmov 683565275  }
  0x1e   : > { %353 = vmatprep.mubr.f32.mxu0 %v2891_v2  ;;  %413 = vmatprep.mubr.f32.mxu1 %v2891_v2 }
  0x21   : > { %2583 = vmatmul.mubr.msk.f32.gmra.mrb[8].mxu0 %vm207_vm0, %v178_v11  ;;  %2593 = vmatmul.mubr.msk.f32.gmra.mrb[8].mxu1 %vm207_vm0, %v188_v12 }
  0x22   : > { %359 = vmatprep.mubr.f32.mxu0 %v2891_v2  ;;  %419 = vmatprep.mubr.f32.mxu1 %v2891_v2 }
  0x25   : > { %2584 = vmatmul.mubr.msk.f32.gmra.mrb[10].mxu0 %vm207_vm0, %v179_v13  ;;  %2594 = vmatmul.mubr.msk.f32.gmra.mrb[10].mxu1 %vm207_vm0, %v189_v14  ;;  %v2893_v13 = vmov 2475754826  }
  0x26   : > { %365 = vmatprep.mubr.f32.mxu0 %v2891_v2  ;;  %425 = vmatprep.mubr.f32.mxu1 %v2891_v2 }
  0x29   : > { %2585 = vmatmul.mubr.msk.f32.gmra.mrb[12].mxu0 %vm207_vm0, %v180_v15  ;;  %2595 = vmatmul.mubr.msk.f32.gmra.mrb[12].mxu1 %vm207_vm0, %v190_v16  ;;  %v2894_v15 = vmov 2131351028  }
  0x2a   : > { %371 = vmatprep.mubr.f32.mxu0 %v2891_v2  ;;  %431 = vmatprep.mubr.f32.mxu1 %v2891_v2 }
  0x2d   : > { %2586 = vmatmul.mubr.msk.f32.gmra.mrb[14].mxu0 %vm207_vm0, %v181_v17  ;;  %2596 = vmatmul.mubr.msk.f32.gmra.mrb[14].mxu1 %vm207_vm0, %v191_v18  ;;  %v2895_v17 = vmov 2102212464  }
  0x2e   : > { %377 = vmatprep.mubr.f32.mxu0 %v2891_v2  ;;  %437 = vmatprep.mubr.f32.mxu1 %v2891_v2 }
  0x31   : > { %2587 = vmatmul.mubr.msk.f32.gmra.mrb[16].mxu0 %vm207_vm0, %v182_v19  ;;  %2597 = vmatmul.mubr.msk.f32.gmra.mrb[16].mxu1 %vm207_vm0, %v192_v20  ;;  %v2896_v19 = vmov 920167782  }
  0x32   : > { %383 = vmatprep.mubr.f32.mxu0 %v2891_v2 }
  0x35   : > { %2588 = vmatmul.mubr.msk.f32.gmra.mrb[18].mxu0 %vm207_vm0, %v183_v21 }
  0xe4   : > { %v331_v27 = vpop.f32.mrb[0].mxu0  ;;  %v391_v28 = vpop.f32.mrb[0].mxu1 }
  0xe5   : > { %v2986_v30 = vadd.f32 %v331_v27, %v2983_v26  ;;  %v2989_v31 = vadd.f32 %v391_v28, %v2983_v26  ;;  %v333_v32 = vpop.f32.mrb[1].mxu0  ;;  %v393_v33 = vpop.f32.mrb[1].mxu1  ;;  %v2897_v28 = vmov 1326507024  }
  0xe6   : > { %v334_v50 = vadd.f32 %v333_v32, %v2995_v38  ;;  %v394_v54 = vadd.f32 %v393_v33, %v2995_v38 }
  0xe7   : > { %v444_v34 = vand.u32 2147483647, %v2986_v30  ;;  %v447_v35 = vand.u32 2139095040, %v2986_v30  ;;  %v1474_v36 = vand.u32 2147483647, %v2989_v31  ;;  %v1477_v37 = vand.u32 2139095040, %v2989_v31 }
  0xe8   : > { %v337_v39 = vpop.f32.mrb[2].mxu0  ;;  %v2997_v40 = vpop.f32.mrb[2].mxu1  ;;  %v3021_v62 = vmul.f32 %v334_v50, %v334_v50  ;;  %v3025_v3 = vmul.f32 %v394_v54, %v394_v54  ;;  %vm446_vm15 = vcmp.lt.s32.totalorder %v2986_v30, 0 }
  0xe9   : > { %v448_v41 = vshrl.u32 %v447_v35, 23  ;;  %v2999_v42 = vpop.f32.mrb[3].mxu0  ;;  %v451_v43 = vand.u32 8388607, %v444_v34  ;;  %v1478_v44 = vshrl.u32 %v1477_v37, 23  ;;  %v3005_v46 = vpop.f32.mrb[3].mxu1  ;;  %v3008_v48 = vadd.f32 %v337_v39, %v2983_v26 }
  0xea   : > { %v1481_v45 = vand.u32 8388607, %v1474_v36 }
  0xeb   : > { %v2598_v47 = vadd.s32 4294967169, %v448_v41  ;;  %v2638_v49 = vadd.s32 4294967169, %v1478_v44  ;;  %v452_v55 = vor.u32 8388608, %v451_v43  ;;  %v550_v59 = vand.u32 2139095040, %v3008_v48 }
  0xec   : > { %v3011_v51 = vpop.f32.mrb[4].mxu0  ;;  %v3013_v52 = vpop.f32.mrb[4].mxu1  ;;  %v1482_v56 = vor.u32 8388608, %v1481_v45  ;;  %v547_v6 = vand.u32 2147483647, %v3008_v48 }
  0xed   : > { %v454_v53 = vadd.s32 1, %v2598_v47  ;;  %v1484_v57 = vadd.s32 1, %v2638_v49  ;;  %v3016_v58 = vpop.f32.mrb[5].mxu0  ;;  %v3019_v60 = vpop.f32.mrb[5].mxu1  ;;  %v3027_v4 = vshll.u32 %v452_v55, 8  ;;  %v3032_v7 = vshrl.u32 %v550_v59, 23 }
  0xee   : > { %v3029_v5 = vshll.u32 %v1482_v56, 8 }
  0xef   : > { %vm455_vm1 = vcmp.gt.s32.totalorder %v454_v53, 0  ;;  %vm1485_vm2 = vcmp.gt.s32.totalorder %v1484_v57, 0 }
  0xf0   : > { %v456_v61 = vsel %vm455_vm1, %v454_v53, 0  ;;  %v3023_v63 = vpop.f32.mrb[6].mxu0  ;;  %v1486_v2 = vsel %vm1485_vm2, %v1484_v57, 0  ;;  %v3044_v24 = vpop.f32.mrb[6].mxu1 }
  0xf1   : > { %v457_v0 = vshrl.u32 %v456_v61, 5  ;;  %v458_v1 = vand.u32 31, %v456_v61  ;;  %v3035_v11 = vshrl.u32 %v1486_v2, 5  ;;  %v1488_v12 = vand.u32 31, %v1486_v2 }
  0xf3   : > { %v459_v8 = vsub.s32 32, %v458_v1  ;;  %v461_v10 = vshll.u32 %v2892_v9, %v458_v1  ;;  %v464_v14 = vshll.u32 %v2893_v13, %v458_v1  ;;  %v467_v16 = vshll.u32 %v2894_v15, %v458_v1 }
  0xf4   : > { %v470_v18 = vshll.u32 %v2895_v17, %v458_v1  ;;  %v473_v20 = vshll.u32 %v2896_v19, %v458_v1  ;;  %vm476_vm3 = vcmp.lt.s32.totalorder %v457_v0, 1  ;;  %vm478_vm4 = vcmp.lt.s32.totalorder %v457_v0, 3 }
  0xf5   : > { %v462_v21 = vshrl.u32 %v2893_v13, %v459_v8  ;;  %v465_v22 = vshrl.u32 %v2894_v15, %v459_v8  ;;  %v468_v23 = vshrl.u32 %v2895_v17, %v459_v8  ;;  %v460_v25 = vshrl.u32 %v2892_v9, %v459_v8 }
  0xf6   : > { %v471_v27 = vshrl.u32 %v2896_v19, %v459_v8  ;;  %v474_v29 = vshrl.u32 %v2897_v28, %v459_v8  ;;  %v1489_v37 = vsub.s32 32, %v1488_v12  ;;  %vm479_vm5 = vcmp.lt.s32.totalorder %v457_v0, 4 }
  0xf7   : > { %v463_v32 = vor.u32 %v462_v21, %v461_v10  ;;  %v466_v33 = vor.u32 %v465_v22, %v464_v14  ;;  %v469_v35 = vor.u32 %v468_v23, %v467_v16  ;;  %v1491_v43 = vshll.u32 %v2892_v9, %v1488_v12 }
  0xf8   : > { %v472_v39 = vor.u32 %v471_v27, %v470_v18  ;;  %v475_v41 = vor.u32 %v474_v29, %v473_v20  ;;  %v1494_v55 = vshll.u32 %v2893_v13, %v1488_v12  ;;  %vm477_vm6 = vcmp.lt.s32.totalorder %v457_v0, 2 }
  0xf9   : > { %v480_v44 = vsel %vm476_vm3, %v460_v25, %v463_v32  ;;  %v481_v45 = vsel %vm479_vm5, %v469_v35, 2102212464  ;;  %v484_v47 = vsel %vm476_vm3, %v463_v32, %v466_v33  ;;  %v488_v49 = vsel %vm476_vm3, %v466_v33, %v469_v35 }
  0xfa   : > { %v482_v50 = vsel %vm478_vm4, %v466_v33, %v481_v45  ;;  %v485_v53 = vsel %vm479_vm5, %v472_v39, 920167782  ;;  %v489_v54 = vsel %vm479_vm5, %v475_v41, 1326507024  ;;  %v1492_v59 = vshrl.u32 %v2893_v13, %v1489_v37 }
  0xfb   : > { %v486_v56 = vsel %vm478_vm4, %v469_v35, %v485_v53  ;;  %v490_v57 = vsel %vm478_vm4, %v472_v39, %v489_v54  ;;  %v483_v61 = vsel %vm477_vm6, %v480_v44, %v482_v50  ;;  %v1495_v8 = vshrl.u32 %v2894_v15, %v1489_v37 }
  0xfc   : > { %v487_v1 = vsel %vm477_vm6, %v484_v47, %v486_v56  ;;  %v491_v2 = vsel %vm477_vm6, %v488_v49, %v490_v57  ;;  %v1493_v20 = vor.u32 %v1492_v59, %v1491_v43  ;;  %v1497_v0 = vshll.u32 %v2894_v15, %v1488_v12 }
  0xfd   : > { %v3060_v10 = vmul.u32.u64.low %v3027_v4, %v491_v2  ;;  %v3061_v14 = vmul.u32.u64.high %v3027_v4, %v491_v2, %v3060_v10  ;;  %v3064_v16 = vmul.u32.u64.low %v3027_v4, %v487_v1  ;;  %v3065_v18 = vmul.u32.u64.high %v3027_v4, %v487_v1, %v3064_v16 }
  0xfe   : > { %v1496_v21 = vor.u32 %v1495_v8, %v1494_v55  ;;  %v1498_v22 = vshrl.u32 %v2895_v17, %v1489_v37  ;;  %v1500_v23 = vshll.u32 %v2895_v17, %v1488_v12  ;;  %v1501_v25 = vshrl.u32 %v2896_v19, %v1489_v37 }
  0xff   : > { %v1503_v27 = vshll.u32 %v2896_v19, %v1488_v12  ;;  %v1504_v29 = vshrl.u32 %v2897_v28, %v1489_v37  ;;  %v499_v32 = vmul.u32 %v3027_v4, %v483_v61  ;;  %v1490_v33 = vshrl.u32 %v2892_v9, %v1489_v37 }
 0x100   : > { %v1499_v35 = vor.u32 %v1498_v22, %v1497_v0  ;;  %vm1506_vm7 = vcmp.lt.s32.totalorder %v3035_v11, 1  ;;  %vm501_vm8 = vc.u32 %v3061_v14, %v3064_v16  ;;  %v502_v39 = vadd.s32 1, %v3065_v18 }
 0x101   : > { %v1502_v41 = vor.u32 %v1501_v25, %v1500_v23  ;;  %vm1507_vm9 = vcmp.lt.s32.totalorder %v3035_v11, 2  ;;  %v1505_v43 = vor.u32 %v1504_v29, %v1503_v27  ;;  %vm1508_vm10 = vcmp.lt.s32.totalorder %v3035_v11, 3 }
 0x102   : > { %vm1509_vm11 = vcmp.lt.s32.totalorder %v3035_v11, 4  ;;  %v1514_v12 = vsel %vm1506_vm7, %v1493_v20, %v1496_v21  ;;  %v503_v4 = vsel %vm501_vm8, %v502_v39, %v3065_v18  ;;  %v1518_v45 = vsel %vm1506_vm7, %v1496_v21, %v1499_v35 }
 0x103   : > { %v1511_v37 = vsel %vm1509_vm11, %v1499_v35, 2102212464  ;;  %v1515_v44 = vsel %vm1509_vm11, %v1502_v41, 920167782  ;;  %v504_v47 = vadd.s32 %v503_v4, %v499_v32  ;;  %v1510_v49 = vsel %vm1506_vm7, %v1490_v33, %v1493_v20 }
 0x104   : > { %v1516_v50 = vsel %vm1508_vm10, %v1499_v35, %v1515_v44  ;;  %v1519_v53 = vsel %vm1509_vm11, %v1505_v43, 1326507024  ;;  %v1512_v54 = vsel %vm1508_vm10, %v1496_v21, %v1511_v37  ;;  %v2602_v57 = vadd.s32 4294967169, %v3032_v7 }
 0x105   : > { %v1517_v55 = vsel %vm1507_vm9, %v1514_v12, %v1516_v50  ;;  %v1520_v56 = vsel %vm1508_vm10, %v1502_v41, %v1519_v53  ;;  %v505_v59 = vadd.s32 536870912, %v504_v47  ;;  %v2420_v18 = vsub.f32 0.0, %v3021_v62  ;;  %v3114_v12 = vpop.f32.mrb[7].mxu0 }
 0x106   : > { %v1521_v61 = vsel %vm1507_vm9, %v1518_v45, %v1520_v56  ;;  %v3090_v1 = vmul.u32.u64.low %v3029_v5, %v1517_v55  ;;  %v3091_v2 = vmul.u32.u64.high %v3029_v5, %v1517_v55, %v3090_v1  ;;  %v557_v20 = vadd.s32 1, %v2602_v57 }
 0x107   : > { %v3094_v8 = vmul.u32.u64.low %v3029_v5, %v1521_v61  ;;  %v3095_v10 = vmul.u32.u64.high %v3029_v5, %v1521_v61, %v3094_v8  ;;  %v3098_v21 = vshrl.u32 %v505_v59, 30  ;;  %v1513_v7 = vsel %vm1507_vm9, %v1510_v49, %v1512_v54 }
 0x108   : > { %v554_v0 = vand.u32 8388607, %v547_v6  ;;  %vm558_vm12 = vcmp.gt.s32.totalorder %v557_v20, 0  ;;  %v1532_v23 = vadd.s32 1, %v3091_v2  ;;  %v2430_v25 = vsub.f32 0.0, %v3025_v3 }
 0x109   : > { %v507_v22 = vshll.u32 %v3098_v21, 30  ;;  %v559_v27 = vsel %vm558_vm12, %v557_v20, 0  ;;  %v1529_v29 = vmul.u32 %v3029_v5, %v1513_v7  ;;  %vm1531_vm13 = vc.u32 %v3095_v10, %v3090_v1 }
 0x10a   : > { %v2439_v62 = vmul.f32 1.442695, %v2420_v18  ;;  %v561_v32 = vand.u32 31, %v559_v27  ;;  %v1533_v11 = vsel %vm1531_vm13, %v1532_v23, %v3091_v2  ;;  %v555_v35 = vor.u32 8388608, %v554_v0 }
 0x10b   : > { %v508_v33 = vsub.s32 %v504_v47, %v507_v22  ;;  %v1534_v39 = vadd.s32 %v1533_v11, %v1529_v29  ;;  %v3112_v43 = vadd.f32 %v2997_v40, %v2983_v26  ;;  %v3116_v5 = vmul.f32 1.442695, %v2430_v25 }
 0x10c   : > { %v562_v41 = vsub.s32 32, %v561_v32  ;;  %2769 = vpow2.f32 %v2439_v62  ;;  %v500_v37 = vadd.s32 %v3064_v16, %v3061_v14  ;;  %v3120_v45 = vshll.u32 %v555_v35, 8 }
 0x10d   : > { %v510_v3 = vsub.s32 0, %v508_v33  ;;  %v1535_v4 = vadd.s32 536870912, %v1534_v39  ;;  %v1577_v47 = vand.u32 2147483647, %v3112_v43  ;;  %v530_v49 = vsub.s32 4, %v3098_v21 }
 0x10e   : > { %v571_v40 = vshrl.u32 %v2895_v17, %v562_v41  ;;  %v1580_v53 = vand.u32 2139095040, %v3112_v43  ;;  %v3129_v55 = vadd.s32 %v3090_v1, %v3095_v10  ;;  %v565_v56 = vshrl.u32 %v2893_v13, %v562_v41 }
 0x10f   : > { %v2599_v44 = vmin.u32 %v510_v3, %v508_v33  ;;  %v3124_v50 = vshrl.u32 %v1535_v4, 30  ;;  %v568_v14 = vshrl.u32 %v2894_v15, %v562_v41  ;;  %v570_v57 = vshll.u32 %v2894_v15, %v561_v32 }
 0x110   : > { %v574_v59 = vshrl.u32 %v2896_v19, %v562_v41  ;;  %v577_v61 = vshrl.u32 %v2897_v28, %v562_v41  ;;  %v560_v8 = vshrl.u32 %v559_v27, 5  ;;  %v564_v18 = vshll.u32 %v2892_v9, %v561_v32 }
 0x111   : > { %v512_v54 = vclz %v2599_v44  ;;  %v1537_v16 = vshll.u32 %v3124_v50, 30  ;;  %v567_v20 = vshll.u32 %v2893_v13, %v561_v32  ;;  %v572_v10 = vor.u32 %v571_v40, %v570_v57 }
 0x112   : > { %v573_v7 = vshll.u32 %v2895_v17, %v561_v32  ;;  %v576_v0 = vshll.u32 %v2896_v19, %v561_v32  ;;  %v563_v22 = vshrl.u32 %v2892_v9, %v562_v41  ;;  %v566_v23 = vor.u32 %v565_v56, %v564_v18 }
 0x113   : > { %v2600_v2 = vadd.s32 4294967294, %v512_v54  ;;  %v3139_v1 = vsub.s32 %v1534_v39, %v1537_v16  ;;  %v569_v25 = vor.u32 %v568_v14, %v567_v20  ;;  %vm579_vm0 = vcmp.lt.s32.totalorder %v560_v8, 1  ;;  %v3153_v20 = vpop.f32.mrb[7].mxu1 }
 0x114   : > { %v575_v62 = vor.u32 %v574_v59, %v573_v7  ;;  %v578_v11 = vor.u32 %v577_v61, %v576_v0  ;;  %vm582_vm1 = vcmp.lt.s32.totalorder %v560_v8, 4  ;;  %vm580_vm2 = vcmp.lt.s32.totalorder %v560_v8, 2 }
 0x115   : > { %vm2601_vm14 = vcmp.lt.s32.totalorder %v2600_v2, 0  ;;  %v1540_v27 = vsub.s32 0, %v3139_v1  ;;  %vm581_vm3 = vcmp.lt.s32.totalorder %v560_v8, 3  ;;  %v584_v41 = vsel %vm582_vm1, %v572_v10, 2102212464 }
 0x116   : > { %v515_v29 = vsel %vm2601_vm14, 0, %v2600_v2  ;;  %v3146_v3 = vpop.eup %2769  ;;  %v587_v54 = vsel %vm579_vm0, %v566_v23, %v569_v25  ;;  %v588_v14 = vsel %vm582_vm1, %v575_v62, 920167782  ;;  %v591_v16 = vsel %vm579_vm0, %v569_v25, %v572_v10 }
 0x117   : > { %v516_v35 = vsub.s32 32, %v515_v29  ;;  %v520_v39 = vsub.s32 4294967266, %v515_v29  ;;  %v2639_v32 = vmin.u32 %v1540_v27, %v3139_v1  ;;  %v517_v4 = vshll.u32 %v508_v33, %v515_v29 }
 0x118   : > { %v592_v57 = vsel %vm582_vm1, %v578_v11, 1326507024  ;;  %v589_v2 = vsel %vm581_vm3, %v572_v10, %v588_v14  ;;  %v583_v33 = vsel %vm579_vm0, %v563_v22, %v566_v23  ;;  %vm1476_vm4 = vcmp.lt.s32.totalorder %v2989_v31, 0 }
 0x119   : > { %v518_v44 = vshrl.u32 %v500_v37, %v516_v35  ;;  %v521_v40 = vadd.s32 127, %v520_v39  ;;  %v1542_v56 = vclz %v2639_v32  ;;  %v593_v18 = vsel %vm581_vm3, %v575_v62, %v592_v57 }
 0x11a   : > { %v590_v37 = vsel %vm580_vm2, %v587_v54, %v589_v2  ;;  %v594_v0 = vsel %vm580_vm2, %v591_v16, %v593_v18  ;;  %v585_v27 = vsel %vm581_vm3, %v569_v25, %v584_v41  ;;  %v1581_v22 = vshrl.u32 %v1580_v53, 23  ;;  %v3174_v41 = vpop.f32.mrb[8].mxu0 }
 0x11b   : > { %v519_v59 = vor.u32 %v518_v44, %v517_v4  ;;  %v522_v61 = vshll.u32 %v521_v40, 23  ;;  %v2640_v7 = vadd.s32 4294967294, %v1542_v56  ;;  %v531_v32 = vsel %vm446_vm15, %v530_v49, %v3098_v21 }
 0x11c   : > { %v3161_v11 = vmul.u32.u64.low %v3120_v45, %v594_v0  ;;  %v3162_v35 = vmul.u32.u64.high %v3120_v45, %v594_v0, %v3161_v11  ;;  %v3165_v10 = vmul.u32.u64.low %v3120_v45, %v590_v37  ;;  %v3166_v62 = vmul.u32.u64.high %v3120_v45, %v590_v37, %v3165_v10 }
 0x11d   : > { %v523_v29 = vor.u32 4788187, %v522_v61  ;;  %vm2641_vm5 = vcmp.lt.s32.totalorder %v2640_v7, 0  ;;  %v526_v39 = vcvt.s32.f32 %v519_v59  ;;  %v586_v40 = vsel %vm580_vm2, %v583_v33, %v585_v27 }
 0x11e   : > { %v1545_v25 = vsel %vm2641_vm5, 0, %v2640_v7  ;;  %v2642_v54 = vadd.s32 4294967169, %v1581_v22  ;;  %v1560_v53 = vsub.s32 4, %v3124_v50  ;;  %vm604_vm6 = vc.u32 %v3162_v35, %v3165_v10 }
 0x11f   : > { %v524_v23 = vand.u32 2147483647, %v523_v29  ;;  %v1546_v4 = vsub.s32 32, %v1545_v25  ;;  %v1550_v44 = vsub.s32 4294967266, %v1545_v25  ;;  %v1547_v14 = vshll.u32 %v3139_v1, %v1545_v25 }
 0x120   : > { %v605_v21 = vadd.s32 1, %v3166_v62  ;;  %v1587_v49 = vadd.s32 1, %v2642_v54  ;;  %vm3185_vm7 = vcmp.le.f32.partialorder %v444_v34, 0.7853982  ;;  %2771 = vpow2.f32 %v3116_v5 }
 0x121   : > { %v527_v56 = vmul.f32 %v526_v39, %v524_v23  ;;  %v1548_v16 = vshrl.u32 %v3129_v55, %v1546_v4  ;;  %v1551_v57 = vadd.s32 127, %v1550_v44  ;;  %v602_v1 = vmul.u32 %v3120_v45, %v586_v40 }
 0x122   : > { %v606_v18 = vsel %vm604_vm6, %v605_v21, %v3166_v62  ;;  %vm1588_vm8 = vcmp.gt.s32.totalorder %v1587_v49, 0  ;;  %v533_v7 = vsel %vm3185_vm7, 0, %v531_v32  ;;  %v1561_v45 = vsel %vm1476_vm4, %v1560_v53, %v3124_v50  ;;  %v3224_v53 = vpop.f32.mrb[8].mxu1 }
 0x123   : > { %v528_v59 = vxor.u32 2147483648, %v527_v56  ;;  %v1549_v61 = vor.u32 %v1548_v16, %v1547_v14  ;;  %v1552_v2 = vshll.u32 %v1551_v57, 23  ;;  %v607_v34 = vadd.s32 %v606_v18, %v602_v1 }
 0x124   : > { %v1589_v33 = vsel %vm1588_vm8, %v1587_v49, 0  ;;  %v1584_v0 = vand.u32 8388607, %v1577_v47  ;;  %vm3206_vm9 = vcmp.le.f32.partialorder %v1474_v36, 0.7853982  ;;  %v3212_v23 = vadd.f32 %v2999_v42, %v2995_v38 }
 0x125   : > { %v529_v55 = vsel %vm446_vm15, %v528_v59, %v527_v56  ;;  %v1553_v5 = vor.u32 4788187, %v1552_v2  ;;  %v608_v27 = vadd.s32 536870912, %v607_v34  ;;  %v1591_v11 = vand.u32 31, %v1589_v33 }
 0x126   : > { %v532_v37 = vsel %vm3185_vm7, %v2986_v30, %v529_v55  ;;  %v1556_v22 = vcvt.s32.f32 %v1549_v61  ;;  %v537_v50 = vand.u32 3, %v533_v7  ;;  %v1563_v39 = vsel %vm3206_vm9, 0, %v1561_v45 }
 0x127   : > { %2773 = vcosq.f32 %v532_v37  ;;  %v1554_v62 = vand.u32 2147483647, %v1553_v5  ;;  %v3216_v32 = vshrl.u32 %v608_v27, 30  ;;  %v1592_v25 = vsub.s32 32, %v1591_v11 }
 0x128   : > { %2775 = vsinq.f32 %v532_v37  ;;  %v1585_v4 = vor.u32 8388608, %v1584_v0  ;;  %v1594_v44 = vshll.u32 %v2892_v9, %v1591_v11  ;;  %v1597_v40 = vshll.u32 %v2893_v13, %v1591_v11 }
 0x129   : > { %v1557_v36 = vmul.f32 %v1556_v22, %v1554_v62  ;;  %v610_v54 = vshll.u32 %v3216_v32, 30  ;;  %v1595_v56 = vshrl.u32 %v2893_v13, %v1592_v25  ;;  %v1600_v42 = vshll.u32 %v2894_v15, %v1591_v11 }
 0x12a   : > { %v1603_v14 = vshll.u32 %v2895_v17, %v1591_v11  ;;  %v1598_v57 = vshrl.u32 %v2894_v15, %v1592_v25  ;;  %v1601_v21 = vshrl.u32 %v2895_v17, %v1592_v25  ;;  %v1604_v49 = vshrl.u32 %v2896_v19, %v1592_v25  ;;  %v3229_v8 = vpop.eup %2771 }
 0x12b   : > { %v1558_v16 = vxor.u32 2147483648, %v1557_v36  ;;  %vm538_vm10 = vcmp.lt.s32.totalorder %v537_v50, 2  ;;  %v3231_v59 = vsub.s32 %v607_v34, %v610_v54  ;;  %v3233_v1 = vshrl.u32 %v1589_v33, 5 }
 0x12c   : > { %v1606_v61 = vshll.u32 %v2896_v19, %v1591_v11  ;;  %v1607_v2 = vshrl.u32 %v2897_v28, %v1592_v25  ;;  %vm536_vm11 = vweird.f32 %v2986_v30  ;;  %vm539_vm12 = vcmp.eq.s32.totalorder %v537_v50, 0 }
 0x12d   : > { %vm542_vm13 = vcmp.eq.s32.totalorder %v537_v50, 2  ;;  %v1559_v18 = vsel %vm1476_vm4, %v1558_v16, %v1557_v36  ;;  %v3240_v55 = vand.u32 3, %v1563_v39  ;;  %vm2496_vm14 = vcmask 261120  }
 0x12e   : > { %v1562_v7 = vsel %vm3206_vm9, %v2989_v31, %v1559_v18  ;;  %v613_v34 = vsub.s32 0, %v3231_v59  ;;  %v1602_v33 = vor.u32 %v1601_v21, %v1600_v42  ;;  %v3246_v37 = vshll.u32 %v1585_v4, 8 }
 0x12f   : > { %2777 = vcosq.f32 %v1562_v7  ;;  %v1596_v5 = vor.u32 %v1595_v56, %v1594_v44  ;;  %v1599_v45 = vor.u32 %v1598_v57, %v1597_v40  ;;  %v1605_v0 = vor.u32 %v1604_v49, %v1603_v14 }
 0x130   : > { %2779 = vsinq.f32 %v1562_v7  ;;  %v2603_v11 = vmin.u32 %v613_v34, %v3231_v59  ;;  %v1608_v62 = vor.u32 %v1607_v2, %v1606_v61  ;;  %vm1609_vm15 = vcmp.lt.s32.totalorder %v3233_v1, 1 }
 0x131   : > { %v2774_v27 = vpop.eup %2773  ;;  %v1593_v39 = vshrl.u32 %v2892_v9, %v1592_v25  ;;  %vm1610_vm0 = vcmp.lt.s32.totalorder %v3233_v1, 2  ;;  %vm1612_vm1 = vcmp.lt.s32.totalorder %v3233_v1, 4  ;;  %vm1611_vm2 = vcmp.lt.s32.totalorder %v3233_v1, 3 }
 0x132   : > { %v2776_v22 = vpop.eup %2775  ;;  %v543_v29 = vxor.u32 2147483648, %v2774_v27  ;;  %v615_v4 = vclz %v2603_v11  ;;  %v1614_v44 = vsel %vm1612_vm1, %v1602_v33, 2102212464  ;;  %v1617_v54 = vsel %vm1609_vm15, %v1596_v5, %v1599_v45 }
 0x133   : > { %v540_v36 = vxor.u32 2147483648, %v2776_v22  ;;  %v1618_v56 = vsel %vm1612_vm1, %v1605_v0, 920167782  ;;  %v1621_v42 = vsel %vm1609_vm15, %v1599_v45, %v1602_v33  ;;  %v1622_v57 = vsel %vm1612_vm1, %v1608_v62, 1326507024 }
 0x134   : > { %v544_v40 = vsel %vm542_vm13, %v543_v29, %v2776_v22  ;;  %v2604_v14 = vadd.s32 4294967294, %v615_v4  ;;  %v1619_v16 = vsel %vm1611_vm2, %v1602_v33, %v1618_v56  ;;  %vm1568_vm3 = vcmp.lt.s32.totalorder %v3240_v55, 2 }
 0x135   : > { %v541_v25 = vsel %vm539_vm12, %v2774_v27, %v540_v36  ;;  %v1613_v49 = vsel %vm1609_vm15, %v1593_v39, %v1596_v5  ;;  %v1615_v61 = vsel %vm1611_vm2, %v1599_v45, %v1614_v44  ;;  %v1623_v2 = vsel %vm1611_vm2, %v1605_v0, %v1622_v57 }
 0x136   : > { %v545_v21 = vsel %vm538_vm10, %v541_v25, %v544_v40  ;;  %vm1566_vm4 = vweird.f32 %v2989_v31  ;;  %vm2605_vm5 = vcmp.lt.s32.totalorder %v2604_v14, 0  ;;  %v1620_v50 = vsel %vm1610_vm0, %v1617_v54, %v1619_v16 }
 0x137   : > { %v546_v18 = vsel %vm536_vm11, nan, %v545_v21  ;;  %v1624_v7 = vsel %vm1610_vm0, %v1621_v42, %v1623_v2  ;;  %v618_v33 = vsel %vm2605_vm5, 0, %v2604_v14  ;;  %vm1569_vm6 = vcmp.eq.s32.totalorder %v3240_v55, 0 }
 0x138   : > { %v2477_v34 = vmul.f32 %v3146_v3, %v546_v18  ;;  %v3280_v5 = vmul.u32.u64.low %v3246_v37, %v1624_v7  ;;  %v3281_v45 = vmul.u32.u64.high %v3246_v37, %v1624_v7, %v3280_v5  ;;  %vm549_vm7 = vcmp.lt.s32.totalorder %v3008_v48, 0 }
 0x139   : > { %v603_v30 = vadd.s32 %v3165_v10, %v3162_v35  ;;  %v619_v0 = vsub.s32 32, %v618_v33  ;;  %v623_v27 = vsub.s32 4294967266, %v618_v33  ;;  %v2778_v11 = vpop.eup %2777  ;;  %v620_v62 = vshll.u32 %v3231_v59, %v618_v33  ;;  %v3301_v10 = vpop.f32.mrb[9].mxu0 }
 0x13a   : > { %2497 = vst.msk [vmem:[%s3269_s27] sm:$0xff] %vm2496_vm14, %v2477_v34  ;;  %v1616_v3 = vsel %vm1610_vm0, %v1613_v49, %v1615_v61  ;;  %v3293_v22 = vmul.u32.u64.low %v3246_v37, %v1620_v50  ;;  %v3294_v29 = vmul.u32.u64.high %v3246_v37, %v1620_v50, %v3293_v22  ;;  %v2780_v39 = vpop.eup %2779  ;;  %v1573_v36 = vxor.u32 2147483648, %v2778_v11 }
 0x13b   : > { %v621_v4 = vshrl.u32 %v603_v30, %v619_v0  ;;  %v624_v44 = vadd.s32 127, %v623_v27  ;;  %v3299_v35 = vadd.f32 %v3011_v51, %v2983_v26  ;;  %v1570_v40 = vxor.u32 2147483648, %v2780_v39 }
 0x13c   : > { %vm1572_vm8 = vcmp.eq.s32.totalorder %v3240_v55, 2  ;;  %v633_v59 = vsub.s32 4, %v3216_v32  ;;  %v2402_v1 = vmul.f32 %v3212_v23, %v3212_v23  ;;  %vm1634_vm9 = vc.u32 %v3281_v45, %v3293_v22 }
 0x13d   : > { %v1574_v54 = vsel %vm1572_vm8, %v1573_v36, %v2780_v39  ;;  %v622_v56 = vor.u32 %v621_v4, %v620_v62  ;;  %v625_v42 = vshll.u32 %v624_v44, 23  ;;  %v1571_v51 = vsel %vm1569_vm6, %v2778_v11, %v1570_v40 }
 0x13e   : > { %v1632_v25 = vmul.u32 %v3246_v37, %v1616_v3  ;;  %v1635_v14 = vadd.s32 1, %v3294_v29  ;;  %v3315_v16 = vadd.f32 %v3013_v52, %v2983_v26  ;;  %v1575_v23 = vsel %vm1568_vm3, %v1571_v51, %v1574_v54 }
 0x13f   : > { %v626_v57 = vor.u32 4788187, %v625_v42  ;;  %v650_v21 = vand.u32 2147483647, %v3299_v35  ;;  %v653_v49 = vand.u32 2139095040, %v3299_v35  ;;  %v1576_v61 = vsel %vm1566_vm4, nan, %v1575_v23 }
 0x140   : > { %v629_v2 = vcvt.s32.f32 %v622_v56  ;;  %v1636_v37 = vsel %vm1634_vm9, %v1635_v14, %v3294_v29  ;;  %v2421_v18 = vsub.f32 0.0, %v2402_v1  ;;  %v2487_v50 = vmul.f32 %v3229_v8, %v1576_v61 }
 0x141   : > { %v627_v52 = vand.u32 2147483647, %v626_v57  ;;  %v1637_v7 = vadd.s32 %v1636_v37, %v1632_v25  ;;  %v654_v34 = vshrl.u32 %v653_v49, 23  ;;  %v634_v55 = vsel %vm549_vm7, %v633_v59, %v3216_v32 }
 0x142   : > { %v400_v33 = vadd.f32 %v3005_v46, %v2995_v38  ;;  %v1683_v5 = vand.u32 2139095040, %v3315_v16  ;;  %2507 = vst.msk [vmem:[%s3269_s27 + $0x50] sm:$0xff] %vm2496_vm14, %v2487_v50  ;;  %v657_v8 = vand.u32 8388607, %v650_v21  ;;  %v2441_v27 = vmul.f32 1.442695, %v2421_v18 }
 0x143   : > { %v630_v31 = vmul.f32 %v629_v2, %v627_v52  ;;  %v1638_v30 = vadd.s32 536870912, %v1637_v7  ;;  %v2606_v0 = vadd.s32 4294967169, %v654_v34  ;;  %v1680_v11 = vand.u32 2147483647, %v3315_v16  ;;  %v3372_v2 = vpop.f32.mrb[9].mxu1 }
 0x144   : > { %v1684_v62 = vshrl.u32 %v1683_v5, 23  ;;  %vm3338_vm10 = vcmp.le.f32.partialorder %v547_v6, 0.7853982  ;;  %v3346_v36 = vmul.f32 %v400_v33, %v400_v33  ;;  %v658_v59 = vor.u32 8388608, %v657_v8 }
 0x145   : > { %v631_v46 = vxor.u32 2147483648, %v630_v31  ;;  %v3342_v3 = vshrl.u32 %v1638_v30, 30  ;;  %v660_v29 = vadd.s32 1, %v2606_v0  ;;  %v636_v39 = vsel %vm3338_vm10, 0, %v634_v55 }
 0x146   : > { %v2646_v4 = vadd.s32 4294967169, %v1684_v62  ;;  %2781 = vpow2.f32 %v2441_v27  ;;  %v3356_v54 = vand.u32 8388607, %v1680_v11  ;;  %v3358_v56 = vand.u32 3, %v636_v39  ;;  %v3392_v27 = vpop.f32.mrb[10].mxu0 }
 0x147   : > { %v632_v44 = vsel %vm549_vm7, %v631_v46, %v630_v31  ;;  %v1640_v40 = vshll.u32 %v3342_v3, 30  ;;  %vm661_vm11 = vcmp.gt.s32.totalorder %v660_v29, 0  ;;  %v1633_v23 = vadd.s32 %v3293_v22, %v3281_v45 }
 0x148   : > { %v635_v6 = vsel %vm3338_vm10, %v3008_v48, %v632_v44  ;;  %v662_v1 = vsel %vm661_vm11, %v660_v29, 0  ;;  %v3364_v14 = vadd.s32 1, %v2646_v4  ;;  %v2431_v49 = vsub.f32 0.0, %v3346_v36 }
 0x149   : > { %2783 = vcosq.f32 %v635_v6  ;;  %v3360_v42 = vsub.s32 %v1637_v7, %v1640_v40  ;;  %v3362_v51 = vshrl.u32 %v662_v1, 5  ;;  %v664_v25 = vand.u32 31, %v662_v1 }
 0x14a   : > { %2785 = vsinq.f32 %v635_v6  ;;  %v3370_v61 = vshll.u32 %v658_v59, 8  ;;  %v1663_v37 = vsub.s32 4, %v3342_v3  ;;  %v1688_v50 = vor.u32 8388608, %v3356_v54 }
 0x14b   : > { %v1643_v57 = vsub.s32 0, %v3360_v42  ;;  %v665_v18 = vsub.s32 32, %v664_v25  ;;  %vm682_vm12 = vcmp.lt.s32.totalorder %v3362_v51, 1  ;;  %vm645_vm13 = vcmp.eq.s32.totalorder %v3358_v56, 2 }
 0x14c   : > { %v667_v45 = vshll.u32 %v2892_v9, %v664_v25  ;;  %v670_v22 = vshll.u32 %v2893_v13, %v664_v25  ;;  %v673_v7 = vshll.u32 %v2894_v15, %v664_v25  ;;  %vm642_vm15 = vcmp.eq.s32.totalorder %v3358_v56, 0 }
 0x14d   : > { %v2643_v52 = vmin.u32 %v1643_v57, %v3360_v42  ;;  %v666_v34 = vshrl.u32 %v2892_v9, %v665_v18  ;;  %v668_v55 = vshrl.u32 %v2893_v13, %v665_v18  ;;  %v671_v33 = vshrl.u32 %v2894_v15, %v665_v18 }
 0x14e   : > { %v674_v5 = vshrl.u32 %v2895_v17, %v665_v18  ;;  %vm1691_vm0 = vcmp.gt.s32.totalorder %v3364_v14, 0  ;;  %vm641_vm1 = vcmp.lt.s32.totalorder %v3358_v56, 2  ;;  %v676_v30 = vshll.u32 %v2895_v17, %v664_v25 }
 0x14f   : > { %v1645_v31 = vclz %v2643_v52  ;;  %v677_v0 = vshrl.u32 %v2896_v19, %v665_v18  ;;  %v679_v8 = vshll.u32 %v2896_v19, %v664_v25  ;;  %vm639_vm2 = vweird.f32 %v3008_v48 }
 0x150   : > { %v669_v62 = vor.u32 %v668_v55, %v667_v45  ;;  %v672_v32 = vor.u32 %v671_v33, %v670_v22  ;;  %v675_v46 = vor.u32 %v674_v5, %v673_v7  ;;  %v680_v29 = vshrl.u32 %v2897_v28, %v665_v18  ;;  %v2782_v44 = vpop.eup %2781 }
 0x151   : > { %v2644_v39 = vadd.s32 4294967294, %v1645_v31  ;;  %v678_v4 = vor.u32 %v677_v0, %v676_v30  ;;  %vm683_vm3 = vcmp.lt.s32.totalorder %v3362_v51, 2  ;;  %vm685_vm4 = vcmp.lt.s32.totalorder %v3362_v51, 4 }
 0x152   : > { %v681_v40 = vor.u32 %v680_v29, %v679_v8  ;;  %vm684_vm5 = vcmp.lt.s32.totalorder %v3362_v51, 3  ;;  %v686_v59 = vsel %vm682_vm12, %v666_v34, %v669_v62  ;;  %v687_v6 = vsel %vm685_vm4, %v675_v46, 2102212464 }
 0x153   : > { %v2784_v1 = vpop.eup %2783  ;;  %vm2645_vm6 = vcmp.lt.s32.totalorder %v2644_v39, 0  ;;  %v688_v25 = vsel %vm684_vm5, %v672_v32, %v687_v6  ;;  %v690_v57 = vsel %vm682_vm12, %v669_v62, %v672_v32  ;;  %v691_v18 = vsel %vm685_vm4, %v678_v4, 920167782 }
 0x154   : > { %v2786_v52 = vpop.eup %2785  ;;  %v646_v45 = vxor.u32 2147483648, %v2784_v1  ;;  %v1648_v22 = vsel %vm2645_vm6, 0, %v2644_v39  ;;  %v692_v7 = vsel %vm684_vm5, %v675_v46, %v691_v18  ;;  %v694_v34 = vsel %vm682_vm12, %v672_v32, %v675_v46 }
 0x155   : > { %v643_v55 = vxor.u32 2147483648, %v2786_v52  ;;  %v1649_v33 = vsub.s32 32, %v1648_v22  ;;  %v1653_v5 = vsub.s32 4294967266, %v1648_v22  ;;  %v689_v31 = vsel %vm683_vm3, %v686_v59, %v688_v25 }
 0x156   : > { %v647_v30 = vsel %vm645_vm13, %v646_v45, %v2786_v52  ;;  %v1650_v0 = vshll.u32 %v3360_v42, %v1648_v22  ;;  %v693_v8 = vsel %vm683_vm3, %v690_v57, %v692_v7  ;;  %v695_v62 = vsel %vm685_vm4, %v681_v40, 1326507024 }
 0x157   : > { %v644_v32 = vsel %vm642_vm15, %v2784_v1, %v643_v55  ;;  %v1651_v46 = vshrl.u32 %v1633_v23, %v1649_v33  ;;  %v1654_v29 = vadd.s32 127, %v1653_v5  ;;  %v696_v39 = vsel %vm684_vm5, %v678_v4, %v695_v62  ;;  %v3474_v55 = vpop.f32.mrb[10].mxu1 }
 0x158   : > { %v648_v59 = vsel %vm641_vm1, %v644_v32, %v647_v30  ;;  %v697_v42 = vsel %vm683_vm3, %v694_v34, %v696_v39  ;;  %v3431_v6 = vmul.u32.u64.low %v3370_v61, %v693_v8  ;;  %v3432_v25 = vmul.u32.u64.high %v3370_v61, %v693_v8, %v3431_v6 }
 0x159   : > { %v649_v40 = vsel %vm639_vm2, nan, %v648_v59  ;;  %v1652_v23 = vor.u32 %v1651_v46, %v1650_v0  ;;  %v1655_v1 = vshll.u32 %v1654_v29, 23  ;;  %v1692_v4 = vsel %vm1691_vm0, %v3364_v14, 0 }
 0x15a   : > { %vm3442_vm7 = vcmp.le.f32.partialorder %v1577_v47, 0.7853982  ;;  %v2478_v51 = vmul.f32 %v2782_v44, %v649_v40  ;;  %v3447_v57 = vmul.u32.u64.low %v3370_v61, %v697_v42  ;;  %v3448_v18 = vmul.u32.u64.high %v3370_v61, %v697_v42, %v3447_v57 }
 0x15b   : > { %vm1579_vm8 = vcmp.lt.s32.totalorder %v3112_v43, 0  ;;  %v1656_v48 = vor.u32 4788187, %v1655_v1  ;;  %v3453_v52 = vmul.f32 1.442695, %v2431_v49  ;;  %v1694_v45 = vand.u32 31, %v1692_v4 }
 0x15c   : > { %v1664_v47 = vsel %vm1579_vm8, %v1663_v37, %v3342_v3  ;;  %2498 = vst.msk [vmem:[%s3269_s27 + $0x8] sm:$0xff] %vm2496_vm14, %v2478_v51  ;;  %v705_v14 = vmul.u32 %v3370_v61, %v689_v31  ;;  %v708_v44 = vadd.s32 1, %v3432_v25  ;;  %v3466_v22 = vshll.u32 %v1688_v50, 8 }
 0x15d   : > { %v1657_v36 = vand.u32 2147483647, %v1656_v48  ;;  %v1659_v49 = vcvt.s32.f32 %v1652_v23  ;;  %v1695_v7 = vsub.s32 32, %v1694_v45  ;;  %v1697_v34 = vshll.u32 %v2892_v9, %v1694_v45 }
 0x15e   : > { %vm707_vm9 = vc.u32 %v3448_v18, %v3431_v6  ;;  %v1700_v3 = vshll.u32 %v2893_v13, %v1694_v45  ;;  %v1703_v37 = vshll.u32 %v2894_v15, %v1694_v45  ;;  %v1706_v61 = vshll.u32 %v2895_v17, %v1694_v45 }
 0x15f   : > { %v1660_v33 = vmul.f32 %v1659_v49, %v1657_v36  ;;  %v709_v54 = vsel %vm707_vm9, %v708_v44, %v3432_v25  ;;  %v1693_v50 = vshrl.u32 %v1692_v4, 5  ;;  %v1698_v5 = vshrl.u32 %v2893_v13, %v1695_v7 }
 0x160   : > { %v710_v31 = vadd.s32 %v709_v54, %v705_v14  ;;  %v1701_v30 = vshrl.u32 %v2894_v15, %v1695_v7  ;;  %v1704_v0 = vshrl.u32 %v2895_v17, %v1695_v7  ;;  %v1707_v8 = vshrl.u32 %v2896_v19, %v1695_v7 }
 0x161   : > { %v1661_v62 = vxor.u32 2147483648, %v1660_v33  ;;  %v1699_v32 = vor.u32 %v1698_v5, %v1697_v34  ;;  %v1709_v46 = vshll.u32 %v2896_v19, %v1694_v45  ;;  %v1710_v29 = vshrl.u32 %v2897_v28, %v1695_v7 }
 0x162   : > { %v711_v39 = vadd.s32 536870912, %v710_v31  ;;  %v1702_v59 = vor.u32 %v1701_v30, %v1700_v3  ;;  %v1705_v42 = vor.u32 %v1704_v0, %v1703_v37  ;;  %v1708_v25 = vor.u32 %v1707_v8, %v1706_v61 }
 0x163   : > { %v1662_v40 = vsel %vm1579_vm8, %v1661_v62, %v1660_v33  ;;  %v1666_v23 = vsel %vm3442_vm7, 0, %v1664_v47  ;;  %v1696_v1 = vshrl.u32 %v2892_v9, %v1695_v7  ;;  %v1711_v4 = vor.u32 %v1710_v29, %v1709_v46 }
 0x164   : > { %v1665_v51 = vsel %vm3442_vm7, %v3112_v43, %v1662_v40  ;;  %v712_v57 = vshrl.u32 %v711_v39, 30  ;;  %vm1712_vm10 = vcmp.lt.s32.totalorder %v1693_v50, 1  ;;  %vm1715_vm11 = vcmp.lt.s32.totalorder %v1693_v50, 4 }
 0x165   : > { %2787 = vcosq.f32 %v1665_v51  ;;  %v1717_v48 = vsel %vm1715_vm11, %v1705_v42, 2102212464  ;;  %v1720_v45 = vsel %vm1712_vm10, %v1699_v32, %v1702_v59  ;;  %v1721_v14 = vsel %vm1715_vm11, %v1708_v25, 920167782 }
 0x166   : > { %2789 = vsinq.f32 %v1665_v51  ;;  %v713_v44 = vshll.u32 %v712_v57, 30  ;;  %vm1714_vm12 = vcmp.lt.s32.totalorder %v1693_v50, 3  ;;  %v1724_v36 = vsel %vm1712_vm10, %v1702_v59, %v1705_v42 }
 0x167   : > { %vm1713_vm13 = vcmp.lt.s32.totalorder %v1693_v50, 2  ;;  %v1716_v47 = vsel %vm1712_vm10, %v1696_v1, %v1699_v32  ;;  %v1722_v49 = vsel %vm1714_vm12, %v1705_v42, %v1721_v14  ;;  %v1725_v7 = vsel %vm1715_vm11, %v1711_v4, 1326507024 }
 0x168   : > { %v3491_v34 = vsub.s32 %v710_v31, %v713_v44  ;;  %v1718_v3 = vsel %vm1714_vm12, %v1702_v59, %v1717_v48  ;;  %v1723_v56 = vsel %vm1713_vm13, %v1720_v45, %v1722_v49  ;;  %v1726_v37 = vsel %vm1714_vm12, %v1708_v25, %v1725_v7 }
 0x169   : > { %v1670_v61 = vand.u32 3, %v1666_v23  ;;  %v1727_v33 = vsel %vm1713_vm13, %v1724_v36, %v1726_v37  ;;  %v3494_v54 = vmul.u32.u64.low %v3466_v22, %v1723_v56  ;;  %v3495_v5 = vmul.u32.u64.high %v3466_v22, %v1723_v56, %v3494_v54 }
 0x16a   : > { %v716_v30 = vsub.s32 0, %v3491_v34  ;;  %v3500_v0 = vmul.u32.u64.low %v3466_v22, %v1727_v33  ;;  %v3501_v50 = vmul.u32.u64.high %v3466_v22, %v1727_v33, %v3500_v0  ;;  %v3505_v31 = vadd.f32 %v3023_v63, %v2983_v26 }
 0x16b   : > { %2791 = vpow2.f32 %v3453_v52  ;;  %v1719_v8 = vsel %vm1713_vm13, %v1716_v47, %v1718_v3  ;;  %v346_v62 = vadd.f32 %v3016_v58, %v2995_v38  ;;  %vm1669_vm15 = vweird.f32 %v3112_v43 }
 0x16c   : > { %v2607_v32 = vmin.u32 %v716_v30, %v3491_v34  ;;  %vm1671_vm0 = vcmp.lt.s32.totalorder %v1670_v61, 2  ;;  %vm652_vm1 = vcmp.lt.s32.totalorder %v3299_v35, 0  ;;  %v1738_v46 = vadd.s32 1, %v3495_v5 }
 0x16d   : > { %v406_v29 = vadd.f32 %v3019_v60, %v2995_v38  ;;  %vm3518_vm2 = vcmp.le.f32.partialorder %v650_v21, 0.7853982  ;;  %v1735_v58 = vmul.u32 %v3466_v22, %v1719_v8  ;;  %vm1737_vm3 = vc.u32 %v3501_v50, %v3494_v54 }
 0x16e   : > { %v718_v52 = vclz %v2607_v32  ;;  %v756_v39 = vand.u32 2139095040, %v3505_v31  ;;  %v736_v42 = vsub.s32 4, %v712_v57  ;;  %v1739_v25 = vsel %vm1737_vm3, %v1738_v46, %v3495_v5  ;;  %v3535_v5 = vpop.f32.mrb[11].mxu0 }
 0x16f   : > { %v2788_v59 = vpop.eup %2787  ;;  %v2403_v40 = vmul.f32 %v346_v62, %v346_v62  ;;  %v753_v60 = vand.u32 2147483647, %v3505_v31  ;;  %v1740_v4 = vadd.s32 %v1739_v25, %v1735_v58  ;;  %vm1672_vm4 = vcmp.eq.s32.totalorder %v1670_v61, 0 }
 0x170   : > { %v2790_v23 = vpop.eup %2789  ;;  %v1676_v21 = vxor.u32 2147483648, %v2788_v59  ;;  %v2608_v1 = vadd.s32 4294967294, %v718_v52  ;;  %v757_v51 = vshrl.u32 %v756_v39, 23  ;;  %vm1675_vm5 = vcmp.eq.s32.totalorder %v1670_v61, 2 }
 0x171   : > { %v1673_v48 = vxor.u32 2147483648, %v2790_v23  ;;  %v706_v22 = vadd.s32 %v3431_v6, %v3448_v18  ;;  %v1741_v14 = vadd.s32 536870912, %v1740_v4  ;;  %v737_v49 = vsel %vm652_vm1, %v736_v42, %v712_v57 }
 0x172   : > { %v1677_v45 = vsel %vm1675_vm5, %v1676_v21, %v2790_v23  ;;  %vm2609_vm6 = vcmp.lt.s32.totalorder %v2608_v1, 0  ;;  %v2610_v44 = vadd.s32 4294967169, %v757_v51  ;;  %v2422_v7 = vsub.f32 0.0, %v2403_v40 }
 0x173   : > { %v1674_v36 = vsel %vm1672_vm4, %v2788_v59, %v1673_v48  ;;  %v721_v47 = vsel %vm2609_vm6, 0, %v2608_v1  ;;  %v760_v33 = vand.u32 8388607, %v753_v60  ;;  %v3539_v30 = vshrl.u32 %v1741_v14, 30 }
 0x174   : > { %v1678_v3 = vsel %vm1671_vm0, %v1674_v36, %v1677_v45  ;;  %v722_v56 = vsub.s32 32, %v721_v47  ;;  %v726_v37 = vsub.s32 4294967266, %v721_v47  ;;  %v763_v0 = vadd.s32 1, %v2610_v44 }
 0x175   : > { %v2792_v6 = vpop.eup %2791  ;;  %v1679_v18 = vsel %vm1669_vm15, nan, %v1678_v3  ;;  %v3543_v57 = vadd.f32 %v3044_v24, %v2983_v26  ;;  %v723_v8 = vshll.u32 %v3491_v34, %v721_v47  ;;  %v739_v46 = vsel %vm3518_vm2, 0, %v737_v49 }
 0x176   : > { %v2488_v61 = vmul.f32 %v2792_v6, %v1679_v18  ;;  %v724_v62 = vshrl.u32 %v706_v22, %v722_v56  ;;  %v727_v32 = vadd.s32 127, %v726_v37  ;;  %v1743_v52 = vshll.u32 %v3539_v30, 30 }
 0x177   : > { %v2443_v58 = vmul.f32 1.442695, %v2422_v7  ;;  %vm764_vm7 = vcmp.gt.s32.totalorder %v763_v0, 0  ;;  %v761_v59 = vor.u32 8388608, %v760_v33  ;;  %v1786_v34 = vand.u32 2139095040, %v3543_v57 }
 0x178   : > { %2508 = vst.msk [vmem:[%s3269_s27 + $0x58] sm:$0xff] %vm2496_vm14, %v2488_v61  ;;  %v725_v43 = vor.u32 %v724_v62, %v723_v8  ;;  %v728_v39 = vshll.u32 %v727_v32, 23  ;;  %v765_v42 = vsel %vm764_vm7, %v763_v0, 0  ;;  %v3551_v24 = vsub.s32 %v1740_v4, %v1743_v52 }
 0x179   : > { %v767_v25 = vand.u32 31, %v765_v42  ;;  %v3554_v23 = vand.u32 3, %v739_v46  ;;  %v3556_v21 = vmul.f32 %v406_v29, %v406_v29  ;;  %v1736_v1 = vadd.s32 %v3494_v54, %v3501_v50 }
 0x17a   : > { %v729_v40 = vor.u32 4788187, %v728_v39  ;;  %v1746_v51 = vsub.s32 0, %v3551_v24  ;;  %2793 = vpow2.f32 %v2443_v58  ;;  %v732_v45 = vcvt.s32.f32 %v725_v43 }
 0x17b   : > { %v768_v48 = vsub.s32 32, %v767_v25  ;;  %v1766_v4 = vsub.s32 4, %v3539_v30  ;;  %v3562_v14 = vshll.u32 %v761_v59, 8  ;;  %v3565_v36 = vshrl.u32 %v765_v42, 5 }
 0x17c   : > { %v730_v22 = vand.u32 2147483647, %v729_v40  ;;  %v2647_v44 = vmin.u32 %v1746_v51, %v3551_v24  ;;  %v770_v29 = vshll.u32 %v2892_v9, %v767_v25  ;;  %v1787_v47 = vshrl.u32 %v1786_v34, 23  ;;  %v3586_v34 = vpop.f32.mrb[11].mxu1 }
 0x17d   : > { %v771_v54 = vshrl.u32 %v2893_v13, %v768_v48  ;;  %v773_v50 = vshll.u32 %v2893_v13, %v767_v25  ;;  %v774_v7 = vshrl.u32 %v2894_v15, %v768_v48  ;;  %v776_v56 = vshll.u32 %v2894_v15, %v767_v25 }
 0x17e   : > { %v733_v49 = vmul.f32 %v732_v45, %v730_v22  ;;  %v1748_v3 = vclz %v2647_v44  ;;  %v777_v37 = vshrl.u32 %v2895_v17, %v768_v48  ;;  %v780_v33 = vshrl.u32 %v2896_v19, %v768_v48 }
 0x17f   : > { %v779_v18 = vshll.u32 %v2895_v17, %v767_v25  ;;  %v782_v0 = vshll.u32 %v2896_v19, %v767_v25  ;;  %v783_v61 = vshrl.u32 %v2897_v28, %v768_v48  ;;  %v772_v62 = vor.u32 %v771_v54, %v770_v29  ;;  %v3596_v29 = vpop.f32.mrb[12].mxu0 }
 0x180   : > { %v734_v6 = vxor.u32 2147483648, %v733_v49  ;;  %v2648_v8 = vadd.s32 4294967294, %v1748_v3  ;;  %v775_v32 = vor.u32 %v774_v7, %v773_v50  ;;  %v778_v46 = vor.u32 %v777_v37, %v776_v56 }
 0x181   : > { %v769_v58 = vshrl.u32 %v2892_v9, %v768_v48  ;;  %v781_v43 = vor.u32 %v780_v33, %v779_v18  ;;  %v784_v39 = vor.u32 %v783_v61, %v782_v0  ;;  %vm785_vm9 = vcmp.lt.s32.totalorder %v3565_v36, 1 }
 0x182   : > { %v735_v52 = vsel %vm652_vm1, %v734_v6, %v733_v49  ;;  %vm2649_vm8 = vcmp.lt.s32.totalorder %v2648_v8, 0  ;;  %vm788_vm10 = vcmp.lt.s32.totalorder %v3565_v36, 4  ;;  %vm786_vm11 = vcmp.lt.s32.totalorder %v3565_v36, 2 }
 0x183   : > { %v738_v59 = vsel %vm3518_vm2, %v3299_v35, %v735_v52  ;;  %v1751_v42 = vsel %vm2649_vm8, 0, %v2648_v8  ;;  %v790_v25 = vsel %vm788_vm10, %v778_v46, 2102212464  ;;  %vm1682_vm12 = vcmp.lt.s32.totalorder %v3315_v16, 0 }
 0x184   : > { %2795 = vcosq.f32 %v738_v59  ;;  %v3588_v40 = vpop.eup %2793  ;;  %v1752_v51 = vsub.s32 32, %v1751_v42  ;;  %v1756_v63 = vsub.s32 4294967266, %v1751_v42  ;;  %v793_v48 = vsel %vm785_vm9, %v772_v62, %v775_v32 }
 0x185   : > { %2797 = vsinq.f32 %v738_v59  ;;  %vm787_vm13 = vcmp.lt.s32.totalorder %v3565_v36, 3  ;;  %v794_v22 = vsel %vm788_vm10, %v781_v43, 920167782  ;;  %v797_v45 = vsel %vm785_vm9, %v775_v32, %v778_v46 }
 0x186   : > { %v798_v44 = vsel %vm788_vm10, %v784_v39, 1326507024  ;;  %v1753_v49 = vshll.u32 %v3551_v24, %v1751_v42  ;;  %v1754_v54 = vshrl.u32 %v1736_v1, %v1752_v51  ;;  %v1757_v50 = vadd.s32 127, %v1756_v63 }
 0x187   : > { %v795_v7 = vsel %vm787_vm13, %v778_v46, %v794_v22  ;;  %v789_v3 = vsel %vm785_vm9, %v769_v58, %v772_v62  ;;  %v799_v37 = vsel %vm787_vm13, %v781_v43, %v798_v44  ;;  %v2650_v33 = vadd.s32 4294967169, %v1787_v47 }
 0x188   : > { %v796_v56 = vsel %vm786_vm11, %v793_v48, %v795_v7  ;;  %v1755_v6 = vor.u32 %v1754_v54, %v1753_v49  ;;  %v1758_v18 = vshll.u32 %v1757_v50, 23  ;;  %v791_v0 = vsel %vm787_vm13, %v775_v32, %v790_v25 }
 0x189   : > { %v800_v61 = vsel %vm786_vm11, %v797_v45, %v799_v37  ;;  %v3610_v1 = vmul.u32.u64.low %v3562_v14, %v796_v56  ;;  %v3611_v46 = vmul.u32.u64.high %v3562_v14, %v796_v56, %v3610_v1  ;;  %vm742_vm15 = vweird.f32 %v3299_v35 }
 0x18a   : > { %v3606_v8 = vmul.u32.u64.low %v3562_v14, %v800_v61  ;;  %v3607_v24 = vmul.u32.u64.high %v3562_v14, %v800_v61, %v3606_v8  ;;  %vm744_vm0 = vcmp.lt.s32.totalorder %v3554_v23, 2  ;;  %vm3618_vm1 = vcmp.le.f32.partialorder %v1680_v11, 0.7853982 }
 0x18b   : > { %v1759_v62 = vor.u32 4788187, %v1758_v18  ;;  %v1793_v32 = vadd.s32 1, %v2650_v33  ;;  %vm745_vm2 = vcmp.eq.s32.totalorder %v3554_v23, 0  ;;  %v2432_v52 = vsub.f32 0.0, %v3556_v21  ;;  %v3648_v33 = vpop.f32.mrb[12].mxu1 }
 0x18c   : > { %v792_v58 = vsel %vm786_vm11, %v789_v3, %v791_v0  ;;  %v1783_v43 = vand.u32 2147483647, %v3543_v57  ;;  %vm748_vm3 = vcmp.eq.s32.totalorder %v3554_v23, 2  ;;  %v1762_v59 = vcvt.s32.f32 %v1755_v6 }
 0x18d   : > { %v1760_v39 = vand.u32 2147483647, %v1759_v62  ;;  %vm1794_vm4 = vcmp.gt.s32.totalorder %v1793_v32, 0  ;;  %v1767_v42 = vsel %vm1682_vm12, %v1766_v4, %v3539_v30  ;;  %vm810_vm5 = vc.u32 %v3607_v24, %v3610_v1 }
 0x18e   : > { %v2796_v11 = vpop.eup %2795  ;;  %v811_v21 = vadd.s32 1, %v3611_v46  ;;  %v1795_v36 = vsel %vm1794_vm4, %v1793_v32, 0  ;;  %v808_v48 = vmul.u32 %v3562_v14, %v792_v58  ;;  %v2463_v44 = vmul.f32 1.442695, %v2432_v52 }
 0x18f   : > { %v2798_v25 = vpop.eup %2797  ;;  %v749_v51 = vxor.u32 2147483648, %v2796_v11  ;;  %v1763_v63 = vmul.f32 %v1762_v59, %v1760_v39  ;;  %v1797_v22 = vand.u32 31, %v1795_v36  ;;  %v1790_v54 = vand.u32 8388607, %v1783_v43 }
 0x190   : > { %v746_v45 = vxor.u32 2147483648, %v2798_v25  ;;  %v812_v49 = vsel %vm810_vm5, %v811_v21, %v3611_v46  ;;  %v1769_v14 = vsel %vm3618_vm1, 0, %v1767_v42  ;;  %vm1772_vm11 = vweird.f32 %v3315_v16 }
 0x191   : > { %v750_v30 = vsel %vm748_vm3, %v749_v51, %v2798_v25  ;;  %v1764_v4 = vxor.u32 2147483648, %v1763_v63  ;;  %v813_v50 = vadd.s32 %v812_v49, %v808_v48  ;;  %v1798_v7 = vsub.s32 32, %v1797_v22 }
 0x192   : > { %v747_v3 = vsel %vm745_vm2, %v2796_v11, %v746_v45  ;;  %v1800_v56 = vshll.u32 %v2892_v9, %v1797_v22  ;;  %v1803_v37 = vshll.u32 %v2893_v13, %v1797_v22  ;;  %v1806_v61 = vshll.u32 %v2894_v15, %v1797_v22 }
 0x193   : > { %v751_v6 = vsel %vm744_vm0, %v747_v3, %v750_v30  ;;  %v1765_v18 = vsel %vm1682_vm12, %v1764_v4, %v1763_v63  ;;  %v814_v0 = vadd.s32 536870912, %v813_v50  ;;  %v1801_v62 = vshrl.u32 %v2893_v13, %v1798_v7 }
 0x194   : > { %v752_v8 = vsel %vm742_vm15, nan, %v751_v6  ;;  %v1768_v46 = vsel %vm3618_vm1, %v3315_v16, %v1765_v18  ;;  %v1804_v32 = vshrl.u32 %v2894_v15, %v1798_v7  ;;  %v1807_v58 = vshrl.u32 %v2895_v17, %v1798_v7 }
 0x195   : > { %2799 = vcosq.f32 %v1768_v46  ;;  %v2479_v23 = vmul.f32 %v3588_v40, %v752_v8  ;;  %v3663_v52 = vshrl.u32 %v814_v0, 30  ;;  %v3666_v39 = vand.u32 3, %v1769_v14 }
 0x196   : > { %2801 = vsinq.f32 %v1768_v46  ;;  %v1791_v35 = vor.u32 8388608, %v1790_v54  ;;  %v1809_v59 = vshll.u32 %v2895_v17, %v1797_v22  ;;  %v1796_v11 = vshrl.u32 %v1795_v36, 5 }
 0x197   : > { %2499 = vst.msk [vmem:[%s3269_s27 + $0x10] sm:$0xff] %vm2496_vm14, %v2479_v23  ;;  %v816_v47 = vshll.u32 %v3663_v52, 30  ;;  %v1802_v42 = vor.u32 %v1801_v62, %v1800_v56  ;;  %v1810_v21 = vshrl.u32 %v2896_v19, %v1798_v7  ;;  %v1805_v25 = vor.u32 %v1804_v32, %v1803_v37 }
 0x198   : > { %v1808_v40 = vor.u32 %v1807_v58, %v1806_v61  ;;  %v1812_v51 = vshll.u32 %v2896_v19, %v1797_v22  ;;  %v1813_v63 = vshrl.u32 %v2897_v28, %v1798_v7  ;;  %2803 = vpow2.f32 %v2463_v44 }
 0x199   : > { %v3675_v48 = vsub.s32 %v813_v50, %v816_v47  ;;  %v1811_v45 = vor.u32 %v1810_v21, %v1809_v59  ;;  %vm1775_vm6 = vcmp.eq.s32.totalorder %v3666_v39, 0  ;;  %vm1778_vm7 = vcmp.eq.s32.totalorder %v3666_v39, 2 }
 0x19a   : > { %v1814_v49 = vor.u32 %v1813_v63, %v1812_v51  ;;  %v3679_v54 = vshll.u32 %v1791_v35, 8  ;;  %vm1774_vm8 = vcmp.lt.s32.totalorder %v3666_v39, 2  ;;  %v1799_v30 = vshrl.u32 %v2892_v9, %v1798_v7 }
 0x19b   : > { %v819_v36 = vsub.s32 0, %v3675_v48  ;;  %vm1815_vm9 = vcmp.lt.s32.totalorder %v1796_v11, 1  ;;  %vm1818_vm10 = vcmp.lt.s32.totalorder %v1796_v11, 4  ;;  %vm1817_vm12 = vcmp.lt.s32.totalorder %v1796_v11, 3 }
 0x19c   : > { %v1823_v22 = vsel %vm1815_vm9, %v1802_v42, %v1805_v25  ;;  %v1824_v44 = vsel %vm1818_vm10, %v1811_v45, 920167782  ;;  %v1827_v4 = vsel %vm1815_vm9, %v1805_v25, %v1808_v40  ;;  %v1828_v50 = vsel %vm1818_vm10, %v1814_v49, 1326507024 }
 0x19d   : > { %v2611_v3 = vmin.u32 %v819_v36, %v3675_v48  ;;  %v1820_v14 = vsel %vm1818_vm10, %v1808_v40, 2102212464  ;;  %v352_v56 = vadd.f32 %v3114_v12, %v2995_v38  ;;  %vm1816_vm13 = vcmp.lt.s32.totalorder %v1796_v11, 2 }
 0x19e   : > { %v1825_v37 = vsel %vm1817_vm12, %v1808_v40, %v1824_v44  ;;  %v1829_v7 = vsel %vm1817_vm12, %v1811_v45, %v1828_v50  ;;  %v3692_v6 = vadd.f32 %v3174_v41, %v2983_v26  ;;  %vm755_vm15 = vcmp.lt.s32.totalorder %v3505_v31, 0 }
 0x19f   : > { %v2800_v18 = vpop.eup %2799  ;;  %v821_v0 = vclz %v2611_v3  ;;  %v1819_v61 = vsel %vm1815_vm9, %v1799_v30, %v1802_v42  ;;  %v1826_v8 = vsel %vm1816_vm13, %v1823_v22, %v1825_v37  ;;  %v1830_v46 = vsel %vm1816_vm13, %v1827_v4, %v1829_v7  ;;  %v3732_v37 = vpop.f32.mrb[13].mxu0 }
 0x1a0   : > { %v2802_v62 = vpop.eup %2801  ;;  %v1779_v32 = vxor.u32 2147483648, %v2800_v18  ;;  %v1821_v12 = vsel %vm1817_vm12, %v1805_v25, %v1820_v14  ;;  %v3699_v23 = vmul.u32.u64.low %v3679_v54, %v1830_v46  ;;  %v3700_v58 = vmul.u32.u64.high %v3679_v54, %v1830_v46, %v3699_v23  ;;  %v3740_v46 = vpop.f32.mrb[13].mxu1 }
 0x1a1   : > { %v1776_v35 = vxor.u32 2147483648, %v2802_v62  ;;  %v2612_v41 = vadd.s32 4294967294, %v821_v0  ;;  %v3703_v59 = vmul.u32.u64.low %v3679_v54, %v1826_v8  ;;  %v3704_v47 = vmul.u32.u64.high %v3679_v54, %v1826_v8, %v3703_v59 }
 0x1a2   : > { %v1780_v42 = vsel %vm1778_vm7, %v1779_v32, %v2802_v62  ;;  %v809_v21 = vadd.s32 %v3610_v1, %v3607_v24  ;;  %v412_v25 = vadd.f32 %v3153_v20, %v2995_v38  ;;  %v3715_v40 = vadd.f32 %v3224_v53, %v2983_v26  ;;  %v2804_v51 = vpop.eup %2803 }
 0x1a3   : > { %v1777_v63 = vsel %vm1775_vm6, %v2800_v18, %v1776_v35  ;;  %vm2613_vm0 = vcmp.lt.s32.totalorder %v2612_v41, 0  ;;  %v1822_v45 = vsel %vm1816_vm13, %v1819_v61, %v1821_v12  ;;  %v859_v49 = vand.u32 2139095040, %v3692_v6 }
 0x1a4   : > { %v1781_v36 = vsel %vm1774_vm8, %v1777_v63, %v1780_v42  ;;  %v824_v24 = vsel %vm2613_vm0, 0, %v2612_v41  ;;  %v839_v20 = vsub.s32 4, %v3663_v52  ;;  %v2404_v1 = vmul.f32 %v352_v56, %v352_v56 }
 0x1a5   : > { %v1782_v53 = vsel %vm1772_vm11, nan, %v1781_v36  ;;  %v825_v30 = vsub.s32 32, %v824_v24  ;;  %v829_v22 = vsub.s32 4294967266, %v824_v24  ;;  %vm1840_vm1 = vc.u32 %v3700_v58, %v3703_v59 }
 0x1a6   : > { %v2489_v11 = vmul.f32 %v2804_v51, %v1782_v53  ;;  %v1838_v44 = vmul.u32 %v3679_v54, %v1822_v45  ;;  %v1841_v4 = vadd.s32 1, %v3704_v47  ;;  %v856_v39 = vand.u32 2147483647, %v3692_v6 }
 0x1a7   : > { %v826_v50 = vshll.u32 %v3675_v48, %v824_v24  ;;  %v827_v3 = vshrl.u32 %v809_v21, %v825_v30  ;;  %v830_v14 = vadd.s32 127, %v829_v22  ;;  %v860_v56 = vshrl.u32 %v859_v49, 23 }
 0x1a8   : > { %2509 = vst.msk [vmem:[%s3269_s27 + $0x60] sm:$0xff] %vm2496_vm14, %v2489_v11  ;;  %v840_v16 = vsel %vm755_vm15, %v839_v20, %v3663_v52  ;;  %v1842_v7 = vsel %vm1840_vm1, %v1841_v4, %v3704_v47  ;;  %v2423_v54 = vsub.f32 0.0, %v2404_v1  ;;  %vm3744_vm2 = vcmp.le.f32.partialorder %v753_v60, 0.7853982 }
 0x1a9   : > { %v828_v18 = vor.u32 %v827_v3, %v826_v50  ;;  %v831_v0 = vshll.u32 %v830_v14, 23  ;;  %v1843_v61 = vadd.s32 %v1842_v7, %v1838_v44  ;;  %v2614_v8 = vadd.s32 4294967169, %v860_v56 }
 0x1aa   : > { %v2414_v62 = vmul.f32 %v412_v25, %v412_v25  ;;  %v863_v32 = vand.u32 8388607, %v856_v39  ;;  %v1889_v52 = vand.u32 2139095040, %v3715_v40  ;;  %v1886_v41 = vand.u32 2147483647, %v3715_v40 }
 0x1ab   : > { %v832_v12 = vor.u32 4788187, %v831_v0  ;;  %v1844_v23 = vadd.s32 536870912, %v1843_v61  ;;  %v866_v35 = vadd.s32 1, %v2614_v8  ;;  %v835_v47 = vcvt.s32.f32 %v828_v18 }
 0x1ac   : > { %v842_v42 = vsel %vm3744_vm2, 0, %v840_v16  ;;  %v2445_v21 = vmul.f32 1.442695, %v2423_v54  ;;  %v1890_v25 = vshrl.u32 %v1889_v52, 23  ;;  %v2433_v63 = vsub.f32 0.0, %v2414_v62 }
 0x1ad   : > { %v833_v60 = vand.u32 2147483647, %v832_v12  ;;  %v3754_v51 = vshrl.u32 %v1844_v23, 30  ;;  %vm867_vm3 = vcmp.gt.s32.totalorder %v866_v35, 0  ;;  %v864_v45 = vor.u32 8388608, %v863_v32  ;;  %v3787_v12 = vpop.f32.mrb[14].mxu0 }
 0x1ae   : > { %v868_v49 = vsel %vm867_vm3, %v866_v35, 0  ;;  %v3759_v20 = vand.u32 8388607, %v1886_v41  ;;  %v3761_v1 = vand.u32 3, %v842_v42  ;;  %2805 = vpow2.f32 %v2445_v21 }
 0x1af   : > { %v836_v36 = vmul.f32 %v835_v47, %v833_v60  ;;  %v1846_v24 = vshll.u32 %v3754_v51, 30  ;;  %v870_v53 = vand.u32 31, %v868_v49  ;;  %v3765_v11 = vshrl.u32 %v868_v49, 5 }
 0x1b0   : > { %v2654_v44 = vadd.s32 4294967169, %v1890_v25  ;;  %v1839_v4 = vadd.s32 %v3703_v59, %v3700_v58  ;;  %v3769_v50 = vmul.f32 1.442695, %v2433_v63  ;;  %v3771_v14 = vshll.u32 %v864_v45, 8 }
 0x1b1   : > { %v837_v30 = vxor.u32 2147483648, %v836_v36  ;;  %v3763_v22 = vsub.s32 %v1843_v61, %v1846_v24  ;;  %v871_v3 = vsub.s32 32, %v870_v53  ;;  %v873_v7 = vshll.u32 %v2892_v9, %v870_v53 }
 0x1b2   : > { %v1894_v54 = vor.u32 8388608, %v3759_v20  ;;  %v876_v59 = vshll.u32 %v2893_v13, %v870_v53  ;;  %vm888_vm4 = vcmp.lt.s32.totalorder %v3765_v11, 1  ;;  %v1896_v8 = vadd.s32 1, %v2654_v44 }
 0x1b3   : > { %v838_v56 = vsel %vm755_vm15, %v837_v30, %v836_v36  ;;  %v1849_v16 = vsub.s32 0, %v3763_v22  ;;  %v874_v58 = vshrl.u32 %v2893_v13, %v871_v3  ;;  %v877_v0 = vshrl.u32 %v2894_v15, %v871_v3 }
 0x1b4   : > { %v841_v18 = vsel %vm3744_vm2, %v3505_v31, %v838_v56  ;;  %v879_v52 = vshll.u32 %v2894_v15, %v870_v53  ;;  %v880_v23 = vshrl.u32 %v2895_v17, %v871_v3  ;;  %v882_v35 = vshll.u32 %v2895_v17, %v870_v53 }
 0x1b5   : > { %2807 = vcosq.f32 %v841_v18  ;;  %v2651_v61 = vmin.u32 %v1849_v16, %v3763_v22  ;;  %v875_v62 = vor.u32 %v874_v58, %v873_v7  ;;  %v878_v32 = vor.u32 %v877_v0, %v876_v59 }
 0x1b6   : > { %2809 = vsinq.f32 %v841_v18  ;;  %v883_v47 = vshrl.u32 %v2896_v19, %v871_v3  ;;  %v872_v42 = vshrl.u32 %v2892_v9, %v871_v3  ;;  %v885_v21 = vshll.u32 %v2896_v19, %v870_v53 }
 0x1b7   : > { %v1851_v48 = vclz %v2651_v61  ;;  %v886_v60 = vshrl.u32 %v2897_v28, %v871_v3  ;;  %vm890_vm5 = vcmp.lt.s32.totalorder %v3765_v11, 3  ;;  %vm851_vm6 = vcmp.eq.s32.totalorder %v3761_v1, 2 }
 0x1b8   : > { %v881_v63 = vor.u32 %v880_v23, %v879_v52  ;;  %v884_v45 = vor.u32 %v883_v47, %v882_v35  ;;  %vm891_vm7 = vcmp.lt.s32.totalorder %v3765_v11, 4  ;;  %v2806_v49 = vpop.eup %2805  ;;  %vm848_vm8 = vcmp.eq.s32.totalorder %v3761_v1, 0 }
 0x1b9   : > { %v2652_v25 = vadd.s32 4294967294, %v1851_v48  ;;  %v887_v36 = vor.u32 %v886_v60, %v885_v21  ;;  %v892_v24 = vsel %vm888_vm4, %v872_v42, %v875_v62  ;;  %v896_v20 = vsel %vm888_vm4, %v875_v62, %v878_v32 }
 0x1ba   : > { %vm1897_vm9 = vcmp.gt.s32.totalorder %v1896_v8, 0  ;;  %vm847_vm10 = vcmp.lt.s32.totalorder %v3761_v1, 2  ;;  %v893_v53 = vsel %vm891_vm7, %v881_v63, 2102212464  ;;  %v897_v30 = vsel %vm891_vm7, %v884_v45, 920167782 }
 0x1bb   : > { %vm2653_vm11 = vcmp.lt.s32.totalorder %v2652_v25, 0  ;;  %v900_v44 = vsel %vm888_vm4, %v878_v32, %v881_v63  ;;  %vm845_vm12 = vweird.f32 %v3505_v31  ;;  %v894_v56 = vsel %vm890_vm5, %v878_v32, %v893_v53 }
 0x1bc   : > { %v1854_v3 = vsel %vm2653_vm11, 0, %v2652_v25  ;;  %v898_v16 = vsel %vm890_vm5, %v881_v63, %v897_v30  ;;  %v901_v7 = vsel %vm891_vm7, %v887_v36, 1326507024  ;;  %v1869_v59 = vsub.s32 4, %v3754_v51 }
 0x1bd   : > { %v1855_v18 = vsub.s32 32, %v1854_v3  ;;  %v1859_v58 = vsub.s32 4294967266, %v1854_v3  ;;  %vm889_vm13 = vcmp.lt.s32.totalorder %v3765_v11, 2  ;;  %v1856_v0 = vshll.u32 %v3763_v22, %v1854_v3 }
 0x1be   : > { %v895_v61 = vsel %vm889_vm13, %v892_v24, %v894_v56  ;;  %v902_v62 = vsel %vm890_vm5, %v884_v45, %v901_v7  ;;  %v1898_v32 = vsel %vm1897_vm9, %v1896_v8, 0  ;;  %v899_v35 = vsel %vm889_vm13, %v896_v20, %v898_v16 }
 0x1bf   : > { %v2808_v52 = vpop.eup %2807  ;;  %v1857_v48 = vshrl.u32 %v1839_v4, %v1855_v18  ;;  %v1860_v23 = vadd.s32 127, %v1859_v58  ;;  %v903_v47 = vsel %vm889_vm13, %v900_v44, %v902_v62  ;;  %v1900_v63 = vand.u32 31, %v1898_v32  ;;  %v3851_v18 = vpop.f32.mrb[14].mxu1 }
 0x1c0   : > { %v2810_v42 = vpop.eup %2809  ;;  %v852_v21 = vxor.u32 2147483648, %v2808_v52  ;;  %v3824_v60 = vmul.u32.u64.low %v3771_v14, %v903_v47  ;;  %v3825_v25 = vmul.u32.u64.high %v3771_v14, %v903_v47, %v3824_v60  ;;  %v3827_v53 = vshll.u32 %v1894_v54, 8 }
 0x1c1   : > { %v849_v36 = vxor.u32 2147483648, %v2810_v42  ;;  %v1858_v22 = vor.u32 %v1857_v48, %v1856_v0  ;;  %v1861_v24 = vshll.u32 %v1860_v23, 23  ;;  %vm1785_vm15 = vcmp.lt.s32.totalorder %v3543_v57, 0 }
 0x1c2   : > { %v853_v11 = vsel %vm851_vm6, %v852_v21, %v2810_v42  ;;  %v3833_v4 = vmul.u32.u64.low %v3771_v14, %v899_v35  ;;  %v3834_v8 = vmul.u32.u64.high %v3771_v14, %v899_v35, %v3833_v4  ;;  %v1901_v45 = vsub.s32 32, %v1900_v63 }
 0x1c3   : > { %v850_v20 = vsel %vm848_vm8, %v2808_v52, %v849_v36  ;;  %vm3841_vm0 = vcmp.le.f32.partialorder %v1783_v43, 0.7853982  ;;  %v1862_v54 = vor.u32 4788187, %v1861_v24  ;;  %v911_v44 = vmul.u32 %v3771_v14, %v895_v61 }
 0x1c4   : > { %v1903_v3 = vshll.u32 %v2892_v9, %v1900_v63  ;;  %v854_v56 = vsel %vm847_vm10, %v850_v20, %v853_v11  ;;  %v1865_v16 = vcvt.s32.f32 %v1858_v22  ;;  %vm913_vm1 = vc.u32 %v3825_v25, %v3833_v4 }
 0x1c5   : > { %v1899_v7 = vshrl.u32 %v1898_v32, 5  ;;  %v855_v43 = vsel %vm845_vm12, nan, %v854_v56  ;;  %v1863_v58 = vand.u32 2147483647, %v1862_v54  ;;  %v1904_v0 = vshrl.u32 %v2893_v13, %v1901_v45 }
 0x1c6   : > { %v1906_v14 = vshll.u32 %v2893_v13, %v1900_v63  ;;  %v2480_v61 = vmul.f32 %v2806_v49, %v855_v43  ;;  %v914_v1 = vadd.s32 1, %v3834_v8  ;;  %v1907_v62 = vshrl.u32 %v2894_v15, %v1901_v45 }
 0x1c7   : > { %v1909_v52 = vshll.u32 %v2894_v15, %v1900_v63  ;;  %v1866_v48 = vmul.f32 %v1865_v16, %v1863_v58  ;;  %v1905_v23 = vor.u32 %v1904_v0, %v1903_v3  ;;  %v1910_v32 = vshrl.u32 %v2895_v17, %v1901_v45 }
 0x1c8   : > { %v1912_v35 = vshll.u32 %v2895_v17, %v1900_v63  ;;  %2500 = vst.msk [vmem:[%s3269_s27 + $0x18] sm:$0xff] %vm2496_vm14, %v2480_v61  ;;  %v915_v31 = vsel %vm913_vm1, %v914_v1, %v3834_v8  ;;  %v1908_v49 = vor.u32 %v1907_v62, %v1906_v14  ;;  %v1913_v47 = vshrl.u32 %v2896_v19, %v1901_v45 }
 0x1c9   : > { %v1915_v42 = vshll.u32 %v2896_v19, %v1900_v63  ;;  %v1867_v21 = vxor.u32 2147483648, %v1866_v48  ;;  %v916_v60 = vadd.s32 %v915_v31, %v911_v44  ;;  %v1911_v36 = vor.u32 %v1910_v32, %v1909_v52 }
 0x1ca   : > { %v1916_v22 = vshrl.u32 %v2897_v28, %v1901_v45  ;;  %v1902_v24 = vshrl.u32 %v2892_v9, %v1901_v45  ;;  %v1914_v11 = vor.u32 %v1913_v47, %v1912_v35  ;;  %vm1918_vm2 = vcmp.lt.s32.totalorder %v1899_v7, 1 }
 0x1cb   : > { %vm1919_vm3 = vcmp.lt.s32.totalorder %v1899_v7, 2  ;;  %v1868_v20 = vsel %vm1785_vm15, %v1867_v21, %v1866_v48  ;;  %v917_v54 = vadd.s32 536870912, %v916_v60  ;;  %vm1921_vm4 = vcmp.lt.s32.totalorder %v1899_v7, 4 }
 0x1cc   : > { %v1917_v8 = vor.u32 %v1916_v22, %v1915_v42  ;;  %v1871_v63 = vsel %vm3841_vm0, %v3543_v57, %v1868_v20  ;;  %vm1920_vm5 = vcmp.lt.s32.totalorder %v1899_v7, 3  ;;  %v1926_v44 = vsel %vm1918_vm2, %v1905_v23, %v1908_v49 }
 0x1cd   : > { %v1927_v3 = vsel %vm1921_vm4, %v1914_v11, 920167782  ;;  %2811 = vcosq.f32 %v1871_v63  ;;  %v3878_v56 = vshrl.u32 %v917_v54, 30  ;;  %v1923_v45 = vsel %vm1921_vm4, %v1911_v36, 2102212464 }
 0x1ce   : > { %v1928_v16 = vsel %vm1920_vm5, %v1911_v36, %v1927_v3  ;;  %v1870_v43 = vsel %vm1785_vm15, %v1869_v59, %v3754_v51  ;;  %2813 = vsinq.f32 %v1871_v63  ;;  %v1930_v0 = vsel %vm1918_vm2, %v1908_v49, %v1911_v36 }
 0x1cf   : > { %v1929_v58 = vsel %vm1919_vm3, %v1926_v44, %v1928_v16  ;;  %v919_v14 = vshll.u32 %v3878_v56, 30  ;;  %v1922_v61 = vsel %vm1918_vm2, %v1902_v24, %v1905_v23  ;;  %v1931_v1 = vsel %vm1921_vm4, %v1917_v8, 1326507024 }
 0x1d0   : > { %v358_v62 = vadd.f32 %v3301_v10, %v2995_v38  ;;  %v1924_v52 = vsel %vm1920_vm5, %v1908_v49, %v1923_v45  ;;  %v1932_v48 = vsel %vm1920_vm5, %v1914_v11, %v1931_v1  ;;  %v1872_v59 = vsel %vm3841_vm0, 0, %v1870_v43 }
 0x1d1   : > { %v3895_v32 = vmul.u32.u64.low %v3827_v53, %v1929_v58  ;;  %v3896_v51 = vmul.u32.u64.high %v3827_v53, %v1929_v58, %v3895_v32  ;;  %v3901_v35 = vsub.s32 %v916_v60, %v919_v14  ;;  %v1933_v23 = vsel %vm1919_vm3, %v1930_v0, %v1932_v48 }
 0x1d2   : > { %2815 = vpow2.f32 %v3769_v50  ;;  %v3906_v10 = vmul.u32.u64.low %v3827_v53, %v1933_v23  ;;  %v3907_v31 = vmul.u32.u64.high %v3827_v53, %v1933_v23, %v3906_v10  ;;  %v1925_v47 = vsel %vm1919_vm3, %v1922_v61, %v1924_v52  ;;  %v3936_v61 = vpop.f32.mrb[15].mxu0 }
 0x1d3   : > { %v922_v49 = vsub.s32 0, %v3901_v35  ;;  %v2405_v42 = vmul.f32 %v358_v62, %v358_v62  ;;  %v3913_v21 = vadd.f32 %v3392_v27, %v2983_v26  ;;  %v1876_v30 = vand.u32 3, %v1872_v59 }
 0x1d4   : > { %v1944_v60 = vadd.s32 1, %v3896_v51  ;;  %vm1875_vm6 = vweird.f32 %v3543_v57  ;;  %vm858_vm7 = vcmp.lt.s32.totalorder %v3692_v6, 0  ;;  %v1941_v36 = vmul.u32 %v3827_v53, %v1925_v47 }
 0x1d5   : > { %v2615_v50 = vmin.u32 %v922_v49, %v3901_v35  ;;  %vm1943_vm8 = vc.u32 %v3907_v31, %v3895_v32  ;;  %v418_v7 = vadd.f32 %v3372_v2, %v2995_v38  ;;  %vm3926_vm9 = vcmp.le.f32.partialorder %v856_v39, 0.7853982 }
 0x1d6   : > { %v1945_v11 = vsel %vm1943_vm8, %v1944_v60, %v3896_v51  ;;  %v2424_v20 = vsub.f32 0.0, %v2405_v42  ;;  %v962_v54 = vand.u32 2139095040, %v3913_v21  ;;  %vm1881_vm10 = vcmp.eq.s32.totalorder %v1876_v30, 2 }
 0x1d7   : > { %v2812_v22 = vpop.eup %2811  ;;  %v924_v24 = vclz %v2615_v50  ;;  %v1946_v63 = vadd.s32 %v1945_v11, %v1941_v36  ;;  %v959_v44 = vand.u32 2147483647, %v3913_v21  ;;  %v942_v45 = vsub.s32 4, %v3878_v56 }
 0x1d8   : > { %v2814_v53 = vpop.eup %2813  ;;  %v1882_v8 = vxor.u32 2147483648, %v2812_v22  ;;  %v963_v39 = vshrl.u32 %v962_v54, 23  ;;  %vm1877_vm11 = vcmp.lt.s32.totalorder %v1876_v30, 2  ;;  %vm1878_vm12 = vcmp.eq.s32.totalorder %v1876_v30, 0 }
 0x1d9   : > { %v1879_v2 = vxor.u32 2147483648, %v2814_v53  ;;  %v2616_v3 = vadd.s32 4294967294, %v924_v24  ;;  %v1947_v43 = vadd.s32 536870912, %v1946_v63  ;;  %v912_v0 = vadd.s32 %v3833_v4, %v3825_v25 }
 0x1da   : > { %v1883_v16 = vsel %vm1881_vm10, %v1882_v8, %v2814_v53  ;;  %v2618_v14 = vadd.s32 4294967169, %v963_v39  ;;  %v966_v51 = vand.u32 8388607, %v959_v44  ;;  %v943_v25 = vsel %vm858_vm7, %v942_v45, %v3878_v56 }
 0x1db   : > { %v1880_v58 = vsel %vm1878_vm12, %v2812_v22, %v1879_v2  ;;  %vm2617_vm13 = vcmp.lt.s32.totalorder %v2616_v3, 0  ;;  %v3938_v48 = vshrl.u32 %v1947_v43, 30  ;;  %v3950_v42 = vadd.f32 %v3474_v55, %v2983_v26 }
 0x1dc   : > { %v2816_v1 = vpop.eup %2815  ;;  %v1884_v62 = vsel %vm1877_vm11, %v1880_v58, %v1883_v16  ;;  %v927_v52 = vsel %vm2617_vm13, 0, %v2616_v3  ;;  %v969_v47 = vadd.s32 1, %v2618_v14  ;;  %v2447_v57 = vmul.f32 1.442695, %v2424_v20 }
 0x1dd   : > { %v1885_v59 = vsel %vm1875_vm6, nan, %v1884_v62  ;;  %v928_v23 = vsub.s32 32, %v927_v52  ;;  %v932_v10 = vsub.s32 4294967266, %v927_v52  ;;  %v1949_v49 = vshll.u32 %v3938_v48, 30 }
 0x1de   : > { %v2490_v4 = vmul.f32 %v2816_v1, %v1885_v59  ;;  %v929_v30 = vshll.u32 %v3901_v35, %v927_v52  ;;  %v945_v36 = vsel %vm3926_vm9, 0, %v943_v25  ;;  %v967_v56 = vor.u32 8388608, %v966_v51 }
 0x1df   : > { %v930_v60 = vshrl.u32 %v912_v0, %v928_v23  ;;  %v933_v50 = vadd.s32 127, %v932_v10  ;;  %v3957_v22 = vsub.s32 %v1946_v63, %v1949_v49  ;;  %vm970_vm15 = vcmp.gt.s32.totalorder %v969_v47, 0 }
 0x1e0   : > { %2510 = vst.msk [vmem:[%s3269_s27 + $0x68] sm:$0xff] %vm2496_vm14, %v2490_v4  ;;  %v971_v54 = vsel %vm970_vm15, %v969_v47, 0  ;;  %v1992_v35 = vand.u32 2139095040, %v3950_v42  ;;  %v3961_v2 = vand.u32 3, %v945_v36  ;;  %2817 = vpow2.f32 %v2447_v57  ;;  %v3982_v4 = vpop.f32.mrb[15].mxu1 }
 0x1e1   : > { %v931_v24 = vor.u32 %v930_v60, %v929_v30  ;;  %v934_v11 = vshll.u32 %v933_v50, 23  ;;  %v1952_v55 = vsub.s32 0, %v3957_v22  ;;  %v973_v53 = vand.u32 31, %v971_v54 }
 0x1e2   : > { %v3963_v20 = vmul.f32 %v418_v7, %v418_v7  ;;  %v1942_v63 = vadd.s32 %v3895_v32, %v3907_v31  ;;  %v1972_v45 = vsub.s32 4, %v3938_v48  ;;  %v3969_v39 = vshll.u32 %v967_v56, 8 }
 0x1e3   : > { %v935_v8 = vor.u32 4788187, %v934_v11  ;;  %v2655_v3 = vmin.u32 %v1952_v55, %v3957_v22  ;;  %v938_v43 = vcvt.s32.f32 %v931_v24  ;;  %v3971_v58 = vshrl.u32 %v971_v54, 5 }
 0x1e4   : > { %v974_v0 = vsub.s32 32, %v973_v53  ;;  %v976_v1 = vshll.u32 %v2892_v9, %v973_v53  ;;  %v979_v7 = vshll.u32 %v2893_v13, %v973_v53  ;;  %v1993_v62 = vshrl.u32 %v1992_v35, 23 }
 0x1e5   : > { %v936_v16 = vand.u32 2147483647, %v935_v8  ;;  %v1954_v14 = vclz %v2655_v3  ;;  %v982_v51 = vshll.u32 %v2894_v15, %v973_v53  ;;  %vm1888_vm0 = vcmp.lt.s32.totalorder %v3715_v40, 0 }
 0x1e6   : > { %v977_v32 = vshrl.u32 %v2893_v13, %v974_v0  ;;  %v980_v31 = vshrl.u32 %v2894_v15, %v974_v0  ;;  %v983_v23 = vshrl.u32 %v2895_v17, %v974_v0  ;;  %v986_v10 = vshrl.u32 %v2896_v19, %v974_v0 }
 0x1e7   : > { %v939_v52 = vmul.f32 %v938_v43, %v936_v16  ;;  %v2656_v59 = vadd.s32 4294967294, %v1954_v14  ;;  %v989_v25 = vshrl.u32 %v2897_v28, %v974_v0  ;;  %v975_v47 = vshrl.u32 %v2892_v9, %v974_v0  ;;  %v3998_v16 = vpop.f32.mrb[16].mxu0 }
 0x1e8   : > { %v985_v30 = vshll.u32 %v2895_v17, %v973_v53  ;;  %v988_v60 = vshll.u32 %v2896_v19, %v973_v53  ;;  %v978_v50 = vor.u32 %v977_v32, %v976_v1  ;;  %v981_v57 = vor.u32 %v980_v31, %v979_v7 }
 0x1e9   : > { %v940_v49 = vxor.u32 2147483648, %v939_v52  ;;  %vm2657_vm1 = vcmp.lt.s32.totalorder %v2656_v59, 0  ;;  %v984_v36 = vor.u32 %v983_v23, %v982_v51  ;;  %vm991_vm2 = vcmp.lt.s32.totalorder %v3971_v58, 1 }
 0x1ea   : > { %v1957_v24 = vsel %vm2657_vm1, 0, %v2656_v59  ;;  %v987_v11 = vor.u32 %v986_v10, %v985_v30  ;;  %v990_v54 = vor.u32 %v989_v25, %v988_v60  ;;  %v3993_v3 = vpop.eup %2817  ;;  %vm993_vm3 = vcmp.lt.s32.totalorder %v3971_v58, 3 }
 0x1eb   : > { %v941_v56 = vsel %vm858_vm7, %v940_v49, %v939_v52  ;;  %v1958_v35 = vsub.s32 32, %v1957_v24  ;;  %v1962_v8 = vsub.s32 4294967266, %v1957_v24  ;;  %v1959_v53 = vshll.u32 %v3957_v22, %v1957_v24 }
 0x1ec   : > { %v944_v55 = vsel %vm3926_vm9, %v3692_v6, %v941_v56  ;;  %vm994_vm4 = vcmp.lt.s32.totalorder %v3971_v58, 4  ;;  %v999_v27 = vsel %vm991_vm2, %v978_v50, %v981_v57  ;;  %v1003_v7 = vsel %vm991_vm2, %v981_v57, %v984_v36 }
 0x1ed   : > { %2819 = vcosq.f32 %v944_v55  ;;  %v1960_v43 = vshrl.u32 %v1942_v63, %v1958_v35  ;;  %v1963_v0 = vadd.s32 127, %v1962_v8  ;;  %v996_v14 = vsel %vm994_vm4, %v984_v36, 2102212464 }
 0x1ee   : > { %2821 = vsinq.f32 %v944_v55  ;;  %v1000_v1 = vsel %vm994_vm4, %v987_v11, 920167782  ;;  %v1004_v52 = vsel %vm994_vm4, %v990_v54, 1326507024  ;;  %vm992_vm5 = vcmp.lt.s32.totalorder %v3971_v58, 2 }
 0x1ef   : > { %v1961_v32 = vor.u32 %v1960_v43, %v1959_v53  ;;  %v1964_v22 = vshll.u32 %v1963_v0, 23  ;;  %v1001_v31 = vsel %vm993_vm3, %v984_v36, %v1000_v1  ;;  %v1973_v63 = vsel %vm1888_vm0, %v1972_v45, %v3938_v48 }
 0x1f0   : > { %v1002_v51 = vsel %vm992_vm5, %v999_v27, %v1001_v31  ;;  %v1005_v59 = vsel %vm993_vm3, %v987_v11, %v1004_v52  ;;  %v2658_v23 = vadd.s32 4294967169, %v1993_v62  ;;  %v995_v25 = vsel %vm991_vm2, %v975_v47, %v978_v50 }
 0x1f1   : > { %v1965_v10 = vor.u32 4788187, %v1964_v22  ;;  %v997_v49 = vsel %vm993_vm3, %v981_v57, %v996_v14  ;;  %v1006_v30 = vsel %vm992_vm5, %v1003_v7, %v1005_v59  ;;  %vm948_vm6 = vweird.f32 %v3692_v6 }
 0x1f2   : > { %v4021_v60 = vmul.u32.u64.low %v3969_v39, %v1006_v30  ;;  %v4022_v48 = vmul.u32.u64.high %v3969_v39, %v1006_v30, %v4021_v60  ;;  %v4025_v45 = vmul.u32.u64.low %v3969_v39, %v1002_v51  ;;  %v4026_v36 = vmul.u32.u64.high %v3969_v39, %v1002_v51, %v4025_v45 }
 0x1f3   : > { %vm4032_vm7 = vcmp.le.f32.partialorder %v1886_v41, 0.7853982  ;;  %v1966_v47 = vand.u32 2147483647, %v1965_v10  ;;  %v1968_v50 = vcvt.s32.f32 %v1961_v32  ;;  %v1999_v57 = vadd.s32 1, %v2658_v23 }
 0x1f4   : > { %vm950_vm8 = vcmp.lt.s32.totalorder %v3961_v2, 2  ;;  %vm951_vm9 = vcmp.eq.s32.totalorder %v3961_v2, 0  ;;  %v2434_v56 = vsub.f32 0.0, %v3963_v20  ;;  %v998_v24 = vsel %vm992_vm5, %v995_v25, %v997_v49 }
 0x1f5   : > { %vm954_vm10 = vcmp.eq.s32.totalorder %v3961_v2, 2  ;;  %v1969_v11 = vmul.f32 %v1968_v50, %v1966_v47  ;;  %v1975_v41 = vsel %vm4032_vm7, 0, %v1973_v63  ;;  %vm2000_vm11 = vcmp.gt.s32.totalorder %v1999_v57, 0  ;;  %v4056_v63 = vpop.f32.mrb[16].mxu1 }
 0x1f6   : > { %vm1016_vm12 = vc.u32 %v4022_v48, %v4025_v45  ;;  %v1017_v55 = vadd.s32 1, %v4026_v36  ;;  %v1989_v35 = vand.u32 2147483647, %v3950_v42  ;;  %v2001_v8 = vsel %vm2000_vm11, %v1999_v57, 0 }
 0x1f7   : > { %v2820_v54 = vpop.eup %2819  ;;  %v1970_v58 = vxor.u32 2147483648, %v1969_v11  ;;  %v1014_v43 = vmul.u32 %v3969_v39, %v998_v24  ;;  %v2003_v0 = vand.u32 31, %v2001_v8  ;;  %v4049_v14 = vand.u32 3, %v1975_v41 }
 0x1f8   : > { %v2822_v20 = vpop.eup %2821  ;;  %v955_v53 = vxor.u32 2147483648, %v2820_v54  ;;  %v2467_v1 = vmul.f32 1.442695, %v2434_v56  ;;  %v1018_v7 = vsel %vm1016_vm12, %v1017_v55, %v4026_v36  ;;  %v1996_v59 = vand.u32 8388607, %v1989_v35 }
 0x1f9   : > { %v952_v27 = vxor.u32 2147483648, %v2822_v20  ;;  %v1971_v32 = vsel %vm1888_vm0, %v1970_v58, %v1969_v11  ;;  %v1019_v22 = vadd.s32 %v1018_v7, %v1014_v43  ;;  %v2004_v31 = vsub.s32 32, %v2003_v0 }
 0x1fa   : > { %v956_v52 = vsel %vm954_vm10, %v955_v53, %v2822_v20  ;;  %v1974_v51 = vsel %vm4032_vm7, %v3715_v40, %v1971_v32  ;;  %v2006_v23 = vshll.u32 %v2892_v9, %v2003_v0  ;;  %v2009_v49 = vshll.u32 %v2893_v13, %v2003_v0 }
 0x1fb   : > { %v953_v39 = vsel %vm951_vm9, %v2820_v54, %v952_v27  ;;  %2823 = vcosq.f32 %v1974_v51  ;;  %v1020_v25 = vadd.s32 536870912, %v1019_v22  ;;  %v2007_v60 = vshrl.u32 %v2893_v13, %v2004_v31 }
 0x1fc   : > { %v957_v10 = vsel %vm950_vm8, %v953_v39, %v956_v52  ;;  %2825 = vsinq.f32 %v1974_v51  ;;  %v2010_v36 = vshrl.u32 %v2894_v15, %v2004_v31  ;;  %v2012_v2 = vshll.u32 %v2894_v15, %v2003_v0 }
 0x1fd   : > { %v958_v30 = vsel %vm948_vm6, nan, %v957_v10  ;;  %v4074_v47 = vshrl.u32 %v1020_v25, 30  ;;  %v2013_v50 = vshrl.u32 %v2895_v17, %v2004_v31  ;;  %v1997_v57 = vor.u32 8388608, %v1996_v59 }
 0x1fe   : > { %v2481_v62 = vmul.f32 %v3993_v3, %v958_v30  ;;  %v2015_v56 = vshll.u32 %v2895_v17, %v2003_v0  ;;  %v2016_v24 = vshrl.u32 %v2896_v19, %v2004_v31  ;;  %v364_v6 = vadd.f32 %v3535_v5, %v2995_v38 }
 0x1ff   : > { %v1022_v11 = vshll.u32 %v4074_v47, 30  ;;  %v2002_v41 = vshrl.u32 %v2001_v8, 5  ;;  %v2008_v3 = vor.u32 %v2007_v60, %v2006_v23  ;;  %v2018_v54 = vshll.u32 %v2896_v19, %v2003_v0 }
 0x200   : > { %2501 = vst.msk [vmem:[%s3269_s27 + $0x20] sm:$0xff] %vm2496_vm14, %v2481_v62  ;;  %v2011_v55 = vor.u32 %v2010_v36, %v2009_v49  ;;  %v2014_v20 = vor.u32 %v2013_v50, %v2012_v2  ;;  %v2017_v53 = vor.u32 %v2016_v24, %v2015_v56  ;;  %v2019_v58 = vshrl.u32 %v2897_v28, %v2004_v31 }
 0x201   : > { %vm1980_vm13 = vcmp.lt.s32.totalorder %v4049_v14, 2  ;;  %vm1981_vm15 = vcmp.eq.s32.totalorder %v4049_v14, 0  ;;  %2827 = vpow2.f32 %v2467_v1  ;;  %v4089_v43 = vsub.s32 %v1019_v22, %v1022_v11 }
 0x202   : > { %vm1984_vm0 = vcmp.eq.s32.totalorder %v4049_v14, 2  ;;  %v2005_v5 = vshrl.u32 %v2892_v9, %v2004_v31  ;;  %v2020_v8 = vor.u32 %v2019_v58, %v2018_v54  ;;  %v2037_v27 = vshll.u32 %v1997_v57, 8 }
 0x203   : > { %v1025_v0 = vsub.s32 0, %v4089_v43  ;;  %vm2021_vm1 = vcmp.lt.s32.totalorder %v2002_v41, 1  ;;  %vm2024_vm2 = vcmp.lt.s32.totalorder %v2002_v41, 4  ;;  %v4096_v7 = vadd.f32 %v3596_v29, %v2983_v26 }
 0x204   : > { %v2029_v52 = vsel %vm2021_vm1, %v2008_v3, %v2011_v55  ;;  %v2030_v32 = vsel %vm2024_vm2, %v2017_v53, 920167782  ;;  %v2033_v39 = vsel %vm2021_vm1, %v2011_v55, %v2014_v20  ;;  %v2034_v1 = vsel %vm2024_vm2, %v2020_v8, 1326507024 }
 0x205   : > { %v2824_v22 = vpop.eup %2823  ;;  %v2619_v51 = vmin.u32 %v1025_v0, %v4089_v43  ;;  %vm2022_vm3 = vcmp.lt.s32.totalorder %v2002_v41, 2  ;;  %vm2023_vm4 = vcmp.lt.s32.totalorder %v2002_v41, 3  ;;  %v2026_v31 = vsel %vm2024_vm2, %v2014_v20, 2102212464  ;;  %v4119_v0 = vpop.f32.mrb[17].mxu0 }
 0x206   : > { %v2826_v59 = vpop.eup %2825  ;;  %v1985_v23 = vxor.u32 2147483648, %v2824_v22  ;;  %v2025_v10 = vsel %vm2021_vm1, %v2005_v5, %v2008_v3  ;;  %v2031_v25 = vsel %vm2023_vm4, %v2014_v20, %v2030_v32  ;;  %v2035_v49 = vsel %vm2023_vm4, %v2017_v53, %v2034_v1 }
 0x207   : > { %v1982_v30 = vxor.u32 2147483648, %v2826_v59  ;;  %v1027_v60 = vclz %v2619_v51  ;;  %v2032_v29 = vsel %vm2022_vm3, %v2029_v52, %v2031_v25  ;;  %v2036_v36 = vsel %vm2022_vm3, %v2033_v39, %v2035_v49 }
 0x208   : > { %v1986_v62 = vsel %vm1984_vm0, %v1985_v23, %v2826_v59  ;;  %v2027_v2 = vsel %vm2023_vm4, %v2011_v55, %v2026_v31  ;;  %v4103_v50 = vmul.u32.u64.low %v2037_v27, %v2036_v36  ;;  %v4104_v57 = vmul.u32.u64.high %v2037_v27, %v2036_v36, %v4103_v50 }
 0x209   : > { %v1983_v56 = vsel %vm1981_vm15, %v2824_v22, %v1982_v30  ;;  %v2620_v24 = vadd.s32 4294967294, %v1027_v60  ;;  %v4108_v11 = vmul.u32.u64.low %v2037_v27, %v2032_v29  ;;  %v4109_v3 = vmul.u32.u64.high %v2037_v27, %v2032_v29, %v4108_v11 }
 0x20a   : > { %vm1978_vm5 = vweird.f32 %v3715_v40  ;;  %v1987_v54 = vsel %vm1980_vm13, %v1983_v56, %v1986_v62  ;;  %v1015_v20 = vadd.s32 %v4025_v45, %v4022_v48  ;;  %v2406_v55 = vmul.f32 %v364_v6, %v364_v6 }
 0x20b   : > { %v2828_v53 = vpop.eup %2827  ;;  %v1988_v58 = vsel %vm1978_vm5, nan, %v1987_v54  ;;  %vm2621_vm6 = vcmp.lt.s32.totalorder %v2620_v24, 0  ;;  %v2028_v5 = vsel %vm2022_vm3, %v2025_v10, %v2027_v2  ;;  %v1065_v8 = vand.u32 2139095040, %v4096_v7 }
 0x20c   : > { %v2491_v52 = vmul.f32 %v2828_v53, %v1988_v58  ;;  %v1030_v32 = vsel %vm2621_vm6, 0, %v2620_v24  ;;  %v1045_v40 = vsub.s32 4, %v4074_v47  ;;  %vm2046_vm7 = vc.u32 %v4104_v57, %v4108_v11 }
 0x20d   : > { %v1031_v14 = vsub.s32 32, %v1030_v32  ;;  %v1035_v48 = vsub.s32 4294967266, %v1030_v32  ;;  %v2047_v45 = vadd.s32 1, %v4109_v3  ;;  %v1062_v6 = vand.u32 2147483647, %v4096_v7 }
 0x20e   : > { %2511 = vst.msk [vmem:[%s3269_s27 + $0x70] sm:$0xff] %vm2496_vm14, %v2491_v52  ;;  %v2044_v41 = vmul.u32 %v2037_v27, %v2028_v5  ;;  %v424_v39 = vadd.f32 %v3586_v34, %v2995_v38  ;;  %v1066_v1 = vshrl.u32 %v1065_v8, 23  ;;  %v4132_v22 = vadd.f32 %v3648_v33, %v2983_v26 }
 0x20f   : > { %v1032_v51 = vshll.u32 %v4089_v43, %v1030_v32  ;;  %v1033_v31 = vshrl.u32 %v1015_v20, %v1031_v14  ;;  %v1036_v59 = vadd.s32 127, %v1035_v48  ;;  %v2048_v23 = vsel %vm2046_vm7, %v2047_v45, %v4109_v3 }
 0x210   : > { %vm961_vm8 = vcmp.lt.s32.totalorder %v3913_v21, 0  ;;  %v2049_v10 = vadd.s32 %v2048_v23, %v2044_v41  ;;  %v2425_v25 = vsub.f32 0.0, %v2406_v55  ;;  %v2622_v49 = vadd.s32 4294967169, %v1066_v1 }
 0x211   : > { %v1034_v27 = vor.u32 %v1033_v31, %v1032_v51  ;;  %v1037_v30 = vshll.u32 %v1036_v59, 23  ;;  %v1046_v34 = vsel %vm961_vm8, %v1045_v40, %v4074_v47  ;;  %v1069_v33 = vand.u32 8388607, %v1062_v6 }
 0x212   : > { %v2050_v60 = vadd.s32 536870912, %v2049_v10  ;;  %v1072_v43 = vadd.s32 1, %v2622_v49  ;;  %v2095_v29 = vand.u32 2139095040, %v4132_v22  ;;  %vm4145_vm9 = vcmp.le.f32.partialorder %v959_v44, 0.7853982 }
 0x213   : > { %v1038_v62 = vor.u32 4788187, %v1037_v30  ;;  %v4149_v2 = vmul.f32 %v424_v39, %v424_v39  ;;  %v1048_v50 = vsel %vm4145_vm9, 0, %v1046_v34  ;;  %v2449_v56 = vmul.f32 1.442695, %v2425_v25 }
 0x214   : > { %v4153_v47 = vshrl.u32 %v2050_v60, 30  ;;  %vm1073_vm10 = vcmp.gt.s32.totalorder %v1072_v43, 0  ;;  %v1041_v3 = vcvt.s32.f32 %v1034_v27  ;;  %v1070_v54 = vor.u32 8388608, %v1069_v33 }
 0x215   : > { %v1039_v24 = vand.u32 2147483647, %v1038_v62  ;;  %v1074_v20 = vsel %vm1073_vm10, %v1072_v43, 0  ;;  %v2096_v53 = vshrl.u32 %v2095_v29, 23  ;;  %v2435_v5 = vsub.f32 0.0, %v4149_v2  ;;  %v4185_v29 = vpop.f32.mrb[18].mxu0 }
 0x216   : > { %v2052_v55 = vshll.u32 %v4153_v47, 30  ;;  %v1076_v44 = vand.u32 31, %v1074_v20  ;;  %v4159_v8 = vadd.f32 %v3732_v37, %v2995_v38  ;;  %v4161_v52 = vand.u32 3, %v1048_v50 }
 0x217   : > { %v1042_v58 = vmul.f32 %v1041_v3, %v1039_v24  ;;  %2829 = vpow2.f32 %v2449_v56  ;;  %v2045_v48 = vadd.s32 %v4108_v11, %v4104_v57  ;;  %v4167_v45 = vshll.u32 %v1070_v54, 8 }
 0x218   : > { %v4163_v32 = vsub.s32 %v2049_v10, %v2052_v55  ;;  %v1077_v40 = vsub.s32 32, %v1076_v44  ;;  %v2092_v41 = vand.u32 2147483647, %v4132_v22  ;;  %v1079_v1 = vshll.u32 %v2892_v9, %v1076_v44 }
 0x219   : > { %v1043_v14 = vxor.u32 2147483648, %v1042_v58  ;;  %v2662_v51 = vadd.s32 4294967169, %v2096_v53  ;;  %v1082_v59 = vshll.u32 %v2893_v13, %v1076_v44  ;;  %v1075_v25 = vshrl.u32 %v1074_v20, 5 }
 0x21a   : > { %v2055_v39 = vsub.s32 0, %v4163_v32  ;;  %v1080_v37 = vshrl.u32 %v2893_v13, %v1077_v40  ;;  %v1083_v23 = vshrl.u32 %v2894_v15, %v1077_v40  ;;  %v1086_v57 = vshrl.u32 %v2895_v17, %v1077_v40 }
 0x21b   : > { %v1044_v31 = vsel %vm961_vm8, %v1043_v14, %v1042_v58  ;;  %v1085_v49 = vshll.u32 %v2894_v15, %v1076_v44  ;;  %v1088_v34 = vshll.u32 %v2895_v17, %v1076_v44  ;;  %v1089_v43 = vshrl.u32 %v2896_v19, %v1077_v40 }
 0x21c   : > { %v1047_v11 = vsel %vm4145_vm9, %v3913_v21, %v1044_v31  ;;  %v2659_v10 = vmin.u32 %v2055_v39, %v4163_v32  ;;  %v1081_v27 = vor.u32 %v1080_v37, %v1079_v1  ;;  %v1084_v30 = vor.u32 %v1083_v23, %v1082_v59 }
 0x21d   : > { %2831 = vcosq.f32 %v1047_v11  ;;  %v1087_v60 = vor.u32 %v1086_v57, %v1085_v49  ;;  %v1078_v36 = vshrl.u32 %v2892_v9, %v1077_v40  ;;  %v1091_v62 = vshll.u32 %v2896_v19, %v1076_v44 }
 0x21e   : > { %2833 = vsinq.f32 %v1047_v11  ;;  %v2057_v33 = vclz %v2659_v10  ;;  %v1092_v50 = vshrl.u32 %v2897_v28, %v1077_v40  ;;  %v2102_v56 = vadd.s32 1, %v2662_v51 }
 0x21f   : > { %v1090_v3 = vor.u32 %v1089_v43, %v1088_v34  ;;  %vm1094_vm11 = vcmp.lt.s32.totalorder %v1075_v25, 1  ;;  %vm1097_vm12 = vcmp.lt.s32.totalorder %v1075_v25, 4  ;;  %vm1095_vm13 = vcmp.lt.s32.totalorder %v1075_v25, 2 }
 0x220   : > { %v2660_v24 = vadd.s32 4294967294, %v2057_v33  ;;  %v1093_v54 = vor.u32 %v1092_v50, %v1091_v62  ;;  %v1099_v20 = vsel %vm1097_vm12, %v1087_v60, 2102212464  ;;  %v1102_v55 = vsel %vm1094_vm11, %v1081_v27, %v1084_v30 }
 0x221   : > { %v2830_v53 = vpop.eup %2829  ;;  %vm1096_vm0 = vcmp.lt.s32.totalorder %v1075_v25, 3  ;;  %v1098_v58 = vsel %vm1094_vm11, %v1078_v36, %v1081_v27  ;;  %v1103_v14 = vsel %vm1097_vm12, %v1090_v3, 920167782  ;;  %vm1053_vm1 = vcmp.lt.s32.totalorder %v4161_v52, 2 }
 0x222   : > { %vm2661_vm15 = vcmp.lt.s32.totalorder %v2660_v24, 0  ;;  %v1104_v44 = vsel %vm1096_vm0, %v1087_v60, %v1103_v14  ;;  %v1106_v1 = vsel %vm1094_vm11, %v1084_v30, %v1087_v60  ;;  %v1107_v40 = vsel %vm1097_vm12, %v1093_v54, 1326507024  ;;  %v4209_v54 = vpop.f32.mrb[17].mxu1 }
 0x223   : > { %v2060_v39 = vsel %vm2661_vm15, 0, %v2660_v24  ;;  %vm1051_vm2 = vweird.f32 %v3913_v21  ;;  %v1100_v31 = vsel %vm1096_vm0, %v1084_v30, %v1099_v20  ;;  %v1105_v59 = vsel %vm1095_vm13, %v1102_v55, %v1104_v44 }
 0x224   : > { %v2061_v37 = vsub.s32 32, %v2060_v39  ;;  %v2065_v51 = vsub.s32 4294967266, %v2060_v39  ;;  %v2062_v23 = vshll.u32 %v4163_v32, %v2060_v39  ;;  %v1108_v57 = vsel %vm1096_vm0, %v1090_v3, %v1107_v40 }
 0x225   : > { %v4195_v11 = vmul.u32.u64.low %v4167_v45, %v1105_v59  ;;  %v4196_v10 = vmul.u32.u64.high %v4167_v45, %v1105_v59, %v4195_v11  ;;  %v1109_v34 = vsel %vm1095_vm13, %v1106_v1, %v1108_v57  ;;  %vm2103_vm3 = vcmp.gt.s32.totalorder %v2102_v56, 0 }
 0x226   : > { %v2063_v49 = vshrl.u32 %v2045_v48, %v2061_v37  ;;  %v2066_v27 = vadd.s32 127, %v2065_v51  ;;  %v1101_v60 = vsel %vm1095_vm13, %v1098_v58, %v1100_v31  ;;  %v2104_v36 = vsel %vm2103_vm3, %v2102_v56, 0 }
 0x227   : > { %v2832_v33 = vpop.eup %2831  ;;  %v4202_v30 = vmul.u32.u64.low %v4167_v45, %v1109_v34  ;;  %v4203_v43 = vmul.u32.u64.high %v4167_v45, %v1109_v34, %v4202_v30  ;;  %vm1054_vm4 = vcmp.eq.s32.totalorder %v4161_v52, 0  ;;  %vm1057_vm5 = vcmp.eq.s32.totalorder %v4161_v52, 2 }
 0x228   : > { %v2834_v32 = vpop.eup %2833  ;;  %v1058_v62 = vxor.u32 2147483648, %v2832_v33  ;;  %v2064_v50 = vor.u32 %v2063_v49, %v2062_v23  ;;  %v2067_v24 = vshll.u32 %v2066_v27, 23  ;;  %vm1991_vm6 = vcmp.lt.s32.totalorder %v3950_v42, 0 }
 0x229   : > { %v1055_v3 = vxor.u32 2147483648, %v2834_v32  ;;  %v1120_v48 = vadd.s32 1, %v4196_v10  ;;  %v2106_v25 = vand.u32 31, %v2104_v36  ;;  %vm4213_vm7 = vcmp.le.f32.partialorder %v1989_v35, 0.7853982 }
 0x22a   : > { %v1059_v20 = vsel %vm1057_vm5, %v1058_v62, %v2834_v32  ;;  %v2068_v55 = vor.u32 4788187, %v2067_v24  ;;  %v1117_v58 = vmul.u32 %v4167_v45, %v1101_v60  ;;  %v2099_v14 = vand.u32 8388607, %v2092_v41 }
 0x22b   : > { %v1056_v39 = vsel %vm1054_vm4, %v2832_v33, %v1055_v3  ;;  %v2071_v44 = vcvt.s32.f32 %v2064_v50  ;;  %vm1119_vm8 = vc.u32 %v4203_v43, %v4195_v11  ;;  %v2107_v1 = vsub.s32 32, %v2106_v25 }
 0x22c   : > { %v1060_v35 = vsel %vm1053_vm1, %v1056_v39, %v1059_v20  ;;  %v2069_v40 = vand.u32 2147483647, %v2068_v55  ;;  %v1121_v37 = vsel %vm1119_vm8, %v1120_v48, %v4196_v10  ;;  %v2109_v45 = vshll.u32 %v2892_v9, %v2106_v25 }
 0x22d   : > { %v1061_v51 = vsel %vm1051_vm2, nan, %v1060_v35  ;;  %v2075_v31 = vsub.s32 4, %v4153_v47  ;;  %v1122_v59 = vadd.s32 %v1121_v37, %v1117_v58  ;;  %v2110_v23 = vshrl.u32 %v2893_v13, %v2107_v1 }
 0x22e   : > { %v2072_v57 = vmul.f32 %v2071_v44, %v2069_v40  ;;  %v2482_v49 = vmul.f32 %v2830_v53, %v1061_v51  ;;  %v2112_v27 = vshll.u32 %v2893_v13, %v2106_v25  ;;  %v2113_v52 = vshrl.u32 %v2894_v15, %v2107_v1 }
 0x22f   : > { %v1123_v34 = vadd.s32 536870912, %v1122_v59  ;;  %v2105_v33 = vshrl.u32 %v2104_v36, 5  ;;  %v2115_v10 = vshll.u32 %v2894_v15, %v2106_v25  ;;  %v2116_v60 = vshrl.u32 %v2895_v17, %v2107_v1 }
 0x230   : > { %v2073_v30 = vxor.u32 2147483648, %v2072_v57  ;;  %2502 = vst.msk [vmem:[%s3269_s27 + $0x28] sm:$0xff] %vm2496_vm14, %v2482_v49  ;;  %v2111_v21 = vor.u32 %v2110_v23, %v2109_v45  ;;  %v2118_v32 = vshll.u32 %v2895_v17, %v2106_v25  ;;  %v2119_v62 = vshrl.u32 %v2896_v19, %v2107_v1 }
 0x231   : > { %v4240_v50 = vshrl.u32 %v1123_v34, 30  ;;  %v2114_v53 = vor.u32 %v2113_v52, %v2112_v27  ;;  %v2121_v24 = vshll.u32 %v2896_v19, %v2106_v25  ;;  %v2122_v3 = vshrl.u32 %v2897_v28, %v2107_v1 }
 0x232   : > { %v2074_v36 = vsel %vm1991_vm6, %v2073_v30, %v2072_v57  ;;  %v2469_v48 = vmul.f32 1.442695, %v2435_v5  ;;  %v2100_v20 = vor.u32 8388608, %v2099_v14  ;;  %v2120_v55 = vor.u32 %v2119_v62, %v2118_v32 }
 0x233   : > { %v2076_v58 = vsel %vm1991_vm6, %v2075_v31, %v4153_v47  ;;  %v2077_v39 = vsel %vm4213_vm7, %v3950_v42, %v2074_v36  ;;  %v1125_v25 = vshll.u32 %v4240_v50, 30  ;;  %v2117_v44 = vor.u32 %v2116_v60, %v2115_v10  ;;  %v4267_v31 = vpop.f32.mrb[19].mxu0 }
 0x234   : > { %2835 = vcosq.f32 %v2077_v39  ;;  %v2108_v35 = vshrl.u32 %v2892_v9, %v2107_v1  ;;  %v2123_v40 = vor.u32 %v2122_v3, %v2121_v24  ;;  %vm2124_vm9 = vcmp.lt.s32.totalorder %v2105_v33, 1 }
 0x235   : > { %2837 = vsinq.f32 %v2077_v39  ;;  %v4256_v2 = vsub.s32 %v1122_v59, %v1125_v25  ;;  %vm2127_vm10 = vcmp.lt.s32.totalorder %v2105_v33, 4  ;;  %v2132_v5 = vsel %vm2124_vm9, %v2111_v21, %v2114_v53 }
 0x236   : > { %v2078_v47 = vsel %vm4213_vm7, 0, %v2076_v58  ;;  %vm2126_vm11 = vcmp.lt.s32.totalorder %v2105_v33, 3  ;;  %v2133_v14 = vsel %vm2127_vm10, %v2120_v55, 920167782  ;;  %v4263_v37 = vmul.f32 %v4159_v8, %v4159_v8 }
 0x237   : > { %v1128_v45 = vsub.s32 0, %v4256_v2  ;;  %vm2125_vm12 = vcmp.lt.s32.totalorder %v2105_v33, 2  ;;  %v2129_v1 = vsel %vm2127_vm10, %v2117_v44, 2102212464  ;;  %v2134_v51 = vsel %vm2126_vm11, %v2117_v44, %v2133_v14 }
 0x238   : > { %v2135_v59 = vsel %vm2125_vm12, %v2132_v5, %v2134_v51  ;;  %v2136_v23 = vsel %vm2124_vm9, %v2114_v53, %v2117_v44  ;;  %v2137_v56 = vsel %vm2127_vm10, %v2123_v40, 1326507024  ;;  %v2140_v57 = vshll.u32 %v2100_v20, 8 }
 0x239   : > { %v2082_v49 = vand.u32 3, %v2078_v47  ;;  %2839 = vpow2.f32 %v2469_v48  ;;  %v2623_v27 = vmin.u32 %v1128_v45, %v4256_v2  ;;  %v2128_v8 = vsel %vm2124_vm9, %v2108_v35, %v2111_v21 }
 0x23a   : > { %v2130_v52 = vsel %vm2126_vm11, %v2114_v53, %v2129_v1  ;;  %v2138_v34 = vsel %vm2126_vm11, %v2120_v55, %v2137_v56  ;;  %v4275_v10 = vmul.u32.u64.low %v2140_v57, %v2135_v59  ;;  %v4276_v60 = vmul.u32.u64.high %v2140_v57, %v2135_v59, %v4275_v10 }
 0x23b   : > { %vm2081_vm13 = vweird.f32 %v3950_v42  ;;  %v1130_v30 = vclz %v2623_v27  ;;  %v1148_v32 = vsub.s32 4, %v4240_v50  ;;  %v2139_v62 = vsel %vm2125_vm12, %v2136_v23, %v2138_v34 }
 0x23c   : > { %v4284_v24 = vadd.f32 %v3787_v12, %v2983_v26  ;;  %vm1064_vm15 = vcmp.lt.s32.totalorder %v4096_v7, 0  ;;  %v4287_v21 = vmul.u32.u64.low %v2140_v57, %v2139_v62  ;;  %v4288_v53 = vmul.u32.u64.high %v2140_v57, %v2139_v62, %v4287_v21 }
 0x23d   : > { %v2426_v3 = vsub.f32 0.0, %v4263_v37  ;;  %vm2083_vm0 = vcmp.lt.s32.totalorder %v2082_v49, 2  ;;  %v2624_v36 = vadd.s32 4294967294, %v1130_v30  ;;  %v2131_v48 = vsel %vm2125_vm12, %v2128_v8, %v2130_v52 }
 0x23e   : > { %v1168_v20 = vand.u32 2139095040, %v4284_v24  ;;  %v2836_v55 = vpop.eup %2835  ;;  %vm2084_vm1 = vcmp.eq.s32.totalorder %v2082_v49, 0  ;;  %vm2087_vm2 = vcmp.eq.s32.totalorder %v2082_v49, 2  ;;  %v1118_v12 = vadd.s32 %v4195_v11, %v4203_v43 }
 0x23f   : > { %v2150_v58 = vadd.s32 1, %v4276_v60  ;;  %v2838_v39 = vpop.eup %2837  ;;  %v2088_v25 = vxor.u32 2147483648, %v2836_v55  ;;  %vm2625_vm3 = vcmp.lt.s32.totalorder %v2624_v36, 0  ;;  %v1149_v44 = vsel %vm1064_vm15, %v1148_v32, %v4240_v50 }
 0x240   : > { %v1169_v35 = vshrl.u32 %v1168_v20, 23  ;;  %v2085_v33 = vxor.u32 2147483648, %v2838_v39  ;;  %v1133_v40 = vsel %vm2625_vm3, 0, %v2624_v36  ;;  %v2147_v5 = vmul.u32 %v2140_v57, %v2131_v48 }
 0x241   : > { %vm2149_vm4 = vc.u32 %v4288_v53, %v4275_v10  ;;  %v2089_v47 = vsel %vm2087_vm2, %v2088_v25, %v2838_v39  ;;  %v1134_v14 = vsub.s32 32, %v1133_v40  ;;  %v1138_v37 = vsub.s32 4294967266, %v1133_v40 }
 0x242   : > { %v1165_v11 = vand.u32 2147483647, %v4284_v24  ;;  %v2086_v43 = vsel %vm2084_vm1, %v2836_v55, %v2085_v33  ;;  %v1135_v45 = vshll.u32 %v4256_v2, %v1133_v40  ;;  %v2151_v1 = vsel %vm2149_vm4, %v2150_v58, %v4276_v60 }
 0x243   : > { %v2626_v51 = vadd.s32 4294967169, %v1169_v35  ;;  %v2840_v50 = vpop.eup %2839  ;;  %v2090_v59 = vsel %vm2083_vm0, %v2086_v43, %v2089_v47  ;;  %v1136_v23 = vshrl.u32 %v1118_v12, %v1134_v14  ;;  %v1139_v56 = vadd.s32 127, %v1138_v37 }
 0x244   : > { %v2152_v57 = vadd.s32 %v2151_v1, %v2147_v5  ;;  %v2091_v27 = vsel %vm2081_vm13, nan, %v2090_v59  ;;  %vm4310_vm5 = vcmp.le.f32.partialorder %v1062_v6, 0.7853982  ;;  %v2451_v32 = vmul.f32 1.442695, %v2426_v3 }
 0x245   : > { %v1175_v2 = vadd.s32 1, %v2626_v51  ;;  %v2492_v52 = vmul.f32 %v2840_v50, %v2091_v27  ;;  %v1137_v34 = vor.u32 %v1136_v23, %v1135_v45  ;;  %v1140_v60 = vshll.u32 %v1139_v56, 23 }
 0x246   : > { %v2153_v30 = vadd.s32 536870912, %v2152_v57  ;;  %v1151_v49 = vsel %vm4310_vm5, 0, %v1149_v44  ;;  %v430_v62 = vadd.f32 %v3740_v46, %v2995_v38  ;;  %v1172_v21 = vand.u32 8388607, %v1165_v11 }
 0x247   : > { %vm1176_vm6 = vcmp.gt.s32.totalorder %v1175_v2, 0  ;;  %2512 = vst.msk [vmem:[%s3269_s27 + $0x78] sm:$0xff] %vm2496_vm14, %v2492_v52  ;;  %v1141_v42 = vor.u32 4788187, %v1140_v60  ;;  %v4326_v20 = vadd.f32 %v3851_v18, %v2983_v26  ;;  %v1144_v3 = vcvt.s32.f32 %v1137_v34 }
 0x248   : > { %v4320_v6 = vshrl.u32 %v2153_v30, 30  ;;  %v1177_v36 = vsel %vm1176_vm6, %v1175_v2, 0  ;;  %v4329_v46 = vand.u32 3, %v1151_v49  ;;  %2841 = vpow2.f32 %v2451_v32 }
 0x249   : > { %v1179_v48 = vand.u32 31, %v1177_v36  ;;  %v1142_v55 = vand.u32 2147483647, %v1141_v42  ;;  %v4331_v58 = vmul.f32 %v430_v62, %v430_v62  ;;  %v2148_v44 = vadd.s32 %v4275_v10, %v4288_v53 }
 0x24a   : > { %v2155_v12 = vshll.u32 %v4320_v6, 30  ;;  %v1173_v33 = vor.u32 8388608, %v1172_v21  ;;  %v4337_v40 = vshrl.u32 %v1177_v36, 5  ;;  %v2198_v47 = vand.u32 2139095040, %v4326_v20 }
 0x24b   : > { %v1180_v39 = vsub.s32 32, %v1179_v48  ;;  %v1145_v25 = vmul.f32 %v1144_v3, %v1142_v55  ;;  %v1182_v43 = vshll.u32 %v2892_v9, %v1179_v48  ;;  %v1185_v10 = vshll.u32 %v2893_v13, %v1179_v48 }
 0x24c   : > { %v4335_v35 = vsub.s32 %v2152_v57, %v2155_v12  ;;  %v1188_v53 = vshll.u32 %v2894_v15, %v1179_v48  ;;  %v1191_v1 = vshll.u32 %v2895_v17, %v1179_v48  ;;  %v4352_v56 = vshll.u32 %v1173_v33, 8 }
 0x24d   : > { %v1183_v18 = vshrl.u32 %v2893_v13, %v1180_v39  ;;  %v1186_v5 = vshrl.u32 %v2894_v15, %v1180_v39  ;;  %v1146_v14 = vxor.u32 2147483648, %v1145_v25  ;;  %v1189_v45 = vshrl.u32 %v2895_v17, %v1180_v39 }
 0x24e   : > { %v2158_v37 = vsub.s32 0, %v4335_v35  ;;  %v1192_v51 = vshrl.u32 %v2896_v19, %v1180_v39  ;;  %v1194_v60 = vshll.u32 %v2896_v19, %v1179_v48  ;;  %v1195_v30 = vshrl.u32 %v2897_v28, %v1180_v39 }
 0x24f   : > { %v1147_v50 = vsel %vm1064_vm15, %v1146_v14, %v1145_v25  ;;  %v1184_v23 = vor.u32 %v1183_v18, %v1182_v43  ;;  %v1187_v27 = vor.u32 %v1186_v5, %v1185_v10  ;;  %v1190_v2 = vor.u32 %v1189_v45, %v1188_v53 }
 0x250   : > { %v2663_v59 = vmin.u32 %v2158_v37, %v4335_v35  ;;  %v1150_v57 = vsel %vm4310_vm5, %v4096_v7, %v1147_v50  ;;  %v1193_v52 = vor.u32 %v1192_v51, %v1191_v1  ;;  %v1181_v49 = vshrl.u32 %v2892_v9, %v1180_v39 }
 0x251   : > { %2843 = vcosq.f32 %v1150_v57  ;;  %vm1197_vm7 = vcmp.lt.s32.totalorder %v4337_v40, 1  ;;  %v2199_v32 = vshrl.u32 %v2198_v47, 23  ;;  %v1196_v42 = vor.u32 %v1195_v30, %v1194_v60 }
 0x252   : > { %v2160_v34 = vclz %v2663_v59  ;;  %2845 = vsinq.f32 %v1150_v57  ;;  %vm1199_vm8 = vcmp.lt.s32.totalorder %v4337_v40, 3  ;;  %vm1200_vm9 = vcmp.lt.s32.totalorder %v4337_v40, 4  ;;  %v4363_v8 = vpop.eup %2841 }
 0x253   : > { %v1202_v21 = vsel %vm1200_vm9, %v1190_v2, 2102212464  ;;  %v1205_v36 = vsel %vm1197_vm7, %v1184_v23, %v1187_v27  ;;  %v1206_v48 = vsel %vm1200_vm9, %v1193_v52, 920167782  ;;  %v1209_v55 = vsel %vm1197_vm7, %v1187_v27, %v1190_v2 }
 0x254   : > { %v2664_v62 = vadd.s32 4294967294, %v2160_v34  ;;  %vm2094_vm10 = vcmp.lt.s32.totalorder %v4132_v22, 0  ;;  %vm1198_vm12 = vcmp.lt.s32.totalorder %v4337_v40, 2  ;;  %v1207_v3 = vsel %vm1199_vm8, %v1190_v2, %v1206_v48 }
 0x255   : > { %v1210_v12 = vsel %vm1200_vm9, %v1196_v42, 1326507024  ;;  %v1201_v25 = vsel %vm1197_vm7, %v1181_v49, %v1184_v23  ;;  %v1208_v33 = vsel %vm1198_vm12, %v1205_v36, %v1207_v3  ;;  %vm1156_vm13 = vcmp.lt.s32.totalorder %v4329_v46, 2 }
 0x256   : > { %vm2665_vm11 = vcmp.lt.s32.totalorder %v2664_v62, 0  ;;  %v1211_v18 = vsel %vm1199_vm8, %v1193_v52, %v1210_v12  ;;  %v1203_v14 = vsel %vm1199_vm8, %v1187_v27, %v1202_v21  ;;  %vm1154_vm15 = vweird.f32 %v4096_v7 }
 0x257   : > { %v2163_v39 = vsel %vm2665_vm11, 0, %v2664_v62  ;;  %v1212_v37 = vsel %vm1198_vm12, %v1209_v55, %v1211_v18  ;;  %v4390_v10 = vmul.u32.u64.low %v4352_v56, %v1208_v33  ;;  %v4391_v53 = vmul.u32.u64.high %v4352_v56, %v1208_v33, %v4390_v10 }
 0x258   : > { %v2164_v5 = vsub.s32 32, %v2163_v39  ;;  %v2168_v47 = vsub.s32 4294967266, %v2163_v39  ;;  %v4386_v43 = vmul.u32.u64.low %v4352_v56, %v1212_v37  ;;  %v4387_v45 = vmul.u32.u64.high %v4352_v56, %v1212_v37, %v4386_v43 }
 0x259   : > { %v2165_v1 = vshll.u32 %v4335_v35, %v2163_v39  ;;  %v2666_v59 = vadd.s32 4294967169, %v2199_v32  ;;  %vm1157_vm0 = vcmp.eq.s32.totalorder %v4329_v46, 0  ;;  %vm1160_vm1 = vcmp.eq.s32.totalorder %v4329_v46, 2 }
 0x25a   : > { %v2166_v51 = vshrl.u32 %v2148_v44, %v2164_v5  ;;  %v2169_v50 = vadd.s32 127, %v2168_v47  ;;  %v2178_v23 = vsub.s32 4, %v4320_v6  ;;  %v1204_v57 = vsel %vm1198_vm12, %v1201_v25, %v1203_v14 }
 0x25b   : > { %v2844_v27 = vpop.eup %2843  ;;  %v2436_v34 = vsub.f32 0.0, %v4331_v58  ;;  %v2205_v60 = vadd.s32 1, %v2666_v59  ;;  %vm1222_vm2 = vc.u32 %v4387_v45, %v4390_v10  ;;  %v1223_v44 = vadd.s32 1, %v4391_v53 }
 0x25c   : > { %v2167_v2 = vor.u32 %v2166_v51, %v2165_v1  ;;  %v2170_v52 = vshll.u32 %v2169_v50, 23  ;;  %v2846_v30 = vpop.eup %2845  ;;  %v1161_v35 = vxor.u32 2147483648, %v2844_v27  ;;  %v2195_v49 = vand.u32 2147483647, %v4326_v20 }
 0x25d   : > { %v1158_v32 = vxor.u32 2147483648, %v2846_v30  ;;  %v1220_v40 = vmul.u32 %v4352_v56, %v1204_v57  ;;  %vm2206_vm3 = vcmp.gt.s32.totalorder %v2205_v60, 0  ;;  %v2179_v58 = vsel %vm2094_vm10, %v2178_v23, %v4320_v6 }
 0x25e   : > { %v2171_v62 = vor.u32 4788187, %v2170_v52  ;;  %v1162_v42 = vsel %vm1160_vm1, %v1161_v35, %v2846_v30  ;;  %v1224_v21 = vsel %vm1222_vm2, %v1223_v44, %v4391_v53  ;;  %v2207_v36 = vsel %vm2206_vm3, %v2205_v60, 0 }
 0x25f   : > { %v1159_v48 = vsel %vm1157_vm0, %v2844_v27, %v1158_v32  ;;  %v2174_v3 = vcvt.s32.f32 %v2167_v2  ;;  %v1225_v12 = vadd.s32 %v1224_v21, %v1220_v40  ;;  %vm4418_vm4 = vcmp.le.f32.partialorder %v2092_v41, 0.7853982 }
 0x260   : > { %v2172_v55 = vand.u32 2147483647, %v2171_v62  ;;  %v1163_v56 = vsel %vm1156_vm13, %v1159_v48, %v1162_v42  ;;  %v2471_v6 = vmul.f32 1.442695, %v2436_v34  ;;  %v2209_v25 = vand.u32 31, %v2207_v36 }
 0x261   : > { %v1164_v33 = vsel %vm1154_vm15, nan, %v1163_v56  ;;  %v1226_v5 = vadd.s32 536870912, %v1225_v12  ;;  %v2202_v47 = vand.u32 8388607, %v2195_v49  ;;  %v2181_v46 = vsel %vm4418_vm4, 0, %v2179_v58 }
 0x262   : > { %v2175_v18 = vmul.f32 %v2174_v3, %v2172_v55  ;;  %v2483_v14 = vmul.f32 %v4363_v8, %v1164_v33  ;;  %v2210_v37 = vsub.s32 32, %v2209_v25  ;;  %v2212_v41 = vshll.u32 %v2892_v9, %v2209_v25 }
 0x263   : > { %v4430_v53 = vshrl.u32 %v1226_v5, 30  ;;  %v2215_v1 = vshll.u32 %v2893_v13, %v2209_v25  ;;  %v2218_v7 = vshll.u32 %v2894_v15, %v2209_v25  ;;  %v2221_v8 = vshll.u32 %v2895_v17, %v2209_v25 }
 0x264   : > { %v2176_v43 = vxor.u32 2147483648, %v2175_v18  ;;  %2503 = vst.msk [vmem:[%s3269_s27 + $0x30] sm:$0xff] %vm2496_vm14, %v2483_v14  ;;  %v2213_v51 = vshrl.u32 %v2893_v13, %v2210_v37  ;;  %v2216_v50 = vshrl.u32 %v2894_v15, %v2210_v37  ;;  %v2219_v59 = vshrl.u32 %v2895_v17, %v2210_v37 }
 0x265   : > { %v4442_v57 = vand.u32 3, %v2181_v46  ;;  %v1228_v27 = vshll.u32 %v4430_v53, 30  ;;  %v2222_v2 = vshrl.u32 %v2896_v19, %v2210_v37  ;;  %v2203_v34 = vor.u32 8388608, %v2202_v47 }
 0x266   : > { %v2177_v23 = vsel %vm2094_vm10, %v2176_v43, %v2175_v18  ;;  %v2208_v60 = vshrl.u32 %v2207_v36, 5  ;;  %v2214_v30 = vor.u32 %v2213_v51, %v2212_v41  ;;  %v2217_v44 = vor.u32 %v2216_v50, %v2215_v1 }
 0x267   : > { %v2180_v52 = vsel %vm4418_vm4, %v4132_v22, %v2177_v23  ;;  %v4449_v35 = vsub.s32 %v1225_v12, %v1228_v27  ;;  %v2220_v32 = vor.u32 %v2219_v59, %v2218_v7  ;;  %v2223_v62 = vor.u32 %v2222_v2, %v2221_v8 }
 0x268   : > { %2847 = vcosq.f32 %v2180_v52  ;;  %v2224_v40 = vshll.u32 %v2896_v19, %v2209_v25  ;;  %v2225_v42 = vshrl.u32 %v2897_v28, %v2210_v37  ;;  %v376_v21 = vadd.f32 %v3936_v61, %v2995_v38 }
 0x269   : > { %2849 = vsinq.f32 %v2180_v52  ;;  %v1231_v58 = vsub.s32 0, %v4449_v35  ;;  %v4458_v36 = vadd.f32 %v3998_v16, %v2983_v26  ;;  %v2211_v48 = vshrl.u32 %v2892_v9, %v2210_v37 }
 0x26a   : > { %2851 = vpow2.f32 %v2471_v6  ;;  %v2226_v55 = vor.u32 %v2225_v42, %v2224_v40  ;;  %vm2227_vm5 = vcmp.lt.s32.totalorder %v2208_v60, 1  ;;  %v2243_v3 = vshll.u32 %v2203_v34, 8 }
 0x26b   : > { %v2627_v12 = vmin.u32 %v1231_v58, %v4449_v35  ;;  %vm2229_vm6 = vcmp.lt.s32.totalorder %v2208_v60, 3  ;;  %vm2230_vm7 = vcmp.lt.s32.totalorder %v2208_v60, 4  ;;  %v2235_v56 = vsel %vm2227_vm5, %v2214_v30, %v2217_v44 }
 0x26c   : > { %vm2187_vm8 = vcmp.eq.s32.totalorder %v4442_v57, 0  ;;  %v2232_v39 = vsel %vm2230_vm7, %v2220_v32, 2102212464  ;;  %v2236_v6 = vsel %vm2230_vm7, %v2223_v62, 920167782  ;;  %v2239_v61 = vsel %vm2227_vm5, %v2217_v44, %v2220_v32 }
 0x26d   : > { %v2240_v25 = vsel %vm2230_vm7, %v2226_v55, 1326507024  ;;  %vm2186_vm9 = vcmp.lt.s32.totalorder %v4442_v57, 2  ;;  %vm1167_vm10 = vcmp.lt.s32.totalorder %v4284_v24, 0  ;;  %v1233_v16 = vclz %v2627_v12 }
 0x26e   : > { %vm2228_vm11 = vcmp.lt.s32.totalorder %v2208_v60, 2  ;;  %v2237_v33 = vsel %vm2229_vm6, %v2220_v32, %v2236_v6  ;;  %v2241_v18 = vsel %vm2229_vm6, %v2223_v62, %v2240_v25  ;;  %vm2184_vm12 = vweird.f32 %v4132_v22 }
 0x26f   : > { %v2231_v5 = vsel %vm2227_vm5, %v2211_v48, %v2214_v30  ;;  %v2233_v47 = vsel %vm2229_vm6, %v2217_v44, %v2232_v39  ;;  %v2238_v46 = vsel %vm2228_vm11, %v2235_v56, %v2237_v33  ;;  %v2242_v14 = vsel %vm2228_vm11, %v2239_v61, %v2241_v18 }
 0x270   : > { %v2628_v37 = vadd.s32 4294967294, %v1233_v16  ;;  %v4474_v41 = vmul.u32.u64.low %v2243_v3, %v2242_v14  ;;  %v4475_v43 = vmul.u32.u64.high %v2243_v3, %v2242_v14, %v4474_v41  ;;  %v2408_v1 = vmul.f32 %v376_v21, %v376_v21 }
 0x271   : > { %vm2190_vm13 = vcmp.eq.s32.totalorder %v4442_v57, 2  ;;  %v4478_v7 = vmul.u32.u64.low %v2243_v3, %v2238_v46  ;;  %v4479_v51 = vmul.u32.u64.high %v2243_v3, %v2238_v46, %v4478_v7  ;;  %v436_v50 = vadd.f32 %v3982_v4, %v2995_v38 }
 0x272   : > { %v2848_v59 = vpop.eup %2847  ;;  %v1221_v8 = vadd.s32 %v4390_v10, %v4387_v45  ;;  %vm2629_vm15 = vcmp.lt.s32.totalorder %v2628_v37, 0  ;;  %v2234_v23 = vsel %vm2228_vm11, %v2231_v5, %v2233_v47  ;;  %v4488_v27 = vadd.f32 %v4056_v63, %v2983_v26 }
 0x273   : > { %v2850_v2 = vpop.eup %2849  ;;  %v2191_v52 = vxor.u32 2147483648, %v2848_v59  ;;  %v1236_v34 = vsel %vm2629_vm15, 0, %v2628_v37  ;;  %v1251_v30 = vsub.s32 4, %v4430_v53  ;;  %v1271_v44 = vand.u32 2139095040, %v4458_v36 }
 0x274   : > { %v2852_v32 = vpop.eup %2851  ;;  %v2188_v4 = vxor.u32 2147483648, %v2850_v2  ;;  %v1237_v62 = vsub.s32 32, %v1236_v34  ;;  %v1241_v40 = vsub.s32 4294967266, %v1236_v34  ;;  %v2427_v42 = vsub.f32 0.0, %v2408_v1 }
 0x275   : > { %v2192_v45 = vsel %vm2190_vm13, %v2191_v52, %v2850_v2  ;;  %v2250_v10 = vmul.u32 %v2243_v3, %v2234_v23  ;;  %vm2252_vm0 = vc.u32 %v4475_v43, %v4478_v7  ;;  %v2253_v63 = vadd.s32 1, %v4479_v51 }
 0x276   : > { %v2189_v60 = vsel %vm2187_vm8, %v2848_v59, %v2188_v4  ;;  %v1238_v58 = vshll.u32 %v4449_v35, %v1236_v34  ;;  %v1239_v21 = vshrl.u32 %v1221_v8, %v1237_v62  ;;  %v1242_v48 = vadd.s32 127, %v1241_v40 }
 0x277   : > { %v2193_v55 = vsel %vm2186_vm9, %v2189_v60, %v2192_v45  ;;  %v1252_v12 = vsel %vm1167_vm10, %v1251_v30, %v4430_v53  ;;  %v2254_v3 = vsel %vm2252_vm0, %v2253_v63, %v4479_v51  ;;  %v1272_v56 = vshrl.u32 %v1271_v44, 23 }
 0x278   : > { %v2194_v39 = vsel %vm2184_vm12, nan, %v2193_v55  ;;  %v1240_v6 = vor.u32 %v1239_v21, %v1238_v58  ;;  %v1243_v61 = vshll.u32 %v1242_v48, 23  ;;  %v2255_v25 = vadd.s32 %v2254_v3, %v2250_v10 }
 0x279   : > { %v2493_v35 = vmul.f32 %v2852_v32, %v2194_v39  ;;  %v2418_v16 = vmul.f32 %v436_v50, %v436_v50  ;;  %v1268_v33 = vand.u32 2147483647, %v4458_v36  ;;  %v2630_v57 = vadd.s32 4294967169, %v1272_v56 }
 0x27a   : > { %vm4510_vm1 = vcmp.le.f32.partialorder %v1165_v11, 0.7853982  ;;  %v1244_v53 = vor.u32 4788187, %v1243_v61  ;;  %v2256_v5 = vadd.s32 536870912, %v2255_v25  ;;  %v1247_v37 = vcvt.s32.f32 %v1240_v6 }
 0x27b   : > { %2513 = vst.msk [vmem:[%s3269_s27 + $0x80] sm:$0xff] %vm2496_vm14, %v2493_v35  ;;  %v1254_v22 = vsel %vm4510_vm1, 0, %v1252_v12  ;;  %v2453_v47 = vmul.f32 1.442695, %v2427_v42  ;;  %v1278_v46 = vadd.s32 1, %v2630_v57  ;;  %v2301_v1 = vand.u32 2139095040, %v4488_v27 }
 0x27c   : > { %v1245_v14 = vand.u32 2147483647, %v1244_v53  ;;  %v4518_v41 = vshrl.u32 %v2256_v5, 30  ;;  %v2437_v51 = vsub.f32 0.0, %v2418_v16  ;;  %v4523_v11 = vand.u32 8388607, %v1268_v33 }
 0x27d   : > { %vm1279_vm2 = vcmp.gt.s32.totalorder %v1278_v46, 0  ;;  %v4526_v23 = vand.u32 3, %v1254_v22  ;;  %2853 = vpow2.f32 %v2453_v47  ;;  %v2302_v30 = vshrl.u32 %v2301_v1, 23 }
 0x27e   : > { %v1248_v50 = vmul.f32 %v1247_v37, %v1245_v14  ;;  %v2258_v59 = vshll.u32 %v4518_v41, 30  ;;  %v1280_v8 = vsel %vm1279_vm2, %v1278_v46, 0  ;;  %v2251_v44 = vadd.s32 %v4478_v7, %v4475_v43 }
 0x27f   : > { %v1282_v2 = vand.u32 31, %v1280_v8  ;;  %v4531_v32 = vmul.f32 1.442695, %v2437_v51  ;;  %v1276_v4 = vor.u32 8388608, %v4523_v11  ;;  %v1281_v45 = vshrl.u32 %v1280_v8, 5 }
 0x280   : > { %v1249_v52 = vxor.u32 2147483648, %v1248_v50  ;;  %v4528_v34 = vsub.s32 %v2255_v25, %v2258_v59  ;;  %v2298_v21 = vand.u32 2147483647, %v4488_v27  ;;  %v2670_v48 = vadd.s32 4294967169, %v2302_v30 }
 0x281   : > { %v1283_v62 = vsub.s32 32, %v1282_v2  ;;  %v1285_v10 = vshll.u32 %v2892_v9, %v1282_v2  ;;  %v1288_v43 = vshll.u32 %v2893_v13, %v1282_v2  ;;  %v1291_v3 = vshll.u32 %v2894_v15, %v1282_v2 }
 0x282   : > { %v1250_v40 = vsel %vm1167_vm10, %v1249_v52, %v1248_v50  ;;  %v2261_v42 = vsub.s32 0, %v4528_v34  ;;  %v1294_v6 = vshll.u32 %v2895_v17, %v1282_v2  ;;  %v1297_v35 = vshll.u32 %v2896_v19, %v1282_v2 }
 0x283   : > { %v1253_v63 = vsel %vm4510_vm1, %v4284_v24, %v1250_v40  ;;  %v1286_v60 = vshrl.u32 %v2893_v13, %v1283_v62  ;;  %v1289_v7 = vshrl.u32 %v2894_v15, %v1283_v62  ;;  %v1292_v39 = vshrl.u32 %v2895_v17, %v1283_v62 }
 0x284   : > { %2855 = vcosq.f32 %v1253_v63  ;;  %v2667_v58 = vmin.u32 %v2261_v42, %v4528_v34  ;;  %v1295_v61 = vshrl.u32 %v2896_v19, %v1283_v62  ;;  %v1284_v25 = vshrl.u32 %v2892_v9, %v1283_v62 }
 0x285   : > { %2857 = vsinq.f32 %v1253_v63  ;;  %v1287_v55 = vor.u32 %v1286_v60, %v1285_v10  ;;  %v1290_v12 = vor.u32 %v1289_v7, %v1288_v43  ;;  %v1298_v16 = vshrl.u32 %v2897_v28, %v1283_v62 }
 0x286   : > { %v2263_v56 = vclz %v2667_v58  ;;  %vm1300_vm3 = vcmp.lt.s32.totalorder %v1281_v45, 1  ;;  %vm1263_vm4 = vcmp.eq.s32.totalorder %v4526_v23, 2  ;;  %v1293_v18 = vor.u32 %v1292_v39, %v1291_v3 }
 0x287   : > { %v1296_v53 = vor.u32 %v1295_v61, %v1294_v6  ;;  %vm1302_vm5 = vcmp.lt.s32.totalorder %v1281_v45, 3  ;;  %vm1260_vm6 = vcmp.eq.s32.totalorder %v4526_v23, 0  ;;  %v1299_v5 = vor.u32 %v1298_v16, %v1297_v35  ;;  %v2854_v46 = vpop.eup %2853 }
 0x288   : > { %v2668_v57 = vadd.s32 4294967294, %v2263_v56  ;;  %vm1303_vm7 = vcmp.lt.s32.totalorder %v1281_v45, 4  ;;  %v1304_v22 = vsel %vm1300_vm3, %v1284_v25, %v1287_v55  ;;  %v1308_v47 = vsel %vm1300_vm3, %v1287_v55, %v1290_v12 }
 0x289   : > { %vm1259_vm8 = vcmp.lt.s32.totalorder %v4526_v23, 2  ;;  %v1305_v14 = vsel %vm1303_vm7, %v1293_v18, 2102212464  ;;  %v1309_v37 = vsel %vm1303_vm7, %v1296_v53, 920167782  ;;  %v1312_v1 = vsel %vm1300_vm3, %v1290_v12, %v1293_v18 }
 0x28a   : > { %vm2669_vm9 = vcmp.lt.s32.totalorder %v2668_v57, 0  ;;  %vm1257_vm10 = vweird.f32 %v4284_v24  ;;  %v1306_v11 = vsel %vm1302_vm5, %v1290_v12, %v1305_v14  ;;  %v1310_v50 = vsel %vm1302_vm5, %v1293_v18, %v1309_v37 }
 0x28b   : > { %v2266_v51 = vsel %vm2669_vm9, 0, %v2668_v57  ;;  %v1313_v59 = vsel %vm1303_vm7, %v1299_v5, 1326507024  ;;  %vm1301_vm11 = vcmp.lt.s32.totalorder %v1281_v45, 2  ;;  %v1316_v52 = vshll.u32 %v1276_v4, 8 }
 0x28c   : > { %v2267_v8 = vsub.s32 32, %v2266_v51  ;;  %v2271_v2 = vsub.s32 4294967266, %v2266_v51  ;;  %v2268_v30 = vshll.u32 %v4528_v34, %v2266_v51  ;;  %v1307_v62 = vsel %vm1301_vm11, %v1304_v22, %v1306_v11 }
 0x28d   : > { %v1314_v40 = vsel %vm1302_vm5, %v1296_v53, %v1313_v59  ;;  %v2308_v42 = vadd.s32 1, %v2670_v48  ;;  %v1311_v43 = vsel %vm1301_vm11, %v1308_v47, %v1310_v50  ;;  %vm2197_vm13 = vcmp.lt.s32.totalorder %v4326_v20, 0 }
 0x28e   : > { %v2856_v10 = vpop.eup %2855  ;;  %v2269_v63 = vshrl.u32 %v2251_v44, %v2267_v8  ;;  %v2272_v60 = vadd.s32 127, %v2271_v2  ;;  %v1315_v7 = vsel %vm1301_vm11, %v1312_v1, %v1314_v40  ;;  %v2305_v48 = vand.u32 8388607, %v2298_v21 }
 0x28f   : > { %v2858_v58 = vpop.eup %2857  ;;  %v1264_v55 = vxor.u32 2147483648, %v2856_v10  ;;  %v4564_v12 = vmul.u32.u64.low %v1316_v52, %v1315_v7  ;;  %v4565_v3 = vmul.u32.u64.high %v1316_v52, %v1315_v7, %v4564_v12  ;;  %vm2309_vm12 = vcmp.gt.s32.totalorder %v2308_v42, 0 }
 0x290   : > { %v1261_v56 = vxor.u32 2147483648, %v2858_v58  ;;  %v2270_v39 = vor.u32 %v2269_v63, %v2268_v30  ;;  %v2273_v4 = vshll.u32 %v2272_v60, 23  ;;  %v2310_v6 = vsel %vm2309_vm12, %v2308_v42, 0 }
 0x291   : > { %v1265_v34 = vsel %vm1263_vm4, %v1264_v55, %v2858_v58  ;;  %v4570_v45 = vmul.u32.u64.low %v1316_v52, %v1311_v43  ;;  %v4571_v44 = vmul.u32.u64.high %v1316_v52, %v1311_v43, %v4570_v45  ;;  %vm4580_vm15 = vcmp.le.f32.partialorder %v2195_v49, 0.7853982 }
 0x292   : > { %v1262_v61 = vsel %vm1260_vm6, %v2856_v10, %v1261_v56  ;;  %v2274_v35 = vor.u32 4788187, %v2273_v4  ;;  %v2281_v16 = vsub.s32 4, %v4518_v41  ;;  %v2312_v57 = vand.u32 31, %v2310_v6 }
 0x293   : > { %v1266_v18 = vsel %vm1259_vm8, %v1262_v61, %v1265_v34  ;;  %v2277_v53 = vcvt.s32.f32 %v2270_v39  ;;  %v1323_v5 = vmul.u32 %v1316_v52, %v1307_v62  ;;  %vm1325_vm0 = vc.u32 %v4565_v3, %v4570_v45 }
 0x294   : > { %v1267_v22 = vsel %vm1257_vm10, nan, %v1266_v18  ;;  %v2275_v49 = vand.u32 2147483647, %v2274_v35  ;;  %v2313_v47 = vsub.s32 32, %v2312_v57  ;;  %v2315_v14 = vshll.u32 %v2892_v9, %v2312_v57 }
 0x295   : > { %v2484_v37 = vmul.f32 %v2854_v46, %v1267_v22  ;;  %v1326_v1 = vadd.s32 1, %v4571_v44  ;;  %v2318_v51 = vshll.u32 %v2893_v13, %v2312_v57  ;;  %v2321_v23 = vshll.u32 %v2894_v15, %v2312_v57 }
 0x296   : > { %v2278_v11 = vmul.f32 %v2277_v53, %v2275_v49  ;;  %v2311_v50 = vshrl.u32 %v2310_v6, 5  ;;  %v2316_v59 = vshrl.u32 %v2893_v13, %v2313_v47  ;;  %v2319_v8 = vshrl.u32 %v2894_v15, %v2313_v47 }
 0x297   : > { %2504 = vst.msk [vmem:[%s3269_s27 + $0x38] sm:$0xff] %vm2496_vm14, %v2484_v37  ;;  %v1327_v24 = vsel %vm1325_vm0, %v1326_v1, %v4571_v44  ;;  %v2322_v2 = vshrl.u32 %v2895_v17, %v2313_v47  ;;  %v2324_v46 = vshll.u32 %v2895_v17, %v2312_v57  ;;  %v2325_v52 = vshrl.u32 %v2896_v19, %v2313_v47 }
 0x298   : > { %v2279_v30 = vxor.u32 2147483648, %v2278_v11  ;;  %v1328_v62 = vadd.s32 %v1327_v24, %v1323_v5  ;;  %v2317_v40 = vor.u32 %v2316_v59, %v2315_v14  ;;  %v2320_v42 = vor.u32 %v2319_v8, %v2318_v51 }
 0x299   : > { %v2323_v10 = vor.u32 %v2322_v2, %v2321_v23  ;;  %v2326_v63 = vor.u32 %v2325_v52, %v2324_v46  ;;  %v2327_v60 = vshll.u32 %v2896_v19, %v2312_v57  ;;  %v2328_v43 = vshrl.u32 %v2897_v28, %v2313_v47 }
 0x29a   : > { %v2280_v7 = vsel %vm2197_vm13, %v2279_v30, %v2278_v11  ;;  %v2282_v58 = vsel %vm2197_vm13, %v2281_v16, %v4518_v41  ;;  %v1329_v55 = vadd.s32 536870912, %v1328_v62  ;;  %v2306_v12 = vor.u32 8388608, %v2305_v48 }
 0x29b   : > { %v2283_v56 = vsel %vm4580_vm15, %v4326_v20, %v2280_v7  ;;  %v2314_v39 = vshrl.u32 %v2892_v9, %v2313_v47  ;;  %v2329_v4 = vor.u32 %v2328_v43, %v2327_v60  ;;  %vm2330_vm1 = vcmp.lt.s32.totalorder %v2311_v50, 1 }
 0x29c   : > { %2859 = vcosq.f32 %v2283_v56  ;;  %v4614_v6 = vshrl.u32 %v1329_v55, 30  ;;  %vm2333_vm2 = vcmp.lt.s32.totalorder %v2311_v50, 4  ;;  %v2338_v34 = vsel %vm2330_vm1, %v2317_v40, %v2320_v42 }
 0x29d   : > { %2861 = vsinq.f32 %v2283_v56  ;;  %vm2332_vm3 = vcmp.lt.s32.totalorder %v2311_v50, 3  ;;  %v2335_v44 = vsel %vm2333_vm2, %v2323_v10, 2102212464  ;;  %v2339_v41 = vsel %vm2333_vm2, %v2326_v63, 920167782 }
 0x29e   : > { %v1331_v48 = vshll.u32 %v4614_v6, 30  ;;  %vm2331_vm4 = vcmp.lt.s32.totalorder %v2311_v50, 2  ;;  %v2340_v61 = vsel %vm2332_vm3, %v2323_v10, %v2339_v41  ;;  %v2342_v35 = vsel %vm2330_vm1, %v2320_v42, %v2323_v10 }
 0x29f   : > { %v2341_v16 = vsel %vm2331_vm4, %v2338_v34, %v2340_v61  ;;  %v2343_v57 = vsel %vm2333_vm2, %v2329_v4, 1326507024  ;;  %v2346_v18 = vshll.u32 %v2306_v12, 8  ;;  %v4622_v53 = vadd.f32 %v4185_v29, %v2983_v26 }
 0x2a0   : > { %v1332_v5 = vsub.s32 %v1328_v62, %v1331_v48  ;;  %v2334_v22 = vsel %vm2330_vm1, %v2314_v39, %v2317_v40  ;;  %v2336_v49 = vsel %vm2332_vm3, %v2320_v42, %v2335_v44  ;;  %v2344_v47 = vsel %vm2332_vm3, %v2326_v63, %v2343_v57 }
 0x2a1   : > { %v2284_v14 = vsel %vm4580_vm15, 0, %v2282_v58  ;;  %v2345_v37 = vsel %vm2331_vm4, %v2342_v35, %v2344_v47  ;;  %v4628_v1 = vmul.u32.u64.low %v2346_v18, %v2341_v16  ;;  %v4629_v51 = vmul.u32.u64.high %v2346_v18, %v2341_v16, %v4628_v1 }
 0x2a2   : > { %2863 = vpow2.f32 %v4531_v32  ;;  %v1334_v23 = vsub.s32 0, %v1332_v5  ;;  %v4633_v11 = vmul.u32.u64.low %v2346_v18, %v2345_v37  ;;  %v4634_v26 = vmul.u32.u64.high %v2346_v18, %v2345_v37, %v4633_v11 }
 0x2a3   : > { %v2337_v29 = vsel %vm2331_vm4, %v2334_v22, %v2336_v49  ;;  %v382_v59 = vadd.f32 %v4119_v0, %v2995_v38  ;;  %v1374_v25 = vand.u32 2139095040, %v4622_v53  ;;  %v2288_v8 = vand.u32 3, %v2284_v14 }
 0x2a4   : > { %v2631_v24 = vmin.u32 %v1334_v23, %v1332_v5  ;;  %v2356_v2 = vadd.s32 1, %v4629_v51  ;;  %vm2287_vm5 = vweird.f32 %v4326_v20  ;;  %v2353_v30 = vmul.u32 %v2346_v18, %v2337_v29 }
 0x2a5   : > { %v1375_v46 = vshrl.u32 %v1374_v25, 23  ;;  %vm2355_vm6 = vc.u32 %v4634_v26, %v4628_v1  ;;  %v2409_v0 = vmul.f32 %v382_v59, %v382_v59  ;;  %vm2293_vm7 = vcmp.eq.s32.totalorder %v2288_v8, 2 }
 0x2a6   : > { %v2860_v52 = vpop.eup %2859  ;;  %v1336_v32 = vclz %v2631_v24  ;;  %v2357_v40 = vsel %vm2355_vm6, %v2356_v2, %v4629_v51  ;;  %vm2290_vm8 = vcmp.eq.s32.totalorder %v2288_v8, 0  ;;  %v1371_v7 = vand.u32 2147483647, %v4622_v53 }
 0x2a7   : > { %v2862_v50 = vpop.eup %2861  ;;  %v2294_v62 = vxor.u32 2147483648, %v2860_v52  ;;  %v2634_v42 = vadd.s32 4294967169, %v1375_v46  ;;  %v2358_v60 = vadd.s32 %v2357_v40, %v2353_v30  ;;  %vm2289_vm9 = vcmp.lt.s32.totalorder %v2288_v8, 2 }
 0x2a8   : > { %v2291_v10 = vxor.u32 2147483648, %v2862_v50  ;;  %v2632_v63 = vadd.s32 4294967294, %v1336_v32  ;;  %v1324_v39 = vadd.s32 %v4570_v45, %v4565_v3  ;;  %v1354_v61 = vsub.s32 4, %v4614_v6 }
 0x2a9   : > { %v2295_v43 = vsel %vm2293_vm7, %v2294_v62, %v2862_v50  ;;  %v1381_v58 = vadd.s32 1, %v2634_v42  ;;  %v2359_v12 = vadd.s32 536870912, %v2358_v60  ;;  %v1378_v57 = vand.u32 8388607, %v1371_v7 }
 0x2aa   : > { %v2292_v55 = vsel %vm2290_vm8, %v2860_v52, %v2291_v10  ;;  %vm2633_vm10 = vcmp.lt.s32.totalorder %v2632_v63, 0  ;;  %vm1270_vm12 = vcmp.lt.s32.totalorder %v4458_v36, 0  ;;  %vm4668_vm13 = vcmp.le.f32.partialorder %v1268_v33, 0.7853982 }
 0x2ab   : > { %v2296_v56 = vsel %vm2289_vm9, %v2292_v55, %v2295_v43  ;;  %v1339_v4 = vsel %vm2633_vm10, 0, %v2632_v63  ;;  %vm1382_vm11 = vcmp.gt.s32.totalorder %v1381_v58, 0  ;;  %v4651_v16 = vshrl.u32 %v2359_v12, 30 }
 0x2ac   : > { %v2864_v34 = vpop.eup %2863  ;;  %v2297_v44 = vsel %vm2287_vm5, nan, %v2296_v56  ;;  %v1340_v41 = vsub.s32 32, %v1339_v4  ;;  %v1344_v48 = vsub.s32 4294967266, %v1339_v4  ;;  %v1383_v18 = vsel %vm1382_vm11, %v1381_v58, 0 }
 0x2ad   : > { %v2494_v35 = vmul.f32 %v2864_v34, %v2297_v44  ;;  %v1341_v22 = vshll.u32 %v1332_v5, %v1339_v4  ;;  %v1385_v49 = vand.u32 31, %v1383_v18  ;;  %v2361_v20 = vshll.u32 %v4651_v16, 30 }
 0x2ae   : > { %v1342_v3 = vshrl.u32 %v1324_v39, %v1340_v41  ;;  %v1345_v45 = vadd.s32 127, %v1344_v48  ;;  %v4662_v51 = vsel %vm1270_vm12, %v1354_v61, %v4614_v6  ;;  %v2428_v5 = vsub.f32 0.0, %v2409_v0 }
 0x2af   : > { %2514 = vst.msk [vmem:[%s3269_s27 + $0x88] sm:$0xff] %vm2496_vm14, %v2494_v35  ;;  %v1386_v37 = vsub.s32 32, %v1385_v49  ;;  %v4664_v23 = vsub.s32 %v2358_v60, %v2361_v20  ;;  %v1379_v11 = vor.u32 8388608, %v1378_v57  ;;  %v4672_v25 = vshrl.u32 %v1383_v18, 5 }
 0x2b0   : > { %v1343_v47 = vor.u32 %v1342_v3, %v1341_v22  ;;  %v1346_v14 = vshll.u32 %v1345_v45, 23  ;;  %v1388_v8 = vshll.u32 %v2892_v9, %v1385_v49  ;;  %v1391_v24 = vshll.u32 %v2893_v13, %v1385_v49 }
 0x2b1   : > { %v2364_v6 = vsub.s32 0, %v4664_v23  ;;  %v1389_v2 = vshrl.u32 %v2893_v13, %v1386_v37  ;;  %v1392_v46 = vshrl.u32 %v2894_v15, %v1386_v37  ;;  %v1394_v52 = vshll.u32 %v2894_v15, %v1385_v49 }
 0x2b2   : > { %v1347_v59 = vor.u32 4788187, %v1346_v14  ;;  %v1350_v33 = vcvt.s32.f32 %v1343_v47  ;;  %v1395_v30 = vshrl.u32 %v2895_v17, %v1386_v37  ;;  %v1398_v50 = vshrl.u32 %v2896_v19, %v1386_v37 }
 0x2b3   : > { %v2354_v62 = vadd.s32 %v4628_v1, %v4634_v26  ;;  %v2671_v40 = vmin.u32 %v2364_v6, %v4664_v23  ;;  %v2455_v0 = vmul.f32 1.442695, %v2428_v5  ;;  %v1397_v42 = vshll.u32 %v2895_v17, %v1385_v49 }
 0x2b4   : > { %v1348_v32 = vand.u32 2147483647, %v1347_v59  ;;  %v1390_v13 = vor.u32 %v1389_v2, %v1388_v8  ;;  %v1393_v63 = vor.u32 %v1392_v46, %v1391_v24  ;;  %v1396_v60 = vor.u32 %v1395_v30, %v1394_v52 }
 0x2b5   : > { %v2366_v43 = vclz %v2671_v40  ;;  %v1399_v15 = vor.u32 %v1398_v50, %v1397_v42  ;;  %v1400_v58 = vshll.u32 %v2896_v19, %v1385_v49  ;;  %v1401_v55 = vshrl.u32 %v2897_v28, %v1386_v37 }
 0x2b6   : > { %v1351_v10 = vmul.f32 %v1350_v33, %v1348_v32  ;;  %v1387_v56 = vshrl.u32 %v2892_v9, %v1386_v37  ;;  %vm1403_vm15 = vcmp.lt.s32.totalorder %v4672_v25, 1  ;;  %v1419_v1 = vshll.u32 %v1379_v11, 8 }
 0x2b7   : > { %v2672_v26 = vadd.s32 4294967294, %v2366_v43  ;;  %v1402_v39 = vor.u32 %v1401_v55, %v1400_v58  ;;  %vm1405_vm0 = vcmp.lt.s32.totalorder %v4672_v25, 3  ;;  %vm1406_vm1 = vcmp.lt.s32.totalorder %v4672_v25, 4 }
 0x2b8   : > { %v1352_v12 = vxor.u32 2147483648, %v1351_v10  ;;  %v1408_v19 = vsel %vm1406_vm1, %v1396_v60, 2102212464  ;;  %v1411_v28 = vsel %vm1403_vm15, %v1390_v13, %v1393_v63  ;;  %v1412_v9 = vsel %vm1406_vm1, %v1399_v15, 920167782 }
 0x2b9   : > { %vm2673_vm2 = vcmp.lt.s32.totalorder %v2672_v26, 0  ;;  %vm1404_vm3 = vcmp.lt.s32.totalorder %v4672_v25, 2  ;;  %v1413_v34 = vsel %vm1405_vm0, %v1396_v60, %v1412_v9  ;;  %v1407_v41 = vsel %vm1403_vm15, %v1387_v56, %v1390_v13 }
 0x2ba   : > { %v1353_v17 = vsel %vm1270_vm12, %v1352_v12, %v1351_v10  ;;  %v2369_v44 = vsel %vm2673_vm2, 0, %v2672_v26  ;;  %v1414_v48 = vsel %vm1404_vm3, %v1411_v28, %v1413_v34  ;;  %v1409_v57 = vsel %vm1405_vm0, %v1393_v63, %v1408_v19 }
 0x2bb   : > { %v1356_v4 = vsel %vm4668_vm13, %v4458_v36, %v1353_v17  ;;  %v2370_v61 = vsub.s32 32, %v2369_v44  ;;  %v2374_v35 = vsub.s32 4294967266, %v2369_v44  ;;  %v1415_v18 = vsel %vm1403_vm15, %v1393_v63, %v1396_v60 }
 0x2bc   : > { %2865 = vcosq.f32 %v1356_v4  ;;  %v1416_v22 = vsel %vm1406_vm1, %v1402_v39, 1326507024  ;;  %v4716_v3 = vmul.u32.u64.low %v1419_v1, %v1414_v48  ;;  %v4717_v45 = vmul.u32.u64.high %v1419_v1, %v1414_v48, %v4716_v3 }
 0x2bd   : > { %2867 = vsinq.f32 %v1356_v4  ;;  %v2371_v49 = vshll.u32 %v4664_v23, %v2369_v44  ;;  %v2372_v20 = vshrl.u32 %v2354_v62, %v2370_v61  ;;  %v2375_v47 = vadd.s32 127, %v2374_v35 }
 0x2be   : > { %v1417_v14 = vsel %vm1405_vm0, %v1399_v15, %v1416_v22  ;;  %v1357_v37 = vsel %vm4668_vm13, 0, %v4662_v51  ;;  %2869 = vpow2.f32 %v2455_v0  ;;  %v1410_v23 = vsel %vm1404_vm3, %v1407_v41, %v1409_v57 }
 0x2bf   : > { %v1418_v5 = vsel %vm1404_vm3, %v1415_v18, %v1417_v14  ;;  %v2373_v11 = vor.u32 %v2372_v20, %v2371_v49  ;;  %v2376_v59 = vshll.u32 %v2375_v47, 23  ;;  %v1429_v6 = vadd.s32 1, %v4717_v45 }
 0x2c0   : > { %v4728_v8 = vmul.u32.u64.low %v1419_v1, %v1418_v5  ;;  %v4729_v24 = vmul.u32.u64.high %v1419_v1, %v1418_v5, %v4728_v8  ;;  %v442_v2 = vadd.f32 %v4209_v54, %v2995_v38  ;;  %v1361_v29 = vand.u32 3, %v1357_v37 }
 0x2c1   : > { %v2377_v46 = vor.u32 4788187, %v2376_v59  ;;  %v2380_v52 = vcvt.s32.f32 %v2373_v11  ;;  %v1426_v32 = vmul.u32 %v1419_v1, %v1410_v23  ;;  %vm1360_vm5 = vweird.f32 %v4458_v36 }
 0x2c2   : > { %vm1428_vm4 = vc.u32 %v4729_v24, %v4716_v3  ;;  %v2419_v50 = vmul.f32 %v442_v2, %v442_v2  ;;  %vm1366_vm6 = vcmp.eq.s32.totalorder %v1361_v29, 2  ;;  %vm2300_vm7 = vcmp.lt.s32.totalorder %v4488_v27, 0 }
 0x2c3   : > { %v2378_v51 = vand.u32 2147483647, %v2377_v46  ;;  %v1430_v30 = vsel %vm1428_vm4, %v1429_v6, %v4717_v45  ;;  %vm1363_vm8 = vcmp.eq.s32.totalorder %v1361_v29, 0  ;;  %vm1362_vm9 = vcmp.lt.s32.totalorder %v1361_v29, 2 }
 0x2c4   : > { %v1431_v0 = vadd.s32 %v1430_v30, %v1426_v32  ;;  %vm4743_vm10 = vcmp.le.f32.partialorder %v2298_v21, 0.7853982  ;;  %v2438_v43 = vsub.f32 0.0, %v2419_v50  ;;  %v2384_v55 = vsub.s32 4, %v4651_v16 }
 0x2c5   : > { %v2381_v40 = vmul.f32 %v2380_v52, %v2378_v51  ;;  %v1427_v45 = vadd.s32 %v4716_v3, %v4729_v24  ;;  %vm2390_vm0 = vweird.f32 %v4488_v27  ;;  %v388_v46 = vadd.f32 %v4267_v31, %v2995_v38 }
 0x2c6   : > { %v2866_v33 = vpop.eup %2865  ;;  %v1432_v13 = vadd.s32 536870912, %v1431_v0  ;;  %v2385_v17 = vsel %vm2300_vm7, %v2384_v55, %v4651_v16  ;;  %v2475_v28 = vmul.f32 1.442695, %v2438_v43  ;;  %vm1373_vm1 = vcmp.lt.s32.totalorder %v4622_v53, 0 }
 0x2c7   : > { %v2868_v62 = vpop.eup %2867  ;;  %v1367_v25 = vxor.u32 2147483648, %v2866_v33  ;;  %v2382_v10 = vxor.u32 2147483648, %v2381_v40  ;;  %v2387_v36 = vsel %vm4743_vm10, 0, %v2385_v17  ;;  %v2410_v51 = vmul.f32 %v388_v46, %v388_v46 }
 0x2c8   : > { %v1364_v42 = vxor.u32 2147483648, %v2868_v62  ;;  %v1433_v12 = vshrl.u32 %v1432_v13, 30  ;;  %v2870_v56 = vpop.eup %2869  ;;  %v2391_v34 = vand.u32 3, %v2387_v36  ;;  %vm1372_vm2 = vcmp.le.f32.partialorder %v1371_v7, 0.7853982 }
 0x2c9   : > { %v1368_v54 = vsel %vm1366_vm6, %v1367_v25, %v2868_v62  ;;  %v2383_v58 = vsel %vm2300_vm7, %v2382_v10, %v2381_v40  ;;  %vm1463_vm6 = vweird.f32 %v4622_v53 }
 0x2ca   : > { %v1365_v63 = vsel %vm1363_vm8, %v2866_v33, %v1364_v42  ;;  %v2386_v26 = vsel %vm4743_vm10, %v4488_v27, %v2383_v58  ;;  %v1434_v39 = vshll.u32 %v1433_v12, 30  ;;  %vm2396_vm11 = vcmp.eq.s32.totalorder %v2391_v34, 2 }
 0x2cb   : > { %v1369_v15 = vsel %vm1362_vm9, %v1365_v63, %v1368_v54  ;;  %2871 = vcosq.f32 %v2386_v26  ;;  %vm2392_vm13 = vcmp.lt.s32.totalorder %v2391_v34, 2  ;;  %vm2393_vm15 = vcmp.eq.s32.totalorder %v2391_v34, 0 }
 0x2cc   : > { %v1370_v1 = vsel %vm1360_vm5, nan, %v1369_v15  ;;  %2873 = vsinq.f32 %v2386_v26  ;;  %v1435_v19 = vsub.s32 %v1431_v0, %v1434_v39  ;;  %v1457_v32 = vsub.s32 4, %v1433_v12 }
 0x2cd   : > { %v2485_v21 = vmul.f32 %v2870_v56, %v1370_v1  ;;  %2875 = vpow2.f32 %v2475_v28  ;;  %v2429_v33 = vsub.f32 0.0, %v2410_v51 }
 0x2ce   : > { %v1437_v9 = vsub.s32 0, %v1435_v19  ;;  %v1458_v50 = vsel %vm1373_vm1, %v1457_v32, %v1433_v12 }
 0x2cf   : > { %2505 = vst.msk [vmem:[%s3269_s27 + $0x40] sm:$0xff] %vm2496_vm14, %v2485_v21  ;;  %v2457_v62 = vmul.f32 1.442695, %v2429_v33  ;;  %v1460_v38 = vsel %vm1372_vm2, 0, %v1458_v50 }
 0x2d0   : > { %v2635_v4 = vmin.u32 %v1437_v9, %v1435_v19  ;;  %v1464_v31 = vand.u32 3, %v1460_v38 }
 0x2d2   : > { %v1439_v44 = vclz %v2635_v4  ;;  %vm1469_vm3 = vcmp.eq.s32.totalorder %v1464_v31, 2  ;;  %vm1466_vm4 = vcmp.eq.s32.totalorder %v1464_v31, 0  ;;  %vm1465_vm5 = vcmp.lt.s32.totalorder %v1464_v31, 2 }
 0x2d4   : > { %v2636_v48 = vadd.s32 4294967294, %v1439_v44 }
 0x2d5   : > { %v2872_v41 = vpop.eup %2871 }
 0x2d6   : > { %v2874_v61 = vpop.eup %2873  ;;  %v2397_v35 = vxor.u32 2147483648, %v2872_v41  ;;  %vm2637_vm12 = vcmp.lt.s32.totalorder %v2636_v48, 0 }
 0x2d7   : > { %v2394_v57 = vxor.u32 2147483648, %v2874_v61  ;;  %v1442_v18 = vsel %vm2637_vm12, 0, %v2636_v48  ;;  %v2876_v14 = vpop.eup %2875 }
 0x2d8   : > { %v2398_v16 = vsel %vm2396_vm11, %v2397_v35, %v2874_v61  ;;  %v1443_v49 = vsub.s32 32, %v1442_v18  ;;  %v1447_v20 = vsub.s32 4294967266, %v1442_v18  ;;  %v1444_v5 = vshll.u32 %v1435_v19, %v1442_v18 }
 0x2d9   : > { %v2395_v22 = vsel %vm2393_vm15, %v2872_v41, %v2394_v57 }
 0x2da   : > { %v2399_v47 = vsel %vm2392_vm13, %v2395_v22, %v2398_v16  ;;  %v1445_v11 = vshrl.u32 %v1427_v45, %v1443_v49  ;;  %v1448_v59 = vadd.s32 127, %v1447_v20 }
 0x2db   : > { %v2400_v37 = vsel %vm2390_vm0, nan, %v2399_v47 }
 0x2dc   : > { %v2495_v8 = vmul.f32 %v2876_v14, %v2400_v37  ;;  %v1446_v23 = vor.u32 %v1445_v11, %v1444_v5  ;;  %v1449_v6 = vshll.u32 %v1448_v59, 23 }
 0x2de   : > { %2515 = vst.msk [vmem:[%s3269_s27 + $0x90] sm:$0xff] %vm2496_vm14, %v2495_v8  ;;  %v1450_v2 = vor.u32 4788187, %v1449_v6  ;;  %v1453_v24 = vcvt.s32.f32 %v1446_v23 }
 0x2e0   : > { %v1451_v3 = vand.u32 2147483647, %v1450_v2 }
 0x2e2   : > { %v1454_v29 = vmul.f32 %v1453_v24, %v1451_v3 }
 0x2e4   : > { %v1455_v27 = vxor.u32 2147483648, %v1454_v29 }
 0x2e6   : > { %v1456_v52 = vsel %vm1373_vm1, %v1455_v27, %v1454_v29 }
 0x2e7   : > { %v1459_v30 = vsel %vm1372_vm2, %v4622_v53, %v1456_v52 }
 0x2e8   : > { %2877 = vcosq.f32 %v1459_v30 }
 0x2e9   : > { %2879 = vsinq.f32 %v1459_v30 }
 0x2ea   : > { %2881 = vpow2.f32 %v2457_v62 }
 0x2f2   : > { %v2878_v25 = vpop.eup %2877 }
 0x2f3   : > { %v2880_v40 = vpop.eup %2879  ;;  %v1470_v0 = vxor.u32 2147483648, %v2878_v25 }
 0x2f4   : > { %v1467_v42 = vxor.u32 2147483648, %v2880_v40  ;;  %v2882_v13 = vpop.eup %2881 }
 0x2f5   : > { %v1471_v7 = vsel %vm1469_vm3, %v1470_v0, %v2880_v40 }
 0x2f6   : > { %v1468_v54 = vsel %vm1466_vm4, %v2878_v25, %v1467_v42 }
 0x2f7   : > { %v1472_v10 = vsel %vm1465_vm5, %v1468_v54, %v1471_v7 }
 0x2f8   : > { %v1473_v63 = vsel %vm1463_vm6, nan, %v1472_v10 }
 0x2f9   : > { %v2486_v60 = vmul.f32 %v2882_v13, %v1473_v63 }
 0x2fb   : > { %2506 = vst.msk [vmem:[%s3269_s27 + $0x48] sm:$0xff] %vm2496_vm14, %v2486_v60 }
 0x2fc PF: > { %s13_s12 = sadd.s32 1, %s2889_s12  }
 0x2fd   : > { %p10_p4 = scmp.ge.s32.totalorder %s13_s12, 4  }
 0x2ff   :  { %12 = sbr.rel (!%p10_p4) target bundleno = 1 (0x1), region = 62 }

// kernel: tpu_custom_call.1
= control target key start
LH: loop header
LB: loop body
LE: loop exit
PB: predicated region body
PF: predicated region fallthrough
CT: control target
= control target key end

     0   :  { %s2918_s12 = smov 0   ;;  %s4779_s0 = inlined_call_operand.vmem [shape: f32[300,8], index: 0, kind: input, shape index: {}]   ;;  %s4780_s1 = inlined_call_operand.vmem [shape: f32[8,256], index: 1, kind: input, shape index: {}]   ;;  %s4781_s2 = inlined_call_operand.vmem [shape: f32[1,256], index: 2, kind: input, shape index: {}]   ;;  %s4782_s3 = inlined_call_operand.vmem [shape: f32[300,32], index: 3, kind: output, shape index: {}]  }
   0x1 LB: > { %s2572_s13 = sadd.s32 4294967295, %s2889_s12   ;;  %p2576_p0 = scmp.ge.s32.totalorder %s2889_s12, 1  ;;  %s2889_s12 = sphi %s2918_s12, %s13_s12  }
   0x2   : > { %p138_p1 = scmp.lt.s32.totalorder %s2889_s12, 3 }
   0x4   : > { %p139_p2 = pnand %p2576_p0, %p138_p1 }
   0x5   : > { %v194_v0 = vld [vmem:[%s4780_s1 + $0x8] sm:$0xff] (!%p139_p2)  ;;  %v193_v1 = vld [vmem:[%s4780_s1] sm:$0xff] (!%p139_p2)  ;;  %s162_s18 = smul.u32 (!%p139_p2), 19, %s2572_s13  ;;  %v2891_v2 = vmov (!%p139_p2), 0.0   ;;  %vm207_vm0 = vcmask (!%p139_p2), 64512   ;;  %v197_v22 = vlaneseq (!%p139_p2) }
   0x6   : > { %142 = sbr.rel (%p139_p2) target bundleno = 764 (0x2fc), region = 32  ;;  %265 = vmatprep.subr.mxu0 (!%p139_p2), %v194_v0  ;;  %2676 = vmatprep.subr.mxu1 (!%p139_p2), %v194_v0  ;;  %v195_v25 = vld [vmem:[%s4781_s2] sm:$0x3] (!%p139_p2) }
   0x7   : > { %266 = vmatpush1.msra.mxu0 (!%p139_p2), %v193_v1  ;;  %2677 = vmatpush1.msra.mxu1 (!%p139_p2), %v193_v1  ;;  %p163_p3 = scmp.lt.s32.totalorder (!%p139_p2), %s162_s18, 37  ;;  %v198_v23 = vshrl.u32 (!%p139_p2), %v197_v22, 7 }
   0x8   : > { %329 = vmatprep.mubr.f32.mxu0 (!%p139_p2), %v2891_v2  ;;  %389 = vmatprep.mubr.f32.mxu1 (!%p139_p2), %v2891_v2 }
   0x9   : > { %v199_v24 = vsub.s32 (!%p139_p2), 0, %v198_v23  ;;  %v203_v29 = vsub.s32 (!%p139_p2), 1, %v198_v23 }
   0xb   : > { %v2983_v26 = vrot.slane (!%p139_p2), %v195_v25, %v199_v24  ;;  %v2995_v38 = vrot.slane (!%p139_p2), %v195_v25, %v203_v29 }
   0xd   : > { %s4820_s18 = smov (!%p163_p3, %s162_s18), 37 }
   0xe   : > { %s2577_s19 = sshll.u32 %s4820_s18, 3 }
   0xf   : > { %s2940_s22 = scalar_lea.vmem %s4779_s0, %s2577_s19  ;;  %s3269_s27 = scalar_lea.vmem %s4782_s3, %s2577_s19 }
  0x10   : > { %v174_v3 = vld [vmem:[%s2940_s22] sm:$0xff]  ;;  %v184_v4 = vld [vmem:[%s2940_s22 + $0x50] sm:$0xff]  ;;  %v175_v5 = vld [vmem:[%s2940_s22 + $0x8] sm:$0xff] }
  0x11   : > { %2579 = vmatmul.mubr.msk.f32.vlgmr.msra.gmra.mrb[0].mxu0 %vm207_vm0, %v174_v3  ;;  %2589 = vmatmul.mubr.msk.f32.vlgmr.msra.gmra.mrb[0].mxu1 %vm207_vm0, %v184_v4  ;;  %v185_v6 = vld [vmem:[%s2940_s22 + $0x58] sm:$0xff]  ;;  %v176_v7 = vld [vmem:[%s2940_s22 + $0x10] sm:$0xff]  ;;  %v186_v8 = vld [vmem:[%s2940_s22 + $0x60] sm:$0xff] }
  0x12   : > { %335 = vmatprep.mubr.f32.mxu0 %v2891_v2  ;;  %395 = vmatprep.mubr.f32.mxu1 %v2891_v2  ;;  %v177_v9 = vld [vmem:[%s2940_s22 + $0x18] sm:$0xff]  ;;  %v187_v10 = vld [vmem:[%s2940_s22 + $0x68] sm:$0xff]  ;;  %v178_v11 = vld [vmem:[%s2940_s22 + $0x20] sm:$0xff] }
  0x13   : > { %v188_v12 = vld [vmem:[%s2940_s22 + $0x70] sm:$0xff]  ;;  %v179_v13 = vld [vmem:[%s2940_s22 + $0x28] sm:$0xff]  ;;  %v189_v14 = vld [vmem:[%s2940_s22 + $0x78] sm:$0xff] }
  0x14   : > { %v180_v15 = vld [vmem:[%s2940_s22 + $0x30] sm:$0xff]  ;;  %v190_v16 = vld [vmem:[%s2940_s22 + $0x80] sm:$0xff]  ;;  %v181_v17 = vld [vmem:[%s2940_s22 + $0x38] sm:$0xff] }
  0x15   : > { %2580 = vmatmul.mubr.msk.f32.gmra.mrb[2].mxu0 %vm207_vm0, %v175_v5  ;;  %2590 = vmatmul.mubr.msk.f32.gmra.mrb[2].mxu1 %vm207_vm0, %v185_v6  ;;  %v191_v18 = vld [vmem:[%s2940_s22 + $0x88] sm:$0xff]  ;;  %v182_v19 = vld [vmem:[%s2940_s22 + $0x40] sm:$0xff]  ;;  %v192_v20 = vld [vmem:[%s2940_s22 + $0x90] sm:$0xff] }
  0x16   : > { %341 = vmatprep.mubr.f32.mxu0 %v2891_v2  ;;  %401 = vmatprep.mubr.f32.mxu1 %v2891_v2  ;;  %v183_v21 = vld [vmem:[%s2940_s22 + $0x48] sm:$0xff] }
  0x19   : > { %2581 = vmatmul.mubr.msk.f32.gmra.mrb[4].mxu0 %vm207_vm0, %v176_v7  ;;  %2591 = vmatmul.mubr.msk.f32.gmra.mrb[4].mxu1 %vm207_vm0, %v186_v8 }
  0x1a   : > { %347 = vmatprep.mubr.f32.mxu0 %v2891_v2  ;;  %407 = vmatprep.mubr.f32.mxu1 %v2891_v2 }
  0x1d   : > { %2582 = vmatmul.mubr.msk.f32.gmra.mrb[6].mxu0 %vm207_vm0, %v177_v9  ;;  %2592 = vmatmul.mubr.msk.f32.gmra.mrb[6].mxu1 %vm207_vm0, %v187_v10  ;;  %v2892_v9 = vmov 683565275  }
  0x1e   : > { %353 = vmatprep.mubr.f32.mxu0 %v2891_v2  ;;  %413 = vmatprep.mubr.f32.mxu1 %v2891_v2 }
  0x21   : > { %2583 = vmatmul.mubr.msk.f32.gmra.mrb[8].mxu0 %vm207_vm0, %v178_v11  ;;  %2593 = vmatmul.mubr.msk.f32.gmra.mrb[8].mxu1 %vm207_vm0, %v188_v12 }
  0x22   : > { %359 = vmatprep.mubr.f32.mxu0 %v2891_v2  ;;  %419 = vmatprep.mubr.f32.mxu1 %v2891_v2 }
  0x25   : > { %2584 = vmatmul.mubr.msk.f32.gmra.mrb[10].mxu0 %vm207_vm0, %v179_v13  ;;  %2594 = vmatmul.mubr.msk.f32.gmra.mrb[10].mxu1 %vm207_vm0, %v189_v14  ;;  %v2893_v13 = vmov 2475754826  }
  0x26   : > { %365 = vmatprep.mubr.f32.mxu0 %v2891_v2  ;;  %425 = vmatprep.mubr.f32.mxu1 %v2891_v2 }
  0x29   : > { %2585 = vmatmul.mubr.msk.f32.gmra.mrb[12].mxu0 %vm207_vm0, %v180_v15  ;;  %2595 = vmatmul.mubr.msk.f32.gmra.mrb[12].mxu1 %vm207_vm0, %v190_v16  ;;  %v2894_v15 = vmov 2131351028  }
  0x2a   : > { %371 = vmatprep.mubr.f32.mxu0 %v2891_v2  ;;  %431 = vmatprep.mubr.f32.mxu1 %v2891_v2 }
  0x2d   : > { %2586 = vmatmul.mubr.msk.f32.gmra.mrb[14].mxu0 %vm207_vm0, %v181_v17  ;;  %2596 = vmatmul.mubr.msk.f32.gmra.mrb[14].mxu1 %vm207_vm0, %v191_v18  ;;  %v2895_v17 = vmov 2102212464  }
  0x2e   : > { %377 = vmatprep.mubr.f32.mxu0 %v2891_v2  ;;  %437 = vmatprep.mubr.f32.mxu1 %v2891_v2 }
  0x31   : > { %2587 = vmatmul.mubr.msk.f32.gmra.mrb[16].mxu0 %vm207_vm0, %v182_v19  ;;  %2597 = vmatmul.mubr.msk.f32.gmra.mrb[16].mxu1 %vm207_vm0, %v192_v20  ;;  %v2896_v19 = vmov 920167782  }
  0x32   : > { %383 = vmatprep.mubr.f32.mxu0 %v2891_v2 }
  0x35   : > { %2588 = vmatmul.mubr.msk.f32.gmra.mrb[18].mxu0 %vm207_vm0, %v183_v21 }
  0xe4   : > { %v331_v27 = vpop.f32.mrb[0].mxu0  ;;  %v391_v28 = vpop.f32.mrb[0].mxu1 }
  0xe5   : > { %v2986_v30 = vadd.f32 %v331_v27, %v2983_v26  ;;  %v2989_v31 = vadd.f32 %v391_v28, %v2983_v26  ;;  %v333_v32 = vpop.f32.mrb[1].mxu0  ;;  %v393_v33 = vpop.f32.mrb[1].mxu1  ;;  %v2897_v28 = vmov 1326507024  }
  0xe6   : > { %v334_v50 = vadd.f32 %v333_v32, %v2995_v38  ;;  %v394_v54 = vadd.f32 %v393_v33, %v2995_v38 }
  0xe7   : > { %v444_v34 = vand.u32 2147483647, %v2986_v30  ;;  %v447_v35 = vand.u32 2139095040, %v2986_v30  ;;  %v1474_v36 = vand.u32 2147483647, %v2989_v31  ;;  %v1477_v37 = vand.u32 2139095040, %v2989_v31 }
  0xe8   : > { %v337_v39 = vpop.f32.mrb[2].mxu0  ;;  %v2997_v40 = vpop.f32.mrb[2].mxu1  ;;  %v3021_v62 = vmul.f32 %v334_v50, %v334_v50  ;;  %v3025_v3 = vmul.f32 %v394_v54, %v394_v54  ;;  %vm446_vm15 = vcmp.lt.s32.totalorder %v2986_v30, 0 }
  0xe9   : > { %v448_v41 = vshrl.u32 %v447_v35, 23  ;;  %v2999_v42 = vpop.f32.mrb[3].mxu0  ;;  %v451_v43 = vand.u32 8388607, %v444_v34  ;;  %v1478_v44 = vshrl.u32 %v1477_v37, 23  ;;  %v3005_v46 = vpop.f32.mrb[3].mxu1  ;;  %v3008_v48 = vadd.f32 %v337_v39, %v2983_v26 }
  0xea   : > { %v1481_v45 = vand.u32 8388607, %v1474_v36 }
  0xeb   : > { %v2598_v47 = vadd.s32 4294967169, %v448_v41  ;;  %v2638_v49 = vadd.s32 4294967169, %v1478_v44  ;;  %v452_v55 = vor.u32 8388608, %v451_v43  ;;  %v550_v59 = vand.u32 2139095040, %v3008_v48 }
  0xec   : > { %v3011_v51 = vpop.f32.mrb[4].mxu0  ;;  %v3013_v52 = vpop.f32.mrb[4].mxu1  ;;  %v1482_v56 = vor.u32 8388608, %v1481_v45  ;;  %v547_v6 = vand.u32 2147483647, %v3008_v48 }
  0xed   : > { %v454_v53 = vadd.s32 1, %v2598_v47  ;;  %v1484_v57 = vadd.s32 1, %v2638_v49  ;;  %v3016_v58 = vpop.f32.mrb[5].mxu0  ;;  %v3019_v60 = vpop.f32.mrb[5].mxu1  ;;  %v3027_v4 = vshll.u32 %v452_v55, 8  ;;  %v3032_v7 = vshrl.u32 %v550_v59, 23 }
  0xee   : > { %v3029_v5 = vshll.u32 %v1482_v56, 8 }
  0xef   : > { %vm455_vm1 = vcmp.gt.s32.totalorder %v454_v53, 0  ;;  %vm1485_vm2 = vcmp.gt.s32.totalorder %v1484_v57, 0 }
  0xf0   : > { %v456_v61 = vsel %vm455_vm1, %v454_v53, 0  ;;  %v3023_v63 = vpop.f32.mrb[6].mxu0  ;;  %v1486_v2 = vsel %vm1485_vm2, %v1484_v57, 0  ;;  %v3044_v24 = vpop.f32.mrb[6].mxu1 }
  0xf1   : > { %v457_v0 = vshrl.u32 %v456_v61, 5  ;;  %v458_v1 = vand.u32 31, %v456_v61  ;;  %v3035_v11 = vshrl.u32 %v1486_v2, 5  ;;  %v1488_v12 = vand.u32 31, %v1486_v2 }
  0xf3   : > { %v459_v8 = vsub.s32 32, %v458_v1  ;;  %v461_v10 = vshll.u32 %v2892_v9, %v458_v1  ;;  %v464_v14 = vshll.u32 %v2893_v13, %v458_v1  ;;  %v467_v16 = vshll.u32 %v2894_v15, %v458_v1 }
  0xf4   : > { %v470_v18 = vshll.u32 %v2895_v17, %v458_v1  ;;  %v473_v20 = vshll.u32 %v2896_v19, %v458_v1  ;;  %vm476_vm3 = vcmp.lt.s32.totalorder %v457_v0, 1  ;;  %vm478_vm4 = vcmp.lt.s32.totalorder %v457_v0, 3 }
  0xf5   : > { %v462_v21 = vshrl.u32 %v2893_v13, %v459_v8  ;;  %v465_v22 = vshrl.u32 %v2894_v15, %v459_v8  ;;  %v468_v23 = vshrl.u32 %v2895_v17, %v459_v8  ;;  %v460_v25 = vshrl.u32 %v2892_v9, %v459_v8 }
  0xf6   : > { %v471_v27 = vshrl.u32 %v2896_v19, %v459_v8  ;;  %v474_v29 = vshrl.u32 %v2897_v28, %v459_v8  ;;  %v1489_v37 = vsub.s32 32, %v1488_v12  ;;  %vm479_vm5 = vcmp.lt.s32.totalorder %v457_v0, 4 }
  0xf7   : > { %v463_v32 = vor.u32 %v462_v21, %v461_v10  ;;  %v466_v33 = vor.u32 %v465_v22, %v464_v14  ;;  %v469_v35 = vor.u32 %v468_v23, %v467_v16  ;;  %v1491_v43 = vshll.u32 %v2892_v9, %v1488_v12 }
  0xf8   : > { %v472_v39 = vor.u32 %v471_v27, %v470_v18  ;;  %v475_v41 = vor.u32 %v474_v29, %v473_v20  ;;  %v1494_v55 = vshll.u32 %v2893_v13, %v1488_v12  ;;  %vm477_vm6 = vcmp.lt.s32.totalorder %v457_v0, 2 }
  0xf9   : > { %v480_v44 = vsel %vm476_vm3, %v460_v25, %v463_v32  ;;  %v481_v45 = vsel %vm479_vm5, %v469_v35, 2102212464  ;;  %v484_v47 = vsel %vm476_vm3, %v463_v32, %v466_v33  ;;  %v488_v49 = vsel %vm476_vm3, %v466_v33, %v469_v35 }
  0xfa   : > { %v482_v50 = vsel %vm478_vm4, %v466_v33, %v481_v45  ;;  %v485_v53 = vsel %vm479_vm5, %v472_v39, 920167782  ;;  %v489_v54 = vsel %vm479_vm5, %v475_v41, 1326507024  ;;  %v1492_v59 = vshrl.u32 %v2893_v13, %v1489_v37 }
  0xfb   : > { %v486_v56 = vsel %vm478_vm4, %v469_v35, %v485_v53  ;;  %v490_v57 = vsel %vm478_vm4, %v472_v39, %v489_v54  ;;  %v483_v61 = vsel %vm477_vm6, %v480_v44, %v482_v50  ;;  %v1495_v8 = vshrl.u32 %v2894_v15, %v1489_v37 }
  0xfc   : > { %v487_v1 = vsel %vm477_vm6, %v484_v47, %v486_v56  ;;  %v491_v2 = vsel %vm477_vm6, %v488_v49, %v490_v57  ;;  %v1493_v20 = vor.u32 %v1492_v59, %v1491_v43  ;;  %v1497_v0 = vshll.u32 %v2894_v15, %v1488_v12 }
  0xfd   : > { %v3060_v10 = vmul.u32.u64.low %v3027_v4, %v491_v2  ;;  %v3061_v14 = vmul.u32.u64.high %v3027_v4, %v491_v2, %v3060_v10  ;;  %v3064_v16 = vmul.u32.u64.low %v3027_v4, %v487_v1  ;;  %v3065_v18 = vmul.u32.u64.high %v3027_v4, %v487_v1, %v3064_v16 }
  0xfe   : > { %v1496_v21 = vor.u32 %v1495_v8, %v1494_v55  ;;  %v1498_v22 = vshrl.u32 %v2895_v17, %v1489_v37  ;;  %v1500_v23 = vshll.u32 %v2895_v17, %v1488_v12  ;;  %v1501_v25 = vshrl.u32 %v2896_v19, %v1489_v37 }
  0xff   : > { %v1503_v27 = vshll.u32 %v2896_v19, %v1488_v12  ;;  %v1504_v29 = vshrl.u32 %v2897_v28, %v1489_v37  ;;  %v499_v32 = vmul.u32 %v3027_v4, %v483_v61  ;;  %v1490_v33 = vshrl.u32 %v2892_v9, %v1489_v37 }
 0x100   : > { %v1499_v35 = vor.u32 %v1498_v22, %v1497_v0  ;;  %vm1506_vm7 = vcmp.lt.s32.totalorder %v3035_v11, 1  ;;  %vm501_vm8 = vc.u32 %v3061_v14, %v3064_v16  ;;  %v502_v39 = vadd.s32 1, %v3065_v18 }
 0x101   : > { %v1502_v41 = vor.u32 %v1501_v25, %v1500_v23  ;;  %vm1507_vm9 = vcmp.lt.s32.totalorder %v3035_v11, 2  ;;  %v1505_v43 = vor.u32 %v1504_v29, %v1503_v27  ;;  %vm1508_vm10 = vcmp.lt.s32.totalorder %v3035_v11, 3 }
 0x102   : > { %vm1509_vm11 = vcmp.lt.s32.totalorder %v3035_v11, 4  ;;  %v1514_v12 = vsel %vm1506_vm7, %v1493_v20, %v1496_v21  ;;  %v503_v4 = vsel %vm501_vm8, %v502_v39, %v3065_v18  ;;  %v1518_v45 = vsel %vm1506_vm7, %v1496_v21, %v1499_v35 }
 0x103   : > { %v1511_v37 = vsel %vm1509_vm11, %v1499_v35, 2102212464  ;;  %v1515_v44 = vsel %vm1509_vm11, %v1502_v41, 920167782  ;;  %v504_v47 = vadd.s32 %v503_v4, %v499_v32  ;;  %v1510_v49 = vsel %vm1506_vm7, %v1490_v33, %v1493_v20 }
 0x104   : > { %v1516_v50 = vsel %vm1508_vm10, %v1499_v35, %v1515_v44  ;;  %v1519_v53 = vsel %vm1509_vm11, %v1505_v43, 1326507024  ;;  %v1512_v54 = vsel %vm1508_vm10, %v1496_v21, %v1511_v37  ;;  %v2602_v57 = vadd.s32 4294967169, %v3032_v7 }
 0x105   : > { %v1517_v55 = vsel %vm1507_vm9, %v1514_v12, %v1516_v50  ;;  %v1520_v56 = vsel %vm1508_vm10, %v1502_v41, %v1519_v53  ;;  %v505_v59 = vadd.s32 536870912, %v504_v47  ;;  %v2420_v18 = vsub.f32 0.0, %v3021_v62  ;;  %v3114_v12 = vpop.f32.mrb[7].mxu0 }
 0x106   : > { %v1521_v61 = vsel %vm1507_vm9, %v1518_v45, %v1520_v56  ;;  %v3090_v1 = vmul.u32.u64.low %v3029_v5, %v1517_v55  ;;  %v3091_v2 = vmul.u32.u64.high %v3029_v5, %v1517_v55, %v3090_v1  ;;  %v557_v20 = vadd.s32 1, %v2602_v57 }
 0x107   : > { %v3094_v8 = vmul.u32.u64.low %v3029_v5, %v1521_v61  ;;  %v3095_v10 = vmul.u32.u64.high %v3029_v5, %v1521_v61, %v3094_v8  ;;  %v3098_v21 = vshrl.u32 %v505_v59, 30  ;;  %v1513_v7 = vsel %vm1507_vm9, %v1510_v49, %v1512_v54 }
 0x108   : > { %v554_v0 = vand.u32 8388607, %v547_v6  ;;  %vm558_vm12 = vcmp.gt.s32.totalorder %v557_v20, 0  ;;  %v1532_v23 = vadd.s32 1, %v3091_v2  ;;  %v2430_v25 = vsub.f32 0.0, %v3025_v3 }
 0x109   : > { %v507_v22 = vshll.u32 %v3098_v21, 30  ;;  %v559_v27 = vsel %vm558_vm12, %v557_v20, 0  ;;  %v1529_v29 = vmul.u32 %v3029_v5, %v1513_v7  ;;  %vm1531_vm13 = vc.u32 %v3095_v10, %v3090_v1 }
 0x10a   : > { %v2439_v62 = vmul.f32 1.442695, %v2420_v18  ;;  %v561_v32 = vand.u32 31, %v559_v27  ;;  %v1533_v11 = vsel %vm1531_vm13, %v1532_v23, %v3091_v2  ;;  %v555_v35 = vor.u32 8388608, %v554_v0 }
 0x10b   : > { %v508_v33 = vsub.s32 %v504_v47, %v507_v22  ;;  %v1534_v39 = vadd.s32 %v1533_v11, %v1529_v29  ;;  %v3112_v43 = vadd.f32 %v2997_v40, %v2983_v26  ;;  %v3116_v5 = vmul.f32 1.442695, %v2430_v25 }
 0x10c   : > { %v562_v41 = vsub.s32 32, %v561_v32  ;;  %2769 = vpow2.f32 %v2439_v62  ;;  %v500_v37 = vadd.s32 %v3064_v16, %v3061_v14  ;;  %v3120_v45 = vshll.u32 %v555_v35, 8 }
 0x10d   : > { %v510_v3 = vsub.s32 0, %v508_v33  ;;  %v1535_v4 = vadd.s32 536870912, %v1534_v39  ;;  %v1577_v47 = vand.u32 2147483647, %v3112_v43  ;;  %v530_v49 = vsub.s32 4, %v3098_v21 }
 0x10e   : > { %v571_v40 = vshrl.u32 %v2895_v17, %v562_v41  ;;  %v1580_v53 = vand.u32 2139095040, %v3112_v43  ;;  %v3129_v55 = vadd.s32 %v3090_v1, %v3095_v10  ;;  %v565_v56 = vshrl.u32 %v2893_v13, %v562_v41 }
 0x10f   : > { %v2599_v44 = vmin.u32 %v510_v3, %v508_v33  ;;  %v3124_v50 = vshrl.u32 %v1535_v4, 30  ;;  %v568_v14 = vshrl.u32 %v2894_v15, %v562_v41  ;;  %v570_v57 = vshll.u32 %v2894_v15, %v561_v32 }
 0x110   : > { %v574_v59 = vshrl.u32 %v2896_v19, %v562_v41  ;;  %v577_v61 = vshrl.u32 %v2897_v28, %v562_v41  ;;  %v560_v8 = vshrl.u32 %v559_v27, 5  ;;  %v564_v18 = vshll.u32 %v2892_v9, %v561_v32 }
 0x111   : > { %v512_v54 = vclz %v2599_v44  ;;  %v1537_v16 = vshll.u32 %v3124_v50, 30  ;;  %v567_v20 = vshll.u32 %v2893_v13, %v561_v32  ;;  %v572_v10 = vor.u32 %v571_v40, %v570_v57 }
 0x112   : > { %v573_v7 = vshll.u32 %v2895_v17, %v561_v32  ;;  %v576_v0 = vshll.u32 %v2896_v19, %v561_v32  ;;  %v563_v22 = vshrl.u32 %v2892_v9, %v562_v41  ;;  %v566_v23 = vor.u32 %v565_v56, %v564_v18 }
 0x113   : > { %v2600_v2 = vadd.s32 4294967294, %v512_v54  ;;  %v3139_v1 = vsub.s32 %v1534_v39, %v1537_v16  ;;  %v569_v25 = vor.u32 %v568_v14, %v567_v20  ;;  %vm579_vm0 = vcmp.lt.s32.totalorder %v560_v8, 1  ;;  %v3153_v20 = vpop.f32.mrb[7].mxu1 }
 0x114   : > { %v575_v62 = vor.u32 %v574_v59, %v573_v7  ;;  %v578_v11 = vor.u32 %v577_v61, %v576_v0  ;;  %vm582_vm1 = vcmp.lt.s32.totalorder %v560_v8, 4  ;;  %vm580_vm2 = vcmp.lt.s32.totalorder %v560_v8, 2 }
 0x115   : > { %vm2601_vm14 = vcmp.lt.s32.totalorder %v2600_v2, 0  ;;  %v1540_v27 = vsub.s32 0, %v3139_v1  ;;  %vm581_vm3 = vcmp.lt.s32.totalorder %v560_v8, 3  ;;  %v584_v41 = vsel %vm582_vm1, %v572_v10, 2102212464 }
 0x116   : > { %v515_v29 = vsel %vm2601_vm14, 0, %v2600_v2  ;;  %v3146_v3 = vpop.eup %2769  ;;  %v587_v54 = vsel %vm579_vm0, %v566_v23, %v569_v25  ;;  %v588_v14 = vsel %vm582_vm1, %v575_v62, 920167782  ;;  %v591_v16 = vsel %vm579_vm0, %v569_v25, %v572_v10 }
 0x117   : > { %v516_v35 = vsub.s32 32, %v515_v29  ;;  %v520_v39 = vsub.s32 4294967266, %v515_v29  ;;  %v2639_v32 = vmin.u32 %v1540_v27, %v3139_v1  ;;  %v517_v4 = vshll.u32 %v508_v33, %v515_v29 }
 0x118   : > { %v592_v57 = vsel %vm582_vm1, %v578_v11, 1326507024  ;;  %v589_v2 = vsel %vm581_vm3, %v572_v10, %v588_v14  ;;  %v583_v33 = vsel %vm579_vm0, %v563_v22, %v566_v23  ;;  %vm1476_vm4 = vcmp.lt.s32.totalorder %v2989_v31, 0 }
 0x119   : > { %v518_v44 = vshrl.u32 %v500_v37, %v516_v35  ;;  %v521_v40 = vadd.s32 127, %v520_v39  ;;  %v1542_v56 = vclz %v2639_v32  ;;  %v593_v18 = vsel %vm581_vm3, %v575_v62, %v592_v57 }
 0x11a   : > { %v590_v37 = vsel %vm580_vm2, %v587_v54, %v589_v2  ;;  %v594_v0 = vsel %vm580_vm2, %v591_v16, %v593_v18  ;;  %v585_v27 = vsel %vm581_vm3, %v569_v25, %v584_v41  ;;  %v1581_v22 = vshrl.u32 %v1580_v53, 23  ;;  %v3174_v41 = vpop.f32.mrb[8].mxu0 }
 0x11b   : > { %v519_v59 = vor.u32 %v518_v44, %v517_v4  ;;  %v522_v61 = vshll.u32 %v521_v40, 23  ;;  %v2640_v7 = vadd.s32 4294967294, %v1542_v56  ;;  %v531_v32 = vsel %vm446_vm15, %v530_v49, %v3098_v21 }
 0x11c   : > { %v3161_v11 = vmul.u32.u64.low %v3120_v45, %v594_v0  ;;  %v3162_v35 = vmul.u32.u64.high %v3120_v45, %v594_v0, %v3161_v11  ;;  %v3165_v10 = vmul.u32.u64.low %v3120_v45, %v590_v37  ;;  %v3166_v62 = vmul.u32.u64.high %v3120_v45, %v590_v37, %v3165_v10 }
 0x11d   : > { %v523_v29 = vor.u32 4788187, %v522_v61  ;;  %vm2641_vm5 = vcmp.lt.s32.totalorder %v2640_v7, 0  ;;  %v526_v39 = vcvt.s32.f32 %v519_v59  ;;  %v586_v40 = vsel %vm580_vm2, %v583_v33, %v585_v27 }
 0x11e   : > { %v1545_v25 = vsel %vm2641_vm5, 0, %v2640_v7  ;;  %v2642_v54 = vadd.s32 4294967169, %v1581_v22  ;;  %v1560_v53 = vsub.s32 4, %v3124_v50  ;;  %vm604_vm6 = vc.u32 %v3162_v35, %v3165_v10 }
 0x11f   : > { %v524_v23 = vand.u32 2147483647, %v523_v29  ;;  %v1546_v4 = vsub.s32 32, %v1545_v25  ;;  %v1550_v44 = vsub.s32 4294967266, %v1545_v25  ;;  %v1547_v14 = vshll.u32 %v3139_v1, %v1545_v25 }
 0x120   : > { %v605_v21 = vadd.s32 1, %v3166_v62  ;;  %v1587_v49 = vadd.s32 1, %v2642_v54  ;;  %vm3185_vm7 = vcmp.le.f32.partialorder %v444_v34, 0.7853982  ;;  %2771 = vpow2.f32 %v3116_v5 }
 0x121   : > { %v527_v56 = vmul.f32 %v526_v39, %v524_v23  ;;  %v1548_v16 = vshrl.u32 %v3129_v55, %v1546_v4  ;;  %v1551_v57 = vadd.s32 127, %v1550_v44  ;;  %v602_v1 = vmul.u32 %v3120_v45, %v586_v40 }
 0x122   : > { %v606_v18 = vsel %vm604_vm6, %v605_v21, %v3166_v62  ;;  %vm1588_vm8 = vcmp.gt.s32.totalorder %v1587_v49, 0  ;;  %v533_v7 = vsel %vm3185_vm7, 0, %v531_v32  ;;  %v1561_v45 = vsel %vm1476_vm4, %v1560_v53, %v3124_v50  ;;  %v3224_v53 = vpop.f32.mrb[8].mxu1 }
 0x123   : > { %v528_v59 = vxor.u32 2147483648, %v527_v56  ;;  %v1549_v61 = vor.u32 %v1548_v16, %v1547_v14  ;;  %v1552_v2 = vshll.u32 %v1551_v57, 23  ;;  %v607_v34 = vadd.s32 %v606_v18, %v602_v1 }
 0x124   : > { %v1589_v33 = vsel %vm1588_vm8, %v1587_v49, 0  ;;  %v1584_v0 = vand.u32 8388607, %v1577_v47  ;;  %vm3206_vm9 = vcmp.le.f32.partialorder %v1474_v36, 0.7853982  ;;  %v3212_v23 = vadd.f32 %v2999_v42, %v2995_v38 }
 0x125   : > { %v529_v55 = vsel %vm446_vm15, %v528_v59, %v527_v56  ;;  %v1553_v5 = vor.u32 4788187, %v1552_v2  ;;  %v608_v27 = vadd.s32 536870912, %v607_v34  ;;  %v1591_v11 = vand.u32 31, %v1589_v33 }
 0x126   : > { %v532_v37 = vsel %vm3185_vm7, %v2986_v30, %v529_v55  ;;  %v1556_v22 = vcvt.s32.f32 %v1549_v61  ;;  %v537_v50 = vand.u32 3, %v533_v7  ;;  %v1563_v39 = vsel %vm3206_vm9, 0, %v1561_v45 }
 0x127   : > { %2773 = vcosq.f32 %v532_v37  ;;  %v1554_v62 = vand.u32 2147483647, %v1553_v5  ;;  %v3216_v32 = vshrl.u32 %v608_v27, 30  ;;  %v1592_v25 = vsub.s32 32, %v1591_v11 }
 0x128   : > { %2775 = vsinq.f32 %v532_v37  ;;  %v1585_v4 = vor.u32 8388608, %v1584_v0  ;;  %v1594_v44 = vshll.u32 %v2892_v9, %v1591_v11  ;;  %v1597_v40 = vshll.u32 %v2893_v13, %v1591_v11 }
 0x129   : > { %v1557_v36 = vmul.f32 %v1556_v22, %v1554_v62  ;;  %v610_v54 = vshll.u32 %v3216_v32, 30  ;;  %v1595_v56 = vshrl.u32 %v2893_v13, %v1592_v25  ;;  %v1600_v42 = vshll.u32 %v2894_v15, %v1591_v11 }
 0x12a   : > { %v1603_v14 = vshll.u32 %v2895_v17, %v1591_v11  ;;  %v1598_v57 = vshrl.u32 %v2894_v15, %v1592_v25  ;;  %v1601_v21 = vshrl.u32 %v2895_v17, %v1592_v25  ;;  %v1604_v49 = vshrl.u32 %v2896_v19, %v1592_v25  ;;  %v3229_v8 = vpop.eup %2771 }
 0x12b   : > { %v1558_v16 = vxor.u32 2147483648, %v1557_v36  ;;  %vm538_vm10 = vcmp.lt.s32.totalorder %v537_v50, 2  ;;  %v3231_v59 = vsub.s32 %v607_v34, %v610_v54  ;;  %v3233_v1 = vshrl.u32 %v1589_v33, 5 }
 0x12c   : > { %v1606_v61 = vshll.u32 %v2896_v19, %v1591_v11  ;;  %v1607_v2 = vshrl.u32 %v2897_v28, %v1592_v25  ;;  %vm536_vm11 = vweird.f32 %v2986_v30  ;;  %vm539_vm12 = vcmp.eq.s32.totalorder %v537_v50, 0 }
 0x12d   : > { %vm542_vm13 = vcmp.eq.s32.totalorder %v537_v50, 2  ;;  %v1559_v18 = vsel %vm1476_vm4, %v1558_v16, %v1557_v36  ;;  %v3240_v55 = vand.u32 3, %v1563_v39  ;;  %vm2496_vm14 = vcmask 261120  }
 0x12e   : > { %v1562_v7 = vsel %vm3206_vm9, %v2989_v31, %v1559_v18  ;;  %v613_v34 = vsub.s32 0, %v3231_v59  ;;  %v1602_v33 = vor.u32 %v1601_v21, %v1600_v42  ;;  %v3246_v37 = vshll.u32 %v1585_v4, 8 }
 0x12f   : > { %2777 = vcosq.f32 %v1562_v7  ;;  %v1596_v5 = vor.u32 %v1595_v56, %v1594_v44  ;;  %v1599_v45 = vor.u32 %v1598_v57, %v1597_v40  ;;  %v1605_v0 = vor.u32 %v1604_v49, %v1603_v14 }
 0x130   : > { %2779 = vsinq.f32 %v1562_v7  ;;  %v2603_v11 = vmin.u32 %v613_v34, %v3231_v59  ;;  %v1608_v62 = vor.u32 %v1607_v2, %v1606_v61  ;;  %vm1609_vm15 = vcmp.lt.s32.totalorder %v3233_v1, 1 }
 0x131   : > { %v2774_v27 = vpop.eup %2773  ;;  %v1593_v39 = vshrl.u32 %v2892_v9, %v1592_v25  ;;  %vm1610_vm0 = vcmp.lt.s32.totalorder %v3233_v1, 2  ;;  %vm1612_vm1 = vcmp.lt.s32.totalorder %v3233_v1, 4  ;;  %vm1611_vm2 = vcmp.lt.s32.totalorder %v3233_v1, 3 }
 0x132   : > { %v2776_v22 = vpop.eup %2775  ;;  %v543_v29 = vxor.u32 2147483648, %v2774_v27  ;;  %v615_v4 = vclz %v2603_v11  ;;  %v1614_v44 = vsel %vm1612_vm1, %v1602_v33, 2102212464  ;;  %v1617_v54 = vsel %vm1609_vm15, %v1596_v5, %v1599_v45 }
 0x133   : > { %v540_v36 = vxor.u32 2147483648, %v2776_v22  ;;  %v1618_v56 = vsel %vm1612_vm1, %v1605_v0, 920167782  ;;  %v1621_v42 = vsel %vm1609_vm15, %v1599_v45, %v1602_v33  ;;  %v1622_v57 = vsel %vm1612_vm1, %v1608_v62, 1326507024 }
 0x134   : > { %v544_v40 = vsel %vm542_vm13, %v543_v29, %v2776_v22  ;;  %v2604_v14 = vadd.s32 4294967294, %v615_v4  ;;  %v1619_v16 = vsel %vm1611_vm2, %v1602_v33, %v1618_v56  ;;  %vm1568_vm3 = vcmp.lt.s32.totalorder %v3240_v55, 2 }
 0x135   : > { %v541_v25 = vsel %vm539_vm12, %v2774_v27, %v540_v36  ;;  %v1613_v49 = vsel %vm1609_vm15, %v1593_v39, %v1596_v5  ;;  %v1615_v61 = vsel %vm1611_vm2, %v1599_v45, %v1614_v44  ;;  %v1623_v2 = vsel %vm1611_vm2, %v1605_v0, %v1622_v57 }
 0x136   : > { %v545_v21 = vsel %vm538_vm10, %v541_v25, %v544_v40  ;;  %vm1566_vm4 = vweird.f32 %v2989_v31  ;;  %vm2605_vm5 = vcmp.lt.s32.totalorder %v2604_v14, 0  ;;  %v1620_v50 = vsel %vm1610_vm0, %v1617_v54, %v1619_v16 }
 0x137   : > { %v546_v18 = vsel %vm536_vm11, nan, %v545_v21  ;;  %v1624_v7 = vsel %vm1610_vm0, %v1621_v42, %v1623_v2  ;;  %v618_v33 = vsel %vm2605_vm5, 0, %v2604_v14  ;;  %vm1569_vm6 = vcmp.eq.s32.totalorder %v3240_v55, 0 }
 0x138   : > { %v2477_v34 = vmul.f32 %v3146_v3, %v546_v18  ;;  %v3280_v5 = vmul.u32.u64.low %v3246_v37, %v1624_v7  ;;  %v3281_v45 = vmul.u32.u64.high %v3246_v37, %v1624_v7, %v3280_v5  ;;  %vm549_vm7 = vcmp.lt.s32.totalorder %v3008_v48, 0 }
 0x139   : > { %v603_v30 = vadd.s32 %v3165_v10, %v3162_v35  ;;  %v619_v0 = vsub.s32 32, %v618_v33  ;;  %v623_v27 = vsub.s32 4294967266, %v618_v33  ;;  %v2778_v11 = vpop.eup %2777  ;;  %v620_v62 = vshll.u32 %v3231_v59, %v618_v33  ;;  %v3301_v10 = vpop.f32.mrb[9].mxu0 }
 0x13a   : > { %2497 = vst.msk [vmem:[%s3269_s27] sm:$0xff] %vm2496_vm14, %v2477_v34  ;;  %v1616_v3 = vsel %vm1610_vm0, %v1613_v49, %v1615_v61  ;;  %v3293_v22 = vmul.u32.u64.low %v3246_v37, %v1620_v50  ;;  %v3294_v29 = vmul.u32.u64.high %v3246_v37, %v1620_v50, %v3293_v22  ;;  %v2780_v39 = vpop.eup %2779  ;;  %v1573_v36 = vxor.u32 2147483648, %v2778_v11 }
 0x13b   : > { %v621_v4 = vshrl.u32 %v603_v30, %v619_v0  ;;  %v624_v44 = vadd.s32 127, %v623_v27  ;;  %v3299_v35 = vadd.f32 %v3011_v51, %v2983_v26  ;;  %v1570_v40 = vxor.u32 2147483648, %v2780_v39 }
 0x13c   : > { %vm1572_vm8 = vcmp.eq.s32.totalorder %v3240_v55, 2  ;;  %v633_v59 = vsub.s32 4, %v3216_v32  ;;  %v2402_v1 = vmul.f32 %v3212_v23, %v3212_v23  ;;  %vm1634_vm9 = vc.u32 %v3281_v45, %v3293_v22 }
 0x13d   : > { %v1574_v54 = vsel %vm1572_vm8, %v1573_v36, %v2780_v39  ;;  %v622_v56 = vor.u32 %v621_v4, %v620_v62  ;;  %v625_v42 = vshll.u32 %v624_v44, 23  ;;  %v1571_v51 = vsel %vm1569_vm6, %v2778_v11, %v1570_v40 }
 0x13e   : > { %v1632_v25 = vmul.u32 %v3246_v37, %v1616_v3  ;;  %v1635_v14 = vadd.s32 1, %v3294_v29  ;;  %v3315_v16 = vadd.f32 %v3013_v52, %v2983_v26  ;;  %v1575_v23 = vsel %vm1568_vm3, %v1571_v51, %v1574_v54 }
 0x13f   : > { %v626_v57 = vor.u32 4788187, %v625_v42  ;;  %v650_v21 = vand.u32 2147483647, %v3299_v35  ;;  %v653_v49 = vand.u32 2139095040, %v3299_v35  ;;  %v1576_v61 = vsel %vm1566_vm4, nan, %v1575_v23 }
 0x140   : > { %v629_v2 = vcvt.s32.f32 %v622_v56  ;;  %v1636_v37 = vsel %vm1634_vm9, %v1635_v14, %v3294_v29  ;;  %v2421_v18 = vsub.f32 0.0, %v2402_v1  ;;  %v2487_v50 = vmul.f32 %v3229_v8, %v1576_v61 }
 0x141   : > { %v627_v52 = vand.u32 2147483647, %v626_v57  ;;  %v1637_v7 = vadd.s32 %v1636_v37, %v1632_v25  ;;  %v654_v34 = vshrl.u32 %v653_v49, 23  ;;  %v634_v55 = vsel %vm549_vm7, %v633_v59, %v3216_v32 }
 0x142   : > { %v400_v33 = vadd.f32 %v3005_v46, %v2995_v38  ;;  %v1683_v5 = vand.u32 2139095040, %v3315_v16  ;;  %2507 = vst.msk [vmem:[%s3269_s27 + $0x50] sm:$0xff] %vm2496_vm14, %v2487_v50  ;;  %v657_v8 = vand.u32 8388607, %v650_v21  ;;  %v2441_v27 = vmul.f32 1.442695, %v2421_v18 }
 0x143   : > { %v630_v31 = vmul.f32 %v629_v2, %v627_v52  ;;  %v1638_v30 = vadd.s32 536870912, %v1637_v7  ;;  %v2606_v0 = vadd.s32 4294967169, %v654_v34  ;;  %v1680_v11 = vand.u32 2147483647, %v3315_v16  ;;  %v3372_v2 = vpop.f32.mrb[9].mxu1 }
 0x144   : > { %v1684_v62 = vshrl.u32 %v1683_v5, 23  ;;  %vm3338_vm10 = vcmp.le.f32.partialorder %v547_v6, 0.7853982  ;;  %v3346_v36 = vmul.f32 %v400_v33, %v400_v33  ;;  %v658_v59 = vor.u32 8388608, %v657_v8 }
 0x145   : > { %v631_v46 = vxor.u32 2147483648, %v630_v31  ;;  %v3342_v3 = vshrl.u32 %v1638_v30, 30  ;;  %v660_v29 = vadd.s32 1, %v2606_v0  ;;  %v636_v39 = vsel %vm3338_vm10, 0, %v634_v55 }
 0x146   : > { %v2646_v4 = vadd.s32 4294967169, %v1684_v62  ;;  %2781 = vpow2.f32 %v2441_v27  ;;  %v3356_v54 = vand.u32 8388607, %v1680_v11  ;;  %v3358_v56 = vand.u32 3, %v636_v39  ;;  %v3392_v27 = vpop.f32.mrb[10].mxu0 }
 0x147   : > { %v632_v44 = vsel %vm549_vm7, %v631_v46, %v630_v31  ;;  %v1640_v40 = vshll.u32 %v3342_v3, 30  ;;  %vm661_vm11 = vcmp.gt.s32.totalorder %v660_v29, 0  ;;  %v1633_v23 = vadd.s32 %v3293_v22, %v3281_v45 }
 0x148   : > { %v635_v6 = vsel %vm3338_vm10, %v3008_v48, %v632_v44  ;;  %v662_v1 = vsel %vm661_vm11, %v660_v29, 0  ;;  %v3364_v14 = vadd.s32 1, %v2646_v4  ;;  %v2431_v49 = vsub.f32 0.0, %v3346_v36 }
 0x149   : > { %2783 = vcosq.f32 %v635_v6  ;;  %v3360_v42 = vsub.s32 %v1637_v7, %v1640_v40  ;;  %v3362_v51 = vshrl.u32 %v662_v1, 5  ;;  %v664_v25 = vand.u32 31, %v662_v1 }
 0x14a   : > { %2785 = vsinq.f32 %v635_v6  ;;  %v3370_v61 = vshll.u32 %v658_v59, 8  ;;  %v1663_v37 = vsub.s32 4, %v3342_v3  ;;  %v1688_v50 = vor.u32 8388608, %v3356_v54 }
 0x14b   : > { %v1643_v57 = vsub.s32 0, %v3360_v42  ;;  %v665_v18 = vsub.s32 32, %v664_v25  ;;  %vm682_vm12 = vcmp.lt.s32.totalorder %v3362_v51, 1  ;;  %vm645_vm13 = vcmp.eq.s32.totalorder %v3358_v56, 2 }
 0x14c   : > { %v667_v45 = vshll.u32 %v2892_v9, %v664_v25  ;;  %v670_v22 = vshll.u32 %v2893_v13, %v664_v25  ;;  %v673_v7 = vshll.u32 %v2894_v15, %v664_v25  ;;  %vm642_vm15 = vcmp.eq.s32.totalorder %v3358_v56, 0 }
 0x14d   : > { %v2643_v52 = vmin.u32 %v1643_v57, %v3360_v42  ;;  %v666_v34 = vshrl.u32 %v2892_v9, %v665_v18  ;;  %v668_v55 = vshrl.u32 %v2893_v13, %v665_v18  ;;  %v671_v33 = vshrl.u32 %v2894_v15, %v665_v18 }
 0x14e   : > { %v674_v5 = vshrl.u32 %v2895_v17, %v665_v18  ;;  %vm1691_vm0 = vcmp.gt.s32.totalorder %v3364_v14, 0  ;;  %vm641_vm1 = vcmp.lt.s32.totalorder %v3358_v56, 2  ;;  %v676_v30 = vshll.u32 %v2895_v17, %v664_v25 }
 0x14f   : > { %v1645_v31 = vclz %v2643_v52  ;;  %v677_v0 = vshrl.u32 %v2896_v19, %v665_v18  ;;  %v679_v8 = vshll.u32 %v2896_v19, %v664_v25  ;;  %vm639_vm2 = vweird.f32 %v3008_v48 }
 0x150   : > { %v669_v62 = vor.u32 %v668_v55, %v667_v45  ;;  %v672_v32 = vor.u32 %v671_v33, %v670_v22  ;;  %v675_v46 = vor.u32 %v674_v5, %v673_v7  ;;  %v680_v29 = vshrl.u32 %v2897_v28, %v665_v18  ;;  %v2782_v44 = vpop.eup %2781 }
 0x151   : > { %v2644_v39 = vadd.s32 4294967294, %v1645_v31  ;;  %v678_v4 = vor.u32 %v677_v0, %v676_v30  ;;  %vm683_vm3 = vcmp.lt.s32.totalorder %v3362_v51, 2  ;;  %vm685_vm4 = vcmp.lt.s32.totalorder %v3362_v51, 4 }
 0x152   : > { %v681_v40 = vor.u32 %v680_v29, %v679_v8  ;;  %vm684_vm5 = vcmp.lt.s32.totalorder %v3362_v51, 3  ;;  %v686_v59 = vsel %vm682_vm12, %v666_v34, %v669_v62  ;;  %v687_v6 = vsel %vm685_vm4, %v675_v46, 2102212464 }
 0x153   : > { %v2784_v1 = vpop.eup %2783  ;;  %vm2645_vm6 = vcmp.lt.s32.totalorder %v2644_v39, 0  ;;  %v688_v25 = vsel %vm684_vm5, %v672_v32, %v687_v6  ;;  %v690_v57 = vsel %vm682_vm12, %v669_v62, %v672_v32  ;;  %v691_v18 = vsel %vm685_vm4, %v678_v4, 920167782 }
 0x154   : > { %v2786_v52 = vpop.eup %2785  ;;  %v646_v45 = vxor.u32 2147483648, %v2784_v1  ;;  %v1648_v22 = vsel %vm2645_vm6, 0, %v2644_v39  ;;  %v692_v7 = vsel %vm684_vm5, %v675_v46, %v691_v18  ;;  %v694_v34 = vsel %vm682_vm12, %v672_v32, %v675_v46 }
 0x155   : > { %v643_v55 = vxor.u32 2147483648, %v2786_v52  ;;  %v1649_v33 = vsub.s32 32, %v1648_v22  ;;  %v1653_v5 = vsub.s32 4294967266, %v1648_v22  ;;  %v689_v31 = vsel %vm683_vm3, %v686_v59, %v688_v25 }
 0x156   : > { %v647_v30 = vsel %vm645_vm13, %v646_v45, %v2786_v52  ;;  %v1650_v0 = vshll.u32 %v3360_v42, %v1648_v22  ;;  %v693_v8 = vsel %vm683_vm3, %v690_v57, %v692_v7  ;;  %v695_v62 = vsel %vm685_vm4, %v681_v40, 1326507024 }
 0x157   : > { %v644_v32 = vsel %vm642_vm15, %v2784_v1, %v643_v55  ;;  %v1651_v46 = vshrl.u32 %v1633_v23, %v1649_v33  ;;  %v1654_v29 = vadd.s32 127, %v1653_v5  ;;  %v696_v39 = vsel %vm684_vm5, %v678_v4, %v695_v62  ;;  %v3474_v55 = vpop.f32.mrb[10].mxu1 }
 0x158   : > { %v648_v59 = vsel %vm641_vm1, %v644_v32, %v647_v30  ;;  %v697_v42 = vsel %vm683_vm3, %v694_v34, %v696_v39  ;;  %v3431_v6 = vmul.u32.u64.low %v3370_v61, %v693_v8  ;;  %v3432_v25 = vmul.u32.u64.high %v3370_v61, %v693_v8, %v3431_v6 }
 0x159   : > { %v649_v40 = vsel %vm639_vm2, nan, %v648_v59  ;;  %v1652_v23 = vor.u32 %v1651_v46, %v1650_v0  ;;  %v1655_v1 = vshll.u32 %v1654_v29, 23  ;;  %v1692_v4 = vsel %vm1691_vm0, %v3364_v14, 0 }
 0x15a   : > { %vm3442_vm7 = vcmp.le.f32.partialorder %v1577_v47, 0.7853982  ;;  %v2478_v51 = vmul.f32 %v2782_v44, %v649_v40  ;;  %v3447_v57 = vmul.u32.u64.low %v3370_v61, %v697_v42  ;;  %v3448_v18 = vmul.u32.u64.high %v3370_v61, %v697_v42, %v3447_v57 }
 0x15b   : > { %vm1579_vm8 = vcmp.lt.s32.totalorder %v3112_v43, 0  ;;  %v1656_v48 = vor.u32 4788187, %v1655_v1  ;;  %v3453_v52 = vmul.f32 1.442695, %v2431_v49  ;;  %v1694_v45 = vand.u32 31, %v1692_v4 }
 0x15c   : > { %v1664_v47 = vsel %vm1579_vm8, %v1663_v37, %v3342_v3  ;;  %2498 = vst.msk [vmem:[%s3269_s27 + $0x8] sm:$0xff] %vm2496_vm14, %v2478_v51  ;;  %v705_v14 = vmul.u32 %v3370_v61, %v689_v31  ;;  %v708_v44 = vadd.s32 1, %v3432_v25  ;;  %v3466_v22 = vshll.u32 %v1688_v50, 8 }
 0x15d   : > { %v1657_v36 = vand.u32 2147483647, %v1656_v48  ;;  %v1659_v49 = vcvt.s32.f32 %v1652_v23  ;;  %v1695_v7 = vsub.s32 32, %v1694_v45  ;;  %v1697_v34 = vshll.u32 %v2892_v9, %v1694_v45 }
 0x15e   : > { %vm707_vm9 = vc.u32 %v3448_v18, %v3431_v6  ;;  %v1700_v3 = vshll.u32 %v2893_v13, %v1694_v45  ;;  %v1703_v37 = vshll.u32 %v2894_v15, %v1694_v45  ;;  %v1706_v61 = vshll.u32 %v2895_v17, %v1694_v45 }
 0x15f   : > { %v1660_v33 = vmul.f32 %v1659_v49, %v1657_v36  ;;  %v709_v54 = vsel %vm707_vm9, %v708_v44, %v3432_v25  ;;  %v1693_v50 = vshrl.u32 %v1692_v4, 5  ;;  %v1698_v5 = vshrl.u32 %v2893_v13, %v1695_v7 }
 0x160   : > { %v710_v31 = vadd.s32 %v709_v54, %v705_v14  ;;  %v1701_v30 = vshrl.u32 %v2894_v15, %v1695_v7  ;;  %v1704_v0 = vshrl.u32 %v2895_v17, %v1695_v7  ;;  %v1707_v8 = vshrl.u32 %v2896_v19, %v1695_v7 }
 0x161   : > { %v1661_v62 = vxor.u32 2147483648, %v1660_v33  ;;  %v1699_v32 = vor.u32 %v1698_v5, %v1697_v34  ;;  %v1709_v46 = vshll.u32 %v2896_v19, %v1694_v45  ;;  %v1710_v29 = vshrl.u32 %v2897_v28, %v1695_v7 }
 0x162   : > { %v711_v39 = vadd.s32 536870912, %v710_v31  ;;  %v1702_v59 = vor.u32 %v1701_v30, %v1700_v3  ;;  %v1705_v42 = vor.u32 %v1704_v0, %v1703_v37  ;;  %v1708_v25 = vor.u32 %v1707_v8, %v1706_v61 }
 0x163   : > { %v1662_v40 = vsel %vm1579_vm8, %v1661_v62, %v1660_v33  ;;  %v1666_v23 = vsel %vm3442_vm7, 0, %v1664_v47  ;;  %v1696_v1 = vshrl.u32 %v2892_v9, %v1695_v7  ;;  %v1711_v4 = vor.u32 %v1710_v29, %v1709_v46 }
 0x164   : > { %v1665_v51 = vsel %vm3442_vm7, %v3112_v43, %v1662_v40  ;;  %v712_v57 = vshrl.u32 %v711_v39, 30  ;;  %vm1712_vm10 = vcmp.lt.s32.totalorder %v1693_v50, 1  ;;  %vm1715_vm11 = vcmp.lt.s32.totalorder %v1693_v50, 4 }
 0x165   : > { %2787 = vcosq.f32 %v1665_v51  ;;  %v1717_v48 = vsel %vm1715_vm11, %v1705_v42, 2102212464  ;;  %v1720_v45 = vsel %vm1712_vm10, %v1699_v32, %v1702_v59  ;;  %v1721_v14 = vsel %vm1715_vm11, %v1708_v25, 920167782 }
 0x166   : > { %2789 = vsinq.f32 %v1665_v51  ;;  %v713_v44 = vshll.u32 %v712_v57, 30  ;;  %vm1714_vm12 = vcmp.lt.s32.totalorder %v1693_v50, 3  ;;  %v1724_v36 = vsel %vm1712_vm10, %v1702_v59, %v1705_v42 }
 0x167   : > { %vm1713_vm13 = vcmp.lt.s32.totalorder %v1693_v50, 2  ;;  %v1716_v47 = vsel %vm1712_vm10, %v1696_v1, %v1699_v32  ;;  %v1722_v49 = vsel %vm1714_vm12, %v1705_v42, %v1721_v14  ;;  %v1725_v7 = vsel %vm1715_vm11, %v1711_v4, 1326507024 }
 0x168   : > { %v3491_v34 = vsub.s32 %v710_v31, %v713_v44  ;;  %v1718_v3 = vsel %vm1714_vm12, %v1702_v59, %v1717_v48  ;;  %v1723_v56 = vsel %vm1713_vm13, %v1720_v45, %v1722_v49  ;;  %v1726_v37 = vsel %vm1714_vm12, %v1708_v25, %v1725_v7 }
 0x169   : > { %v1670_v61 = vand.u32 3, %v1666_v23  ;;  %v1727_v33 = vsel %vm1713_vm13, %v1724_v36, %v1726_v37  ;;  %v3494_v54 = vmul.u32.u64.low %v3466_v22, %v1723_v56  ;;  %v3495_v5 = vmul.u32.u64.high %v3466_v22, %v1723_v56, %v3494_v54 }
 0x16a   : > { %v716_v30 = vsub.s32 0, %v3491_v34  ;;  %v3500_v0 = vmul.u32.u64.low %v3466_v22, %v1727_v33  ;;  %v3501_v50 = vmul.u32.u64.high %v3466_v22, %v1727_v33, %v3500_v0  ;;  %v3505_v31 = vadd.f32 %v3023_v63, %v2983_v26 }
 0x16b   : > { %2791 = vpow2.f32 %v3453_v52  ;;  %v1719_v8 = vsel %vm1713_vm13, %v1716_v47, %v1718_v3  ;;  %v346_v62 = vadd.f32 %v3016_v58, %v2995_v38  ;;  %vm1669_vm15 = vweird.f32 %v3112_v43 }
 0x16c   : > { %v2607_v32 = vmin.u32 %v716_v30, %v3491_v34  ;;  %vm1671_vm0 = vcmp.lt.s32.totalorder %v1670_v61, 2  ;;  %vm652_vm1 = vcmp.lt.s32.totalorder %v3299_v35, 0  ;;  %v1738_v46 = vadd.s32 1, %v3495_v5 }
 0x16d   : > { %v406_v29 = vadd.f32 %v3019_v60, %v2995_v38  ;;  %vm3518_vm2 = vcmp.le.f32.partialorder %v650_v21, 0.7853982  ;;  %v1735_v58 = vmul.u32 %v3466_v22, %v1719_v8  ;;  %vm1737_vm3 = vc.u32 %v3501_v50, %v3494_v54 }
 0x16e   : > { %v718_v52 = vclz %v2607_v32  ;;  %v756_v39 = vand.u32 2139095040, %v3505_v31  ;;  %v736_v42 = vsub.s32 4, %v712_v57  ;;  %v1739_v25 = vsel %vm1737_vm3, %v1738_v46, %v3495_v5  ;;  %v3535_v5 = vpop.f32.mrb[11].mxu0 }
 0x16f   : > { %v2788_v59 = vpop.eup %2787  ;;  %v2403_v40 = vmul.f32 %v346_v62, %v346_v62  ;;  %v753_v60 = vand.u32 2147483647, %v3505_v31  ;;  %v1740_v4 = vadd.s32 %v1739_v25, %v1735_v58  ;;  %vm1672_vm4 = vcmp.eq.s32.totalorder %v1670_v61, 0 }
 0x170   : > { %v2790_v23 = vpop.eup %2789  ;;  %v1676_v21 = vxor.u32 2147483648, %v2788_v59  ;;  %v2608_v1 = vadd.s32 4294967294, %v718_v52  ;;  %v757_v51 = vshrl.u32 %v756_v39, 23  ;;  %vm1675_vm5 = vcmp.eq.s32.totalorder %v1670_v61, 2 }
 0x171   : > { %v1673_v48 = vxor.u32 2147483648, %v2790_v23  ;;  %v706_v22 = vadd.s32 %v3431_v6, %v3448_v18  ;;  %v1741_v14 = vadd.s32 536870912, %v1740_v4  ;;  %v737_v49 = vsel %vm652_vm1, %v736_v42, %v712_v57 }
 0x172   : > { %v1677_v45 = vsel %vm1675_vm5, %v1676_v21, %v2790_v23  ;;  %vm2609_vm6 = vcmp.lt.s32.totalorder %v2608_v1, 0  ;;  %v2610_v44 = vadd.s32 4294967169, %v757_v51  ;;  %v2422_v7 = vsub.f32 0.0, %v2403_v40 }
 0x173   : > { %v1674_v36 = vsel %vm1672_vm4, %v2788_v59, %v1673_v48  ;;  %v721_v47 = vsel %vm2609_vm6, 0, %v2608_v1  ;;  %v760_v33 = vand.u32 8388607, %v753_v60  ;;  %v3539_v30 = vshrl.u32 %v1741_v14, 30 }
 0x174   : > { %v1678_v3 = vsel %vm1671_vm0, %v1674_v36, %v1677_v45  ;;  %v722_v56 = vsub.s32 32, %v721_v47  ;;  %v726_v37 = vsub.s32 4294967266, %v721_v47  ;;  %v763_v0 = vadd.s32 1, %v2610_v44 }
 0x175   : > { %v2792_v6 = vpop.eup %2791  ;;  %v1679_v18 = vsel %vm1669_vm15, nan, %v1678_v3  ;;  %v3543_v57 = vadd.f32 %v3044_v24, %v2983_v26  ;;  %v723_v8 = vshll.u32 %v3491_v34, %v721_v47  ;;  %v739_v46 = vsel %vm3518_vm2, 0, %v737_v49 }
 0x176   : > { %v2488_v61 = vmul.f32 %v2792_v6, %v1679_v18  ;;  %v724_v62 = vshrl.u32 %v706_v22, %v722_v56  ;;  %v727_v32 = vadd.s32 127, %v726_v37  ;;  %v1743_v52 = vshll.u32 %v3539_v30, 30 }
 0x177   : > { %v2443_v58 = vmul.f32 1.442695, %v2422_v7  ;;  %vm764_vm7 = vcmp.gt.s32.totalorder %v763_v0, 0  ;;  %v761_v59 = vor.u32 8388608, %v760_v33  ;;  %v1786_v34 = vand.u32 2139095040, %v3543_v57 }
 0x178   : > { %2508 = vst.msk [vmem:[%s3269_s27 + $0x58] sm:$0xff] %vm2496_vm14, %v2488_v61  ;;  %v725_v43 = vor.u32 %v724_v62, %v723_v8  ;;  %v728_v39 = vshll.u32 %v727_v32, 23  ;;  %v765_v42 = vsel %vm764_vm7, %v763_v0, 0  ;;  %v3551_v24 = vsub.s32 %v1740_v4, %v1743_v52 }
 0x179   : > { %v767_v25 = vand.u32 31, %v765_v42  ;;  %v3554_v23 = vand.u32 3, %v739_v46  ;;  %v3556_v21 = vmul.f32 %v406_v29, %v406_v29  ;;  %v1736_v1 = vadd.s32 %v3494_v54, %v3501_v50 }
 0x17a   : > { %v729_v40 = vor.u32 4788187, %v728_v39  ;;  %v1746_v51 = vsub.s32 0, %v3551_v24  ;;  %2793 = vpow2.f32 %v2443_v58  ;;  %v732_v45 = vcvt.s32.f32 %v725_v43 }
 0x17b   : > { %v768_v48 = vsub.s32 32, %v767_v25  ;;  %v1766_v4 = vsub.s32 4, %v3539_v30  ;;  %v3562_v14 = vshll.u32 %v761_v59, 8  ;;  %v3565_v36 = vshrl.u32 %v765_v42, 5 }
 0x17c   : > { %v730_v22 = vand.u32 2147483647, %v729_v40  ;;  %v2647_v44 = vmin.u32 %v1746_v51, %v3551_v24  ;;  %v770_v29 = vshll.u32 %v2892_v9, %v767_v25  ;;  %v1787_v47 = vshrl.u32 %v1786_v34, 23  ;;  %v3586_v34 = vpop.f32.mrb[11].mxu1 }
 0x17d   : > { %v771_v54 = vshrl.u32 %v2893_v13, %v768_v48  ;;  %v773_v50 = vshll.u32 %v2893_v13, %v767_v25  ;;  %v774_v7 = vshrl.u32 %v2894_v15, %v768_v48  ;;  %v776_v56 = vshll.u32 %v2894_v15, %v767_v25 }
 0x17e   : > { %v733_v49 = vmul.f32 %v732_v45, %v730_v22  ;;  %v1748_v3 = vclz %v2647_v44  ;;  %v777_v37 = vshrl.u32 %v2895_v17, %v768_v48  ;;  %v780_v33 = vshrl.u32 %v2896_v19, %v768_v48 }
 0x17f   : > { %v779_v18 = vshll.u32 %v2895_v17, %v767_v25  ;;  %v782_v0 = vshll.u32 %v2896_v19, %v767_v25  ;;  %v783_v61 = vshrl.u32 %v2897_v28, %v768_v48  ;;  %v772_v62 = vor.u32 %v771_v54, %v770_v29  ;;  %v3596_v29 = vpop.f32.mrb[12].mxu0 }
 0x180   : > { %v734_v6 = vxor.u32 2147483648, %v733_v49  ;;  %v2648_v8 = vadd.s32 4294967294, %v1748_v3  ;;  %v775_v32 = vor.u32 %v774_v7, %v773_v50  ;;  %v778_v46 = vor.u32 %v777_v37, %v776_v56 }
 0x181   : > { %v769_v58 = vshrl.u32 %v2892_v9, %v768_v48  ;;  %v781_v43 = vor.u32 %v780_v33, %v779_v18  ;;  %v784_v39 = vor.u32 %v783_v61, %v782_v0  ;;  %vm785_vm9 = vcmp.lt.s32.totalorder %v3565_v36, 1 }
 0x182   : > { %v735_v52 = vsel %vm652_vm1, %v734_v6, %v733_v49  ;;  %vm2649_vm8 = vcmp.lt.s32.totalorder %v2648_v8, 0  ;;  %vm788_vm10 = vcmp.lt.s32.totalorder %v3565_v36, 4  ;;  %vm786_vm11 = vcmp.lt.s32.totalorder %v3565_v36, 2 }
 0x183   : > { %v738_v59 = vsel %vm3518_vm2, %v3299_v35, %v735_v52  ;;  %v1751_v42 = vsel %vm2649_vm8, 0, %v2648_v8  ;;  %v790_v25 = vsel %vm788_vm10, %v778_v46, 2102212464  ;;  %vm1682_vm12 = vcmp.lt.s32.totalorder %v3315_v16, 0 }
 0x184   : > { %2795 = vcosq.f32 %v738_v59  ;;  %v3588_v40 = vpop.eup %2793  ;;  %v1752_v51 = vsub.s32 32, %v1751_v42  ;;  %v1756_v63 = vsub.s32 4294967266, %v1751_v42  ;;  %v793_v48 = vsel %vm785_vm9, %v772_v62, %v775_v32 }
 0x185   : > { %2797 = vsinq.f32 %v738_v59  ;;  %vm787_vm13 = vcmp.lt.s32.totalorder %v3565_v36, 3  ;;  %v794_v22 = vsel %vm788_vm10, %v781_v43, 920167782  ;;  %v797_v45 = vsel %vm785_vm9, %v775_v32, %v778_v46 }
 0x186   : > { %v798_v44 = vsel %vm788_vm10, %v784_v39, 1326507024  ;;  %v1753_v49 = vshll.u32 %v3551_v24, %v1751_v42  ;;  %v1754_v54 = vshrl.u32 %v1736_v1, %v1752_v51  ;;  %v1757_v50 = vadd.s32 127, %v1756_v63 }
 0x187   : > { %v795_v7 = vsel %vm787_vm13, %v778_v46, %v794_v22  ;;  %v789_v3 = vsel %vm785_vm9, %v769_v58, %v772_v62  ;;  %v799_v37 = vsel %vm787_vm13, %v781_v43, %v798_v44  ;;  %v2650_v33 = vadd.s32 4294967169, %v1787_v47 }
 0x188   : > { %v796_v56 = vsel %vm786_vm11, %v793_v48, %v795_v7  ;;  %v1755_v6 = vor.u32 %v1754_v54, %v1753_v49  ;;  %v1758_v18 = vshll.u32 %v1757_v50, 23  ;;  %v791_v0 = vsel %vm787_vm13, %v775_v32, %v790_v25 }
 0x189   : > { %v800_v61 = vsel %vm786_vm11, %v797_v45, %v799_v37  ;;  %v3610_v1 = vmul.u32.u64.low %v3562_v14, %v796_v56  ;;  %v3611_v46 = vmul.u32.u64.high %v3562_v14, %v796_v56, %v3610_v1  ;;  %vm742_vm15 = vweird.f32 %v3299_v35 }
 0x18a   : > { %v3606_v8 = vmul.u32.u64.low %v3562_v14, %v800_v61  ;;  %v3607_v24 = vmul.u32.u64.high %v3562_v14, %v800_v61, %v3606_v8  ;;  %vm744_vm0 = vcmp.lt.s32.totalorder %v3554_v23, 2  ;;  %vm3618_vm1 = vcmp.le.f32.partialorder %v1680_v11, 0.7853982 }
 0x18b   : > { %v1759_v62 = vor.u32 4788187, %v1758_v18  ;;  %v1793_v32 = vadd.s32 1, %v2650_v33  ;;  %vm745_vm2 = vcmp.eq.s32.totalorder %v3554_v23, 0  ;;  %v2432_v52 = vsub.f32 0.0, %v3556_v21  ;;  %v3648_v33 = vpop.f32.mrb[12].mxu1 }
 0x18c   : > { %v792_v58 = vsel %vm786_vm11, %v789_v3, %v791_v0  ;;  %v1783_v43 = vand.u32 2147483647, %v3543_v57  ;;  %vm748_vm3 = vcmp.eq.s32.totalorder %v3554_v23, 2  ;;  %v1762_v59 = vcvt.s32.f32 %v1755_v6 }
 0x18d   : > { %v1760_v39 = vand.u32 2147483647, %v1759_v62  ;;  %vm1794_vm4 = vcmp.gt.s32.totalorder %v1793_v32, 0  ;;  %v1767_v42 = vsel %vm1682_vm12, %v1766_v4, %v3539_v30  ;;  %vm810_vm5 = vc.u32 %v3607_v24, %v3610_v1 }
 0x18e   : > { %v2796_v11 = vpop.eup %2795  ;;  %v811_v21 = vadd.s32 1, %v3611_v46  ;;  %v1795_v36 = vsel %vm1794_vm4, %v1793_v32, 0  ;;  %v808_v48 = vmul.u32 %v3562_v14, %v792_v58  ;;  %v2463_v44 = vmul.f32 1.442695, %v2432_v52 }
 0x18f   : > { %v2798_v25 = vpop.eup %2797  ;;  %v749_v51 = vxor.u32 2147483648, %v2796_v11  ;;  %v1763_v63 = vmul.f32 %v1762_v59, %v1760_v39  ;;  %v1797_v22 = vand.u32 31, %v1795_v36  ;;  %v1790_v54 = vand.u32 8388607, %v1783_v43 }
 0x190   : > { %v746_v45 = vxor.u32 2147483648, %v2798_v25  ;;  %v812_v49 = vsel %vm810_vm5, %v811_v21, %v3611_v46  ;;  %v1769_v14 = vsel %vm3618_vm1, 0, %v1767_v42  ;;  %vm1772_vm11 = vweird.f32 %v3315_v16 }
 0x191   : > { %v750_v30 = vsel %vm748_vm3, %v749_v51, %v2798_v25  ;;  %v1764_v4 = vxor.u32 2147483648, %v1763_v63  ;;  %v813_v50 = vadd.s32 %v812_v49, %v808_v48  ;;  %v1798_v7 = vsub.s32 32, %v1797_v22 }
 0x192   : > { %v747_v3 = vsel %vm745_vm2, %v2796_v11, %v746_v45  ;;  %v1800_v56 = vshll.u32 %v2892_v9, %v1797_v22  ;;  %v1803_v37 = vshll.u32 %v2893_v13, %v1797_v22  ;;  %v1806_v61 = vshll.u32 %v2894_v15, %v1797_v22 }
 0x193   : > { %v751_v6 = vsel %vm744_vm0, %v747_v3, %v750_v30  ;;  %v1765_v18 = vsel %vm1682_vm12, %v1764_v4, %v1763_v63  ;;  %v814_v0 = vadd.s32 536870912, %v813_v50  ;;  %v1801_v62 = vshrl.u32 %v2893_v13, %v1798_v7 }
 0x194   : > { %v752_v8 = vsel %vm742_vm15, nan, %v751_v6  ;;  %v1768_v46 = vsel %vm3618_vm1, %v3315_v16, %v1765_v18  ;;  %v1804_v32 = vshrl.u32 %v2894_v15, %v1798_v7  ;;  %v1807_v58 = vshrl.u32 %v2895_v17, %v1798_v7 }
 0x195   : > { %2799 = vcosq.f32 %v1768_v46  ;;  %v2479_v23 = vmul.f32 %v3588_v40, %v752_v8  ;;  %v3663_v52 = vshrl.u32 %v814_v0, 30  ;;  %v3666_v39 = vand.u32 3, %v1769_v14 }
 0x196   : > { %2801 = vsinq.f32 %v1768_v46  ;;  %v1791_v35 = vor.u32 8388608, %v1790_v54  ;;  %v1809_v59 = vshll.u32 %v2895_v17, %v1797_v22  ;;  %v1796_v11 = vshrl.u32 %v1795_v36, 5 }
 0x197   : > { %2499 = vst.msk [vmem:[%s3269_s27 + $0x10] sm:$0xff] %vm2496_vm14, %v2479_v23  ;;  %v816_v47 = vshll.u32 %v3663_v52, 30  ;;  %v1802_v42 = vor.u32 %v1801_v62, %v1800_v56  ;;  %v1810_v21 = vshrl.u32 %v2896_v19, %v1798_v7  ;;  %v1805_v25 = vor.u32 %v1804_v32, %v1803_v37 }
 0x198   : > { %v1808_v40 = vor.u32 %v1807_v58, %v1806_v61  ;;  %v1812_v51 = vshll.u32 %v2896_v19, %v1797_v22  ;;  %v1813_v63 = vshrl.u32 %v2897_v28, %v1798_v7  ;;  %2803 = vpow2.f32 %v2463_v44 }
 0x199   : > { %v3675_v48 = vsub.s32 %v813_v50, %v816_v47  ;;  %v1811_v45 = vor.u32 %v1810_v21, %v1809_v59  ;;  %vm1775_vm6 = vcmp.eq.s32.totalorder %v3666_v39, 0  ;;  %vm1778_vm7 = vcmp.eq.s32.totalorder %v3666_v39, 2 }
 0x19a   : > { %v1814_v49 = vor.u32 %v1813_v63, %v1812_v51  ;;  %v3679_v54 = vshll.u32 %v1791_v35, 8  ;;  %vm1774_vm8 = vcmp.lt.s32.totalorder %v3666_v39, 2  ;;  %v1799_v30 = vshrl.u32 %v2892_v9, %v1798_v7 }
 0x19b   : > { %v819_v36 = vsub.s32 0, %v3675_v48  ;;  %vm1815_vm9 = vcmp.lt.s32.totalorder %v1796_v11, 1  ;;  %vm1818_vm10 = vcmp.lt.s32.totalorder %v1796_v11, 4  ;;  %vm1817_vm12 = vcmp.lt.s32.totalorder %v1796_v11, 3 }
 0x19c   : > { %v1823_v22 = vsel %vm1815_vm9, %v1802_v42, %v1805_v25  ;;  %v1824_v44 = vsel %vm1818_vm10, %v1811_v45, 920167782  ;;  %v1827_v4 = vsel %vm1815_vm9, %v1805_v25, %v1808_v40  ;;  %v1828_v50 = vsel %vm1818_vm10, %v1814_v49, 1326507024 }
 0x19d   : > { %v2611_v3 = vmin.u32 %v819_v36, %v3675_v48  ;;  %v1820_v14 = vsel %vm1818_vm10, %v1808_v40, 2102212464  ;;  %v352_v56 = vadd.f32 %v3114_v12, %v2995_v38  ;;  %vm1816_vm13 = vcmp.lt.s32.totalorder %v1796_v11, 2 }
 0x19e   : > { %v1825_v37 = vsel %vm1817_vm12, %v1808_v40, %v1824_v44  ;;  %v1829_v7 = vsel %vm1817_vm12, %v1811_v45, %v1828_v50  ;;  %v3692_v6 = vadd.f32 %v3174_v41, %v2983_v26  ;;  %vm755_vm15 = vcmp.lt.s32.totalorder %v3505_v31, 0 }
 0x19f   : > { %v2800_v18 = vpop.eup %2799  ;;  %v821_v0 = vclz %v2611_v3  ;;  %v1819_v61 = vsel %vm1815_vm9, %v1799_v30, %v1802_v42  ;;  %v1826_v8 = vsel %vm1816_vm13, %v1823_v22, %v1825_v37  ;;  %v1830_v46 = vsel %vm1816_vm13, %v1827_v4, %v1829_v7  ;;  %v3732_v37 = vpop.f32.mrb[13].mxu0 }
 0x1a0   : > { %v2802_v62 = vpop.eup %2801  ;;  %v1779_v32 = vxor.u32 2147483648, %v2800_v18  ;;  %v1821_v12 = vsel %vm1817_vm12, %v1805_v25, %v1820_v14  ;;  %v3699_v23 = vmul.u32.u64.low %v3679_v54, %v1830_v46  ;;  %v3700_v58 = vmul.u32.u64.high %v3679_v54, %v1830_v46, %v3699_v23  ;;  %v3740_v46 = vpop.f32.mrb[13].mxu1 }
 0x1a1   : > { %v1776_v35 = vxor.u32 2147483648, %v2802_v62  ;;  %v2612_v41 = vadd.s32 4294967294, %v821_v0  ;;  %v3703_v59 = vmul.u32.u64.low %v3679_v54, %v1826_v8  ;;  %v3704_v47 = vmul.u32.u64.high %v3679_v54, %v1826_v8, %v3703_v59 }
 0x1a2   : > { %v1780_v42 = vsel %vm1778_vm7, %v1779_v32, %v2802_v62  ;;  %v809_v21 = vadd.s32 %v3610_v1, %v3607_v24  ;;  %v412_v25 = vadd.f32 %v3153_v20, %v2995_v38  ;;  %v3715_v40 = vadd.f32 %v3224_v53, %v2983_v26  ;;  %v2804_v51 = vpop.eup %2803 }
 0x1a3   : > { %v1777_v63 = vsel %vm1775_vm6, %v2800_v18, %v1776_v35  ;;  %vm2613_vm0 = vcmp.lt.s32.totalorder %v2612_v41, 0  ;;  %v1822_v45 = vsel %vm1816_vm13, %v1819_v61, %v1821_v12  ;;  %v859_v49 = vand.u32 2139095040, %v3692_v6 }
 0x1a4   : > { %v1781_v36 = vsel %vm1774_vm8, %v1777_v63, %v1780_v42  ;;  %v824_v24 = vsel %vm2613_vm0, 0, %v2612_v41  ;;  %v839_v20 = vsub.s32 4, %v3663_v52  ;;  %v2404_v1 = vmul.f32 %v352_v56, %v352_v56 }
 0x1a5   : > { %v1782_v53 = vsel %vm1772_vm11, nan, %v1781_v36  ;;  %v825_v30 = vsub.s32 32, %v824_v24  ;;  %v829_v22 = vsub.s32 4294967266, %v824_v24  ;;  %vm1840_vm1 = vc.u32 %v3700_v58, %v3703_v59 }
 0x1a6   : > { %v2489_v11 = vmul.f32 %v2804_v51, %v1782_v53  ;;  %v1838_v44 = vmul.u32 %v3679_v54, %v1822_v45  ;;  %v1841_v4 = vadd.s32 1, %v3704_v47  ;;  %v856_v39 = vand.u32 2147483647, %v3692_v6 }
 0x1a7   : > { %v826_v50 = vshll.u32 %v3675_v48, %v824_v24  ;;  %v827_v3 = vshrl.u32 %v809_v21, %v825_v30  ;;  %v830_v14 = vadd.s32 127, %v829_v22  ;;  %v860_v56 = vshrl.u32 %v859_v49, 23 }
 0x1a8   : > { %2509 = vst.msk [vmem:[%s3269_s27 + $0x60] sm:$0xff] %vm2496_vm14, %v2489_v11  ;;  %v840_v16 = vsel %vm755_vm15, %v839_v20, %v3663_v52  ;;  %v1842_v7 = vsel %vm1840_vm1, %v1841_v4, %v3704_v47  ;;  %v2423_v54 = vsub.f32 0.0, %v2404_v1  ;;  %vm3744_vm2 = vcmp.le.f32.partialorder %v753_v60, 0.7853982 }
 0x1a9   : > { %v828_v18 = vor.u32 %v827_v3, %v826_v50  ;;  %v831_v0 = vshll.u32 %v830_v14, 23  ;;  %v1843_v61 = vadd.s32 %v1842_v7, %v1838_v44  ;;  %v2614_v8 = vadd.s32 4294967169, %v860_v56 }
 0x1aa   : > { %v2414_v62 = vmul.f32 %v412_v25, %v412_v25  ;;  %v863_v32 = vand.u32 8388607, %v856_v39  ;;  %v1889_v52 = vand.u32 2139095040, %v3715_v40  ;;  %v1886_v41 = vand.u32 2147483647, %v3715_v40 }
 0x1ab   : > { %v832_v12 = vor.u32 4788187, %v831_v0  ;;  %v1844_v23 = vadd.s32 536870912, %v1843_v61  ;;  %v866_v35 = vadd.s32 1, %v2614_v8  ;;  %v835_v47 = vcvt.s32.f32 %v828_v18 }
 0x1ac   : > { %v842_v42 = vsel %vm3744_vm2, 0, %v840_v16  ;;  %v2445_v21 = vmul.f32 1.442695, %v2423_v54  ;;  %v1890_v25 = vshrl.u32 %v1889_v52, 23  ;;  %v2433_v63 = vsub.f32 0.0, %v2414_v62 }
 0x1ad   : > { %v833_v60 = vand.u32 2147483647, %v832_v12  ;;  %v3754_v51 = vshrl.u32 %v1844_v23, 30  ;;  %vm867_vm3 = vcmp.gt.s32.totalorder %v866_v35, 0  ;;  %v864_v45 = vor.u32 8388608, %v863_v32  ;;  %v3787_v12 = vpop.f32.mrb[14].mxu0 }
 0x1ae   : > { %v868_v49 = vsel %vm867_vm3, %v866_v35, 0  ;;  %v3759_v20 = vand.u32 8388607, %v1886_v41  ;;  %v3761_v1 = vand.u32 3, %v842_v42  ;;  %2805 = vpow2.f32 %v2445_v21 }
 0x1af   : > { %v836_v36 = vmul.f32 %v835_v47, %v833_v60  ;;  %v1846_v24 = vshll.u32 %v3754_v51, 30  ;;  %v870_v53 = vand.u32 31, %v868_v49  ;;  %v3765_v11 = vshrl.u32 %v868_v49, 5 }
 0x1b0   : > { %v2654_v44 = vadd.s32 4294967169, %v1890_v25  ;;  %v1839_v4 = vadd.s32 %v3703_v59, %v3700_v58  ;;  %v3769_v50 = vmul.f32 1.442695, %v2433_v63  ;;  %v3771_v14 = vshll.u32 %v864_v45, 8 }
 0x1b1   : > { %v837_v30 = vxor.u32 2147483648, %v836_v36  ;;  %v3763_v22 = vsub.s32 %v1843_v61, %v1846_v24  ;;  %v871_v3 = vsub.s32 32, %v870_v53  ;;  %v873_v7 = vshll.u32 %v2892_v9, %v870_v53 }
 0x1b2   : > { %v1894_v54 = vor.u32 8388608, %v3759_v20  ;;  %v876_v59 = vshll.u32 %v2893_v13, %v870_v53  ;;  %vm888_vm4 = vcmp.lt.s32.totalorder %v3765_v11, 1  ;;  %v1896_v8 = vadd.s32 1, %v2654_v44 }
 0x1b3   : > { %v838_v56 = vsel %vm755_vm15, %v837_v30, %v836_v36  ;;  %v1849_v16 = vsub.s32 0, %v3763_v22  ;;  %v874_v58 = vshrl.u32 %v2893_v13, %v871_v3  ;;  %v877_v0 = vshrl.u32 %v2894_v15, %v871_v3 }
 0x1b4   : > { %v841_v18 = vsel %vm3744_vm2, %v3505_v31, %v838_v56  ;;  %v879_v52 = vshll.u32 %v2894_v15, %v870_v53  ;;  %v880_v23 = vshrl.u32 %v2895_v17, %v871_v3  ;;  %v882_v35 = vshll.u32 %v2895_v17, %v870_v53 }
 0x1b5   : > { %2807 = vcosq.f32 %v841_v18  ;;  %v2651_v61 = vmin.u32 %v1849_v16, %v3763_v22  ;;  %v875_v62 = vor.u32 %v874_v58, %v873_v7  ;;  %v878_v32 = vor.u32 %v877_v0, %v876_v59 }
 0x1b6   : > { %2809 = vsinq.f32 %v841_v18  ;;  %v883_v47 = vshrl.u32 %v2896_v19, %v871_v3  ;;  %v872_v42 = vshrl.u32 %v2892_v9, %v871_v3  ;;  %v885_v21 = vshll.u32 %v2896_v19, %v870_v53 }
 0x1b7   : > { %v1851_v48 = vclz %v2651_v61  ;;  %v886_v60 = vshrl.u32 %v2897_v28, %v871_v3  ;;  %vm890_vm5 = vcmp.lt.s32.totalorder %v3765_v11, 3  ;;  %vm851_vm6 = vcmp.eq.s32.totalorder %v3761_v1, 2 }
 0x1b8   : > { %v881_v63 = vor.u32 %v880_v23, %v879_v52  ;;  %v884_v45 = vor.u32 %v883_v47, %v882_v35  ;;  %vm891_vm7 = vcmp.lt.s32.totalorder %v3765_v11, 4  ;;  %v2806_v49 = vpop.eup %2805  ;;  %vm848_vm8 = vcmp.eq.s32.totalorder %v3761_v1, 0 }
 0x1b9   : > { %v2652_v25 = vadd.s32 4294967294, %v1851_v48  ;;  %v887_v36 = vor.u32 %v886_v60, %v885_v21  ;;  %v892_v24 = vsel %vm888_vm4, %v872_v42, %v875_v62  ;;  %v896_v20 = vsel %vm888_vm4, %v875_v62, %v878_v32 }
 0x1ba   : > { %vm1897_vm9 = vcmp.gt.s32.totalorder %v1896_v8, 0  ;;  %vm847_vm10 = vcmp.lt.s32.totalorder %v3761_v1, 2  ;;  %v893_v53 = vsel %vm891_vm7, %v881_v63, 2102212464  ;;  %v897_v30 = vsel %vm891_vm7, %v884_v45, 920167782 }
 0x1bb   : > { %vm2653_vm11 = vcmp.lt.s32.totalorder %v2652_v25, 0  ;;  %v900_v44 = vsel %vm888_vm4, %v878_v32, %v881_v63  ;;  %vm845_vm12 = vweird.f32 %v3505_v31  ;;  %v894_v56 = vsel %vm890_vm5, %v878_v32, %v893_v53 }
 0x1bc   : > { %v1854_v3 = vsel %vm2653_vm11, 0, %v2652_v25  ;;  %v898_v16 = vsel %vm890_vm5, %v881_v63, %v897_v30  ;;  %v901_v7 = vsel %vm891_vm7, %v887_v36, 1326507024  ;;  %v1869_v59 = vsub.s32 4, %v3754_v51 }
 0x1bd   : > { %v1855_v18 = vsub.s32 32, %v1854_v3  ;;  %v1859_v58 = vsub.s32 4294967266, %v1854_v3  ;;  %vm889_vm13 = vcmp.lt.s32.totalorder %v3765_v11, 2  ;;  %v1856_v0 = vshll.u32 %v3763_v22, %v1854_v3 }
 0x1be   : > { %v895_v61 = vsel %vm889_vm13, %v892_v24, %v894_v56  ;;  %v902_v62 = vsel %vm890_vm5, %v884_v45, %v901_v7  ;;  %v1898_v32 = vsel %vm1897_vm9, %v1896_v8, 0  ;;  %v899_v35 = vsel %vm889_vm13, %v896_v20, %v898_v16 }
 0x1bf   : > { %v2808_v52 = vpop.eup %2807  ;;  %v1857_v48 = vshrl.u32 %v1839_v4, %v1855_v18  ;;  %v1860_v23 = vadd.s32 127, %v1859_v58  ;;  %v903_v47 = vsel %vm889_vm13, %v900_v44, %v902_v62  ;;  %v1900_v63 = vand.u32 31, %v1898_v32  ;;  %v3851_v18 = vpop.f32.mrb[14].mxu1 }
 0x1c0   : > { %v2810_v42 = vpop.eup %2809  ;;  %v852_v21 = vxor.u32 2147483648, %v2808_v52  ;;  %v3824_v60 = vmul.u32.u64.low %v3771_v14, %v903_v47  ;;  %v3825_v25 = vmul.u32.u64.high %v3771_v14, %v903_v47, %v3824_v60  ;;  %v3827_v53 = vshll.u32 %v1894_v54, 8 }
 0x1c1   : > { %v849_v36 = vxor.u32 2147483648, %v2810_v42  ;;  %v1858_v22 = vor.u32 %v1857_v48, %v1856_v0  ;;  %v1861_v24 = vshll.u32 %v1860_v23, 23  ;;  %vm1785_vm15 = vcmp.lt.s32.totalorder %v3543_v57, 0 }
 0x1c2   : > { %v853_v11 = vsel %vm851_vm6, %v852_v21, %v2810_v42  ;;  %v3833_v4 = vmul.u32.u64.low %v3771_v14, %v899_v35  ;;  %v3834_v8 = vmul.u32.u64.high %v3771_v14, %v899_v35, %v3833_v4  ;;  %v1901_v45 = vsub.s32 32, %v1900_v63 }
 0x1c3   : > { %v850_v20 = vsel %vm848_vm8, %v2808_v52, %v849_v36  ;;  %vm3841_vm0 = vcmp.le.f32.partialorder %v1783_v43, 0.7853982  ;;  %v1862_v54 = vor.u32 4788187, %v1861_v24  ;;  %v911_v44 = vmul.u32 %v3771_v14, %v895_v61 }
 0x1c4   : > { %v1903_v3 = vshll.u32 %v2892_v9, %v1900_v63  ;;  %v854_v56 = vsel %vm847_vm10, %v850_v20, %v853_v11  ;;  %v1865_v16 = vcvt.s32.f32 %v1858_v22  ;;  %vm913_vm1 = vc.u32 %v3825_v25, %v3833_v4 }
 0x1c5   : > { %v1899_v7 = vshrl.u32 %v1898_v32, 5  ;;  %v855_v43 = vsel %vm845_vm12, nan, %v854_v56  ;;  %v1863_v58 = vand.u32 2147483647, %v1862_v54  ;;  %v1904_v0 = vshrl.u32 %v2893_v13, %v1901_v45 }
 0x1c6   : > { %v1906_v14 = vshll.u32 %v2893_v13, %v1900_v63  ;;  %v2480_v61 = vmul.f32 %v2806_v49, %v855_v43  ;;  %v914_v1 = vadd.s32 1, %v3834_v8  ;;  %v1907_v62 = vshrl.u32 %v2894_v15, %v1901_v45 }
 0x1c7   : > { %v1909_v52 = vshll.u32 %v2894_v15, %v1900_v63  ;;  %v1866_v48 = vmul.f32 %v1865_v16, %v1863_v58  ;;  %v1905_v23 = vor.u32 %v1904_v0, %v1903_v3  ;;  %v1910_v32 = vshrl.u32 %v2895_v17, %v1901_v45 }
 0x1c8   : > { %v1912_v35 = vshll.u32 %v2895_v17, %v1900_v63  ;;  %2500 = vst.msk [vmem:[%s3269_s27 + $0x18] sm:$0xff] %vm2496_vm14, %v2480_v61  ;;  %v915_v31 = vsel %vm913_vm1, %v914_v1, %v3834_v8  ;;  %v1908_v49 = vor.u32 %v1907_v62, %v1906_v14  ;;  %v1913_v47 = vshrl.u32 %v2896_v19, %v1901_v45 }
 0x1c9   : > { %v1915_v42 = vshll.u32 %v2896_v19, %v1900_v63  ;;  %v1867_v21 = vxor.u32 2147483648, %v1866_v48  ;;  %v916_v60 = vadd.s32 %v915_v31, %v911_v44  ;;  %v1911_v36 = vor.u32 %v1910_v32, %v1909_v52 }
 0x1ca   : > { %v1916_v22 = vshrl.u32 %v2897_v28, %v1901_v45  ;;  %v1902_v24 = vshrl.u32 %v2892_v9, %v1901_v45  ;;  %v1914_v11 = vor.u32 %v1913_v47, %v1912_v35  ;;  %vm1918_vm2 = vcmp.lt.s32.totalorder %v1899_v7, 1 }
 0x1cb   : > { %vm1919_vm3 = vcmp.lt.s32.totalorder %v1899_v7, 2  ;;  %v1868_v20 = vsel %vm1785_vm15, %v1867_v21, %v1866_v48  ;;  %v917_v54 = vadd.s32 536870912, %v916_v60  ;;  %vm1921_vm4 = vcmp.lt.s32.totalorder %v1899_v7, 4 }
 0x1cc   : > { %v1917_v8 = vor.u32 %v1916_v22, %v1915_v42  ;;  %v1871_v63 = vsel %vm3841_vm0, %v3543_v57, %v1868_v20  ;;  %vm1920_vm5 = vcmp.lt.s32.totalorder %v1899_v7, 3  ;;  %v1926_v44 = vsel %vm1918_vm2, %v1905_v23, %v1908_v49 }
 0x1cd   : > { %v1927_v3 = vsel %vm1921_vm4, %v1914_v11, 920167782  ;;  %2811 = vcosq.f32 %v1871_v63  ;;  %v3878_v56 = vshrl.u32 %v917_v54, 30  ;;  %v1923_v45 = vsel %vm1921_vm4, %v1911_v36, 2102212464 }
 0x1ce   : > { %v1928_v16 = vsel %vm1920_vm5, %v1911_v36, %v1927_v3  ;;  %v1870_v43 = vsel %vm1785_vm15, %v1869_v59, %v3754_v51  ;;  %2813 = vsinq.f32 %v1871_v63  ;;  %v1930_v0 = vsel %vm1918_vm2, %v1908_v49, %v1911_v36 }
 0x1cf   : > { %v1929_v58 = vsel %vm1919_vm3, %v1926_v44, %v1928_v16  ;;  %v919_v14 = vshll.u32 %v3878_v56, 30  ;;  %v1922_v61 = vsel %vm1918_vm2, %v1902_v24, %v1905_v23  ;;  %v1931_v1 = vsel %vm1921_vm4, %v1917_v8, 1326507024 }
 0x1d0   : > { %v358_v62 = vadd.f32 %v3301_v10, %v2995_v38  ;;  %v1924_v52 = vsel %vm1920_vm5, %v1908_v49, %v1923_v45  ;;  %v1932_v48 = vsel %vm1920_vm5, %v1914_v11, %v1931_v1  ;;  %v1872_v59 = vsel %vm3841_vm0, 0, %v1870_v43 }
 0x1d1   : > { %v3895_v32 = vmul.u32.u64.low %v3827_v53, %v1929_v58  ;;  %v3896_v51 = vmul.u32.u64.high %v3827_v53, %v1929_v58, %v3895_v32  ;;  %v3901_v35 = vsub.s32 %v916_v60, %v919_v14  ;;  %v1933_v23 = vsel %vm1919_vm3, %v1930_v0, %v1932_v48 }
 0x1d2   : > { %2815 = vpow2.f32 %v3769_v50  ;;  %v3906_v10 = vmul.u32.u64.low %v3827_v53, %v1933_v23  ;;  %v3907_v31 = vmul.u32.u64.high %v3827_v53, %v1933_v23, %v3906_v10  ;;  %v1925_v47 = vsel %vm1919_vm3, %v1922_v61, %v1924_v52  ;;  %v3936_v61 = vpop.f32.mrb[15].mxu0 }
 0x1d3   : > { %v922_v49 = vsub.s32 0, %v3901_v35  ;;  %v2405_v42 = vmul.f32 %v358_v62, %v358_v62  ;;  %v3913_v21 = vadd.f32 %v3392_v27, %v2983_v26  ;;  %v1876_v30 = vand.u32 3, %v1872_v59 }
 0x1d4   : > { %v1944_v60 = vadd.s32 1, %v3896_v51  ;;  %vm1875_vm6 = vweird.f32 %v3543_v57  ;;  %vm858_vm7 = vcmp.lt.s32.totalorder %v3692_v6, 0  ;;  %v1941_v36 = vmul.u32 %v3827_v53, %v1925_v47 }
 0x1d5   : > { %v2615_v50 = vmin.u32 %v922_v49, %v3901_v35  ;;  %vm1943_vm8 = vc.u32 %v3907_v31, %v3895_v32  ;;  %v418_v7 = vadd.f32 %v3372_v2, %v2995_v38  ;;  %vm3926_vm9 = vcmp.le.f32.partialorder %v856_v39, 0.7853982 }
 0x1d6   : > { %v1945_v11 = vsel %vm1943_vm8, %v1944_v60, %v3896_v51  ;;  %v2424_v20 = vsub.f32 0.0, %v2405_v42  ;;  %v962_v54 = vand.u32 2139095040, %v3913_v21  ;;  %vm1881_vm10 = vcmp.eq.s32.totalorder %v1876_v30, 2 }
 0x1d7   : > { %v2812_v22 = vpop.eup %2811  ;;  %v924_v24 = vclz %v2615_v50  ;;  %v1946_v63 = vadd.s32 %v1945_v11, %v1941_v36  ;;  %v959_v44 = vand.u32 2147483647, %v3913_v21  ;;  %v942_v45 = vsub.s32 4, %v3878_v56 }
 0x1d8   : > { %v2814_v53 = vpop.eup %2813  ;;  %v1882_v8 = vxor.u32 2147483648, %v2812_v22  ;;  %v963_v39 = vshrl.u32 %v962_v54, 23  ;;  %vm1877_vm11 = vcmp.lt.s32.totalorder %v1876_v30, 2  ;;  %vm1878_vm12 = vcmp.eq.s32.totalorder %v1876_v30, 0 }
 0x1d9   : > { %v1879_v2 = vxor.u32 2147483648, %v2814_v53  ;;  %v2616_v3 = vadd.s32 4294967294, %v924_v24  ;;  %v1947_v43 = vadd.s32 536870912, %v1946_v63  ;;  %v912_v0 = vadd.s32 %v3833_v4, %v3825_v25 }
 0x1da   : > { %v1883_v16 = vsel %vm1881_vm10, %v1882_v8, %v2814_v53  ;;  %v2618_v14 = vadd.s32 4294967169, %v963_v39  ;;  %v966_v51 = vand.u32 8388607, %v959_v44  ;;  %v943_v25 = vsel %vm858_vm7, %v942_v45, %v3878_v56 }
 0x1db   : > { %v1880_v58 = vsel %vm1878_vm12, %v2812_v22, %v1879_v2  ;;  %vm2617_vm13 = vcmp.lt.s32.totalorder %v2616_v3, 0  ;;  %v3938_v48 = vshrl.u32 %v1947_v43, 30  ;;  %v3950_v42 = vadd.f32 %v3474_v55, %v2983_v26 }
 0x1dc   : > { %v2816_v1 = vpop.eup %2815  ;;  %v1884_v62 = vsel %vm1877_vm11, %v1880_v58, %v1883_v16  ;;  %v927_v52 = vsel %vm2617_vm13, 0, %v2616_v3  ;;  %v969_v47 = vadd.s32 1, %v2618_v14  ;;  %v2447_v57 = vmul.f32 1.442695, %v2424_v20 }
 0x1dd   : > { %v1885_v59 = vsel %vm1875_vm6, nan, %v1884_v62  ;;  %v928_v23 = vsub.s32 32, %v927_v52  ;;  %v932_v10 = vsub.s32 4294967266, %v927_v52  ;;  %v1949_v49 = vshll.u32 %v3938_v48, 30 }
 0x1de   : > { %v2490_v4 = vmul.f32 %v2816_v1, %v1885_v59  ;;  %v929_v30 = vshll.u32 %v3901_v35, %v927_v52  ;;  %v945_v36 = vsel %vm3926_vm9, 0, %v943_v25  ;;  %v967_v56 = vor.u32 8388608, %v966_v51 }
 0x1df   : > { %v930_v60 = vshrl.u32 %v912_v0, %v928_v23  ;;  %v933_v50 = vadd.s32 127, %v932_v10  ;;  %v3957_v22 = vsub.s32 %v1946_v63, %v1949_v49  ;;  %vm970_vm15 = vcmp.gt.s32.totalorder %v969_v47, 0 }
 0x1e0   : > { %2510 = vst.msk [vmem:[%s3269_s27 + $0x68] sm:$0xff] %vm2496_vm14, %v2490_v4  ;;  %v971_v54 = vsel %vm970_vm15, %v969_v47, 0  ;;  %v1992_v35 = vand.u32 2139095040, %v3950_v42  ;;  %v3961_v2 = vand.u32 3, %v945_v36  ;;  %2817 = vpow2.f32 %v2447_v57  ;;  %v3982_v4 = vpop.f32.mrb[15].mxu1 }
 0x1e1   : > { %v931_v24 = vor.u32 %v930_v60, %v929_v30  ;;  %v934_v11 = vshll.u32 %v933_v50, 23  ;;  %v1952_v55 = vsub.s32 0, %v3957_v22  ;;  %v973_v53 = vand.u32 31, %v971_v54 }
 0x1e2   : > { %v3963_v20 = vmul.f32 %v418_v7, %v418_v7  ;;  %v1942_v63 = vadd.s32 %v3895_v32, %v3907_v31  ;;  %v1972_v45 = vsub.s32 4, %v3938_v48  ;;  %v3969_v39 = vshll.u32 %v967_v56, 8 }
 0x1e3   : > { %v935_v8 = vor.u32 4788187, %v934_v11  ;;  %v2655_v3 = vmin.u32 %v1952_v55, %v3957_v22  ;;  %v938_v43 = vcvt.s32.f32 %v931_v24  ;;  %v3971_v58 = vshrl.u32 %v971_v54, 5 }
 0x1e4   : > { %v974_v0 = vsub.s32 32, %v973_v53  ;;  %v976_v1 = vshll.u32 %v2892_v9, %v973_v53  ;;  %v979_v7 = vshll.u32 %v2893_v13, %v973_v53  ;;  %v1993_v62 = vshrl.u32 %v1992_v35, 23 }
 0x1e5   : > { %v936_v16 = vand.u32 2147483647, %v935_v8  ;;  %v1954_v14 = vclz %v2655_v3  ;;  %v982_v51 = vshll.u32 %v2894_v15, %v973_v53  ;;  %vm1888_vm0 = vcmp.lt.s32.totalorder %v3715_v40, 0 }
 0x1e6   : > { %v977_v32 = vshrl.u32 %v2893_v13, %v974_v0  ;;  %v980_v31 = vshrl.u32 %v2894_v15, %v974_v0  ;;  %v983_v23 = vshrl.u32 %v2895_v17, %v974_v0  ;;  %v986_v10 = vshrl.u32 %v2896_v19, %v974_v0 }
 0x1e7   : > { %v939_v52 = vmul.f32 %v938_v43, %v936_v16  ;;  %v2656_v59 = vadd.s32 4294967294, %v1954_v14  ;;  %v989_v25 = vshrl.u32 %v2897_v28, %v974_v0  ;;  %v975_v47 = vshrl.u32 %v2892_v9, %v974_v0  ;;  %v3998_v16 = vpop.f32.mrb[16].mxu0 }
 0x1e8   : > { %v985_v30 = vshll.u32 %v2895_v17, %v973_v53  ;;  %v988_v60 = vshll.u32 %v2896_v19, %v973_v53  ;;  %v978_v50 = vor.u32 %v977_v32, %v976_v1  ;;  %v981_v57 = vor.u32 %v980_v31, %v979_v7 }
 0x1e9   : > { %v940_v49 = vxor.u32 2147483648, %v939_v52  ;;  %vm2657_vm1 = vcmp.lt.s32.totalorder %v2656_v59, 0  ;;  %v984_v36 = vor.u32 %v983_v23, %v982_v51  ;;  %vm991_vm2 = vcmp.lt.s32.totalorder %v3971_v58, 1 }
 0x1ea   : > { %v1957_v24 = vsel %vm2657_vm1, 0, %v2656_v59  ;;  %v987_v11 = vor.u32 %v986_v10, %v985_v30  ;;  %v990_v54 = vor.u32 %v989_v25, %v988_v60  ;;  %v3993_v3 = vpop.eup %2817  ;;  %vm993_vm3 = vcmp.lt.s32.totalorder %v3971_v58, 3 }
 0x1eb   : > { %v941_v56 = vsel %vm858_vm7, %v940_v49, %v939_v52  ;;  %v1958_v35 = vsub.s32 32, %v1957_v24  ;;  %v1962_v8 = vsub.s32 4294967266, %v1957_v24  ;;  %v1959_v53 = vshll.u32 %v3957_v22, %v1957_v24 }
 0x1ec   : > { %v944_v55 = vsel %vm3926_vm9, %v3692_v6, %v941_v56  ;;  %vm994_vm4 = vcmp.lt.s32.totalorder %v3971_v58, 4  ;;  %v999_v27 = vsel %vm991_vm2, %v978_v50, %v981_v57  ;;  %v1003_v7 = vsel %vm991_vm2, %v981_v57, %v984_v36 }
 0x1ed   : > { %2819 = vcosq.f32 %v944_v55  ;;  %v1960_v43 = vshrl.u32 %v1942_v63, %v1958_v35  ;;  %v1963_v0 = vadd.s32 127, %v1962_v8  ;;  %v996_v14 = vsel %vm994_vm4, %v984_v36, 2102212464 }
 0x1ee   : > { %2821 = vsinq.f32 %v944_v55  ;;  %v1000_v1 = vsel %vm994_vm4, %v987_v11, 920167782  ;;  %v1004_v52 = vsel %vm994_vm4, %v990_v54, 1326507024  ;;  %vm992_vm5 = vcmp.lt.s32.totalorder %v3971_v58, 2 }
 0x1ef   : > { %v1961_v32 = vor.u32 %v1960_v43, %v1959_v53  ;;  %v1964_v22 = vshll.u32 %v1963_v0, 23  ;;  %v1001_v31 = vsel %vm993_vm3, %v984_v36, %v1000_v1  ;;  %v1973_v63 = vsel %vm1888_vm0, %v1972_v45, %v3938_v48 }
 0x1f0   : > { %v1002_v51 = vsel %vm992_vm5, %v999_v27, %v1001_v31  ;;  %v1005_v59 = vsel %vm993_vm3, %v987_v11, %v1004_v52  ;;  %v2658_v23 = vadd.s32 4294967169, %v1993_v62  ;;  %v995_v25 = vsel %vm991_vm2, %v975_v47, %v978_v50 }
 0x1f1   : > { %v1965_v10 = vor.u32 4788187, %v1964_v22  ;;  %v997_v49 = vsel %vm993_vm3, %v981_v57, %v996_v14  ;;  %v1006_v30 = vsel %vm992_vm5, %v1003_v7, %v1005_v59  ;;  %vm948_vm6 = vweird.f32 %v3692_v6 }
 0x1f2   : > { %v4021_v60 = vmul.u32.u64.low %v3969_v39, %v1006_v30  ;;  %v4022_v48 = vmul.u32.u64.high %v3969_v39, %v1006_v30, %v4021_v60  ;;  %v4025_v45 = vmul.u32.u64.low %v3969_v39, %v1002_v51  ;;  %v4026_v36 = vmul.u32.u64.high %v3969_v39, %v1002_v51, %v4025_v45 }
 0x1f3   : > { %vm4032_vm7 = vcmp.le.f32.partialorder %v1886_v41, 0.7853982  ;;  %v1966_v47 = vand.u32 2147483647, %v1965_v10  ;;  %v1968_v50 = vcvt.s32.f32 %v1961_v32  ;;  %v1999_v57 = vadd.s32 1, %v2658_v23 }
 0x1f4   : > { %vm950_vm8 = vcmp.lt.s32.totalorder %v3961_v2, 2  ;;  %vm951_vm9 = vcmp.eq.s32.totalorder %v3961_v2, 0  ;;  %v2434_v56 = vsub.f32 0.0, %v3963_v20  ;;  %v998_v24 = vsel %vm992_vm5, %v995_v25, %v997_v49 }
 0x1f5   : > { %vm954_vm10 = vcmp.eq.s32.totalorder %v3961_v2, 2  ;;  %v1969_v11 = vmul.f32 %v1968_v50, %v1966_v47  ;;  %v1975_v41 = vsel %vm4032_vm7, 0, %v1973_v63  ;;  %vm2000_vm11 = vcmp.gt.s32.totalorder %v1999_v57, 0  ;;  %v4056_v63 = vpop.f32.mrb[16].mxu1 }
 0x1f6   : > { %vm1016_vm12 = vc.u32 %v4022_v48, %v4025_v45  ;;  %v1017_v55 = vadd.s32 1, %v4026_v36  ;;  %v1989_v35 = vand.u32 2147483647, %v3950_v42  ;;  %v2001_v8 = vsel %vm2000_vm11, %v1999_v57, 0 }
 0x1f7   : > { %v2820_v54 = vpop.eup %2819  ;;  %v1970_v58 = vxor.u32 2147483648, %v1969_v11  ;;  %v1014_v43 = vmul.u32 %v3969_v39, %v998_v24  ;;  %v2003_v0 = vand.u32 31, %v2001_v8  ;;  %v4049_v14 = vand.u32 3, %v1975_v41 }
 0x1f8   : > { %v2822_v20 = vpop.eup %2821  ;;  %v955_v53 = vxor.u32 2147483648, %v2820_v54  ;;  %v2467_v1 = vmul.f32 1.442695, %v2434_v56  ;;  %v1018_v7 = vsel %vm1016_vm12, %v1017_v55, %v4026_v36  ;;  %v1996_v59 = vand.u32 8388607, %v1989_v35 }
 0x1f9   : > { %v952_v27 = vxor.u32 2147483648, %v2822_v20  ;;  %v1971_v32 = vsel %vm1888_vm0, %v1970_v58, %v1969_v11  ;;  %v1019_v22 = vadd.s32 %v1018_v7, %v1014_v43  ;;  %v2004_v31 = vsub.s32 32, %v2003_v0 }
 0x1fa   : > { %v956_v52 = vsel %vm954_vm10, %v955_v53, %v2822_v20  ;;  %v1974_v51 = vsel %vm4032_vm7, %v3715_v40, %v1971_v32  ;;  %v2006_v23 = vshll.u32 %v2892_v9, %v2003_v0  ;;  %v2009_v49 = vshll.u32 %v2893_v13, %v2003_v0 }
 0x1fb   : > { %v953_v39 = vsel %vm951_vm9, %v2820_v54, %v952_v27  ;;  %2823 = vcosq.f32 %v1974_v51  ;;  %v1020_v25 = vadd.s32 536870912, %v1019_v22  ;;  %v2007_v60 = vshrl.u32 %v2893_v13, %v2004_v31 }
 0x1fc   : > { %v957_v10 = vsel %vm950_vm8, %v953_v39, %v956_v52  ;;  %2825 = vsinq.f32 %v1974_v51  ;;  %v2010_v36 = vshrl.u32 %v2894_v15, %v2004_v31  ;;  %v2012_v2 = vshll.u32 %v2894_v15, %v2003_v0 }
 0x1fd   : > { %v958_v30 = vsel %vm948_vm6, nan, %v957_v10  ;;  %v4074_v47 = vshrl.u32 %v1020_v25, 30  ;;  %v2013_v50 = vshrl.u32 %v2895_v17, %v2004_v31  ;;  %v1997_v57 = vor.u32 8388608, %v1996_v59 }
 0x1fe   : > { %v2481_v62 = vmul.f32 %v3993_v3, %v958_v30  ;;  %v2015_v56 = vshll.u32 %v2895_v17, %v2003_v0  ;;  %v2016_v24 = vshrl.u32 %v2896_v19, %v2004_v31  ;;  %v364_v6 = vadd.f32 %v3535_v5, %v2995_v38 }
 0x1ff   : > { %v1022_v11 = vshll.u32 %v4074_v47, 30  ;;  %v2002_v41 = vshrl.u32 %v2001_v8, 5  ;;  %v2008_v3 = vor.u32 %v2007_v60, %v2006_v23  ;;  %v2018_v54 = vshll.u32 %v2896_v19, %v2003_v0 }
 0x200   : > { %2501 = vst.msk [vmem:[%s3269_s27 + $0x20] sm:$0xff] %vm2496_vm14, %v2481_v62  ;;  %v2011_v55 = vor.u32 %v2010_v36, %v2009_v49  ;;  %v2014_v20 = vor.u32 %v2013_v50, %v2012_v2  ;;  %v2017_v53 = vor.u32 %v2016_v24, %v2015_v56  ;;  %v2019_v58 = vshrl.u32 %v2897_v28, %v2004_v31 }
 0x201   : > { %vm1980_vm13 = vcmp.lt.s32.totalorder %v4049_v14, 2  ;;  %vm1981_vm15 = vcmp.eq.s32.totalorder %v4049_v14, 0  ;;  %2827 = vpow2.f32 %v2467_v1  ;;  %v4089_v43 = vsub.s32 %v1019_v22, %v1022_v11 }
 0x202   : > { %vm1984_vm0 = vcmp.eq.s32.totalorder %v4049_v14, 2  ;;  %v2005_v5 = vshrl.u32 %v2892_v9, %v2004_v31  ;;  %v2020_v8 = vor.u32 %v2019_v58, %v2018_v54  ;;  %v2037_v27 = vshll.u32 %v1997_v57, 8 }
 0x203   : > { %v1025_v0 = vsub.s32 0, %v4089_v43  ;;  %vm2021_vm1 = vcmp.lt.s32.totalorder %v2002_v41, 1  ;;  %vm2024_vm2 = vcmp.lt.s32.totalorder %v2002_v41, 4  ;;  %v4096_v7 = vadd.f32 %v3596_v29, %v2983_v26 }
 0x204   : > { %v2029_v52 = vsel %vm2021_vm1, %v2008_v3, %v2011_v55  ;;  %v2030_v32 = vsel %vm2024_vm2, %v2017_v53, 920167782  ;;  %v2033_v39 = vsel %vm2021_vm1, %v2011_v55, %v2014_v20  ;;  %v2034_v1 = vsel %vm2024_vm2, %v2020_v8, 1326507024 }
 0x205   : > { %v2824_v22 = vpop.eup %2823  ;;  %v2619_v51 = vmin.u32 %v1025_v0, %v4089_v43  ;;  %vm2022_vm3 = vcmp.lt.s32.totalorder %v2002_v41, 2  ;;  %vm2023_vm4 = vcmp.lt.s32.totalorder %v2002_v41, 3  ;;  %v2026_v31 = vsel %vm2024_vm2, %v2014_v20, 2102212464  ;;  %v4119_v0 = vpop.f32.mrb[17].mxu0 }
 0x206   : > { %v2826_v59 = vpop.eup %2825  ;;  %v1985_v23 = vxor.u32 2147483648, %v2824_v22  ;;  %v2025_v10 = vsel %vm2021_vm1, %v2005_v5, %v2008_v3  ;;  %v2031_v25 = vsel %vm2023_vm4, %v2014_v20, %v2030_v32  ;;  %v2035_v49 = vsel %vm2023_vm4, %v2017_v53, %v2034_v1 }
 0x207   : > { %v1982_v30 = vxor.u32 2147483648, %v2826_v59  ;;  %v1027_v60 = vclz %v2619_v51  ;;  %v2032_v29 = vsel %vm2022_vm3, %v2029_v52, %v2031_v25  ;;  %v2036_v36 = vsel %vm2022_vm3, %v2033_v39, %v2035_v49 }
 0x208   : > { %v1986_v62 = vsel %vm1984_vm0, %v1985_v23, %v2826_v59  ;;  %v2027_v2 = vsel %vm2023_vm4, %v2011_v55, %v2026_v31  ;;  %v4103_v50 = vmul.u32.u64.low %v2037_v27, %v2036_v36  ;;  %v4104_v57 = vmul.u32.u64.high %v2037_v27, %v2036_v36, %v4103_v50 }
 0x209   : > { %v1983_v56 = vsel %vm1981_vm15, %v2824_v22, %v1982_v30  ;;  %v2620_v24 = vadd.s32 4294967294, %v1027_v60  ;;  %v4108_v11 = vmul.u32.u64.low %v2037_v27, %v2032_v29  ;;  %v4109_v3 = vmul.u32.u64.high %v2037_v27, %v2032_v29, %v4108_v11 }
 0x20a   : > { %vm1978_vm5 = vweird.f32 %v3715_v40  ;;  %v1987_v54 = vsel %vm1980_vm13, %v1983_v56, %v1986_v62  ;;  %v1015_v20 = vadd.s32 %v4025_v45, %v4022_v48  ;;  %v2406_v55 = vmul.f32 %v364_v6, %v364_v6 }
 0x20b   : > { %v2828_v53 = vpop.eup %2827  ;;  %v1988_v58 = vsel %vm1978_vm5, nan, %v1987_v54  ;;  %vm2621_vm6 = vcmp.lt.s32.totalorder %v2620_v24, 0  ;;  %v2028_v5 = vsel %vm2022_vm3, %v2025_v10, %v2027_v2  ;;  %v1065_v8 = vand.u32 2139095040, %v4096_v7 }
 0x20c   : > { %v2491_v52 = vmul.f32 %v2828_v53, %v1988_v58  ;;  %v1030_v32 = vsel %vm2621_vm6, 0, %v2620_v24  ;;  %v1045_v40 = vsub.s32 4, %v4074_v47  ;;  %vm2046_vm7 = vc.u32 %v4104_v57, %v4108_v11 }
 0x20d   : > { %v1031_v14 = vsub.s32 32, %v1030_v32  ;;  %v1035_v48 = vsub.s32 4294967266, %v1030_v32  ;;  %v2047_v45 = vadd.s32 1, %v4109_v3  ;;  %v1062_v6 = vand.u32 2147483647, %v4096_v7 }
 0x20e   : > { %2511 = vst.msk [vmem:[%s3269_s27 + $0x70] sm:$0xff] %vm2496_vm14, %v2491_v52  ;;  %v2044_v41 = vmul.u32 %v2037_v27, %v2028_v5  ;;  %v424_v39 = vadd.f32 %v3586_v34, %v2995_v38  ;;  %v1066_v1 = vshrl.u32 %v1065_v8, 23  ;;  %v4132_v22 = vadd.f32 %v3648_v33, %v2983_v26 }
 0x20f   : > { %v1032_v51 = vshll.u32 %v4089_v43, %v1030_v32  ;;  %v1033_v31 = vshrl.u32 %v1015_v20, %v1031_v14  ;;  %v1036_v59 = vadd.s32 127, %v1035_v48  ;;  %v2048_v23 = vsel %vm2046_vm7, %v2047_v45, %v4109_v3 }
 0x210   : > { %vm961_vm8 = vcmp.lt.s32.totalorder %v3913_v21, 0  ;;  %v2049_v10 = vadd.s32 %v2048_v23, %v2044_v41  ;;  %v2425_v25 = vsub.f32 0.0, %v2406_v55  ;;  %v2622_v49 = vadd.s32 4294967169, %v1066_v1 }
 0x211   : > { %v1034_v27 = vor.u32 %v1033_v31, %v1032_v51  ;;  %v1037_v30 = vshll.u32 %v1036_v59, 23  ;;  %v1046_v34 = vsel %vm961_vm8, %v1045_v40, %v4074_v47  ;;  %v1069_v33 = vand.u32 8388607, %v1062_v6 }
 0x212   : > { %v2050_v60 = vadd.s32 536870912, %v2049_v10  ;;  %v1072_v43 = vadd.s32 1, %v2622_v49  ;;  %v2095_v29 = vand.u32 2139095040, %v4132_v22  ;;  %vm4145_vm9 = vcmp.le.f32.partialorder %v959_v44, 0.7853982 }
 0x213   : > { %v1038_v62 = vor.u32 4788187, %v1037_v30  ;;  %v4149_v2 = vmul.f32 %v424_v39, %v424_v39  ;;  %v1048_v50 = vsel %vm4145_vm9, 0, %v1046_v34  ;;  %v2449_v56 = vmul.f32 1.442695, %v2425_v25 }
 0x214   : > { %v4153_v47 = vshrl.u32 %v2050_v60, 30  ;;  %vm1073_vm10 = vcmp.gt.s32.totalorder %v1072_v43, 0  ;;  %v1041_v3 = vcvt.s32.f32 %v1034_v27  ;;  %v1070_v54 = vor.u32 8388608, %v1069_v33 }
 0x215   : > { %v1039_v24 = vand.u32 2147483647, %v1038_v62  ;;  %v1074_v20 = vsel %vm1073_vm10, %v1072_v43, 0  ;;  %v2096_v53 = vshrl.u32 %v2095_v29, 23  ;;  %v2435_v5 = vsub.f32 0.0, %v4149_v2  ;;  %v4185_v29 = vpop.f32.mrb[18].mxu0 }
 0x216   : > { %v2052_v55 = vshll.u32 %v4153_v47, 30  ;;  %v1076_v44 = vand.u32 31, %v1074_v20  ;;  %v4159_v8 = vadd.f32 %v3732_v37, %v2995_v38  ;;  %v4161_v52 = vand.u32 3, %v1048_v50 }
 0x217   : > { %v1042_v58 = vmul.f32 %v1041_v3, %v1039_v24  ;;  %2829 = vpow2.f32 %v2449_v56  ;;  %v2045_v48 = vadd.s32 %v4108_v11, %v4104_v57  ;;  %v4167_v45 = vshll.u32 %v1070_v54, 8 }
 0x218   : > { %v4163_v32 = vsub.s32 %v2049_v10, %v2052_v55  ;;  %v1077_v40 = vsub.s32 32, %v1076_v44  ;;  %v2092_v41 = vand.u32 2147483647, %v4132_v22  ;;  %v1079_v1 = vshll.u32 %v2892_v9, %v1076_v44 }
 0x219   : > { %v1043_v14 = vxor.u32 2147483648, %v1042_v58  ;;  %v2662_v51 = vadd.s32 4294967169, %v2096_v53  ;;  %v1082_v59 = vshll.u32 %v2893_v13, %v1076_v44  ;;  %v1075_v25 = vshrl.u32 %v1074_v20, 5 }
 0x21a   : > { %v2055_v39 = vsub.s32 0, %v4163_v32  ;;  %v1080_v37 = vshrl.u32 %v2893_v13, %v1077_v40  ;;  %v1083_v23 = vshrl.u32 %v2894_v15, %v1077_v40  ;;  %v1086_v57 = vshrl.u32 %v2895_v17, %v1077_v40 }
 0x21b   : > { %v1044_v31 = vsel %vm961_vm8, %v1043_v14, %v1042_v58  ;;  %v1085_v49 = vshll.u32 %v2894_v15, %v1076_v44  ;;  %v1088_v34 = vshll.u32 %v2895_v17, %v1076_v44  ;;  %v1089_v43 = vshrl.u32 %v2896_v19, %v1077_v40 }
 0x21c   : > { %v1047_v11 = vsel %vm4145_vm9, %v3913_v21, %v1044_v31  ;;  %v2659_v10 = vmin.u32 %v2055_v39, %v4163_v32  ;;  %v1081_v27 = vor.u32 %v1080_v37, %v1079_v1  ;;  %v1084_v30 = vor.u32 %v1083_v23, %v1082_v59 }
 0x21d   : > { %2831 = vcosq.f32 %v1047_v11  ;;  %v1087_v60 = vor.u32 %v1086_v57, %v1085_v49  ;;  %v1078_v36 = vshrl.u32 %v2892_v9, %v1077_v40  ;;  %v1091_v62 = vshll.u32 %v2896_v19, %v1076_v44 }
 0x21e   : > { %2833 = vsinq.f32 %v1047_v11  ;;  %v2057_v33 = vclz %v2659_v10  ;;  %v1092_v50 = vshrl.u32 %v2897_v28, %v1077_v40  ;;  %v2102_v56 = vadd.s32 1, %v2662_v51 }
 0x21f   : > { %v1090_v3 = vor.u32 %v1089_v43, %v1088_v34  ;;  %vm1094_vm11 = vcmp.lt.s32.totalorder %v1075_v25, 1  ;;  %vm1097_vm12 = vcmp.lt.s32.totalorder %v1075_v25, 4  ;;  %vm1095_vm13 = vcmp.lt.s32.totalorder %v1075_v25, 2 }
 0x220   : > { %v2660_v24 = vadd.s32 4294967294, %v2057_v33  ;;  %v1093_v54 = vor.u32 %v1092_v50, %v1091_v62  ;;  %v1099_v20 = vsel %vm1097_vm12, %v1087_v60, 2102212464  ;;  %v1102_v55 = vsel %vm1094_vm11, %v1081_v27, %v1084_v30 }
 0x221   : > { %v2830_v53 = vpop.eup %2829  ;;  %vm1096_vm0 = vcmp.lt.s32.totalorder %v1075_v25, 3  ;;  %v1098_v58 = vsel %vm1094_vm11, %v1078_v36, %v1081_v27  ;;  %v1103_v14 = vsel %vm1097_vm12, %v1090_v3, 920167782  ;;  %vm1053_vm1 = vcmp.lt.s32.totalorder %v4161_v52, 2 }
 0x222   : > { %vm2661_vm15 = vcmp.lt.s32.totalorder %v2660_v24, 0  ;;  %v1104_v44 = vsel %vm1096_vm0, %v1087_v60, %v1103_v14  ;;  %v1106_v1 = vsel %vm1094_vm11, %v1084_v30, %v1087_v60  ;;  %v1107_v40 = vsel %vm1097_vm12, %v1093_v54, 1326507024  ;;  %v4209_v54 = vpop.f32.mrb[17].mxu1 }
 0x223   : > { %v2060_v39 = vsel %vm2661_vm15, 0, %v2660_v24  ;;  %vm1051_vm2 = vweird.f32 %v3913_v21  ;;  %v1100_v31 = vsel %vm1096_vm0, %v1084_v30, %v1099_v20  ;;  %v1105_v59 = vsel %vm1095_vm13, %v1102_v55, %v1104_v44 }
 0x224   : > { %v2061_v37 = vsub.s32 32, %v2060_v39  ;;  %v2065_v51 = vsub.s32 4294967266, %v2060_v39  ;;  %v2062_v23 = vshll.u32 %v4163_v32, %v2060_v39  ;;  %v1108_v57 = vsel %vm1096_vm0, %v1090_v3, %v1107_v40 }
 0x225   : > { %v4195_v11 = vmul.u32.u64.low %v4167_v45, %v1105_v59  ;;  %v4196_v10 = vmul.u32.u64.high %v4167_v45, %v1105_v59, %v4195_v11  ;;  %v1109_v34 = vsel %vm1095_vm13, %v1106_v1, %v1108_v57  ;;  %vm2103_vm3 = vcmp.gt.s32.totalorder %v2102_v56, 0 }
 0x226   : > { %v2063_v49 = vshrl.u32 %v2045_v48, %v2061_v37  ;;  %v2066_v27 = vadd.s32 127, %v2065_v51  ;;  %v1101_v60 = vsel %vm1095_vm13, %v1098_v58, %v1100_v31  ;;  %v2104_v36 = vsel %vm2103_vm3, %v2102_v56, 0 }
 0x227   : > { %v2832_v33 = vpop.eup %2831  ;;  %v4202_v30 = vmul.u32.u64.low %v4167_v45, %v1109_v34  ;;  %v4203_v43 = vmul.u32.u64.high %v4167_v45, %v1109_v34, %v4202_v30  ;;  %vm1054_vm4 = vcmp.eq.s32.totalorder %v4161_v52, 0  ;;  %vm1057_vm5 = vcmp.eq.s32.totalorder %v4161_v52, 2 }
 0x228   : > { %v2834_v32 = vpop.eup %2833  ;;  %v1058_v62 = vxor.u32 2147483648, %v2832_v33  ;;  %v2064_v50 = vor.u32 %v2063_v49, %v2062_v23  ;;  %v2067_v24 = vshll.u32 %v2066_v27, 23  ;;  %vm1991_vm6 = vcmp.lt.s32.totalorder %v3950_v42, 0 }
 0x229   : > { %v1055_v3 = vxor.u32 2147483648, %v2834_v32  ;;  %v1120_v48 = vadd.s32 1, %v4196_v10  ;;  %v2106_v25 = vand.u32 31, %v2104_v36  ;;  %vm4213_vm7 = vcmp.le.f32.partialorder %v1989_v35, 0.7853982 }
 0x22a   : > { %v1059_v20 = vsel %vm1057_vm5, %v1058_v62, %v2834_v32  ;;  %v2068_v55 = vor.u32 4788187, %v2067_v24  ;;  %v1117_v58 = vmul.u32 %v4167_v45, %v1101_v60  ;;  %v2099_v14 = vand.u32 8388607, %v2092_v41 }
 0x22b   : > { %v1056_v39 = vsel %vm1054_vm4, %v2832_v33, %v1055_v3  ;;  %v2071_v44 = vcvt.s32.f32 %v2064_v50  ;;  %vm1119_vm8 = vc.u32 %v4203_v43, %v4195_v11  ;;  %v2107_v1 = vsub.s32 32, %v2106_v25 }
 0x22c   : > { %v1060_v35 = vsel %vm1053_vm1, %v1056_v39, %v1059_v20  ;;  %v2069_v40 = vand.u32 2147483647, %v2068_v55  ;;  %v1121_v37 = vsel %vm1119_vm8, %v1120_v48, %v4196_v10  ;;  %v2109_v45 = vshll.u32 %v2892_v9, %v2106_v25 }
 0x22d   : > { %v1061_v51 = vsel %vm1051_vm2, nan, %v1060_v35  ;;  %v2075_v31 = vsub.s32 4, %v4153_v47  ;;  %v1122_v59 = vadd.s32 %v1121_v37, %v1117_v58  ;;  %v2110_v23 = vshrl.u32 %v2893_v13, %v2107_v1 }
 0x22e   : > { %v2072_v57 = vmul.f32 %v2071_v44, %v2069_v40  ;;  %v2482_v49 = vmul.f32 %v2830_v53, %v1061_v51  ;;  %v2112_v27 = vshll.u32 %v2893_v13, %v2106_v25  ;;  %v2113_v52 = vshrl.u32 %v2894_v15, %v2107_v1 }
 0x22f   : > { %v1123_v34 = vadd.s32 536870912, %v1122_v59  ;;  %v2105_v33 = vshrl.u32 %v2104_v36, 5  ;;  %v2115_v10 = vshll.u32 %v2894_v15, %v2106_v25  ;;  %v2116_v60 = vshrl.u32 %v2895_v17, %v2107_v1 }
 0x230   : > { %v2073_v30 = vxor.u32 2147483648, %v2072_v57  ;;  %2502 = vst.msk [vmem:[%s3269_s27 + $0x28] sm:$0xff] %vm2496_vm14, %v2482_v49  ;;  %v2111_v21 = vor.u32 %v2110_v23, %v2109_v45  ;;  %v2118_v32 = vshll.u32 %v2895_v17, %v2106_v25  ;;  %v2119_v62 = vshrl.u32 %v2896_v19, %v2107_v1 }
 0x231   : > { %v4240_v50 = vshrl.u32 %v1123_v34, 30  ;;  %v2114_v53 = vor.u32 %v2113_v52, %v2112_v27  ;;  %v2121_v24 = vshll.u32 %v2896_v19, %v2106_v25  ;;  %v2122_v3 = vshrl.u32 %v2897_v28, %v2107_v1 }
 0x232   : > { %v2074_v36 = vsel %vm1991_vm6, %v2073_v30, %v2072_v57  ;;  %v2469_v48 = vmul.f32 1.442695, %v2435_v5  ;;  %v2100_v20 = vor.u32 8388608, %v2099_v14  ;;  %v2120_v55 = vor.u32 %v2119_v62, %v2118_v32 }
 0x233   : > { %v2076_v58 = vsel %vm1991_vm6, %v2075_v31, %v4153_v47  ;;  %v2077_v39 = vsel %vm4213_vm7, %v3950_v42, %v2074_v36  ;;  %v1125_v25 = vshll.u32 %v4240_v50, 30  ;;  %v2117_v44 = vor.u32 %v2116_v60, %v2115_v10  ;;  %v4267_v31 = vpop.f32.mrb[19].mxu0 }
 0x234   : > { %2835 = vcosq.f32 %v2077_v39  ;;  %v2108_v35 = vshrl.u32 %v2892_v9, %v2107_v1  ;;  %v2123_v40 = vor.u32 %v2122_v3, %v2121_v24  ;;  %vm2124_vm9 = vcmp.lt.s32.totalorder %v2105_v33, 1 }
 0x235   : > { %2837 = vsinq.f32 %v2077_v39  ;;  %v4256_v2 = vsub.s32 %v1122_v59, %v1125_v25  ;;  %vm2127_vm10 = vcmp.lt.s32.totalorder %v2105_v33, 4  ;;  %v2132_v5 = vsel %vm2124_vm9, %v2111_v21, %v2114_v53 }
 0x236   : > { %v2078_v47 = vsel %vm4213_vm7, 0, %v2076_v58  ;;  %vm2126_vm11 = vcmp.lt.s32.totalorder %v2105_v33, 3  ;;  %v2133_v14 = vsel %vm2127_vm10, %v2120_v55, 920167782  ;;  %v4263_v37 = vmul.f32 %v4159_v8, %v4159_v8 }
 0x237   : > { %v1128_v45 = vsub.s32 0, %v4256_v2  ;;  %vm2125_vm12 = vcmp.lt.s32.totalorder %v2105_v33, 2  ;;  %v2129_v1 = vsel %vm2127_vm10, %v2117_v44, 2102212464  ;;  %v2134_v51 = vsel %vm2126_vm11, %v2117_v44, %v2133_v14 }
 0x238   : > { %v2135_v59 = vsel %vm2125_vm12, %v2132_v5, %v2134_v51  ;;  %v2136_v23 = vsel %vm2124_vm9, %v2114_v53, %v2117_v44  ;;  %v2137_v56 = vsel %vm2127_vm10, %v2123_v40, 1326507024  ;;  %v2140_v57 = vshll.u32 %v2100_v20, 8 }
 0x239   : > { %v2082_v49 = vand.u32 3, %v2078_v47  ;;  %2839 = vpow2.f32 %v2469_v48  ;;  %v2623_v27 = vmin.u32 %v1128_v45, %v4256_v2  ;;  %v2128_v8 = vsel %vm2124_vm9, %v2108_v35, %v2111_v21 }
 0x23a   : > { %v2130_v52 = vsel %vm2126_vm11, %v2114_v53, %v2129_v1  ;;  %v2138_v34 = vsel %vm2126_vm11, %v2120_v55, %v2137_v56  ;;  %v4275_v10 = vmul.u32.u64.low %v2140_v57, %v2135_v59  ;;  %v4276_v60 = vmul.u32.u64.high %v2140_v57, %v2135_v59, %v4275_v10 }
 0x23b   : > { %vm2081_vm13 = vweird.f32 %v3950_v42  ;;  %v1130_v30 = vclz %v2623_v27  ;;  %v1148_v32 = vsub.s32 4, %v4240_v50  ;;  %v2139_v62 = vsel %vm2125_vm12, %v2136_v23, %v2138_v34 }
 0x23c   : > { %v4284_v24 = vadd.f32 %v3787_v12, %v2983_v26  ;;  %vm1064_vm15 = vcmp.lt.s32.totalorder %v4096_v7, 0  ;;  %v4287_v21 = vmul.u32.u64.low %v2140_v57, %v2139_v62  ;;  %v4288_v53 = vmul.u32.u64.high %v2140_v57, %v2139_v62, %v4287_v21 }
 0x23d   : > { %v2426_v3 = vsub.f32 0.0, %v4263_v37  ;;  %vm2083_vm0 = vcmp.lt.s32.totalorder %v2082_v49, 2  ;;  %v2624_v36 = vadd.s32 4294967294, %v1130_v30  ;;  %v2131_v48 = vsel %vm2125_vm12, %v2128_v8, %v2130_v52 }
 0x23e   : > { %v1168_v20 = vand.u32 2139095040, %v4284_v24  ;;  %v2836_v55 = vpop.eup %2835  ;;  %vm2084_vm1 = vcmp.eq.s32.totalorder %v2082_v49, 0  ;;  %vm2087_vm2 = vcmp.eq.s32.totalorder %v2082_v49, 2  ;;  %v1118_v12 = vadd.s32 %v4195_v11, %v4203_v43 }
 0x23f   : > { %v2150_v58 = vadd.s32 1, %v4276_v60  ;;  %v2838_v39 = vpop.eup %2837  ;;  %v2088_v25 = vxor.u32 2147483648, %v2836_v55  ;;  %vm2625_vm3 = vcmp.lt.s32.totalorder %v2624_v36, 0  ;;  %v1149_v44 = vsel %vm1064_vm15, %v1148_v32, %v4240_v50 }
 0x240   : > { %v1169_v35 = vshrl.u32 %v1168_v20, 23  ;;  %v2085_v33 = vxor.u32 2147483648, %v2838_v39  ;;  %v1133_v40 = vsel %vm2625_vm3, 0, %v2624_v36  ;;  %v2147_v5 = vmul.u32 %v2140_v57, %v2131_v48 }
 0x241   : > { %vm2149_vm4 = vc.u32 %v4288_v53, %v4275_v10  ;;  %v2089_v47 = vsel %vm2087_vm2, %v2088_v25, %v2838_v39  ;;  %v1134_v14 = vsub.s32 32, %v1133_v40  ;;  %v1138_v37 = vsub.s32 4294967266, %v1133_v40 }
 0x242   : > { %v1165_v11 = vand.u32 2147483647, %v4284_v24  ;;  %v2086_v43 = vsel %vm2084_vm1, %v2836_v55, %v2085_v33  ;;  %v1135_v45 = vshll.u32 %v4256_v2, %v1133_v40  ;;  %v2151_v1 = vsel %vm2149_vm4, %v2150_v58, %v4276_v60 }
 0x243   : > { %v2626_v51 = vadd.s32 4294967169, %v1169_v35  ;;  %v2840_v50 = vpop.eup %2839  ;;  %v2090_v59 = vsel %vm2083_vm0, %v2086_v43, %v2089_v47  ;;  %v1136_v23 = vshrl.u32 %v1118_v12, %v1134_v14  ;;  %v1139_v56 = vadd.s32 127, %v1138_v37 }
 0x244   : > { %v2152_v57 = vadd.s32 %v2151_v1, %v2147_v5  ;;  %v2091_v27 = vsel %vm2081_vm13, nan, %v2090_v59  ;;  %vm4310_vm5 = vcmp.le.f32.partialorder %v1062_v6, 0.7853982  ;;  %v2451_v32 = vmul.f32 1.442695, %v2426_v3 }
 0x245   : > { %v1175_v2 = vadd.s32 1, %v2626_v51  ;;  %v2492_v52 = vmul.f32 %v2840_v50, %v2091_v27  ;;  %v1137_v34 = vor.u32 %v1136_v23, %v1135_v45  ;;  %v1140_v60 = vshll.u32 %v1139_v56, 23 }
 0x246   : > { %v2153_v30 = vadd.s32 536870912, %v2152_v57  ;;  %v1151_v49 = vsel %vm4310_vm5, 0, %v1149_v44  ;;  %v430_v62 = vadd.f32 %v3740_v46, %v2995_v38  ;;  %v1172_v21 = vand.u32 8388607, %v1165_v11 }
 0x247   : > { %vm1176_vm6 = vcmp.gt.s32.totalorder %v1175_v2, 0  ;;  %2512 = vst.msk [vmem:[%s3269_s27 + $0x78] sm:$0xff] %vm2496_vm14, %v2492_v52  ;;  %v1141_v42 = vor.u32 4788187, %v1140_v60  ;;  %v4326_v20 = vadd.f32 %v3851_v18, %v2983_v26  ;;  %v1144_v3 = vcvt.s32.f32 %v1137_v34 }
 0x248   : > { %v4320_v6 = vshrl.u32 %v2153_v30, 30  ;;  %v1177_v36 = vsel %vm1176_vm6, %v1175_v2, 0  ;;  %v4329_v46 = vand.u32 3, %v1151_v49  ;;  %2841 = vpow2.f32 %v2451_v32 }
 0x249   : > { %v1179_v48 = vand.u32 31, %v1177_v36  ;;  %v1142_v55 = vand.u32 2147483647, %v1141_v42  ;;  %v4331_v58 = vmul.f32 %v430_v62, %v430_v62  ;;  %v2148_v44 = vadd.s32 %v4275_v10, %v4288_v53 }
 0x24a   : > { %v2155_v12 = vshll.u32 %v4320_v6, 30  ;;  %v1173_v33 = vor.u32 8388608, %v1172_v21  ;;  %v4337_v40 = vshrl.u32 %v1177_v36, 5  ;;  %v2198_v47 = vand.u32 2139095040, %v4326_v20 }
 0x24b   : > { %v1180_v39 = vsub.s32 32, %v1179_v48  ;;  %v1145_v25 = vmul.f32 %v1144_v3, %v1142_v55  ;;  %v1182_v43 = vshll.u32 %v2892_v9, %v1179_v48  ;;  %v1185_v10 = vshll.u32 %v2893_v13, %v1179_v48 }
 0x24c   : > { %v4335_v35 = vsub.s32 %v2152_v57, %v2155_v12  ;;  %v1188_v53 = vshll.u32 %v2894_v15, %v1179_v48  ;;  %v1191_v1 = vshll.u32 %v2895_v17, %v1179_v48  ;;  %v4352_v56 = vshll.u32 %v1173_v33, 8 }
 0x24d   : > { %v1183_v18 = vshrl.u32 %v2893_v13, %v1180_v39  ;;  %v1186_v5 = vshrl.u32 %v2894_v15, %v1180_v39  ;;  %v1146_v14 = vxor.u32 2147483648, %v1145_v25  ;;  %v1189_v45 = vshrl.u32 %v2895_v17, %v1180_v39 }
 0x24e   : > { %v2158_v37 = vsub.s32 0, %v4335_v35  ;;  %v1192_v51 = vshrl.u32 %v2896_v19, %v1180_v39  ;;  %v1194_v60 = vshll.u32 %v2896_v19, %v1179_v48  ;;  %v1195_v30 = vshrl.u32 %v2897_v28, %v1180_v39 }
 0x24f   : > { %v1147_v50 = vsel %vm1064_vm15, %v1146_v14, %v1145_v25  ;;  %v1184_v23 = vor.u32 %v1183_v18, %v1182_v43  ;;  %v1187_v27 = vor.u32 %v1186_v5, %v1185_v10  ;;  %v1190_v2 = vor.u32 %v1189_v45, %v1188_v53 }
 0x250   : > { %v2663_v59 = vmin.u32 %v2158_v37, %v4335_v35  ;;  %v1150_v57 = vsel %vm4310_vm5, %v4096_v7, %v1147_v50  ;;  %v1193_v52 = vor.u32 %v1192_v51, %v1191_v1  ;;  %v1181_v49 = vshrl.u32 %v2892_v9, %v1180_v39 }
 0x251   : > { %2843 = vcosq.f32 %v1150_v57  ;;  %vm1197_vm7 = vcmp.lt.s32.totalorder %v4337_v40, 1  ;;  %v2199_v32 = vshrl.u32 %v2198_v47, 23  ;;  %v1196_v42 = vor.u32 %v1195_v30, %v1194_v60 }
 0x252   : > { %v2160_v34 = vclz %v2663_v59  ;;  %2845 = vsinq.f32 %v1150_v57  ;;  %vm1199_vm8 = vcmp.lt.s32.totalorder %v4337_v40, 3  ;;  %vm1200_vm9 = vcmp.lt.s32.totalorder %v4337_v40, 4  ;;  %v4363_v8 = vpop.eup %2841 }
 0x253   : > { %v1202_v21 = vsel %vm1200_vm9, %v1190_v2, 2102212464  ;;  %v1205_v36 = vsel %vm1197_vm7, %v1184_v23, %v1187_v27  ;;  %v1206_v48 = vsel %vm1200_vm9, %v1193_v52, 920167782  ;;  %v1209_v55 = vsel %vm1197_vm7, %v1187_v27, %v1190_v2 }
 0x254   : > { %v2664_v62 = vadd.s32 4294967294, %v2160_v34  ;;  %vm2094_vm10 = vcmp.lt.s32.totalorder %v4132_v22, 0  ;;  %vm1198_vm12 = vcmp.lt.s32.totalorder %v4337_v40, 2  ;;  %v1207_v3 = vsel %vm1199_vm8, %v1190_v2, %v1206_v48 }
 0x255   : > { %v1210_v12 = vsel %vm1200_vm9, %v1196_v42, 1326507024  ;;  %v1201_v25 = vsel %vm1197_vm7, %v1181_v49, %v1184_v23  ;;  %v1208_v33 = vsel %vm1198_vm12, %v1205_v36, %v1207_v3  ;;  %vm1156_vm13 = vcmp.lt.s32.totalorder %v4329_v46, 2 }
 0x256   : > { %vm2665_vm11 = vcmp.lt.s32.totalorder %v2664_v62, 0  ;;  %v1211_v18 = vsel %vm1199_vm8, %v1193_v52, %v1210_v12  ;;  %v1203_v14 = vsel %vm1199_vm8, %v1187_v27, %v1202_v21  ;;  %vm1154_vm15 = vweird.f32 %v4096_v7 }
 0x257   : > { %v2163_v39 = vsel %vm2665_vm11, 0, %v2664_v62  ;;  %v1212_v37 = vsel %vm1198_vm12, %v1209_v55, %v1211_v18  ;;  %v4390_v10 = vmul.u32.u64.low %v4352_v56, %v1208_v33  ;;  %v4391_v53 = vmul.u32.u64.high %v4352_v56, %v1208_v33, %v4390_v10 }
 0x258   : > { %v2164_v5 = vsub.s32 32, %v2163_v39  ;;  %v2168_v47 = vsub.s32 4294967266, %v2163_v39  ;;  %v4386_v43 = vmul.u32.u64.low %v4352_v56, %v1212_v37  ;;  %v4387_v45 = vmul.u32.u64.high %v4352_v56, %v1212_v37, %v4386_v43 }
 0x259   : > { %v2165_v1 = vshll.u32 %v4335_v35, %v2163_v39  ;;  %v2666_v59 = vadd.s32 4294967169, %v2199_v32  ;;  %vm1157_vm0 = vcmp.eq.s32.totalorder %v4329_v46, 0  ;;  %vm1160_vm1 = vcmp.eq.s32.totalorder %v4329_v46, 2 }
 0x25a   : > { %v2166_v51 = vshrl.u32 %v2148_v44, %v2164_v5  ;;  %v2169_v50 = vadd.s32 127, %v2168_v47  ;;  %v2178_v23 = vsub.s32 4, %v4320_v6  ;;  %v1204_v57 = vsel %vm1198_vm12, %v1201_v25, %v1203_v14 }
 0x25b   : > { %v2844_v27 = vpop.eup %2843  ;;  %v2436_v34 = vsub.f32 0.0, %v4331_v58  ;;  %v2205_v60 = vadd.s32 1, %v2666_v59  ;;  %vm1222_vm2 = vc.u32 %v4387_v45, %v4390_v10  ;;  %v1223_v44 = vadd.s32 1, %v4391_v53 }
 0x25c   : > { %v2167_v2 = vor.u32 %v2166_v51, %v2165_v1  ;;  %v2170_v52 = vshll.u32 %v2169_v50, 23  ;;  %v2846_v30 = vpop.eup %2845  ;;  %v1161_v35 = vxor.u32 2147483648, %v2844_v27  ;;  %v2195_v49 = vand.u32 2147483647, %v4326_v20 }
 0x25d   : > { %v1158_v32 = vxor.u32 2147483648, %v2846_v30  ;;  %v1220_v40 = vmul.u32 %v4352_v56, %v1204_v57  ;;  %vm2206_vm3 = vcmp.gt.s32.totalorder %v2205_v60, 0  ;;  %v2179_v58 = vsel %vm2094_vm10, %v2178_v23, %v4320_v6 }
 0x25e   : > { %v2171_v62 = vor.u32 4788187, %v2170_v52  ;;  %v1162_v42 = vsel %vm1160_vm1, %v1161_v35, %v2846_v30  ;;  %v1224_v21 = vsel %vm1222_vm2, %v1223_v44, %v4391_v53  ;;  %v2207_v36 = vsel %vm2206_vm3, %v2205_v60, 0 }
 0x25f   : > { %v1159_v48 = vsel %vm1157_vm0, %v2844_v27, %v1158_v32  ;;  %v2174_v3 = vcvt.s32.f32 %v2167_v2  ;;  %v1225_v12 = vadd.s32 %v1224_v21, %v1220_v40  ;;  %vm4418_vm4 = vcmp.le.f32.partialorder %v2092_v41, 0.7853982 }
 0x260   : > { %v2172_v55 = vand.u32 2147483647, %v2171_v62  ;;  %v1163_v56 = vsel %vm1156_vm13, %v1159_v48, %v1162_v42  ;;  %v2471_v6 = vmul.f32 1.442695, %v2436_v34  ;;  %v2209_v25 = vand.u32 31, %v2207_v36 }
 0x261   : > { %v1164_v33 = vsel %vm1154_vm15, nan, %v1163_v56  ;;  %v1226_v5 = vadd.s32 536870912, %v1225_v12  ;;  %v2202_v47 = vand.u32 8388607, %v2195_v49  ;;  %v2181_v46 = vsel %vm4418_vm4, 0, %v2179_v58 }
 0x262   : > { %v2175_v18 = vmul.f32 %v2174_v3, %v2172_v55  ;;  %v2483_v14 = vmul.f32 %v4363_v8, %v1164_v33  ;;  %v2210_v37 = vsub.s32 32, %v2209_v25  ;;  %v2212_v41 = vshll.u32 %v2892_v9, %v2209_v25 }
 0x263   : > { %v4430_v53 = vshrl.u32 %v1226_v5, 30  ;;  %v2215_v1 = vshll.u32 %v2893_v13, %v2209_v25  ;;  %v2218_v7 = vshll.u32 %v2894_v15, %v2209_v25  ;;  %v2221_v8 = vshll.u32 %v2895_v17, %v2209_v25 }
 0x264   : > { %v2176_v43 = vxor.u32 2147483648, %v2175_v18  ;;  %2503 = vst.msk [vmem:[%s3269_s27 + $0x30] sm:$0xff] %vm2496_vm14, %v2483_v14  ;;  %v2213_v51 = vshrl.u32 %v2893_v13, %v2210_v37  ;;  %v2216_v50 = vshrl.u32 %v2894_v15, %v2210_v37  ;;  %v2219_v59 = vshrl.u32 %v2895_v17, %v2210_v37 }
 0x265   : > { %v4442_v57 = vand.u32 3, %v2181_v46  ;;  %v1228_v27 = vshll.u32 %v4430_v53, 30  ;;  %v2222_v2 = vshrl.u32 %v2896_v19, %v2210_v37  ;;  %v2203_v34 = vor.u32 8388608, %v2202_v47 }
 0x266   : > { %v2177_v23 = vsel %vm2094_vm10, %v2176_v43, %v2175_v18  ;;  %v2208_v60 = vshrl.u32 %v2207_v36, 5  ;;  %v2214_v30 = vor.u32 %v2213_v51, %v2212_v41  ;;  %v2217_v44 = vor.u32 %v2216_v50, %v2215_v1 }
 0x267   : > { %v2180_v52 = vsel %vm4418_vm4, %v4132_v22, %v2177_v23  ;;  %v4449_v35 = vsub.s32 %v1225_v12, %v1228_v27  ;;  %v2220_v32 = vor.u32 %v2219_v59, %v2218_v7  ;;  %v2223_v62 = vor.u32 %v2222_v2, %v2221_v8 }
 0x268   : > { %2847 = vcosq.f32 %v2180_v52  ;;  %v2224_v40 = vshll.u32 %v2896_v19, %v2209_v25  ;;  %v2225_v42 = vshrl.u32 %v2897_v28, %v2210_v37  ;;  %v376_v21 = vadd.f32 %v3936_v61, %v2995_v38 }
 0x269   : > { %2849 = vsinq.f32 %v2180_v52  ;;  %v1231_v58 = vsub.s32 0, %v4449_v35  ;;  %v4458_v36 = vadd.f32 %v3998_v16, %v2983_v26  ;;  %v2211_v48 = vshrl.u32 %v2892_v9, %v2210_v37 }
 0x26a   : > { %2851 = vpow2.f32 %v2471_v6  ;;  %v2226_v55 = vor.u32 %v2225_v42, %v2224_v40  ;;  %vm2227_vm5 = vcmp.lt.s32.totalorder %v2208_v60, 1  ;;  %v2243_v3 = vshll.u32 %v2203_v34, 8 }
 0x26b   : > { %v2627_v12 = vmin.u32 %v1231_v58, %v4449_v35  ;;  %vm2229_vm6 = vcmp.lt.s32.totalorder %v2208_v60, 3  ;;  %vm2230_vm7 = vcmp.lt.s32.totalorder %v2208_v60, 4  ;;  %v2235_v56 = vsel %vm2227_vm5, %v2214_v30, %v2217_v44 }
 0x26c   : > { %vm2187_vm8 = vcmp.eq.s32.totalorder %v4442_v57, 0  ;;  %v2232_v39 = vsel %vm2230_vm7, %v2220_v32, 2102212464  ;;  %v2236_v6 = vsel %vm2230_vm7, %v2223_v62, 920167782  ;;  %v2239_v61 = vsel %vm2227_vm5, %v2217_v44, %v2220_v32 }
 0x26d   : > { %v2240_v25 = vsel %vm2230_vm7, %v2226_v55, 1326507024  ;;  %vm2186_vm9 = vcmp.lt.s32.totalorder %v4442_v57, 2  ;;  %vm1167_vm10 = vcmp.lt.s32.totalorder %v4284_v24, 0  ;;  %v1233_v16 = vclz %v2627_v12 }
 0x26e   : > { %vm2228_vm11 = vcmp.lt.s32.totalorder %v2208_v60, 2  ;;  %v2237_v33 = vsel %vm2229_vm6, %v2220_v32, %v2236_v6  ;;  %v2241_v18 = vsel %vm2229_vm6, %v2223_v62, %v2240_v25  ;;  %vm2184_vm12 = vweird.f32 %v4132_v22 }
 0x26f   : > { %v2231_v5 = vsel %vm2227_vm5, %v2211_v48, %v2214_v30  ;;  %v2233_v47 = vsel %vm2229_vm6, %v2217_v44, %v2232_v39  ;;  %v2238_v46 = vsel %vm2228_vm11, %v2235_v56, %v2237_v33  ;;  %v2242_v14 = vsel %vm2228_vm11, %v2239_v61, %v2241_v18 }
 0x270   : > { %v2628_v37 = vadd.s32 4294967294, %v1233_v16  ;;  %v4474_v41 = vmul.u32.u64.low %v2243_v3, %v2242_v14  ;;  %v4475_v43 = vmul.u32.u64.high %v2243_v3, %v2242_v14, %v4474_v41  ;;  %v2408_v1 = vmul.f32 %v376_v21, %v376_v21 }
 0x271   : > { %vm2190_vm13 = vcmp.eq.s32.totalorder %v4442_v57, 2  ;;  %v4478_v7 = vmul.u32.u64.low %v2243_v3, %v2238_v46  ;;  %v4479_v51 = vmul.u32.u64.high %v2243_v3, %v2238_v46, %v4478_v7  ;;  %v436_v50 = vadd.f32 %v3982_v4, %v2995_v38 }
 0x272   : > { %v2848_v59 = vpop.eup %2847  ;;  %v1221_v8 = vadd.s32 %v4390_v10, %v4387_v45  ;;  %vm2629_vm15 = vcmp.lt.s32.totalorder %v2628_v37, 0  ;;  %v2234_v23 = vsel %vm2228_vm11, %v2231_v5, %v2233_v47  ;;  %v4488_v27 = vadd.f32 %v4056_v63, %v2983_v26 }
 0x273   : > { %v2850_v2 = vpop.eup %2849  ;;  %v2191_v52 = vxor.u32 2147483648, %v2848_v59  ;;  %v1236_v34 = vsel %vm2629_vm15, 0, %v2628_v37  ;;  %v1251_v30 = vsub.s32 4, %v4430_v53  ;;  %v1271_v44 = vand.u32 2139095040, %v4458_v36 }
 0x274   : > { %v2852_v32 = vpop.eup %2851  ;;  %v2188_v4 = vxor.u32 2147483648, %v2850_v2  ;;  %v1237_v62 = vsub.s32 32, %v1236_v34  ;;  %v1241_v40 = vsub.s32 4294967266, %v1236_v34  ;;  %v2427_v42 = vsub.f32 0.0, %v2408_v1 }
 0x275   : > { %v2192_v45 = vsel %vm2190_vm13, %v2191_v52, %v2850_v2  ;;  %v2250_v10 = vmul.u32 %v2243_v3, %v2234_v23  ;;  %vm2252_vm0 = vc.u32 %v4475_v43, %v4478_v7  ;;  %v2253_v63 = vadd.s32 1, %v4479_v51 }
 0x276   : > { %v2189_v60 = vsel %vm2187_vm8, %v2848_v59, %v2188_v4  ;;  %v1238_v58 = vshll.u32 %v4449_v35, %v1236_v34  ;;  %v1239_v21 = vshrl.u32 %v1221_v8, %v1237_v62  ;;  %v1242_v48 = vadd.s32 127, %v1241_v40 }
 0x277   : > { %v2193_v55 = vsel %vm2186_vm9, %v2189_v60, %v2192_v45  ;;  %v1252_v12 = vsel %vm1167_vm10, %v1251_v30, %v4430_v53  ;;  %v2254_v3 = vsel %vm2252_vm0, %v2253_v63, %v4479_v51  ;;  %v1272_v56 = vshrl.u32 %v1271_v44, 23 }
 0x278   : > { %v2194_v39 = vsel %vm2184_vm12, nan, %v2193_v55  ;;  %v1240_v6 = vor.u32 %v1239_v21, %v1238_v58  ;;  %v1243_v61 = vshll.u32 %v1242_v48, 23  ;;  %v2255_v25 = vadd.s32 %v2254_v3, %v2250_v10 }
 0x279   : > { %v2493_v35 = vmul.f32 %v2852_v32, %v2194_v39  ;;  %v2418_v16 = vmul.f32 %v436_v50, %v436_v50  ;;  %v1268_v33 = vand.u32 2147483647, %v4458_v36  ;;  %v2630_v57 = vadd.s32 4294967169, %v1272_v56 }
 0x27a   : > { %vm4510_vm1 = vcmp.le.f32.partialorder %v1165_v11, 0.7853982  ;;  %v1244_v53 = vor.u32 4788187, %v1243_v61  ;;  %v2256_v5 = vadd.s32 536870912, %v2255_v25  ;;  %v1247_v37 = vcvt.s32.f32 %v1240_v6 }
 0x27b   : > { %2513 = vst.msk [vmem:[%s3269_s27 + $0x80] sm:$0xff] %vm2496_vm14, %v2493_v35  ;;  %v1254_v22 = vsel %vm4510_vm1, 0, %v1252_v12  ;;  %v2453_v47 = vmul.f32 1.442695, %v2427_v42  ;;  %v1278_v46 = vadd.s32 1, %v2630_v57  ;;  %v2301_v1 = vand.u32 2139095040, %v4488_v27 }
 0x27c   : > { %v1245_v14 = vand.u32 2147483647, %v1244_v53  ;;  %v4518_v41 = vshrl.u32 %v2256_v5, 30  ;;  %v2437_v51 = vsub.f32 0.0, %v2418_v16  ;;  %v4523_v11 = vand.u32 8388607, %v1268_v33 }
 0x27d   : > { %vm1279_vm2 = vcmp.gt.s32.totalorder %v1278_v46, 0  ;;  %v4526_v23 = vand.u32 3, %v1254_v22  ;;  %2853 = vpow2.f32 %v2453_v47  ;;  %v2302_v30 = vshrl.u32 %v2301_v1, 23 }
 0x27e   : > { %v1248_v50 = vmul.f32 %v1247_v37, %v1245_v14  ;;  %v2258_v59 = vshll.u32 %v4518_v41, 30  ;;  %v1280_v8 = vsel %vm1279_vm2, %v1278_v46, 0  ;;  %v2251_v44 = vadd.s32 %v4478_v7, %v4475_v43 }
 0x27f   : > { %v1282_v2 = vand.u32 31, %v1280_v8  ;;  %v4531_v32 = vmul.f32 1.442695, %v2437_v51  ;;  %v1276_v4 = vor.u32 8388608, %v4523_v11  ;;  %v1281_v45 = vshrl.u32 %v1280_v8, 5 }
 0x280   : > { %v1249_v52 = vxor.u32 2147483648, %v1248_v50  ;;  %v4528_v34 = vsub.s32 %v2255_v25, %v2258_v59  ;;  %v2298_v21 = vand.u32 2147483647, %v4488_v27  ;;  %v2670_v48 = vadd.s32 4294967169, %v2302_v30 }
 0x281   : > { %v1283_v62 = vsub.s32 32, %v1282_v2  ;;  %v1285_v10 = vshll.u32 %v2892_v9, %v1282_v2  ;;  %v1288_v43 = vshll.u32 %v2893_v13, %v1282_v2  ;;  %v1291_v3 = vshll.u32 %v2894_v15, %v1282_v2 }
 0x282   : > { %v1250_v40 = vsel %vm1167_vm10, %v1249_v52, %v1248_v50  ;;  %v2261_v42 = vsub.s32 0, %v4528_v34  ;;  %v1294_v6 = vshll.u32 %v2895_v17, %v1282_v2  ;;  %v1297_v35 = vshll.u32 %v2896_v19, %v1282_v2 }
 0x283   : > { %v1253_v63 = vsel %vm4510_vm1, %v4284_v24, %v1250_v40  ;;  %v1286_v60 = vshrl.u32 %v2893_v13, %v1283_v62  ;;  %v1289_v7 = vshrl.u32 %v2894_v15, %v1283_v62  ;;  %v1292_v39 = vshrl.u32 %v2895_v17, %v1283_v62 }
 0x284   : > { %2855 = vcosq.f32 %v1253_v63  ;;  %v2667_v58 = vmin.u32 %v2261_v42, %v4528_v34  ;;  %v1295_v61 = vshrl.u32 %v2896_v19, %v1283_v62  ;;  %v1284_v25 = vshrl.u32 %v2892_v9, %v1283_v62 }
 0x285   : > { %2857 = vsinq.f32 %v1253_v63  ;;  %v1287_v55 = vor.u32 %v1286_v60, %v1285_v10  ;;  %v1290_v12 = vor.u32 %v1289_v7, %v1288_v43  ;;  %v1298_v16 = vshrl.u32 %v2897_v28, %v1283_v62 }
 0x286   : > { %v2263_v56 = vclz %v2667_v58  ;;  %vm1300_vm3 = vcmp.lt.s32.totalorder %v1281_v45, 1  ;;  %vm1263_vm4 = vcmp.eq.s32.totalorder %v4526_v23, 2  ;;  %v1293_v18 = vor.u32 %v1292_v39, %v1291_v3 }
 0x287   : > { %v1296_v53 = vor.u32 %v1295_v61, %v1294_v6  ;;  %vm1302_vm5 = vcmp.lt.s32.totalorder %v1281_v45, 3  ;;  %vm1260_vm6 = vcmp.eq.s32.totalorder %v4526_v23, 0  ;;  %v1299_v5 = vor.u32 %v1298_v16, %v1297_v35  ;;  %v2854_v46 = vpop.eup %2853 }
 0x288   : > { %v2668_v57 = vadd.s32 4294967294, %v2263_v56  ;;  %vm1303_vm7 = vcmp.lt.s32.totalorder %v1281_v45, 4  ;;  %v1304_v22 = vsel %vm1300_vm3, %v1284_v25, %v1287_v55  ;;  %v1308_v47 = vsel %vm1300_vm3, %v1287_v55, %v1290_v12 }
 0x289   : > { %vm1259_vm8 = vcmp.lt.s32.totalorder %v4526_v23, 2  ;;  %v1305_v14 = vsel %vm1303_vm7, %v1293_v18, 2102212464  ;;  %v1309_v37 = vsel %vm1303_vm7, %v1296_v53, 920167782  ;;  %v1312_v1 = vsel %vm1300_vm3, %v1290_v12, %v1293_v18 }
 0x28a   : > { %vm2669_vm9 = vcmp.lt.s32.totalorder %v2668_v57, 0  ;;  %vm1257_vm10 = vweird.f32 %v4284_v24  ;;  %v1306_v11 = vsel %vm1302_vm5, %v1290_v12, %v1305_v14  ;;  %v1310_v50 = vsel %vm1302_vm5, %v1293_v18, %v1309_v37 }
 0x28b   : > { %v2266_v51 = vsel %vm2669_vm9, 0, %v2668_v57  ;;  %v1313_v59 = vsel %vm1303_vm7, %v1299_v5, 1326507024  ;;  %vm1301_vm11 = vcmp.lt.s32.totalorder %v1281_v45, 2  ;;  %v1316_v52 = vshll.u32 %v1276_v4, 8 }
 0x28c   : > { %v2267_v8 = vsub.s32 32, %v2266_v51  ;;  %v2271_v2 = vsub.s32 4294967266, %v2266_v51  ;;  %v2268_v30 = vshll.u32 %v4528_v34, %v2266_v51  ;;  %v1307_v62 = vsel %vm1301_vm11, %v1304_v22, %v1306_v11 }
 0x28d   : > { %v1314_v40 = vsel %vm1302_vm5, %v1296_v53, %v1313_v59  ;;  %v2308_v42 = vadd.s32 1, %v2670_v48  ;;  %v1311_v43 = vsel %vm1301_vm11, %v1308_v47, %v1310_v50  ;;  %vm2197_vm13 = vcmp.lt.s32.totalorder %v4326_v20, 0 }
 0x28e   : > { %v2856_v10 = vpop.eup %2855  ;;  %v2269_v63 = vshrl.u32 %v2251_v44, %v2267_v8  ;;  %v2272_v60 = vadd.s32 127, %v2271_v2  ;;  %v1315_v7 = vsel %vm1301_vm11, %v1312_v1, %v1314_v40  ;;  %v2305_v48 = vand.u32 8388607, %v2298_v21 }
 0x28f   : > { %v2858_v58 = vpop.eup %2857  ;;  %v1264_v55 = vxor.u32 2147483648, %v2856_v10  ;;  %v4564_v12 = vmul.u32.u64.low %v1316_v52, %v1315_v7  ;;  %v4565_v3 = vmul.u32.u64.high %v1316_v52, %v1315_v7, %v4564_v12  ;;  %vm2309_vm12 = vcmp.gt.s32.totalorder %v2308_v42, 0 }
 0x290   : > { %v1261_v56 = vxor.u32 2147483648, %v2858_v58  ;;  %v2270_v39 = vor.u32 %v2269_v63, %v2268_v30  ;;  %v2273_v4 = vshll.u32 %v2272_v60, 23  ;;  %v2310_v6 = vsel %vm2309_vm12, %v2308_v42, 0 }
 0x291   : > { %v1265_v34 = vsel %vm1263_vm4, %v1264_v55, %v2858_v58  ;;  %v4570_v45 = vmul.u32.u64.low %v1316_v52, %v1311_v43  ;;  %v4571_v44 = vmul.u32.u64.high %v1316_v52, %v1311_v43, %v4570_v45  ;;  %vm4580_vm15 = vcmp.le.f32.partialorder %v2195_v49, 0.7853982 }
 0x292   : > { %v1262_v61 = vsel %vm1260_vm6, %v2856_v10, %v1261_v56  ;;  %v2274_v35 = vor.u32 4788187, %v2273_v4  ;;  %v2281_v16 = vsub.s32 4, %v4518_v41  ;;  %v2312_v57 = vand.u32 31, %v2310_v6 }
 0x293   : > { %v1266_v18 = vsel %vm1259_vm8, %v1262_v61, %v1265_v34  ;;  %v2277_v53 = vcvt.s32.f32 %v2270_v39  ;;  %v1323_v5 = vmul.u32 %v1316_v52, %v1307_v62  ;;  %vm1325_vm0 = vc.u32 %v4565_v3, %v4570_v45 }
 0x294   : > { %v1267_v22 = vsel %vm1257_vm10, nan, %v1266_v18  ;;  %v2275_v49 = vand.u32 2147483647, %v2274_v35  ;;  %v2313_v47 = vsub.s32 32, %v2312_v57  ;;  %v2315_v14 = vshll.u32 %v2892_v9, %v2312_v57 }
 0x295   : > { %v2484_v37 = vmul.f32 %v2854_v46, %v1267_v22  ;;  %v1326_v1 = vadd.s32 1, %v4571_v44  ;;  %v2318_v51 = vshll.u32 %v2893_v13, %v2312_v57  ;;  %v2321_v23 = vshll.u32 %v2894_v15, %v2312_v57 }
 0x296   : > { %v2278_v11 = vmul.f32 %v2277_v53, %v2275_v49  ;;  %v2311_v50 = vshrl.u32 %v2310_v6, 5  ;;  %v2316_v59 = vshrl.u32 %v2893_v13, %v2313_v47  ;;  %v2319_v8 = vshrl.u32 %v2894_v15, %v2313_v47 }
 0x297   : > { %2504 = vst.msk [vmem:[%s3269_s27 + $0x38] sm:$0xff] %vm2496_vm14, %v2484_v37  ;;  %v1327_v24 = vsel %vm1325_vm0, %v1326_v1, %v4571_v44  ;;  %v2322_v2 = vshrl.u32 %v2895_v17, %v2313_v47  ;;  %v2324_v46 = vshll.u32 %v2895_v17, %v2312_v57  ;;  %v2325_v52 = vshrl.u32 %v2896_v19, %v2313_v47 }
 0x298   : > { %v2279_v30 = vxor.u32 2147483648, %v2278_v11  ;;  %v1328_v62 = vadd.s32 %v1327_v24, %v1323_v5  ;;  %v2317_v40 = vor.u32 %v2316_v59, %v2315_v14  ;;  %v2320_v42 = vor.u32 %v2319_v8, %v2318_v51 }
 0x299   : > { %v2323_v10 = vor.u32 %v2322_v2, %v2321_v23  ;;  %v2326_v63 = vor.u32 %v2325_v52, %v2324_v46  ;;  %v2327_v60 = vshll.u32 %v2896_v19, %v2312_v57  ;;  %v2328_v43 = vshrl.u32 %v2897_v28, %v2313_v47 }
 0x29a   : > { %v2280_v7 = vsel %vm2197_vm13, %v2279_v30, %v2278_v11  ;;  %v2282_v58 = vsel %vm2197_vm13, %v2281_v16, %v4518_v41  ;;  %v1329_v55 = vadd.s32 536870912, %v1328_v62  ;;  %v2306_v12 = vor.u32 8388608, %v2305_v48 }
 0x29b   : > { %v2283_v56 = vsel %vm4580_vm15, %v4326_v20, %v2280_v7  ;;  %v2314_v39 = vshrl.u32 %v2892_v9, %v2313_v47  ;;  %v2329_v4 = vor.u32 %v2328_v43, %v2327_v60  ;;  %vm2330_vm1 = vcmp.lt.s32.totalorder %v2311_v50, 1 }
 0x29c   : > { %2859 = vcosq.f32 %v2283_v56  ;;  %v4614_v6 = vshrl.u32 %v1329_v55, 30  ;;  %vm2333_vm2 = vcmp.lt.s32.totalorder %v2311_v50, 4  ;;  %v2338_v34 = vsel %vm2330_vm1, %v2317_v40, %v2320_v42 }
 0x29d   : > { %2861 = vsinq.f32 %v2283_v56  ;;  %vm2332_vm3 = vcmp.lt.s32.totalorder %v2311_v50, 3  ;;  %v2335_v44 = vsel %vm2333_vm2, %v2323_v10, 2102212464  ;;  %v2339_v41 = vsel %vm2333_vm2, %v2326_v63, 920167782 }
 0x29e   : > { %v1331_v48 = vshll.u32 %v4614_v6, 30  ;;  %vm2331_vm4 = vcmp.lt.s32.totalorder %v2311_v50, 2  ;;  %v2340_v61 = vsel %vm2332_vm3, %v2323_v10, %v2339_v41  ;;  %v2342_v35 = vsel %vm2330_vm1, %v2320_v42, %v2323_v10 }
 0x29f   : > { %v2341_v16 = vsel %vm2331_vm4, %v2338_v34, %v2340_v61  ;;  %v2343_v57 = vsel %vm2333_vm2, %v2329_v4, 1326507024  ;;  %v2346_v18 = vshll.u32 %v2306_v12, 8  ;;  %v4622_v53 = vadd.f32 %v4185_v29, %v2983_v26 }
 0x2a0   : > { %v1332_v5 = vsub.s32 %v1328_v62, %v1331_v48  ;;  %v2334_v22 = vsel %vm2330_vm1, %v2314_v39, %v2317_v40  ;;  %v2336_v49 = vsel %vm2332_vm3, %v2320_v42, %v2335_v44  ;;  %v2344_v47 = vsel %vm2332_vm3, %v2326_v63, %v2343_v57 }
 0x2a1   : > { %v2284_v14 = vsel %vm4580_vm15, 0, %v2282_v58  ;;  %v2345_v37 = vsel %vm2331_vm4, %v2342_v35, %v2344_v47  ;;  %v4628_v1 = vmul.u32.u64.low %v2346_v18, %v2341_v16  ;;  %v4629_v51 = vmul.u32.u64.high %v2346_v18, %v2341_v16, %v4628_v1 }
 0x2a2   : > { %2863 = vpow2.f32 %v4531_v32  ;;  %v1334_v23 = vsub.s32 0, %v1332_v5  ;;  %v4633_v11 = vmul.u32.u64.low %v2346_v18, %v2345_v37  ;;  %v4634_v26 = vmul.u32.u64.high %v2346_v18, %v2345_v37, %v4633_v11 }
 0x2a3   : > { %v2337_v29 = vsel %vm2331_vm4, %v2334_v22, %v2336_v49  ;;  %v382_v59 = vadd.f32 %v4119_v0, %v2995_v38  ;;  %v1374_v25 = vand.u32 2139095040, %v4622_v53  ;;  %v2288_v8 = vand.u32 3, %v2284_v14 }
 0x2a4   : > { %v2631_v24 = vmin.u32 %v1334_v23, %v1332_v5  ;;  %v2356_v2 = vadd.s32 1, %v4629_v51  ;;  %vm2287_vm5 = vweird.f32 %v4326_v20  ;;  %v2353_v30 = vmul.u32 %v2346_v18, %v2337_v29 }
 0x2a5   : > { %v1375_v46 = vshrl.u32 %v1374_v25, 23  ;;  %vm2355_vm6 = vc.u32 %v4634_v26, %v4628_v1  ;;  %v2409_v0 = vmul.f32 %v382_v59, %v382_v59  ;;  %vm2293_vm7 = vcmp.eq.s32.totalorder %v2288_v8, 2 }
 0x2a6   : > { %v2860_v52 = vpop.eup %2859  ;;  %v1336_v32 = vclz %v2631_v24  ;;  %v2357_v40 = vsel %vm2355_vm6, %v2356_v2, %v4629_v51  ;;  %vm2290_vm8 = vcmp.eq.s32.totalorder %v2288_v8, 0  ;;  %v1371_v7 = vand.u32 2147483647, %v4622_v53 }
 0x2a7   : > { %v2862_v50 = vpop.eup %2861  ;;  %v2294_v62 = vxor.u32 2147483648, %v2860_v52  ;;  %v2634_v42 = vadd.s32 4294967169, %v1375_v46  ;;  %v2358_v60 = vadd.s32 %v2357_v40, %v2353_v30  ;;  %vm2289_vm9 = vcmp.lt.s32.totalorder %v2288_v8, 2 }
 0x2a8   : > { %v2291_v10 = vxor.u32 2147483648, %v2862_v50  ;;  %v2632_v63 = vadd.s32 4294967294, %v1336_v32  ;;  %v1324_v39 = vadd.s32 %v4570_v45, %v4565_v3  ;;  %v1354_v61 = vsub.s32 4, %v4614_v6 }
 0x2a9   : > { %v2295_v43 = vsel %vm2293_vm7, %v2294_v62, %v2862_v50  ;;  %v1381_v58 = vadd.s32 1, %v2634_v42  ;;  %v2359_v12 = vadd.s32 536870912, %v2358_v60  ;;  %v1378_v57 = vand.u32 8388607, %v1371_v7 }
 0x2aa   : > { %v2292_v55 = vsel %vm2290_vm8, %v2860_v52, %v2291_v10  ;;  %vm2633_vm10 = vcmp.lt.s32.totalorder %v2632_v63, 0  ;;  %vm1270_vm12 = vcmp.lt.s32.totalorder %v4458_v36, 0  ;;  %vm4668_vm13 = vcmp.le.f32.partialorder %v1268_v33, 0.7853982 }
 0x2ab   : > { %v2296_v56 = vsel %vm2289_vm9, %v2292_v55, %v2295_v43  ;;  %v1339_v4 = vsel %vm2633_vm10, 0, %v2632_v63  ;;  %vm1382_vm11 = vcmp.gt.s32.totalorder %v1381_v58, 0  ;;  %v4651_v16 = vshrl.u32 %v2359_v12, 30 }
 0x2ac   : > { %v2864_v34 = vpop.eup %2863  ;;  %v2297_v44 = vsel %vm2287_vm5, nan, %v2296_v56  ;;  %v1340_v41 = vsub.s32 32, %v1339_v4  ;;  %v1344_v48 = vsub.s32 4294967266, %v1339_v4  ;;  %v1383_v18 = vsel %vm1382_vm11, %v1381_v58, 0 }
 0x2ad   : > { %v2494_v35 = vmul.f32 %v2864_v34, %v2297_v44  ;;  %v1341_v22 = vshll.u32 %v1332_v5, %v1339_v4  ;;  %v1385_v49 = vand.u32 31, %v1383_v18  ;;  %v2361_v20 = vshll.u32 %v4651_v16, 30 }
 0x2ae   : > { %v1342_v3 = vshrl.u32 %v1324_v39, %v1340_v41  ;;  %v1345_v45 = vadd.s32 127, %v1344_v48  ;;  %v4662_v51 = vsel %vm1270_vm12, %v1354_v61, %v4614_v6  ;;  %v2428_v5 = vsub.f32 0.0, %v2409_v0 }
 0x2af   : > { %2514 = vst.msk [vmem:[%s3269_s27 + $0x88] sm:$0xff] %vm2496_vm14, %v2494_v35  ;;  %v1386_v37 = vsub.s32 32, %v1385_v49  ;;  %v4664_v23 = vsub.s32 %v2358_v60, %v2361_v20  ;;  %v1379_v11 = vor.u32 8388608, %v1378_v57  ;;  %v4672_v25 = vshrl.u32 %v1383_v18, 5 }
 0x2b0   : > { %v1343_v47 = vor.u32 %v1342_v3, %v1341_v22  ;;  %v1346_v14 = vshll.u32 %v1345_v45, 23  ;;  %v1388_v8 = vshll.u32 %v2892_v9, %v1385_v49  ;;  %v1391_v24 = vshll.u32 %v2893_v13, %v1385_v49 }
 0x2b1   : > { %v2364_v6 = vsub.s32 0, %v4664_v23  ;;  %v1389_v2 = vshrl.u32 %v2893_v13, %v1386_v37  ;;  %v1392_v46 = vshrl.u32 %v2894_v15, %v1386_v37  ;;  %v1394_v52 = vshll.u32 %v2894_v15, %v1385_v49 }
 0x2b2   : > { %v1347_v59 = vor.u32 4788187, %v1346_v14  ;;  %v1350_v33 = vcvt.s32.f32 %v1343_v47  ;;  %v1395_v30 = vshrl.u32 %v2895_v17, %v1386_v37  ;;  %v1398_v50 = vshrl.u32 %v2896_v19, %v1386_v37 }
 0x2b3   : > { %v2354_v62 = vadd.s32 %v4628_v1, %v4634_v26  ;;  %v2671_v40 = vmin.u32 %v2364_v6, %v4664_v23  ;;  %v2455_v0 = vmul.f32 1.442695, %v2428_v5  ;;  %v1397_v42 = vshll.u32 %v2895_v17, %v1385_v49 }
 0x2b4   : > { %v1348_v32 = vand.u32 2147483647, %v1347_v59  ;;  %v1390_v13 = vor.u32 %v1389_v2, %v1388_v8  ;;  %v1393_v63 = vor.u32 %v1392_v46, %v1391_v24  ;;  %v1396_v60 = vor.u32 %v1395_v30, %v1394_v52 }
 0x2b5   : > { %v2366_v43 = vclz %v2671_v40  ;;  %v1399_v15 = vor.u32 %v1398_v50, %v1397_v42  ;;  %v1400_v58 = vshll.u32 %v2896_v19, %v1385_v49  ;;  %v1401_v55 = vshrl.u32 %v2897_v28, %v1386_v37 }
 0x2b6   : > { %v1351_v10 = vmul.f32 %v1350_v33, %v1348_v32  ;;  %v1387_v56 = vshrl.u32 %v2892_v9, %v1386_v37  ;;  %vm1403_vm15 = vcmp.lt.s32.totalorder %v4672_v25, 1  ;;  %v1419_v1 = vshll.u32 %v1379_v11, 8 }
 0x2b7   : > { %v2672_v26 = vadd.s32 4294967294, %v2366_v43  ;;  %v1402_v39 = vor.u32 %v1401_v55, %v1400_v58  ;;  %vm1405_vm0 = vcmp.lt.s32.totalorder %v4672_v25, 3  ;;  %vm1406_vm1 = vcmp.lt.s32.totalorder %v4672_v25, 4 }
 0x2b8   : > { %v1352_v12 = vxor.u32 2147483648, %v1351_v10  ;;  %v1408_v19 = vsel %vm1406_vm1, %v1396_v60, 2102212464  ;;  %v1411_v28 = vsel %vm1403_vm15, %v1390_v13, %v1393_v63  ;;  %v1412_v9 = vsel %vm1406_vm1, %v1399_v15, 920167782 }
 0x2b9   : > { %vm2673_vm2 = vcmp.lt.s32.totalorder %v2672_v26, 0  ;;  %vm1404_vm3 = vcmp.lt.s32.totalorder %v4672_v25, 2  ;;  %v1413_v34 = vsel %vm1405_vm0, %v1396_v60, %v1412_v9  ;;  %v1407_v41 = vsel %vm1403_vm15, %v1387_v56, %v1390_v13 }
 0x2ba   : > { %v1353_v17 = vsel %vm1270_vm12, %v1352_v12, %v1351_v10  ;;  %v2369_v44 = vsel %vm2673_vm2, 0, %v2672_v26  ;;  %v1414_v48 = vsel %vm1404_vm3, %v1411_v28, %v1413_v34  ;;  %v1409_v57 = vsel %vm1405_vm0, %v1393_v63, %v1408_v19 }
 0x2bb   : > { %v1356_v4 = vsel %vm4668_vm13, %v4458_v36, %v1353_v17  ;;  %v2370_v61 = vsub.s32 32, %v2369_v44  ;;  %v2374_v35 = vsub.s32 4294967266, %v2369_v44  ;;  %v1415_v18 = vsel %vm1403_vm15, %v1393_v63, %v1396_v60 }
 0x2bc   : > { %2865 = vcosq.f32 %v1356_v4  ;;  %v1416_v22 = vsel %vm1406_vm1, %v1402_v39, 1326507024  ;;  %v4716_v3 = vmul.u32.u64.low %v1419_v1, %v1414_v48  ;;  %v4717_v45 = vmul.u32.u64.high %v1419_v1, %v1414_v48, %v4716_v3 }
 0x2bd   : > { %2867 = vsinq.f32 %v1356_v4  ;;  %v2371_v49 = vshll.u32 %v4664_v23, %v2369_v44  ;;  %v2372_v20 = vshrl.u32 %v2354_v62, %v2370_v61  ;;  %v2375_v47 = vadd.s32 127, %v2374_v35 }
 0x2be   : > { %v1417_v14 = vsel %vm1405_vm0, %v1399_v15, %v1416_v22  ;;  %v1357_v37 = vsel %vm4668_vm13, 0, %v4662_v51  ;;  %2869 = vpow2.f32 %v2455_v0  ;;  %v1410_v23 = vsel %vm1404_vm3, %v1407_v41, %v1409_v57 }
 0x2bf   : > { %v1418_v5 = vsel %vm1404_vm3, %v1415_v18, %v1417_v14  ;;  %v2373_v11 = vor.u32 %v2372_v20, %v2371_v49  ;;  %v2376_v59 = vshll.u32 %v2375_v47, 23  ;;  %v1429_v6 = vadd.s32 1, %v4717_v45 }
 0x2c0   : > { %v4728_v8 = vmul.u32.u64.low %v1419_v1, %v1418_v5  ;;  %v4729_v24 = vmul.u32.u64.high %v1419_v1, %v1418_v5, %v4728_v8  ;;  %v442_v2 = vadd.f32 %v4209_v54, %v2995_v38  ;;  %v1361_v29 = vand.u32 3, %v1357_v37 }
 0x2c1   : > { %v2377_v46 = vor.u32 4788187, %v2376_v59  ;;  %v2380_v52 = vcvt.s32.f32 %v2373_v11  ;;  %v1426_v32 = vmul.u32 %v1419_v1, %v1410_v23  ;;  %vm1360_vm5 = vweird.f32 %v4458_v36 }
 0x2c2   : > { %vm1428_vm4 = vc.u32 %v4729_v24, %v4716_v3  ;;  %v2419_v50 = vmul.f32 %v442_v2, %v442_v2  ;;  %vm1366_vm6 = vcmp.eq.s32.totalorder %v1361_v29, 2  ;;  %vm2300_vm7 = vcmp.lt.s32.totalorder %v4488_v27, 0 }
 0x2c3   : > { %v2378_v51 = vand.u32 2147483647, %v2377_v46  ;;  %v1430_v30 = vsel %vm1428_vm4, %v1429_v6, %v4717_v45  ;;  %vm1363_vm8 = vcmp.eq.s32.totalorder %v1361_v29, 0  ;;  %vm1362_vm9 = vcmp.lt.s32.totalorder %v1361_v29, 2 }
 0x2c4   : > { %v1431_v0 = vadd.s32 %v1430_v30, %v1426_v32  ;;  %vm4743_vm10 = vcmp.le.f32.partialorder %v2298_v21, 0.7853982  ;;  %v2438_v43 = vsub.f32 0.0, %v2419_v50  ;;  %v2384_v55 = vsub.s32 4, %v4651_v16 }
 0x2c5   : > { %v2381_v40 = vmul.f32 %v2380_v52, %v2378_v51  ;;  %v1427_v45 = vadd.s32 %v4716_v3, %v4729_v24  ;;  %vm2390_vm0 = vweird.f32 %v4488_v27  ;;  %v388_v46 = vadd.f32 %v4267_v31, %v2995_v38 }
 0x2c6   : > { %v2866_v33 = vpop.eup %2865  ;;  %v1432_v13 = vadd.s32 536870912, %v1431_v0  ;;  %v2385_v17 = vsel %vm2300_vm7, %v2384_v55, %v4651_v16  ;;  %v2475_v28 = vmul.f32 1.442695, %v2438_v43  ;;  %vm1373_vm1 = vcmp.lt.s32.totalorder %v4622_v53, 0 }
 0x2c7   : > { %v2868_v62 = vpop.eup %2867  ;;  %v1367_v25 = vxor.u32 2147483648, %v2866_v33  ;;  %v2382_v10 = vxor.u32 2147483648, %v2381_v40  ;;  %v2387_v36 = vsel %vm4743_vm10, 0, %v2385_v17  ;;  %v2410_v51 = vmul.f32 %v388_v46, %v388_v46 }
 0x2c8   : > { %v1364_v42 = vxor.u32 2147483648, %v2868_v62  ;;  %v1433_v12 = vshrl.u32 %v1432_v13, 30  ;;  %v2870_v56 = vpop.eup %2869  ;;  %v2391_v34 = vand.u32 3, %v2387_v36  ;;  %vm1372_vm2 = vcmp.le.f32.partialorder %v1371_v7, 0.7853982 }
 0x2c9   : > { %v1368_v54 = vsel %vm1366_vm6, %v1367_v25, %v2868_v62  ;;  %v2383_v58 = vsel %vm2300_vm7, %v2382_v10, %v2381_v40  ;;  %vm1463_vm6 = vweird.f32 %v4622_v53 }
 0x2ca   : > { %v1365_v63 = vsel %vm1363_vm8, %v2866_v33, %v1364_v42  ;;  %v2386_v26 = vsel %vm4743_vm10, %v4488_v27, %v2383_v58  ;;  %v1434_v39 = vshll.u32 %v1433_v12, 30  ;;  %vm2396_vm11 = vcmp.eq.s32.totalorder %v2391_v34, 2 }
 0x2cb   : > { %v1369_v15 = vsel %vm1362_vm9, %v1365_v63, %v1368_v54  ;;  %2871 = vcosq.f32 %v2386_v26  ;;  %vm2392_vm13 = vcmp.lt.s32.totalorder %v2391_v34, 2  ;;  %vm2393_vm15 = vcmp.eq.s32.totalorder %v2391_v34, 0 }
 0x2cc   : > { %v1370_v1 = vsel %vm1360_vm5, nan, %v1369_v15  ;;  %2873 = vsinq.f32 %v2386_v26  ;;  %v1435_v19 = vsub.s32 %v1431_v0, %v1434_v39  ;;  %v1457_v32 = vsub.s32 4, %v1433_v12 }
 0x2cd   : > { %v2485_v21 = vmul.f32 %v2870_v56, %v1370_v1  ;;  %2875 = vpow2.f32 %v2475_v28  ;;  %v2429_v33 = vsub.f32 0.0, %v2410_v51 }
 0x2ce   : > { %v1437_v9 = vsub.s32 0, %v1435_v19  ;;  %v1458_v50 = vsel %vm1373_vm1, %v1457_v32, %v1433_v12 }
 0x2cf   : > { %2505 = vst.msk [vmem:[%s3269_s27 + $0x40] sm:$0xff] %vm2496_vm14, %v2485_v21  ;;  %v2457_v62 = vmul.f32 1.442695, %v2429_v33  ;;  %v1460_v38 = vsel %vm1372_vm2, 0, %v1458_v50 }
 0x2d0   : > { %v2635_v4 = vmin.u32 %v1437_v9, %v1435_v19  ;;  %v1464_v31 = vand.u32 3, %v1460_v38 }
 0x2d2   : > { %v1439_v44 = vclz %v2635_v4  ;;  %vm1469_vm3 = vcmp.eq.s32.totalorder %v1464_v31, 2  ;;  %vm1466_vm4 = vcmp.eq.s32.totalorder %v1464_v31, 0  ;;  %vm1465_vm5 = vcmp.lt.s32.totalorder %v1464_v31, 2 }
 0x2d4   : > { %v2636_v48 = vadd.s32 4294967294, %v1439_v44 }
 0x2d5   : > { %v2872_v41 = vpop.eup %2871 }
 0x2d6   : > { %v2874_v61 = vpop.eup %2873  ;;  %v2397_v35 = vxor.u32 2147483648, %v2872_v41  ;;  %vm2637_vm12 = vcmp.lt.s32.totalorder %v2636_v48, 0 }
 0x2d7   : > { %v2394_v57 = vxor.u32 2147483648, %v2874_v61  ;;  %v1442_v18 = vsel %vm2637_vm12, 0, %v2636_v48  ;;  %v2876_v14 = vpop.eup %2875 }
 0x2d8   : > { %v2398_v16 = vsel %vm2396_vm11, %v2397_v35, %v2874_v61  ;;  %v1443_v49 = vsub.s32 32, %v1442_v18  ;;  %v1447_v20 = vsub.s32 4294967266, %v1442_v18  ;;  %v1444_v5 = vshll.u32 %v1435_v19, %v1442_v18 }
 0x2d9   : > { %v2395_v22 = vsel %vm2393_vm15, %v2872_v41, %v2394_v57 }
 0x2da   : > { %v2399_v47 = vsel %vm2392_vm13, %v2395_v22, %v2398_v16  ;;  %v1445_v11 = vshrl.u32 %v1427_v45, %v1443_v49  ;;  %v1448_v59 = vadd.s32 127, %v1447_v20 }
 0x2db   : > { %v2400_v37 = vsel %vm2390_vm0, nan, %v2399_v47 }
 0x2dc   : > { %v2495_v8 = vmul.f32 %v2876_v14, %v2400_v37  ;;  %v1446_v23 = vor.u32 %v1445_v11, %v1444_v5  ;;  %v1449_v6 = vshll.u32 %v1448_v59, 23 }
 0x2de   : > { %2515 = vst.msk [vmem:[%s3269_s27 + $0x90] sm:$0xff] %vm2496_vm14, %v2495_v8  ;;  %v1450_v2 = vor.u32 4788187, %v1449_v6  ;;  %v1453_v24 = vcvt.s32.f32 %v1446_v23 }
 0x2e0   : > { %v1451_v3 = vand.u32 2147483647, %v1450_v2 }
 0x2e2   : > { %v1454_v29 = vmul.f32 %v1453_v24, %v1451_v3 }
 0x2e4   : > { %v1455_v27 = vxor.u32 2147483648, %v1454_v29 }
 0x2e6   : > { %v1456_v52 = vsel %vm1373_vm1, %v1455_v27, %v1454_v29 }
 0x2e7   : > { %v1459_v30 = vsel %vm1372_vm2, %v4622_v53, %v1456_v52 }
 0x2e8   : > { %2877 = vcosq.f32 %v1459_v30 }
 0x2e9   : > { %2879 = vsinq.f32 %v1459_v30 }
 0x2ea   : > { %2881 = vpow2.f32 %v2457_v62 }
 0x2f2   : > { %v2878_v25 = vpop.eup %2877 }
 0x2f3   : > { %v2880_v40 = vpop.eup %2879  ;;  %v1470_v0 = vxor.u32 2147483648, %v2878_v25 }
 0x2f4   : > { %v1467_v42 = vxor.u32 2147483648, %v2880_v40  ;;  %v2882_v13 = vpop.eup %2881 }
 0x2f5   : > { %v1471_v7 = vsel %vm1469_vm3, %v1470_v0, %v2880_v40 }
 0x2f6   : > { %v1468_v54 = vsel %vm1466_vm4, %v2878_v25, %v1467_v42 }
 0x2f7   : > { %v1472_v10 = vsel %vm1465_vm5, %v1468_v54, %v1471_v7 }
 0x2f8   : > { %v1473_v63 = vsel %vm1463_vm6, nan, %v1472_v10 }
 0x2f9   : > { %v2486_v60 = vmul.f32 %v2882_v13, %v1473_v63 }
 0x2fb   : > { %2506 = vst.msk [vmem:[%s3269_s27 + $0x48] sm:$0xff] %vm2496_vm14, %v2486_v60 }
 0x2fc PF: > { %s13_s12 = sadd.s32 1, %s2889_s12  }
 0x2fd   : > { %p10_p4 = scmp.ge.s32.totalorder %s13_s12, 4  }
 0x2ff   :  { %12 = sbr.rel (!%p10_p4) target bundleno = 1 (0x1), region = 62 }

</bundles_post_ra>
